<compile_context>
chip_gen: v5e
topology: v5e:2x2
jax: 0.10.0
libtpu: 0.0.40
codegen_flags: <defaults>
</compile_context>

<pallas_src>
import functools
import math

import jax
import jax.numpy as jnp
from jax.experimental import pallas as pl
from jax.experimental.pallas import tpu as pltpu

COMPUTE_DTYPE = jnp.bfloat16   # MXU-native; f32 accumulation inside kernels
LANE = 128


def _round_up(x, m):
    return (x + m - 1) // m * m


# ----------------------------------------------------------------------------
# Pallas kernels: one ST-GCN layer (conv -> graph aggregation -> bias -> relu)
# ----------------------------------------------------------------------------
def _layer_body(x_ref, wc_ref, p_ref, b_ref, *, k_dim, cout, unroll_conv):
    """Shared body.

    x_ref : (rows, cin)           bf16, rows = tr*V with v-minor row order
    wc_ref: (cin, k_dim*cout)     bf16, 1x1-conv weight, lanes = (k major, o)
    p_ref : (k_dim, rows, rows)   bf16, block-diag I_tr (x) A_k^T  (graph agg)
    b_ref : (rows, cout)          f32,  bias already folded through A
    returns relu(sum_k P_k @ (x @ W_k) + b)   as f32 (rows, cout)
    """
    x = x_ref[...]
    z = b_ref[...]                                       # f32 accumulator
    for k in range(k_dim):
        w_k = wc_ref[:, k * cout:(k + 1) * cout]         # (cin, cout), 128-aligned
        if unroll_conv:
            # Tiny Cin (first layer, Cin=3): VPU broadcast-FMA instead of a
            # contraction-3 MXU matmul.
            y_k = jnp.zeros_like(z)
            for c in range(x.shape[1]):
                y_k = y_k + (x[:, c:c + 1].astype(jnp.float32)
                             * w_k[c:c + 1, :].astype(jnp.float32))
        else:
            y_k = jnp.dot(x, w_k, preferred_element_type=jnp.float32)
        # Graph aggregation over vertices: block-diagonal matmul on the MXU.
        z = z + jnp.dot(p_ref[k], y_k.astype(p_ref.dtype),
                        preferred_element_type=jnp.float32)
    return jnp.maximum(z, 0.0)


def _gcn_layer_kernel(x_ref, wc_ref, p_ref, b_ref, o_ref,
                      *, k_dim, cout, unroll_conv):
    act = _layer_body(x_ref, wc_ref, p_ref, b_ref,
                      k_dim=k_dim, cout=cout, unroll_conv=unroll_conv)
    o_ref[...] = act.astype(o_ref.dtype)


def _gcn_layer_fcn_kernel(x_ref, wc_ref, p_ref, b_ref, wf_ref, bf_ref,
                          o_ref, lg_ref, *, k_dim, cout, unroll_conv):
    """Last layer: graph conv + relu, plus the fused 1x1 `fcn` classifier."""
    act = _layer_body(x_ref, wc_ref, p_ref, b_ref,
                      k_dim=k_dim, cout=cout, unroll_conv=unroll_conv)
    o_ref[...] = act.astype(o_ref.dtype)
    lg_ref[...] = (jnp.dot(act.astype(wf_ref.dtype), wf_ref[...],
                           preferred_element_type=jnp.float32)
                   + bf_ref[...]).astype(lg_ref.dtype)


def gcn_layer(x, layer, *, rows_per_block, fcn=None):
    """Run one prepared GCN layer over (rows, cin) bf16 activations."""
    rows, cin = x.shape
    k_dim, cout = layer["k_dim"], layer["cout"]
    assert rows % rows_per_block == 0
    grid = (rows // rows_per_block,)
    unroll_conv = cin <= 8

    in_specs = [
        pl.BlockSpec((rows_per_block, cin), lambda i: (i, 0)),
        pl.BlockSpec((cin, k_dim * cout), lambda i: (0, 0)),
        pl.BlockSpec((k_dim, rows_per_block, rows_per_block),
                     lambda i: (0, 0, 0)),
        pl.BlockSpec((rows_per_block, cout), lambda i: (0, 0)),
    ]
    args = [x, layer["wc"], layer["p"], layer["bias"]]
    act_spec = pl.BlockSpec((rows_per_block, cout), lambda i: (i, 0))

    if fcn is None:
        kernel = functools.partial(_gcn_layer_kernel, k_dim=k_dim, cout=cout,
                                   unroll_conv=unroll_conv)
        out_shape = jax.ShapeDtypeStruct((rows, cout), COMPUTE_DTYPE)
        out_specs = act_spec
    else:
        wf, bf = fcn
        ncls_pad = wf.shape[1]
        in_specs += [
            pl.BlockSpec((cout, ncls_pad), lambda i: (0, 0)),
            pl.BlockSpec((1, ncls_pad), lambda i: (0, 0)),
        ]
        args += [wf, bf]
        kernel = functools.partial(_gcn_layer_fcn_kernel, k_dim=k_dim,
                                   cout=cout, unroll_conv=unroll_conv)
        out_shape = (jax.ShapeDtypeStruct((rows, cout), COMPUTE_DTYPE),
                     jax.ShapeDtypeStruct((rows, ncls_pad), jnp.float32))
        out_specs = (act_spec,
                     pl.BlockSpec((rows_per_block, ncls_pad),
                                  lambda i: (i, 0)))

    return pl.pallas_call(
        kernel,
        out_shape=out_shape,
        grid_spec=pltpu.PrefetchScalarGridSpec(
            num_scalar_prefetch=0,
            grid=grid,
            in_specs=in_specs,
            out_specs=out_specs,
        ),
        compiler_params=pltpu.CompilerParams(
            dimension_semantics=("parallel",),
            vmem_limit_bytes=32 * 1024 * 1024,   # safe on v5e/v6e/v7x; footprint << this
        ),
    )(*args)


# ----------------------------------------------------------------------------
# Parameters / graph (deterministic, synthetic)
# ----------------------------------------------------------------------------
GCN_CHANNELS = [(None, 64), (64, 128), (128, 128), (128, 256), (256, 256)]


def build_graph_adjacency(v):
    """Synthetic 'spatial'-partitioned adjacency of a chain graph: (3, V, V)."""
    eye = jnp.eye(v, dtype=jnp.float32)
    fwd = jnp.eye(v, k=1, dtype=jnp.float32)
    bwd = jnp.eye(v, k=-1, dtype=jnp.float32)

    def norm(a):
        deg = a.sum(axis=0)
        dinv = jnp.where(deg > 0, 1.0 / jnp.maximum(deg, 1e-6), 0.0)
        return a * dinv[None, :]

    return jnp.stack([norm(eye), norm(fwd), norm(bwd)], axis=0)


def init_params(key, in_channels, num_class, v, k_dim):
    params = {"gcn": [], "edge_importance": []}
    channels = [(in_channels if cin is None else cin, cout)
                for cin, cout in GCN_CHANNELS]
    for cin, cout in channels:
        key, kw, kb = jax.random.split(key, 3)
        bound = 1.0 / math.sqrt(cin)      # PyTorch 1x1-conv default bound
        w = jax.random.uniform(kw, (k_dim, cin, cout), jnp.float32, -bound, bound)
        b = jax.random.uniform(kb, (k_dim, cout), jnp.float32, -bound, bound)
        params["gcn"].append((w, b))
        params["edge_importance"].append(jnp.ones((k_dim, v, v), jnp.float32))

    cbn = in_channels * v
    params["data_bn"] = {
        "gamma": jnp.ones((cbn,), jnp.float32),
        "beta": jnp.zeros((cbn,), jnp.float32),
        "mean": jnp.zeros((cbn,), jnp.float32),
        "var": jnp.ones((cbn,), jnp.float32),
    }

    key, kw, kb = jax.random.split(key, 3)
    bound = 1.0 / math.sqrt(256)
    params["fcn_w"] = jax.random.uniform(kw, (256, num_class), jnp.float32,
                                         -bound, bound)
    params["fcn_b"] = jax.random.uniform(kb, (1, num_class), jnp.float32,
                                         -bound, bound)
    return params


# ----------------------------------------------------------------------------
# One-time parameter preparation (hoisted out of the forward pass)
# ----------------------------------------------------------------------------
def _choose_tr(r_groups, v):
    """Rows per block = tr*v.  Target ~256 rows (one v6e/v7x MXU tile, and keeps
    the block-diagonal aggregation matmul from bloating), keep >= 2 grid blocks
    when the problem allows (v7x megacore), respect the (8,128) constraint."""
    tr = max(1, 256 // v)
    while tr > 1 and _round_up(r_groups, tr) // tr < 2:
        tr //= 2
    while (tr * v) % 8 != 0:
        tr *= 2
    return tr


def prepare_params(params, A, *, r_groups, v):
    """Fold A (and edge importance) into small per-layer constants consumed by
    the Pallas layer kernel.  No O(V^2*Cin*Cout) fused weights are built; all
    prepared weights are bf16 and built exactly once."""
    k_dim = A.shape[0]
    tr = _choose_tr(r_groups, v)
    rpb = tr * v
    eye_tr = jnp.eye(tr, dtype=jnp.float32)

    layers = []
    prev_cout_p = None
    for (w, b), imp in zip(params["gcn"], params["edge_importance"]):
        a_eff = A * imp                                   # (K, V, V)
        _, cin, cout = w.shape
        cin_p = cin if prev_cout_p is None else prev_cout_p
        cout_p = _round_up(cout, LANE)                    # lane-dense channels
        # conv weight  wc[c, (k, o)] = w[k, c, o], zero-padded channels
        wc = jnp.zeros((cin_p, k_dim, cout_p), jnp.float32)
        wc = wc.at[:cin, :, :cout].set(jnp.transpose(w, (1, 0, 2)))
        wc = wc.reshape(cin_p, k_dim * cout_p)
        # block-diagonal graph-aggregation matrices  P_k = I_tr (x) A_k^T
        p = jnp.stack([jnp.kron(eye_tr, a_eff[k].T) for k in range(k_dim)])
        # bias folded through the aggregation: bias[w, o] = sum_{k,v} A[k,v,w] b[k,o]
        bias = jnp.zeros((v, cout_p), jnp.float32)
        bias = bias.at[:, :cout].set(jnp.einsum('kvw,ko->wo', a_eff, b))
        layers.append(dict(
            wc=wc.astype(COMPUTE_DTYPE),
            p=p.astype(COMPUTE_DTYPE),
            bias=jnp.tile(bias, (tr, 1)),                 # (rpb, cout_p) f32
            k_dim=k_dim, cout=cout_p, cout_true=cout,
        ))
        prev_cout_p = cout_p

    # data_bn (inference mode) -> per-(v, c) affine applied to the tiny input
    bn = params["data_bn"]
    eps = 1e-5
    cin0 = params["gcn"][0][0].shape[1]
    scale = (bn["gamma"] * jax.lax.rsqrt(bn["var"] + eps)).reshape(v, cin0)
    shift = bn["beta"].reshape(v, cin0) - bn["mean"].reshape(v, cin0) * scale

    # fcn (1x1 conv 256 -> num_class), lane-padded to a multiple of 128
    ncls = params["fcn_w"].shape[1]
    ncls_pad = _round_up(max(ncls, LANE), LANE)
    wf = jnp.zeros((prev_cout_p, ncls_pad), jnp.float32)
    wf = wf.at[:params["fcn_w"].shape[0], :ncls].set(params["fcn_w"])
    bf = jnp.zeros((1, ncls_pad), jnp.float32)
    bf = bf.at[:, :ncls].set(params["fcn_b"])

    return dict(layers=layers, bn_scale=scale, bn_shift=shift,
                fcn_w=wf.astype(COMPUTE_DTYPE), fcn_b=bf,
                tr=tr, rows_per_block=rpb, num_class=ncls)


# ----------------------------------------------------------------------------
# Model forward (glue: layout in XLA; hot path: Pallas layer kernels)
# ----------------------------------------------------------------------------
def model_forward(x, prep):
    """x: (N, C, T, V, M) f32.  Returns (output (N,ncls,T,V,M) f32,
    feature (N,256,T,V,M) bf16)."""
    n, c, t, v, m = x.shape
    r = n * m * t
    tr = prep["tr"]
    rpb = prep["rows_per_block"]
    r_pad = _round_up(r, tr)

    # (N, C, T, V, M) -> (N, M, T, V, C); data_bn inference affine per (v, c)
    xt = jnp.transpose(x, (0, 4, 2, 3, 1))
    xt = xt * prep["bn_scale"] + prep["bn_shift"]
    act = xt.reshape(r, v, c)
    if r_pad != r:
        act = jnp.pad(act, ((0, r_pad - r), (0, 0), (0, 0)))
    act = act.reshape(r_pad * v, c).astype(COMPUTE_DTYPE)

    layers = prep["layers"]
    for layer in layers[:-1]:
        act = gcn_layer(act, layer, rows_per_block=rpb)
    act, logits = gcn_layer(act, layers[-1], rows_per_block=rpb,
                            fcn=(prep["fcn_w"], prep["fcn_b"]))

    c_out = layers[-1]["cout_true"]
    ncls = prep["num_class"]
    act = act.reshape(r_pad, v, -1)[:r, :, :c_out]
    # feature kept in bf16 (avoids an extra f32 HBM round-trip); cast if needed.
    feature = jnp.transpose(act.reshape(n, m, t, v, c_out), (0, 4, 2, 3, 1))
    logits = logits.reshape(r_pad, v, -1)[:r, :, :ncls]
    output = jnp.transpose(logits.reshape(n, m, t, v, ncls), (0, 4, 2, 3, 1))
    return output, feature


# ----------------------------------------------------------------------------
# Pure-JAX f32 reference (for numerical validation)
# ----------------------------------------------------------------------------
def reference_forward(x, A, params):
    n, c, t, v, m = x.shape
    bn = params["data_bn"]
    eps = 1e-5
    scale = (bn["gamma"] * jax.lax.rsqrt(bn["var"] + eps)).reshape(v, c)
    shift = bn["beta"].reshape(v, c) - bn["mean"].reshape(v, c) * scale
    xt = jnp.transpose(x, (0, 4, 2, 3, 1)) * scale + shift       # (N,M,T,V,C)
    act = jnp.transpose(xt, (0, 1, 4, 2, 3)).reshape(n * m, c, t, v)
    for (w, b), imp in zip(params["gcn"], params["edge_importance"]):
        a_eff = A * imp
        y = jnp.einsum('nctv,kco->nkotv', act, w) + b[None, :, :, None, None]
        act = jnp.maximum(jnp.einsum('nkotv,kvw->notw', y, a_eff), 0.0)
    c_out = act.shape[1]
    feature = jnp.transpose(act.reshape(n, m, c_out, t, v), (0, 2, 3, 4, 1))
    logits = (jnp.einsum('nctv,cd->ndtv', act, params["fcn_w"])
              + params["fcn_b"].reshape(1, -1, 1, 1))
    output = jnp.transpose(logits.reshape(n, m, -1, t, v), (0, 2, 3, 4, 1))
    return output, feature


# ----------------------------------------------------------------------------
if __name__ == "__main__":
    key = jax.random.PRNGKey(0)
    N, C, T, V, M = 1, 3, 8, 16, 2      # small test shapes
    K = 3                               # spatial kernel size = A.shape[0]
    NUM_CLASS = 10

    kx, kp = jax.random.split(key)
    x = jax.random.normal(kx, (N, C, T, V, M), jnp.float32)
    A = build_graph_adjacency(V)
    params = init_params(kp, C, NUM_CLASS, V, K)

    # One-time parameter prep (outside the per-call forward).
    prep = prepare_params(params, A, r_groups=N * M * T, v=V)

    fwd = jax.jit(functools.partial(model_forward, prep=prep))
    output, feature = fwd(x)
    jax.block_until_ready((output, feature))

    assert output.shape == (N, NUM_CLASS, T, V, M), output.shape
    assert feature.shape == (N, 256, T, V, M), feature.shape
    assert bool(jnp.all(jnp.isfinite(output)))
    assert bool(jnp.all(jnp.isfinite(feature.astype(jnp.float32))))

    # Numerical check against the pure-JAX f32 reference (bf16 compute path).
    ref_out, ref_feat = jax.jit(reference_forward)(x, A, params)
    out_err = float(jnp.max(jnp.abs(output - ref_out))
                    / (jnp.max(jnp.abs(ref_out)) + 1e-6))
    feat_err = float(jnp.max(jnp.abs(feature.astype(jnp.float32) - ref_feat))
                     / (jnp.max(jnp.abs(ref_feat)) + 1e-6))
    assert out_err < 0.08 and feat_err < 0.08, (out_err, feat_err)

    print("KERNEL_OK")
</pallas_src>

<mosaic_0001>
module attributes {stable_mosaic.version = 11 : i64} {
  func.func @_gcn_layer_kernel(%arg0: i32, %arg1: memref<128x3xbf16, #tpu.memory_space<vmem>>, %arg2: memref<3x384xbf16, #tpu.memory_space<vmem>>, %arg3: memref<3x128x128xbf16, #tpu.memory_space<vmem>>, %arg4: memref<128x128xf32, #tpu.memory_space<vmem>>, %arg5: memref<128x128xbf16, #tpu.memory_space<vmem>>) attributes {dimension_semantics = [#tpu.dimension_semantics<parallel>], iteration_bounds = array<i64: 2>, scalar_prefetch = 0 : i64, scratch_operands = 0 : i64, tpu.core_type = #tpu.core_type<tc>, window_params = [{transform_indices = @transform_0, window_bounds = array<i64: 128, 3>}, {pipeline_mode = #tpu.pipeline_mode<synchronous>, transform_indices = @transform_1, window_bounds = array<i64: 3, 384>}, {pipeline_mode = #tpu.pipeline_mode<synchronous>, transform_indices = @transform_2, window_bounds = array<i64: 3, 128, 128>}, {pipeline_mode = #tpu.pipeline_mode<synchronous>, transform_indices = @transform_3, window_bounds = array<i64: 128, 128>}, {transform_indices = @transform_4, window_bounds = array<i64: 128, 128>}]} {
    %c0 = arith.constant 0 : index
    %c0_0 = arith.constant 0 : index
    %0 = vector.load %arg1[%c0, %c0_0] : memref<128x3xbf16, #tpu.memory_space<vmem>>, vector<128x3xbf16>
    %c0_1 = arith.constant 0 : index
    %c0_2 = arith.constant 0 : index
    %1 = vector.load %arg4[%c0_1, %c0_2] : memref<128x128xf32, #tpu.memory_space<vmem>>, vector<128x128xf32>
    %c0_3 = arith.constant 0 : index
    %c0_4 = arith.constant 0 : index
    %2 = vector.load %arg2[%c0_3, %c0_4] : memref<3x384xbf16, #tpu.memory_space<vmem>>, vector<3x128xbf16>
    %cst = arith.constant 0.000000e+00 : f32
    %3 = vector.broadcast %cst : f32 to vector<128x128xf32>
    %4 = vector.extract_strided_slice %0 {offsets = [0, 0], sizes = [128, 1], strides = [1, 1]} : vector<128x3xbf16> to vector<128x1xbf16>
    %5 = arith.extf %4 : vector<128x1xbf16> to vector<128x1xf32>
    %6 = vector.extract_strided_slice %2 {offsets = [0, 0], sizes = [1, 128], strides = [1, 1]} : vector<3x128xbf16> to vector<1x128xbf16>
    %7 = arith.extf %6 : vector<1x128xbf16> to vector<1x128xf32>
    %8 = vector.broadcast %5 : vector<128x1xf32> to vector<128x128xf32>
    %9 = vector.broadcast %7 : vector<1x128xf32> to vector<128x128xf32>
    %10 = arith.mulf %8, %9 : vector<128x128xf32>
    %11 = arith.addf %3, %10 : vector<128x128xf32>
    %12 = vector.extract_strided_slice %0 {offsets = [0, 1], sizes = [128, 1], strides = [1, 1]} : vector<128x3xbf16> to vector<128x1xbf16>
    %13 = arith.extf %12 : vector<128x1xbf16> to vector<128x1xf32>
    %14 = vector.extract_strided_slice %2 {offsets = [1, 0], sizes = [1, 128], strides = [1, 1]} : vector<3x128xbf16> to vector<1x128xbf16>
    %15 = arith.extf %14 : vector<1x128xbf16> to vector<1x128xf32>
    %16 = vector.broadcast %13 : vector<128x1xf32> to vector<128x128xf32>
    %17 = vector.broadcast %15 : vector<1x128xf32> to vector<128x128xf32>
    %18 = arith.mulf %16, %17 : vector<128x128xf32>
    %19 = arith.addf %11, %18 : vector<128x128xf32>
    %20 = vector.extract_strided_slice %0 {offsets = [0, 2], sizes = [128, 1], strides = [1, 1]} : vector<128x3xbf16> to vector<128x1xbf16>
    %21 = arith.extf %20 : vector<128x1xbf16> to vector<128x1xf32>
    %22 = vector.extract_strided_slice %2 {offsets = [2, 0], sizes = [1, 128], strides = [1, 1]} : vector<3x128xbf16> to vector<1x128xbf16>
    %23 = arith.extf %22 : vector<1x128xbf16> to vector<1x128xf32>
    %24 = vector.broadcast %21 : vector<128x1xf32> to vector<128x128xf32>
    %25 = vector.broadcast %23 : vector<1x128xf32> to vector<128x128xf32>
    %26 = arith.mulf %24, %25 : vector<128x128xf32>
    %27 = arith.addf %19, %26 : vector<128x128xf32>
    %c0_5 = arith.constant 0 : index
    %c0_6 = arith.constant 0 : index
    %c0_7 = arith.constant 0 : index
    %28 = vector.load %arg3[%c0_5, %c0_6, %c0_7] : memref<3x128x128xbf16, #tpu.memory_space<vmem>>, vector<1x128x128xbf16>
    %29 = vector.shape_cast %28 : vector<1x128x128xbf16> to vector<128x128xbf16>
    %30 = arith.truncf %27 : vector<128x128xf32> to vector<128x128xbf16>
    %cst_8 = arith.constant dense<0.000000e+00> : vector<128x128xf32>
    %31 = tpu.matmul %29, %30, %cst_8 {dimension_numbers = #tpu.dot_dimension_numbers<[1], [0], [0], [1], [0, 0, 1, 1], [], []>} : vector<128x128xbf16>, vector<128x128xbf16>, vector<128x128xf32> -> vector<128x128xf32>
    %32 = arith.addf %1, %31 : vector<128x128xf32>
    %c0_9 = arith.constant 0 : index
    %c128 = arith.constant 128 : index
    %33 = vector.load %arg2[%c0_9, %c128] : memref<3x384xbf16, #tpu.memory_space<vmem>>, vector<3x128xbf16>
    %cst_10 = arith.constant 0.000000e+00 : f32
    %34 = vector.broadcast %cst_10 : f32 to vector<128x128xf32>
    %35 = vector.extract_strided_slice %0 {offsets = [0, 0], sizes = [128, 1], strides = [1, 1]} : vector<128x3xbf16> to vector<128x1xbf16>
    %36 = arith.extf %35 : vector<128x1xbf16> to vector<128x1xf32>
    %37 = vector.extract_strided_slice %33 {offsets = [0, 0], sizes = [1, 128], strides = [1, 1]} : vector<3x128xbf16> to vector<1x128xbf16>
    %38 = arith.extf %37 : vector<1x128xbf16> to vector<1x128xf32>
    %39 = vector.broadcast %36 : vector<128x1xf32> to vector<128x128xf32>
    %40 = vector.broadcast %38 : vector<1x128xf32> to vector<128x128xf32>
    %41 = arith.mulf %39, %40 : vector<128x128xf32>
    %42 = arith.addf %34, %41 : vector<128x128xf32>
    %43 = vector.extract_strided_slice %0 {offsets = [0, 1], sizes = [128, 1], strides = [1, 1]} : vector<128x3xbf16> to vector<128x1xbf16>
    %44 = arith.extf %43 : vector<128x1xbf16> to vector<128x1xf32>
    %45 = vector.extract_strided_slice %33 {offsets = [1, 0], sizes = [1, 128], strides = [1, 1]} : vector<3x128xbf16> to vector<1x128xbf16>
    %46 = arith.extf %45 : vector<1x128xbf16> to vector<1x128xf32>
    %47 = vector.broadcast %44 : vector<128x1xf32> to vector<128x128xf32>
    %48 = vector.broadcast %46 : vector<1x128xf32> to vector<128x128xf32>
    %49 = arith.mulf %47, %48 : vector<128x128xf32>
    %50 = arith.addf %42, %49 : vector<128x128xf32>
    %51 = vector.extract_strided_slice %0 {offsets = [0, 2], sizes = [128, 1], strides = [1, 1]} : vector<128x3xbf16> to vector<128x1xbf16>
    %52 = arith.extf %51 : vector<128x1xbf16> to vector<128x1xf32>
    %53 = vector.extract_strided_slice %33 {offsets = [2, 0], sizes = [1, 128], strides = [1, 1]} : vector<3x128xbf16> to vector<1x128xbf16>
    %54 = arith.extf %53 : vector<1x128xbf16> to vector<1x128xf32>
    %55 = vector.broadcast %52 : vector<128x1xf32> to vector<128x128xf32>
    %56 = vector.broadcast %54 : vector<1x128xf32> to vector<128x128xf32>
    %57 = arith.mulf %55, %56 : vector<128x128xf32>
    %58 = arith.addf %50, %57 : vector<128x128xf32>
    %c1 = arith.constant 1 : index
    %c0_11 = arith.constant 0 : index
    %c0_12 = arith.constant 0 : index
    %59 = vector.load %arg3[%c1, %c0_11, %c0_12] : memref<3x128x128xbf16, #tpu.memory_space<vmem>>, vector<1x128x128xbf16>
    %60 = vector.shape_cast %59 : vector<1x128x128xbf16> to vector<128x128xbf16>
    %61 = arith.truncf %58 : vector<128x128xf32> to vector<128x128xbf16>
    %cst_13 = arith.constant dense<0.000000e+00> : vector<128x128xf32>
    %62 = tpu.matmul %60, %61, %cst_13 {dimension_numbers = #tpu.dot_dimension_numbers<[1], [0], [0], [1], [0, 0, 1, 1], [], []>} : vector<128x128xbf16>, vector<128x128xbf16>, vector<128x128xf32> -> vector<128x128xf32>
    %63 = arith.addf %32, %62 : vector<128x128xf32>
    %c0_14 = arith.constant 0 : index
    %c256 = arith.constant 256 : index
    %64 = vector.load %arg2[%c0_14, %c256] : memref<3x384xbf16, #tpu.memory_space<vmem>>, vector<3x128xbf16>
    %cst_15 = arith.constant 0.000000e+00 : f32
    %65 = vector.broadcast %cst_15 : f32 to vector<128x128xf32>
    %66 = vector.extract_strided_slice %0 {offsets = [0, 0], sizes = [128, 1], strides = [1, 1]} : vector<128x3xbf16> to vector<128x1xbf16>
    %67 = arith.extf %66 : vector<128x1xbf16> to vector<128x1xf32>
    %68 = vector.extract_strided_slice %64 {offsets = [0, 0], sizes = [1, 128], strides = [1, 1]} : vector<3x128xbf16> to vector<1x128xbf16>
    %69 = arith.extf %68 : vector<1x128xbf16> to vector<1x128xf32>
    %70 = vector.broadcast %67 : vector<128x1xf32> to vector<128x128xf32>
    %71 = vector.broadcast %69 : vector<1x128xf32> to vector<128x128xf32>
    %72 = arith.mulf %70, %71 : vector<128x128xf32>
    %73 = arith.addf %65, %72 : vector<128x128xf32>
    %74 = vector.extract_strided_slice %0 {offsets = [0, 1], sizes = [128, 1], strides = [1, 1]} : vector<128x3xbf16> to vector<128x1xbf16>
    %75 = arith.extf %74 : vector<128x1xbf16> to vector<128x1xf32>
    %76 = vector.extract_strided_slice %64 {offsets = [1, 0], sizes = [1, 128], strides = [1, 1]} : vector<3x128xbf16> to vector<1x128xbf16>
    %77 = arith.extf %76 : vector<1x128xbf16> to vector<1x128xf32>
    %78 = vector.broadcast %75 : vector<128x1xf32> to vector<128x128xf32>
    %79 = vector.broadcast %77 : vector<1x128xf32> to vector<128x128xf32>
    %80 = arith.mulf %78, %79 : vector<128x128xf32>
    %81 = arith.addf %73, %80 : vector<128x128xf32>
    %82 = vector.extract_strided_slice %0 {offsets = [0, 2], sizes = [128, 1], strides = [1, 1]} : vector<128x3xbf16> to vector<128x1xbf16>
    %83 = arith.extf %82 : vector<128x1xbf16> to vector<128x1xf32>
    %84 = vector.extract_strided_slice %64 {offsets = [2, 0], sizes = [1, 128], strides = [1, 1]} : vector<3x128xbf16> to vector<1x128xbf16>
    %85 = arith.extf %84 : vector<1x128xbf16> to vector<1x128xf32>
    %86 = vector.broadcast %83 : vector<128x1xf32> to vector<128x128xf32>
    %87 = vector.broadcast %85 : vector<1x128xf32> to vector<128x128xf32>
    %88 = arith.mulf %86, %87 : vector<128x128xf32>
    %89 = arith.addf %81, %88 : vector<128x128xf32>
    %c2 = arith.constant 2 : index
    %c0_16 = arith.constant 0 : index
    %c0_17 = arith.constant 0 : index
    %90 = vector.load %arg3[%c2, %c0_16, %c0_17] : memref<3x128x128xbf16, #tpu.memory_space<vmem>>, vector<1x128x128xbf16>
    %91 = vector.shape_cast %90 : vector<1x128x128xbf16> to vector<128x128xbf16>
    %92 = arith.truncf %89 : vector<128x128xf32> to vector<128x128xbf16>
    %cst_18 = arith.constant dense<0.000000e+00> : vector<128x128xf32>
    %93 = tpu.matmul %91, %92, %cst_18 {dimension_numbers = #tpu.dot_dimension_numbers<[1], [0], [0], [1], [0, 0, 1, 1], [], []>} : vector<128x128xbf16>, vector<128x128xbf16>, vector<128x128xf32> -> vector<128x128xf32>
    %94 = arith.addf %63, %93 : vector<128x128xf32>
    %cst_19 = arith.constant 0.000000e+00 : f32
    %95 = vector.broadcast %cst_19 : f32 to vector<128x128xf32>
    %96 = arith.maximumf %94, %95 : vector<128x128xf32>
    %97 = arith.truncf %96 : vector<128x128xf32> to vector<128x128xbf16>
    %c0_20 = arith.constant 0 : index
    %c0_21 = arith.constant 0 : index
    %98 = vector.load %arg5[%c0_20, %c0_21] : memref<128x128xbf16, #tpu.memory_space<vmem>>, vector<128x128xbf16>
    tpu.vector_store %arg5[%c0_20, %c0_21], %97 {strides = array<i32>} : memref<128x128xbf16, #tpu.memory_space<vmem>>, vector<128x128xbf16>,
    return
  }
  func.func @transform_0(%arg0: i32) -> (i32, i32) {
    %c0_i32 = arith.constant 0 : i32
    %c0_i32_0 = arith.constant 0 : i32
    return %arg0, %c0_i32 : i32, i32
  }
  func.func @transform_1(%arg0: i32) -> (i32, i32) {
    %c0_i32 = arith.constant 0 : i32
    %c0_i32_0 = arith.constant 0 : i32
    %c0_i32_1 = arith.constant 0 : i32
    return %c0_i32, %c0_i32_0 : i32, i32
  }
  func.func @transform_2(%arg0: i32) -> (i32, i32, i32) {
    %c0_i32 = arith.constant 0 : i32
    %c0_i32_0 = arith.constant 0 : i32
    %c0_i32_1 = arith.constant 0 : i32
    %c0_i32_2 = arith.constant 0 : i32
    return %c0_i32, %c0_i32_0, %c0_i32_1 : i32, i32, i32
  }
  func.func @transform_3(%arg0: i32) -> (i32, i32) {
    %c0_i32 = arith.constant 0 : i32
    %c0_i32_0 = arith.constant 0 : i32
    %c0_i32_1 = arith.constant 0 : i32
    return %c0_i32, %c0_i32_0 : i32, i32
  }
  func.func @transform_4(%arg0: i32) -> (i32, i32) {
    %c0_i32 = arith.constant 0 : i32
    %c0_i32_0 = arith.constant 0 : i32
    return %arg0, %c0_i32 : i32, i32
  }
}

module attributes {stable_mosaic.version = 11 : i64} {
  func.func @_gcn_layer_kernel(%arg0: i32, %arg1: memref<128x128xbf16, #tpu.memory_space<vmem>>, %arg2: memref<128x384xbf16, #tpu.memory_space<vmem>>, %arg3: memref<3x128x128xbf16, #tpu.memory_space<vmem>>, %arg4: memref<128x128xf32, #tpu.memory_space<vmem>>, %arg5: memref<128x128xbf16, #tpu.memory_space<vmem>>) attributes {dimension_semantics = [#tpu.dimension_semantics<parallel>], iteration_bounds = array<i64: 2>, scalar_prefetch = 0 : i64, scratch_operands = 0 : i64, tpu.core_type = #tpu.core_type<tc>, window_params = [{transform_indices = @transform_0, window_bounds = array<i64: 128, 128>}, {pipeline_mode = #tpu.pipeline_mode<synchronous>, transform_indices = @transform_1, window_bounds = array<i64: 128, 384>}, {pipeline_mode = #tpu.pipeline_mode<synchronous>, transform_indices = @transform_2, window_bounds = array<i64: 3, 128, 128>}, {pipeline_mode = #tpu.pipeline_mode<synchronous>, transform_indices = @transform_3, window_bounds = array<i64: 128, 128>}, {transform_indices = @transform_4, window_bounds = array<i64: 128, 128>}]} {
    %c0 = arith.constant 0 : index
    %c0_0 = arith.constant 0 : index
    %0 = vector.load %arg1[%c0, %c0_0] : memref<128x128xbf16, #tpu.memory_space<vmem>>, vector<128x128xbf16>
    %c0_1 = arith.constant 0 : index
    %c0_2 = arith.constant 0 : index
    %1 = vector.load %arg4[%c0_1, %c0_2] : memref<128x128xf32, #tpu.memory_space<vmem>>, vector<128x128xf32>
    %c0_3 = arith.constant 0 : index
    %c0_4 = arith.constant 0 : index
    %2 = vector.load %arg2[%c0_3, %c0_4] : memref<128x384xbf16, #tpu.memory_space<vmem>>, vector<128x128xbf16>
    %cst = arith.constant dense<0.000000e+00> : vector<128x128xf32>
    %3 = tpu.matmul %0, %2, %cst {dimension_numbers = #tpu.dot_dimension_numbers<[1], [0], [0], [1], [0, 0, 1, 1], [], []>} : vector<128x128xbf16>, vector<128x128xbf16>, vector<128x128xf32> -> vector<128x128xf32>
    %c0_5 = arith.constant 0 : index
    %c0_6 = arith.constant 0 : index
    %c0_7 = arith.constant 0 : index
    %4 = vector.load %arg3[%c0_5, %c0_6, %c0_7] : memref<3x128x128xbf16, #tpu.memory_space<vmem>>, vector<1x128x128xbf16>
    %5 = vector.shape_cast %4 : vector<1x128x128xbf16> to vector<128x128xbf16>
    %6 = arith.truncf %3 : vector<128x128xf32> to vector<128x128xbf16>
    %cst_8 = arith.constant dense<0.000000e+00> : vector<128x128xf32>
    %7 = tpu.matmul %5, %6, %cst_8 {dimension_numbers = #tpu.dot_dimension_numbers<[1], [0], [0], [1], [0, 0, 1, 1], [], []>} : vector<128x128xbf16>, vector<128x128xbf16>, vector<128x128xf32> -> vector<128x128xf32>
    %8 = arith.addf %1, %7 : vector<128x128xf32>
    %c0_9 = arith.constant 0 : index
    %c128 = arith.constant 128 : index
    %9 = vector.load %arg2[%c0_9, %c128] : memref<128x384xbf16, #tpu.memory_space<vmem>>, vector<128x128xbf16>
    %cst_10 = arith.constant dense<0.000000e+00> : vector<128x128xf32>
    %10 = tpu.matmul %0, %9, %cst_10 {dimension_numbers = #tpu.dot_dimension_numbers<[1], [0], [0], [1], [0, 0, 1, 1], [], []>} : vector<128x128xbf16>, vector<128x128xbf16>, vector<128x128xf32> -> vector<128x128xf32>
    %c1 = arith.constant 1 : index
    %c0_11 = arith.constant 0 : index
    %c0_12 = arith.constant 0 : index
    %11 = vector.load %arg3[%c1, %c0_11, %c0_12] : memref<3x128x128xbf16, #tpu.memory_space<vmem>>, vector<1x128x128xbf16>
    %12 = vector.shape_cast %11 : vector<1x128x128xbf16> to vector<128x128xbf16>
    %13 = arith.truncf %10 : vector<128x128xf32> to vector<128x128xbf16>
    %cst_13 = arith.constant dense<0.000000e+00> : vector<128x128xf32>
    %14 = tpu.matmul %12, %13, %cst_13 {dimension_numbers = #tpu.dot_dimension_numbers<[1], [0], [0], [1], [0, 0, 1, 1], [], []>} : vector<128x128xbf16>, vector<128x128xbf16>, vector<128x128xf32> -> vector<128x128xf32>
    %15 = arith.addf %8, %14 : vector<128x128xf32>
    %c0_14 = arith.constant 0 : index
    %c256 = arith.constant 256 : index
    %16 = vector.load %arg2[%c0_14, %c256] : memref<128x384xbf16, #tpu.memory_space<vmem>>, vector<128x128xbf16>
    %cst_15 = arith.constant dense<0.000000e+00> : vector<128x128xf32>
    %17 = tpu.matmul %0, %16, %cst_15 {dimension_numbers = #tpu.dot_dimension_numbers<[1], [0], [0], [1], [0, 0, 1, 1], [], []>} : vector<128x128xbf16>, vector<128x128xbf16>, vector<128x128xf32> -> vector<128x128xf32>
    %c2 = arith.constant 2 : index
    %c0_16 = arith.constant 0 : index
    %c0_17 = arith.constant 0 : index
    %18 = vector.load %arg3[%c2, %c0_16, %c0_17] : memref<3x128x128xbf16, #tpu.memory_space<vmem>>, vector<1x128x128xbf16>
    %19 = vector.shape_cast %18 : vector<1x128x128xbf16> to vector<128x128xbf16>
    %20 = arith.truncf %17 : vector<128x128xf32> to vector<128x128xbf16>
    %cst_18 = arith.constant dense<0.000000e+00> : vector<128x128xf32>
    %21 = tpu.matmul %19, %20, %cst_18 {dimension_numbers = #tpu.dot_dimension_numbers<[1], [0], [0], [1], [0, 0, 1, 1], [], []>} : vector<128x128xbf16>, vector<128x128xbf16>, vector<128x128xf32> -> vector<128x128xf32>
    %22 = arith.addf %15, %21 : vector<128x128xf32>
    %cst_19 = arith.constant 0.000000e+00 : f32
    %23 = vector.broadcast %cst_19 : f32 to vector<128x128xf32>
    %24 = arith.maximumf %22, %23 : vector<128x128xf32>
    %25 = arith.truncf %24 : vector<128x128xf32> to vector<128x128xbf16>
    %c0_20 = arith.constant 0 : index
    %c0_21 = arith.constant 0 : index
    %26 = vector.load %arg5[%c0_20, %c0_21] : memref<128x128xbf16, #tpu.memory_space<vmem>>, vector<128x128xbf16>
    tpu.vector_store %arg5[%c0_20, %c0_21], %25 {strides = array<i32>} : memref<128x128xbf16, #tpu.memory_space<vmem>>, vector<128x128xbf16>,
    return
  }
  func.func @transform_0(%arg0: i32) -> (i32, i32) {
    %c0_i32 = arith.constant 0 : i32
    %c0_i32_0 = arith.constant 0 : i32
    return %arg0, %c0_i32 : i32, i32
  }
  func.func @transform_1(%arg0: i32) -> (i32, i32) {
    %c0_i32 = arith.constant 0 : i32
    %c0_i32_0 = arith.constant 0 : i32
    %c0_i32_1 = arith.constant 0 : i32
    return %c0_i32, %c0_i32_0 : i32, i32
  }
  func.func @transform_2(%arg0: i32) -> (i32, i32, i32) {
    %c0_i32 = arith.constant 0 : i32
    %c0_i32_0 = arith.constant 0 : i32
    %c0_i32_1 = arith.constant 0 : i32
    %c0_i32_2 = arith.constant 0 : i32
    return %c0_i32, %c0_i32_0, %c0_i32_1 : i32, i32, i32
  }
  func.func @transform_3(%arg0: i32) -> (i32, i32) {
    %c0_i32 = arith.constant 0 : i32
    %c0_i32_0 = arith.constant 0 : i32
    %c0_i32_1 = arith.constant 0 : i32
    return %c0_i32, %c0_i32_0 : i32, i32
  }
  func.func @transform_4(%arg0: i32) -> (i32, i32) {
    %c0_i32 = arith.constant 0 : i32
    %c0_i32_0 = arith.constant 0 : i32
    return %arg0, %c0_i32 : i32, i32
  }
}

module attributes {stable_mosaic.version = 11 : i64} {
  func.func @_gcn_layer_fcn_kernel(%arg0: i32, %arg1: memref<128x256xbf16, #tpu.memory_space<vmem>>, %arg2: memref<256x768xbf16, #tpu.memory_space<vmem>>, %arg3: memref<3x128x128xbf16, #tpu.memory_space<vmem>>, %arg4: memref<128x256xf32, #tpu.memory_space<vmem>>, %arg5: memref<256x128xbf16, #tpu.memory_space<vmem>>, %arg6: memref<1x128xf32, #tpu.memory_space<vmem>>, %arg7: memref<128x256xbf16, #tpu.memory_space<vmem>>, %arg8: memref<128x128xf32, #tpu.memory_space<vmem>>) attributes {dimension_semantics = [#tpu.dimension_semantics<parallel>], iteration_bounds = array<i64: 2>, scalar_prefetch = 0 : i64, scratch_operands = 0 : i64, tpu.core_type = #tpu.core_type<tc>, window_params = [{transform_indices = @transform_0, window_bounds = array<i64: 128, 256>}, {pipeline_mode = #tpu.pipeline_mode<synchronous>, transform_indices = @transform_1, window_bounds = array<i64: 256, 768>}, {pipeline_mode = #tpu.pipeline_mode<synchronous>, transform_indices = @transform_2, window_bounds = array<i64: 3, 128, 128>}, {pipeline_mode = #tpu.pipeline_mode<synchronous>, transform_indices = @transform_3, window_bounds = array<i64: 128, 256>}, {pipeline_mode = #tpu.pipeline_mode<synchronous>, transform_indices = @transform_4, window_bounds = array<i64: 256, 128>}, {pipeline_mode = #tpu.pipeline_mode<synchronous>, transform_indices = @transform_5, window_bounds = array<i64: 1, 128>}, {transform_indices = @transform_6, window_bounds = array<i64: 128, 256>}, {transform_indices = @transform_7, window_bounds = array<i64: 128, 128>}]} {
    %c0 = arith.constant 0 : index
    %c0_0 = arith.constant 0 : index
    %0 = vector.load %arg1[%c0, %c0_0] : memref<128x256xbf16, #tpu.memory_space<vmem>>, vector<128x256xbf16>
    %c0_1 = arith.constant 0 : index
    %c0_2 = arith.constant 0 : index
    %1 = vector.load %arg4[%c0_1, %c0_2] : memref<128x256xf32, #tpu.memory_space<vmem>>, vector<128x256xf32>
    %c0_3 = arith.constant 0 : index
    %c0_4 = arith.constant 0 : index
    %2 = vector.load %arg2[%c0_3, %c0_4] : memref<256x768xbf16, #tpu.memory_space<vmem>>, vector<256x256xbf16>
    %cst = arith.constant dense<0.000000e+00> : vector<128x256xf32>
    %3 = tpu.matmul %0, %2, %cst {dimension_numbers = #tpu.dot_dimension_numbers<[1], [0], [0], [1], [0, 0, 1, 1], [], []>} : vector<128x256xbf16>, vector<256x256xbf16>, vector<128x256xf32> -> vector<128x256xf32>
    %c0_5 = arith.constant 0 : index
    %c0_6 = arith.constant 0 : index
    %c0_7 = arith.constant 0 : index
    %4 = vector.load %arg3[%c0_5, %c0_6, %c0_7] : memref<3x128x128xbf16, #tpu.memory_space<vmem>>, vector<1x128x128xbf16>
    %5 = vector.shape_cast %4 : vector<1x128x128xbf16> to vector<128x128xbf16>
    %6 = arith.truncf %3 : vector<128x256xf32> to vector<128x256xbf16>
    %cst_8 = arith.constant dense<0.000000e+00> : vector<128x256xf32>
    %7 = tpu.matmul %5, %6, %cst_8 {dimension_numbers = #tpu.dot_dimension_numbers<[1], [0], [0], [1], [0, 0, 1, 1], [], []>} : vector<128x128xbf16>, vector<128x256xbf16>, vector<128x256xf32> -> vector<128x256xf32>
    %8 = arith.addf %1, %7 : vector<128x256xf32>
    %c0_9 = arith.constant 0 : index
    %c256 = arith.constant 256 : index
    %9 = vector.load %arg2[%c0_9, %c256] : memref<256x768xbf16, #tpu.memory_space<vmem>>, vector<256x256xbf16>
    %cst_10 = arith.constant dense<0.000000e+00> : vector<128x256xf32>
    %10 = tpu.matmul %0, %9, %cst_10 {dimension_numbers = #tpu.dot_dimension_numbers<[1], [0], [0], [1], [0, 0, 1, 1], [], []>} : vector<128x256xbf16>, vector<256x256xbf16>, vector<128x256xf32> -> vector<128x256xf32>
    %c1 = arith.constant 1 : index
    %c0_11 = arith.constant 0 : index
    %c0_12 = arith.constant 0 : index
    %11 = vector.load %arg3[%c1, %c0_11, %c0_12] : memref<3x128x128xbf16, #tpu.memory_space<vmem>>, vector<1x128x128xbf16>
    %12 = vector.shape_cast %11 : vector<1x128x128xbf16> to vector<128x128xbf16>
    %13 = arith.truncf %10 : vector<128x256xf32> to vector<128x256xbf16>
    %cst_13 = arith.constant dense<0.000000e+00> : vector<128x256xf32>
    %14 = tpu.matmul %12, %13, %cst_13 {dimension_numbers = #tpu.dot_dimension_numbers<[1], [0], [0], [1], [0, 0, 1, 1], [], []>} : vector<128x128xbf16>, vector<128x256xbf16>, vector<128x256xf32> -> vector<128x256xf32>
    %15 = arith.addf %8, %14 : vector<128x256xf32>
    %c0_14 = arith.constant 0 : index
    %c512 = arith.constant 512 : index
    %16 = vector.load %arg2[%c0_14, %c512] : memref<256x768xbf16, #tpu.memory_space<vmem>>, vector<256x256xbf16>
    %cst_15 = arith.constant dense<0.000000e+00> : vector<128x256xf32>
    %17 = tpu.matmul %0, %16, %cst_15 {dimension_numbers = #tpu.dot_dimension_numbers<[1], [0], [0], [1], [0, 0, 1, 1], [], []>} : vector<128x256xbf16>, vector<256x256xbf16>, vector<128x256xf32> -> vector<128x256xf32>
    %c2 = arith.constant 2 : index
    %c0_16 = arith.constant 0 : index
    %c0_17 = arith.constant 0 : index
    %18 = vector.load %arg3[%c2, %c0_16, %c0_17] : memref<3x128x128xbf16, #tpu.memory_space<vmem>>, vector<1x128x128xbf16>
    %19 = vector.shape_cast %18 : vector<1x128x128xbf16> to vector<128x128xbf16>
    %20 = arith.truncf %17 : vector<128x256xf32> to vector<128x256xbf16>
    %cst_18 = arith.constant dense<0.000000e+00> : vector<128x256xf32>
    %21 = tpu.matmul %19, %20, %cst_18 {dimension_numbers = #tpu.dot_dimension_numbers<[1], [0], [0], [1], [0, 0, 1, 1], [], []>} : vector<128x128xbf16>, vector<128x256xbf16>, vector<128x256xf32> -> vector<128x256xf32>
    %22 = arith.addf %15, %21 : vector<128x256xf32>
    %cst_19 = arith.constant 0.000000e+00 : f32
    %23 = vector.broadcast %cst_19 : f32 to vector<128x256xf32>
    %24 = arith.maximumf %22, %23 : vector<128x256xf32>
    %25 = arith.truncf %24 : vector<128x256xf32> to vector<128x256xbf16>
    %c0_20 = arith.constant 0 : index
    %c0_21 = arith.constant 0 : index
    %26 = vector.load %arg7[%c0_20, %c0_21] : memref<128x256xbf16, #tpu.memory_space<vmem>>, vector<128x256xbf16>
    tpu.vector_store %arg7[%c0_20, %c0_21], %25 {strides = array<i32>} : memref<128x256xbf16, #tpu.memory_space<vmem>>, vector<128x256xbf16>,
    %27 = arith.truncf %24 : vector<128x256xf32> to vector<128x256xbf16>
    %c0_22 = arith.constant 0 : index
    %c0_23 = arith.constant 0 : index
    %28 = vector.load %arg5[%c0_22, %c0_23] : memref<256x128xbf16, #tpu.memory_space<vmem>>, vector<256x128xbf16>
    %cst_24 = arith.constant dense<0.000000e+00> : vector<128x128xf32>
    %29 = tpu.matmul %27, %28, %cst_24 {dimension_numbers = #tpu.dot_dimension_numbers<[1], [0], [0], [1], [0, 0, 1, 1], [], []>} : vector<128x256xbf16>, vector<256x128xbf16>, vector<128x128xf32> -> vector<128x128xf32>
    %c0_25 = arith.constant 0 : index
    %c0_26 = arith.constant 0 : index
    %30 = vector.load %arg6[%c0_25, %c0_26] : memref<1x128xf32, #tpu.memory_space<vmem>>, vector<1x128xf32>
    %31 = vector.broadcast %30 : vector<1x128xf32> to vector<128x128xf32>
    %32 = arith.addf %29, %31 : vector<128x128xf32>
    %c0_27 = arith.constant 0 : index
    %c0_28 = arith.constant 0 : index
    %33 = vector.load %arg8[%c0_27, %c0_28] : memref<128x128xf32, #tpu.memory_space<vmem>>, vector<128x128xf32>
    tpu.vector_store %arg8[%c0_27, %c0_28], %32 {strides = array<i32>} : memref<128x128xf32, #tpu.memory_space<vmem>>, vector<128x128xf32>,
    return
  }
  func.func @transform_0(%arg0: i32) -> (i32, i32) {
    %c0_i32 = arith.constant 0 : i32
    %c0_i32_0 = arith.constant 0 : i32
    return %arg0, %c0_i32 : i32, i32
  }
  func.func @transform_1(%arg0: i32) -> (i32, i32) {
    %c0_i32 = arith.constant 0 : i32
    %c0_i32_0 = arith.constant 0 : i32
    %c0_i32_1 = arith.constant 0 : i32
    return %c0_i32, %c0_i32_0 : i32, i32
  }
  func.func @transform_2(%arg0: i32) -> (i32, i32, i32) {
    %c0_i32 = arith.constant 0 : i32
    %c0_i32_0 = arith.constant 0 : i32
    %c0_i32_1 = arith.constant 0 : i32
    %c0_i32_2 = arith.constant 0 : i32
    return %c0_i32, %c0_i32_0, %c0_i32_1 : i32, i32, i32
  }
  func.func @transform_3(%arg0: i32) -> (i32, i32) {
    %c0_i32 = arith.constant 0 : i32
    %c0_i32_0 = arith.constant 0 : i32
    %c0_i32_1 = arith.constant 0 : i32
    return %c0_i32, %c0_i32_0 : i32, i32
  }
  func.func @transform_4(%arg0: i32) -> (i32, i32) {
    %c0_i32 = arith.constant 0 : i32
    %c0_i32_0 = arith.constant 0 : i32
    %c0_i32_1 = arith.constant 0 : i32
    return %c0_i32, %c0_i32_0 : i32, i32
  }
  func.func @transform_5(%arg0: i32) -> (i32, i32) {
    %c0_i32 = arith.constant 0 : i32
    %c0_i32_0 = arith.constant 0 : i32
    %c0_i32_1 = arith.constant 0 : i32
    return %c0_i32, %c0_i32_0 : i32, i32
  }
  func.func @transform_6(%arg0: i32) -> (i32, i32) {
    %c0_i32 = arith.constant 0 : i32
    %c0_i32_0 = arith.constant 0 : i32
    return %arg0, %c0_i32 : i32, i32
  }
  func.func @transform_7(%arg0: i32) -> (i32, i32) {
    %c0_i32 = arith.constant 0 : i32
    %c0_i32_0 = arith.constant 0 : i32
    return %arg0, %c0_i32 : i32, i32
  }
}

module attributes {stable_mosaic.version = 11 : i64} {
  func.func @_gcn_layer_kernel(%arg0: i32, %arg1: memref<128x128xbf16, #tpu.memory_space<vmem>>, %arg2: memref<128x768xbf16, #tpu.memory_space<vmem>>, %arg3: memref<3x128x128xbf16, #tpu.memory_space<vmem>>, %arg4: memref<128x256xf32, #tpu.memory_space<vmem>>, %arg5: memref<128x256xbf16, #tpu.memory_space<vmem>>) attributes {dimension_semantics = [#tpu.dimension_semantics<parallel>], iteration_bounds = array<i64: 2>, scalar_prefetch = 0 : i64, scratch_operands = 0 : i64, tpu.core_type = #tpu.core_type<tc>, window_params = [{transform_indices = @transform_0, window_bounds = array<i64: 128, 128>}, {pipeline_mode = #tpu.pipeline_mode<synchronous>, transform_indices = @transform_1, window_bounds = array<i64: 128, 768>}, {pipeline_mode = #tpu.pipeline_mode<synchronous>, transform_indices = @transform_2, window_bounds = array<i64: 3, 128, 128>}, {pipeline_mode = #tpu.pipeline_mode<synchronous>, transform_indices = @transform_3, window_bounds = array<i64: 128, 256>}, {transform_indices = @transform_4, window_bounds = array<i64: 128, 256>}]} {
    %c0 = arith.constant 0 : index
    %c0_0 = arith.constant 0 : index
    %0 = vector.load %arg1[%c0, %c0_0] : memref<128x128xbf16, #tpu.memory_space<vmem>>, vector<128x128xbf16>
    %c0_1 = arith.constant 0 : index
    %c0_2 = arith.constant 0 : index
    %1 = vector.load %arg4[%c0_1, %c0_2] : memref<128x256xf32, #tpu.memory_space<vmem>>, vector<128x256xf32>
    %c0_3 = arith.constant 0 : index
    %c0_4 = arith.constant 0 : index
    %2 = vector.load %arg2[%c0_3, %c0_4] : memref<128x768xbf16, #tpu.memory_space<vmem>>, vector<128x256xbf16>
    %cst = arith.constant dense<0.000000e+00> : vector<128x256xf32>
    %3 = tpu.matmul %0, %2, %cst {dimension_numbers = #tpu.dot_dimension_numbers<[1], [0], [0], [1], [0, 0, 1, 1], [], []>} : vector<128x128xbf16>, vector<128x256xbf16>, vector<128x256xf32> -> vector<128x256xf32>
    %c0_5 = arith.constant 0 : index
    %c0_6 = arith.constant 0 : index
    %c0_7 = arith.constant 0 : index
    %4 = vector.load %arg3[%c0_5, %c0_6, %c0_7] : memref<3x128x128xbf16, #tpu.memory_space<vmem>>, vector<1x128x128xbf16>
    %5 = vector.shape_cast %4 : vector<1x128x128xbf16> to vector<128x128xbf16>
    %6 = arith.truncf %3 : vector<128x256xf32> to vector<128x256xbf16>
    %cst_8 = arith.constant dense<0.000000e+00> : vector<128x256xf32>
    %7 = tpu.matmul %5, %6, %cst_8 {dimension_numbers = #tpu.dot_dimension_numbers<[1], [0], [0], [1], [0, 0, 1, 1], [], []>} : vector<128x128xbf16>, vector<128x256xbf16>, vector<128x256xf32> -> vector<128x256xf32>
    %8 = arith.addf %1, %7 : vector<128x256xf32>
    %c0_9 = arith.constant 0 : index
    %c256 = arith.constant 256 : index
    %9 = vector.load %arg2[%c0_9, %c256] : memref<128x768xbf16, #tpu.memory_space<vmem>>, vector<128x256xbf16>
    %cst_10 = arith.constant dense<0.000000e+00> : vector<128x256xf32>
    %10 = tpu.matmul %0, %9, %cst_10 {dimension_numbers = #tpu.dot_dimension_numbers<[1], [0], [0], [1], [0, 0, 1, 1], [], []>} : vector<128x128xbf16>, vector<128x256xbf16>, vector<128x256xf32> -> vector<128x256xf32>
    %c1 = arith.constant 1 : index
    %c0_11 = arith.constant 0 : index
    %c0_12 = arith.constant 0 : index
    %11 = vector.load %arg3[%c1, %c0_11, %c0_12] : memref<3x128x128xbf16, #tpu.memory_space<vmem>>, vector<1x128x128xbf16>
    %12 = vector.shape_cast %11 : vector<1x128x128xbf16> to vector<128x128xbf16>
    %13 = arith.truncf %10 : vector<128x256xf32> to vector<128x256xbf16>
    %cst_13 = arith.constant dense<0.000000e+00> : vector<128x256xf32>
    %14 = tpu.matmul %12, %13, %cst_13 {dimension_numbers = #tpu.dot_dimension_numbers<[1], [0], [0], [1], [0, 0, 1, 1], [], []>} : vector<128x128xbf16>, vector<128x256xbf16>, vector<128x256xf32> -> vector<128x256xf32>
    %15 = arith.addf %8, %14 : vector<128x256xf32>
    %c0_14 = arith.constant 0 : index
    %c512 = arith.constant 512 : index
    %16 = vector.load %arg2[%c0_14, %c512] : memref<128x768xbf16, #tpu.memory_space<vmem>>, vector<128x256xbf16>
    %cst_15 = arith.constant dense<0.000000e+00> : vector<128x256xf32>
    %17 = tpu.matmul %0, %16, %cst_15 {dimension_numbers = #tpu.dot_dimension_numbers<[1], [0], [0], [1], [0, 0, 1, 1], [], []>} : vector<128x128xbf16>, vector<128x256xbf16>, vector<128x256xf32> -> vector<128x256xf32>
    %c2 = arith.constant 2 : index
    %c0_16 = arith.constant 0 : index
    %c0_17 = arith.constant 0 : index
    %18 = vector.load %arg3[%c2, %c0_16, %c0_17] : memref<3x128x128xbf16, #tpu.memory_space<vmem>>, vector<1x128x128xbf16>
    %19 = vector.shape_cast %18 : vector<1x128x128xbf16> to vector<128x128xbf16>
    %20 = arith.truncf %17 : vector<128x256xf32> to vector<128x256xbf16>
    %cst_18 = arith.constant dense<0.000000e+00> : vector<128x256xf32>
    %21 = tpu.matmul %19, %20, %cst_18 {dimension_numbers = #tpu.dot_dimension_numbers<[1], [0], [0], [1], [0, 0, 1, 1], [], []>} : vector<128x128xbf16>, vector<128x256xbf16>, vector<128x256xf32> -> vector<128x256xf32>
    %22 = arith.addf %15, %21 : vector<128x256xf32>
    %cst_19 = arith.constant 0.000000e+00 : f32
    %23 = vector.broadcast %cst_19 : f32 to vector<128x256xf32>
    %24 = arith.maximumf %22, %23 : vector<128x256xf32>
    %25 = arith.truncf %24 : vector<128x256xf32> to vector<128x256xbf16>
    %c0_20 = arith.constant 0 : index
    %c0_21 = arith.constant 0 : index
    %26 = vector.load %arg5[%c0_20, %c0_21] : memref<128x256xbf16, #tpu.memory_space<vmem>>, vector<128x256xbf16>
    tpu.vector_store %arg5[%c0_20, %c0_21], %25 {strides = array<i32>} : memref<128x256xbf16, #tpu.memory_space<vmem>>, vector<128x256xbf16>,
    return
  }
  func.func @transform_0(%arg0: i32) -> (i32, i32) {
    %c0_i32 = arith.constant 0 : i32
    %c0_i32_0 = arith.constant 0 : i32
    return %arg0, %c0_i32 : i32, i32
  }
  func.func @transform_1(%arg0: i32) -> (i32, i32) {
    %c0_i32 = arith.constant 0 : i32
    %c0_i32_0 = arith.constant 0 : i32
    %c0_i32_1 = arith.constant 0 : i32
    return %c0_i32, %c0_i32_0 : i32, i32
  }
  func.func @transform_2(%arg0: i32) -> (i32, i32, i32) {
    %c0_i32 = arith.constant 0 : i32
    %c0_i32_0 = arith.constant 0 : i32
    %c0_i32_1 = arith.constant 0 : i32
    %c0_i32_2 = arith.constant 0 : i32
    return %c0_i32, %c0_i32_0, %c0_i32_1 : i32, i32, i32
  }
  func.func @transform_3(%arg0: i32) -> (i32, i32) {
    %c0_i32 = arith.constant 0 : i32
    %c0_i32_0 = arith.constant 0 : i32
    %c0_i32_1 = arith.constant 0 : i32
    return %c0_i32, %c0_i32_0 : i32, i32
  }
  func.func @transform_4(%arg0: i32) -> (i32, i32) {
    %c0_i32 = arith.constant 0 : i32
    %c0_i32_0 = arith.constant 0 : i32
    return %arg0, %c0_i32 : i32, i32
  }
}

</mosaic_0001>

<bundles_post_ra>
// kernel: model_forward.5
= control target key start
LH: loop header
LB: loop body
LE: loop exit
PB: predicated region body
PF: predicated region fallthrough
CT: control target
= control target key end

     0   :  { %9 = vsyncpa [#allocation3], 0  ;;  %s1814_s15 = smov 0   ;;  %s2413_s0 = inlined_call_operand.vmem [shape: bf16[256,3], index: 0, kind: input, shape index: {}]   ;;  %s2414_s1 = inlined_call_operand.vmem [shape: bf16[3,384], index: 1, kind: input, shape index: {}]   ;;  %s2415_s2 = inlined_call_operand.vmem [shape: bf16[3,128,128], index: 2, kind: input, shape index: {}]   ;;  %s2416_s3 = inlined_call_operand.hbm [shape: f32[128,128], index: 3, kind: input, shape index: {}]   ;;  %s2417_s4 = inlined_call_operand.vmem [shape: bf16[256,128], index: 4, kind: output, shape index: {}]  }
   0x1 LB: > { %s152_s18 = sshll.u32 %s2416_s3, 4  ;;  %s1306_s19 = sadd.s32 4294967295, %s1781_s15   ;;  %s1781_s15 = sphi %s1814_s15, %s15_s15   ;;  %s153_s18 = int_to_ptr.hbm [resolvable:$true] %s152_s18 }
   0x2   : > { %p1308_p0 = scmp.ge.s32.totalorder %s1781_s15, 1  ;;  %p135_p1 = scmp.lt.s32.totalorder %s1781_s15, 3 }
   0x3   : > { %p1589_p2 = scmp.eq.s32.totalorder %s1306_s19, 0  ;;  %s1783_s20 = smov [#allocation2]  }
   0x4   : > { %p136_p3 = pnand %p1308_p0, %p135_p1  ;;  %s154_s21 = sshll.u32 %s1783_s20, 4  ;;  %s155_s21 = int_to_ptr.vmem [resolvable:$true] %s154_s21 }
   0x5   : > { %s1784_s22 = smov 128   ;;  %s1785_s23 = smov 8  }
   0x6   : > { %p1585_p4 = pneg %p136_p3  ;;  %179 = sbr.rel (%p136_p3) target bundleno = 449 (0x1c1), region = 36 }
   0x8   : > { %p1586_p5 = pnand %p1589_p2, %p1585_p4 }
   0xa   : > { %1588 = dma.hbm_to_vmem [thread:$0]  (!%p1586_p5), %s153_s18, 2048, %s155_s21, [#allocation3], %s1784_s22, %s1784_s22, %s1785_s23  }
   0xb   : > { %1776 = dma.done.wait (%p1589_p2), [#allocation3], 2048  }
   0xc   : > { %1778 = vsyncadd (%p1589_p2), [#allocation3], 4294965248  ;;  %s1313_s24 = sshll.u32 %s1306_s19, 4  ;;  %v1786_v0 = vmov 2   ;;  %v1787_v1 = vmov 0   ;;  %v1788_v2 = vmov 1  }
   0xd   : > { %1611 = vset.pattern.permute.xlu1 %v1786_v0  ;;  %1605 = vset.pattern.permute.xlu0 %v1787_v1  ;;  %p207_p6 = scmp.lt.s32.totalorder %s1313_s24, 31  ;;  %v250_v37 = vld [vmem:[%s2414_s1] sm:$0x3]  ;;  %v712_v38 = vld [vmem:[%s2414_s1 + $0x2] sm:$0x3] }
   0xe   : > { %1623 = vset.pattern.permute.xlu2 %v1788_v2  ;;  %v951_v39 = vld [vmem:[%s2414_s1 + $0x4] sm:$0x3]  ;;  %v267_v40 = vunpack.c.l.bf16 %v250_v37  ;;  %v713_v41 = vunpack.c.l.bf16 %v712_v38 }
   0xf   : > { %s2437_s24 = smov (!%p207_p6, %s1313_s24), 31  ;;  %v952_v42 = vunpack.c.l.bf16 %v951_v39 }
  0x10   : > { %s1314_s25 = sshll.u32 %s2437_s24, 2  ;;  %v1868_v43 = vperm.slane %v267_v40, 1  ;;  %v1870_v44 = vperm.slane %v713_v41, 1  ;;  %v1874_v51 = vperm.slane %v267_v40, 0  ;;  %v1876_v52 = vperm.slane %v713_v41, 0 }
  0x11   : > { %s1836_s28 = scalar_lea.vmem %s2413_s0, %s1314_s25  ;;  %v1872_v45 = vperm.slane %v952_v42, 1  ;;  %v1878_v53 = vperm.slane %v952_v42, 0  ;;  %v1880_v54 = vperm.slane %v267_v40, 2  ;;  %v1882_v55 = vperm.slane %v713_v41, 2  ;;  %s2392_s13 = scalar_lea.vmem %s2417_s4, %s1314_s25 }
  0x12   : > { %v1549_v3 = vld [vmem:[%s1836_s28 + $0x38] sm:$0xff]   ;;  %v1548_v4 = vld [vmem:[%s1836_s28 + $0x30] sm:$0xff]   ;;  %v1547_v10 = vld [vmem:[%s1836_s28 + $0x28] sm:$0xff]   ;;  %v1884_v56 = vperm.slane %v952_v42, 2 }
  0x13   : > { %v1501_v5 = vunpack.c.l.bf16 %v1549_v3  ;;  %v1502_v6 = vunpack.c.h.bf16 %v1549_v3  ;;  %v1497_v7 = vunpack.c.l.bf16 %v1548_v4  ;;  %v1498_v8 = vunpack.c.h.bf16 %v1548_v4  ;;  %v1546_v15 = vld [vmem:[%s1836_s28 + $0x20] sm:$0xff]   ;;  %v1545_v16 = vld [vmem:[%s1836_s28 + $0x18] sm:$0xff]   ;;  %v1543_v23 = vld [vmem:[%s1836_s28 + $0x8] sm:$0xff]  }
  0x14   : > { %v1493_v12 = vunpack.c.l.bf16 %v1547_v10  ;;  %v1494_v13 = vunpack.c.h.bf16 %v1547_v10  ;;  %v1489_v17 = vunpack.c.l.bf16 %v1546_v15  ;;  %v1490_v18 = vunpack.c.h.bf16 %v1546_v15  ;;  %v1472_v27 = vld [vmem:[%s1836_s28] sm:$0xff]   ;;  %v1544_v28 = vld [vmem:[%s1836_s28 + $0x10] sm:$0xff]  }
  0x15   : > { %v1612_v9 = vpack.i.bf16 %v1502_v6, %v1501_v5  ;;  %v1624_v11 = vpack.i.bf16 %v1498_v8, %v1497_v7  ;;  %v1485_v19 = vunpack.c.l.bf16 %v1545_v16  ;;  %v1486_v20 = vunpack.c.h.bf16 %v1545_v16 }
  0x16   : > { %v1647_v14 = vpack.i.bf16 %v1494_v13, %v1493_v12  ;;  %v1658_v21 = vpack.i.bf16 %v1490_v18, %v1489_v17  ;;  %v1477_v24 = vunpack.c.l.bf16 %v1543_v23  ;;  %v1478_v25 = vunpack.c.h.bf16 %v1543_v23 }
  0x17   : > { %1613 = vperm.xlu1 %1611, %v1612_v9   ;;  %1607 = vperm.xlu0 %1605, %v1612_v9   ;;  %v1680_v22 = vpack.i.bf16 %v1486_v20, %v1485_v19  ;;  %v1473_v29 = vunpack.c.l.bf16 %v1472_v27  ;;  %v1474_v30 = vunpack.c.h.bf16 %v1472_v27  ;;  %v1481_v31 = vunpack.c.l.bf16 %v1544_v28 }
  0x18   : > { %1625 = vperm.xlu2 %1623, %v1624_v11   ;;  %v1708_v26 = vpack.i.bf16 %v1478_v25, %v1477_v24  ;;  %v1482_v32 = vunpack.c.h.bf16 %v1544_v28 }
  0x19   : > { %v1736_v33 = vpack.i.bf16 %v1474_v30, %v1473_v29 }
  0x1a   : > { %v1690_v34 = vpack.i.bf16 %v1482_v32, %v1481_v31 }
  0x1f   : > { %1617 = vset.pattern.permute.xlu1 %v1787_v1  ;;  %1646 = vset.pattern.permute.xlu0 %v1786_v0 }
  0x20   : > { %1619 = vperm.xlu1 %1617, %v1624_v11   ;;  %1648 = vperm.xlu0 %1646, %v1647_v14  }
  0x21   : > { %1629 = vset.pattern.permute.xlu2 %v1786_v0 }
  0x22   : > { %1631 = vperm.xlu2 %1629, %v1624_v11  }
  0x28   : > { %1652 = vset.pattern.permute.xlu0 %v1788_v2  ;;  %1636 = vperm.xlu1 %1617, %v1647_v14  }
  0x29   : > { %1654 = vperm.xlu0 %1652, %v1612_v9  }
  0x2a   : > { %1640 = vset.pattern.permute.xlu2 %v1788_v2 }
  0x2b   : > { %1642 = vperm.xlu2 %1640, %v1647_v14  }
  0x30   : > { %1659 = vperm.xlu1 %1617, %v1658_v21  }
  0x31   : > { %1681 = vperm.xlu0 %1652, %v1680_v22  }
  0x33   : > { %1664 = vperm.xlu2 %1640, %v1658_v21  }
  0x38   : > { %1668 = vset.pattern.permute.xlu1 %v1786_v0 }
  0x39   : > { %1670 = vperm.xlu1 %1668, %v1658_v21   ;;  %1707 = vset.pattern.permute.xlu0 %v1787_v1 }
  0x3a   : > { %1709 = vperm.xlu0 %1707, %v1708_v26  }
  0x3b   : > { %1674 = vset.pattern.permute.xlu2 %v1787_v1 }
  0x3c   : > { %1676 = vperm.xlu2 %1674, %v1680_v22  }
  0x41   : > { %1686 = vperm.xlu1 %1668, %v1680_v22  }
  0x42   : > { %1735 = vset.pattern.permute.xlu0 %v1786_v0 }
  0x43   : > { %1737 = vperm.xlu0 %1735, %v1736_v33  }
  0x44   : > { %1691 = vperm.xlu2 %1674, %v1690_v34  }
  0x49   : > { %1695 = vset.pattern.permute.xlu1 %v1788_v2 }
  0x4a   : > { %1697 = vperm.xlu1 %1695, %v1690_v34  }
  0x4c   : > { %1701 = vset.pattern.permute.xlu2 %v1786_v0 }
  0x4d   : > { %1703 = vperm.xlu2 %1701, %v1690_v34  }
  0x52   : > { %1714 = vperm.xlu1 %1695, %v1708_v26  }
  0x55   : > { %1719 = vperm.xlu2 %1701, %v1708_v26  }
  0x5a   : > { %1723 = vset.pattern.permute.xlu1 %v1787_v1 }
  0x5b   : > { %1725 = vperm.xlu1 %1723, %v1736_v33  }
  0x5d   : > { %1729 = vset.pattern.permute.xlu2 %v1788_v2 }
  0x5e   : > { %1731 = vperm.xlu2 %1729, %v1736_v33  }
  0x72   : > { %v1626_v35 = vpop.permute.xlu2 %1625 }
  0x73   : > { %v1628_v46 = vunpack.i.h.bf16 %v1626_v35  ;;  %v1627_v48 = vunpack.i.l.bf16 %v1626_v35 }
  0x75   : > { %v1887_v57 = vmul.f32 %v1628_v46, %v1868_v43  ;;  %v1890_v58 = vmul.f32 %v1628_v46, %v1870_v44  ;;  %v1893_v59 = vmul.f32 %v1628_v46, %v1872_v45  ;;  %v458_v63 = vmul.f32 %v1627_v48, %v1868_v43 }
  0x76   : > { %v760_v0 = vmul.f32 %v1627_v48, %v1870_v44  ;;  %v999_v1 = vmul.f32 %v1627_v48, %v1872_v45 }
  0x7c   : > { %v1632_v36 = vpop.permute.xlu2 %1631 }
  0x7d   : > { %v1634_v49 = vunpack.i.h.bf16 %v1632_v36  ;;  %v1633_v50 = vunpack.i.l.bf16 %v1632_v36 }
  0x7f   : > { %v1899_v4 = vmul.f32 %v1633_v50, %v1880_v54  ;;  %v1902_v5 = vmul.f32 %v1634_v49, %v1880_v54  ;;  %v1905_v6 = vmul.f32 %v1633_v50, %v1882_v55  ;;  %v1908_v8 = vmul.f32 %v1634_v49, %v1882_v55 }
  0x80   : > { %v1911_v9 = vmul.f32 %v1633_v50, %v1884_v56  ;;  %v1914_v10 = vmul.f32 %v1634_v49, %v1884_v56 }
  0x85   : > { %v1643_v47 = vpop.permute.xlu2 %1642 }
  0x86   : > { %v1645_v62 = vunpack.i.h.bf16 %v1643_v47  ;;  %v1644_v2 = vunpack.i.l.bf16 %v1643_v47 }
  0x88   : > { %v1917_v13 = vmul.f32 %v1645_v62, %v1868_v43  ;;  %v1920_v14 = vmul.f32 %v1645_v62, %v1870_v44  ;;  %v1923_v16 = vmul.f32 %v1645_v62, %v1872_v45  ;;  %v1926_v17 = vmul.f32 %v1644_v2, %v1868_v43 }
  0x89   : > { %v1614_v60 = vpop.permute.xlu1 %1613  ;;  %v1608_v61 = vpop.permute.xlu0 %1607  ;;  %v1929_v18 = vmul.f32 %v1644_v2, %v1870_v44  ;;  %v1941_v23 = vmul.f32 %v1644_v2, %v1872_v45 }
  0x8a   : > { %v1610_v3 = vunpack.i.h.bf16 %v1608_v61  ;;  %v1609_v7 = vunpack.i.l.bf16 %v1608_v61  ;;  %v1616_v11 = vunpack.i.h.bf16 %v1614_v60  ;;  %v1615_v12 = vunpack.i.l.bf16 %v1614_v60 }
  0x8c   : > { %v1932_v20 = vmul.f32 %v1610_v3, %v1874_v51  ;;  %v1935_v21 = vmul.f32 %v1610_v3, %v1876_v52  ;;  %v1938_v22 = vmul.f32 %v1610_v3, %v1878_v53  ;;  %v1944_v24 = vmul.f32 %v1609_v7, %v1874_v51 }
  0x8d   : > { %v1665_v15 = vpop.permute.xlu2 %1664  ;;  %v1947_v25 = vmul.f32 %v1609_v7, %v1876_v52  ;;  %v1950_v26 = vmul.f32 %v1609_v7, %v1878_v53  ;;  %v1953_v28 = vmul.f32 %v1615_v12, %v1880_v54  ;;  %v1956_v29 = vmul.f32 %v1616_v11, %v1880_v54 }
  0x8e   : > { %v1667_v19 = vunpack.i.h.bf16 %v1665_v15  ;;  %v1666_v27 = vunpack.i.l.bf16 %v1665_v15  ;;  %v1959_v30 = vmul.f32 %v1615_v12, %v1882_v55  ;;  %v1962_v31 = vmul.f32 %v1616_v11, %v1882_v55 }
  0x8f   : > { %v1971_v36 = vmul.f32 %v1615_v12, %v1884_v56  ;;  %v1974_v37 = vmul.f32 %v1616_v11, %v1884_v56 }
  0x90   : > { %v1965_v34 = vmul.f32 %v1667_v19, %v1868_v43  ;;  %v1968_v35 = vmul.f32 %v1667_v19, %v1870_v44  ;;  %v1981_v42 = vmul.f32 %v1667_v19, %v1872_v45  ;;  %v1984_v46 = vmul.f32 %v1666_v27, %v1868_v43 }
  0x91   : > { %v1987_v47 = vmul.f32 %v1666_v27, %v1870_v44  ;;  %v1990_v48 = vmul.f32 %v1666_v27, %v1872_v45 }
  0x92   : > { %v1620_v32 = vpop.permute.xlu1 %1619  ;;  %v1649_v33 = vpop.permute.xlu0 %1648  ;;  %2418 = vst [vmem:[#allocation5_spill] sm:$0xff] %v1968_v35 }
  0x93   : > { %v1622_v38 = vunpack.i.h.bf16 %v1620_v32  ;;  %v1621_v39 = vunpack.i.l.bf16 %v1620_v32  ;;  %v1976_v40 = vunpack.i.h.bf16 %v1649_v33  ;;  %v1978_v41 = vunpack.i.l.bf16 %v1649_v33  ;;  %2419 = vst [vmem:[#allocation6_spill] sm:$0xff] %v1981_v42 }
  0x94   : > { %2420 = vst [vmem:[#allocation7_spill] sm:$0xff] %v1990_v48 }
  0x95   : > { %v362_v49 = vmul.f32 %v1622_v38, %v1874_v51  ;;  %v728_v50 = vmul.f32 %v1622_v38, %v1876_v52  ;;  %v967_v60 = vmul.f32 %v1622_v38, %v1878_v53  ;;  %v361_v61 = vmul.f32 %v1621_v39, %v1874_v51 }
  0x96   : > { %v727_v62 = vmul.f32 %v1621_v39, %v1876_v52  ;;  %v966_v2 = vmul.f32 %v1621_v39, %v1878_v53  ;;  %v1677_v3 = vpop.permute.xlu2 %1676  ;;  %v2000_v7 = vmul.f32 %v1978_v41, %v1880_v54  ;;  %v2004_v11 = vmul.f32 %v1976_v40, %v1880_v54 }
  0x97   : > { %v1679_v12 = vunpack.i.h.bf16 %v1677_v3  ;;  %v1678_v15 = vunpack.i.l.bf16 %v1677_v3  ;;  %v474_v19 = vadd.f32 %v458_v63, %v361_v61  ;;  %v475_v27 = vadd.f32 %v1887_v57, %v362_v49 }
  0x98   : > { %v776_v32 = vadd.f32 %v760_v0, %v727_v62  ;;  %v777_v33 = vadd.f32 %v1890_v58, %v728_v50  ;;  %v1015_v38 = vadd.f32 %v999_v1, %v966_v2  ;;  %v1016_v39 = vadd.f32 %v1893_v59, %v967_v60 }
  0x99   : > { %v2010_v42 = vmul.f32 %v1679_v12, %v1874_v51  ;;  %v2013_v48 = vmul.f32 %v1679_v12, %v1876_v52  ;;  %v2016_v35 = vmul.f32 %v1679_v12, %v1878_v53  ;;  %v2019_v3 = vmul.f32 %v1678_v15, %v1874_v51 }
  0x9a   : > { %v1637_v63 = vpop.permute.xlu1 %1636  ;;  %v2022_v57 = vmul.f32 %v1678_v15, %v1876_v52  ;;  %v2025_v58 = vmul.f32 %v1678_v15, %v1878_v53  ;;  %v571_v59 = vadd.f32 %v1899_v4, %v474_v19  ;;  %v572_v0 = vadd.f32 %v1902_v5, %v475_v27 }
  0x9b   : > { %2421 = vst [vmem:[#allocation8_spill] sm:$0xff] %v2010_v42  ;;  %v1639_v1 = vunpack.i.h.bf16 %v1637_v63  ;;  %v1638_v49 = vunpack.i.l.bf16 %v1637_v63  ;;  %v1655_v50 = vpop.permute.xlu0 %1654  ;;  %v809_v60 = vadd.f32 %v1905_v6, %v776_v32  ;;  %v810_v61 = vadd.f32 %v1908_v8, %v777_v33 }
  0x9c   : > { %2422 = vst [vmem:[#allocation9_spill] sm:$0xff] %v2013_v48  ;;  %v1657_v62 = vunpack.i.h.bf16 %v1655_v50  ;;  %v1656_v2 = vunpack.i.l.bf16 %v1655_v50  ;;  %v2031_v12 = vpack.c.bf16 %v572_v0, %v571_v59 }
  0x9d   : > { %2423 = vst [vmem:[#allocation10_spill] sm:$0xff] %v2016_v35  ;;  %v1048_v35 = vadd.f32 %v1911_v9, %v1015_v38  ;;  %v2035_v15 = vmul.f32 %v1639_v1, %v1874_v51  ;;  %v2038_v4 = vmul.f32 %v1639_v1, %v1876_v52  ;;  %v2041_v5 = vmul.f32 %v1639_v1, %v1878_v53 }
  0x9e   : > { %2424 = vst [vmem:[#allocation11_spill] sm:$0xff] %v2019_v3  ;;  %v359_v19 = vmul.f32 %v1638_v49, %v1874_v51  ;;  %v725_v6 = vmul.f32 %v1638_v49, %v1876_v52  ;;  %v2046_v8 = vmul.f32 %v1638_v49, %v1878_v53  ;;  %v461_v27 = vmul.f32 %v1657_v62, %v1868_v43  ;;  %v1692_v32 = vpop.permute.xlu2 %1691 }
  0x9f   : > { %2425 = vst [vmem:[#allocation12_spill] sm:$0xff] %v2022_v57  ;;  %v763_v9 = vmul.f32 %v1657_v62, %v1870_v44  ;;  %v1002_v33 = vmul.f32 %v1657_v62, %v1872_v45  ;;  %v460_v38 = vmul.f32 %v1656_v2, %v1868_v43  ;;  %v762_v63 = vmul.f32 %v1656_v2, %v1870_v44 }
  0xa0   : > { %2426 = vst [vmem:[#allocation13_spill] sm:$0xff] %v2025_v58  ;;  %v1001_v59 = vmul.f32 %v1656_v2, %v1872_v45  ;;  %v477_v0 = vadd.f32 %v461_v27, %v1932_v20  ;;  %v2056_v50 = vpack.c.bf16 %v810_v61, %v809_v60  ;;  %v1049_v49 = vadd.f32 %v1914_v10, %v1016_v39 }
  0xa1   : > { %v779_v1 = vadd.f32 %v763_v9, %v1935_v21  ;;  %v476_v58 = vadd.f32 %v460_v38, %v1944_v24  ;;  %v778_v48 = vadd.f32 %v762_v63, %v1947_v25  ;;  %v1018_v57 = vadd.f32 %v1002_v33, %v1938_v22 }
  0xa2   : > { %v1017_v62 = vadd.f32 %v1001_v59, %v1950_v26  ;;  %v1660_v42 = vpop.permute.xlu1 %1659  ;;  %v574_v3 = vadd.f32 %v1956_v29, %v477_v0  ;;  %v2065_v20 = vpack.c.bf16 %v1049_v49, %v1048_v35  ;;  %v1694_v21 = vunpack.i.h.bf16 %v1692_v32 }
  0xa3   : > { %v812_v2 = vadd.f32 %v1962_v31, %v779_v1  ;;  %v1662_v60 = vunpack.i.h.bf16 %v1660_v42  ;;  %v1661_v61 = vunpack.i.l.bf16 %v1660_v42  ;;  %v573_v10 = vadd.f32 %v1953_v28, %v476_v58  ;;  %v1682_v39 = vpop.permute.xlu0 %1681 }
  0xa4   : > { %v811_v24 = vadd.f32 %v1959_v30, %v778_v48  ;;  %v1050_v25 = vadd.f32 %v1971_v36, %v1017_v62  ;;  %v1051_v26 = vadd.f32 %v1974_v37, %v1018_v57  ;;  %v1684_v22 = vunpack.i.h.bf16 %v1682_v39 }
  0xa5   : > { %v1683_v27 = vunpack.i.l.bf16 %v1682_v39  ;;  %v358_v29 = vmul.f32 %v1662_v60, %v1874_v51  ;;  %v724_v31 = vmul.f32 %v1662_v60, %v1876_v52  ;;  %v2074_v35 = vmul.f32 %v1662_v60, %v1878_v53 }
  0xa6   : > { %v357_v42 = vmul.f32 %v1661_v61, %v1874_v51  ;;  %v723_v28 = vmul.f32 %v1661_v61, %v1876_v52  ;;  %v2079_v30 = vmul.f32 %v1661_v61, %v1878_v53  ;;  %v598_v48 = vpack.c.bf16 %v574_v3, %v573_v10 }
  0xa7   : > { %v2081_v36 = vpack.c.bf16 %v812_v2, %v811_v24  ;;  %v2083_v37 = vpack.c.bf16 %v1051_v26, %v1050_v25  ;;  %v2086_v57 = vmul.f32 %v1684_v22, %v1868_v43  ;;  %v2089_v58 = vmul.f32 %v1684_v22, %v1870_v44  ;;  %v1704_v33 = vpop.permute.xlu2 %1703 }
  0xa8   : > { %v2092_v9 = vmul.f32 %v1684_v22, %v1872_v45  ;;  %647 = vmatpush.bf16.msra.mxu0 %v598_v48  ;;  %1557 = vmatpush.bf16.msra.mxu3 %v598_v48  ;;  %v2095_v38 = vmul.f32 %v1683_v27, %v1868_v43  ;;  %v2098_v3 = vmul.f32 %v1683_v27, %v1870_v44  ;;  %v1693_v59 = vunpack.i.l.bf16 %v1692_v32 }
  0xa9   : > { %v2101_v63 = vmul.f32 %v1683_v27, %v1872_v45  ;;  %886 = vmatpush.bf16.msra.mxu1 %v2081_v36  ;;  %1125 = vmatpush.bf16.msra.mxu2 %v2083_v37  ;;  %v2106_v0 = vmul.f32 %v1694_v21, %v1874_v51  ;;  %v2109_v1 = vmul.f32 %v1694_v21, %v1876_v52  ;;  %v2114_v62 = vunpack.i.h.bf16 %v1704_v33 }
  0xaa   : > { %v2112_v49 = vmul.f32 %v1694_v21, %v1878_v53  ;;  %v2117_v2 = vmul.f32 %v1693_v59, %v1874_v51  ;;  %v2120_v32 = vmul.f32 %v1693_v59, %v1876_v52  ;;  %v2123_v60 = vmul.f32 %v1693_v59, %v1878_v53 }
  0xab   : > { %v472_v61 = vadd.f32 %v1926_v17, %v359_v19  ;;  %v1671_v10 = vpop.permute.xlu1 %1670  ;;  %v473_v24 = vadd.f32 %v1917_v13, %v2035_v15  ;;  %v774_v21 = vadd.f32 %v1929_v18, %v725_v6  ;;  %v775_v39 = vadd.f32 %v1920_v14, %v2038_v4 }
  0xac   : > { %v791_v25 = vmul.f32 %v1978_v41, %v1882_v55  ;;  %648 = vmatpush.bf16.msra.mxu0 %v2031_v12  ;;  %1558 = vmatpush.bf16.msra.mxu3 %v2031_v12  ;;  %v1673_v26 = vunpack.i.h.bf16 %v1671_v10  ;;  %v1672_v22 = vunpack.i.l.bf16 %v1671_v10  ;;  %v792_v19 = vmul.f32 %v1976_v40, %v1882_v55 }
  0xad   : > { %v569_v17 = vadd.f32 %v2000_v7, %v472_v61  ;;  %887 = vmatpush.bf16.msra.mxu1 %v2056_v50  ;;  %1126 = vmatpush.bf16.msra.mxu2 %v2065_v20  ;;  %v570_v13 = vadd.f32 %v2004_v11, %v473_v24  ;;  %v1013_v18 = vadd.f32 %v1941_v23, %v2046_v8  ;;  %v2143_v15 = vunpack.i.l.bf16 %v1704_v33 }
  0xae   : > { %v807_v14 = vadd.f32 %v791_v25, %v774_v21  ;;  %v808_v12 = vadd.f32 %v792_v19, %v775_v39  ;;  %v1014_v4 = vadd.f32 %v1923_v16, %v2041_v5  ;;  %v1030_v7 = vmul.f32 %v1978_v41, %v1884_v56  ;;  %v2428_v39 = vld [vmem:[#allocation7_spill] sm:$0xff] }
  0xaf   : > { %v1031_v6 = vmul.f32 %v1976_v40, %v1884_v56  ;;  %v596_v27 = vpack.c.bf16 %v570_v13, %v569_v17  ;;  %v470_v48 = vadd.f32 %v1984_v46, %v357_v42  ;;  %v471_v11 = vadd.f32 %v1965_v34, %v358_v29  ;;  %v1720_v23 = vpop.permute.xlu2 %1719  ;;  %v2427_v40 = vld [vmem:[#allocation5_spill] sm:$0xff]  ;;  %v2429_v17 = vld [vmem:[#allocation6_spill] sm:$0xff] }
  0xb0   : > { %v551_v59 = vmul.f32 %v1672_v22, %v1880_v54  ;;  %v2154_v8 = vpack.c.bf16 %v808_v12, %v807_v14  ;;  %v1046_v33 = vadd.f32 %v1030_v7, %v1013_v18  ;;  %v552_v16 = vmul.f32 %v1673_v26, %v1880_v54 }
  0xb1   : > { %v1047_v61 = vadd.f32 %v1031_v6, %v1014_v4  ;;  %649 = vmatpush.bf16.msra.mxu0 %v596_v27  ;;  %1559 = vmatpush.bf16.msra.mxu3 %v596_v27  ;;  %v772_v5 = vadd.f32 %v1987_v47, %v723_v28  ;;  %v773_v10 = vadd.f32 %v2427_v40, %v724_v31  ;;  %v2159_v24 = vunpack.i.h.bf16 %v1720_v23  ;;  %v2430_v6 = vld [vmem:[#allocation11_spill] sm:$0xff] }
  0xb2   : > { %v567_v41 = vadd.f32 %v551_v59, %v470_v48  ;;  %888 = vmatpush.bf16.msra.mxu1 %v2154_v8  ;;  %v568_v46 = vadd.f32 %v552_v16, %v471_v11  ;;  %v789_v29 = vmul.f32 %v1672_v22, %v1882_v55  ;;  %v790_v42 = vmul.f32 %v1673_v26, %v1882_v55  ;;  %v1710_v11 = vpop.permute.xlu0 %1709 }
  0xb3   : > { %v2162_v34 = vpack.c.bf16 %v1047_v61, %v1046_v33  ;;  %v1687_v21 = vpop.permute.xlu1 %1686  ;;  %v1011_v25 = vadd.f32 %v2428_v39, %v2079_v30  ;;  %v1012_v47 = vadd.f32 %v2429_v17, %v2074_v35  ;;  %v1028_v31 = vmul.f32 %v1672_v22, %v1884_v56  ;;  %v2431_v30 = vld [vmem:[#allocation8_spill] sm:$0xff] }
  0xb4   : > { %v1029_v28 = vmul.f32 %v1673_v26, %v1884_v56  ;;  %v1689_v19 = vunpack.i.h.bf16 %v1687_v21  ;;  %v1688_v13 = vunpack.i.l.bf16 %v1687_v21  ;;  %v595_v14 = vpack.c.bf16 %v568_v46, %v567_v41  ;;  %v2432_v61 = vld [vmem:[#allocation12_spill] sm:$0xff] }
  0xb5   : > { %1127 = vmatpush.bf16.msra.mxu2 %v2162_v34  ;;  %v805_v18 = vadd.f32 %v789_v29, %v772_v5  ;;  %v806_v12 = vadd.f32 %v790_v42, %v773_v10  ;;  %v1044_v4 = vadd.f32 %v1028_v31, %v1011_v25  ;;  %v468_v27 = vadd.f32 %v2095_v38, %v2430_v6  ;;  %v2433_v38 = vld [vmem:[#allocation9_spill] sm:$0xff]  ;;  %v2435_v29 = vld [vmem:[#allocation10_spill] sm:$0xff] }
  0xb6   : > { %v1045_v7 = vadd.f32 %v1029_v28, %v1012_v47  ;;  %650 = vmatpush.bf16.msra.mxu0 %v595_v14  ;;  %1560 = vmatpush.bf16.msra.mxu3 %v595_v14  ;;  %v469_v35 = vadd.f32 %v2086_v57, %v2431_v30  ;;  %v549_v22 = vmul.f32 %v1688_v13, %v1880_v54  ;;  %v2179_v48 = vunpack.i.l.bf16 %v1720_v23  ;;  %v2434_v23 = vld [vmem:[#allocation13_spill] sm:$0xff] }
  0xb7   : > { %v550_v26 = vmul.f32 %v1689_v19, %v1880_v54  ;;  %v2181_v59 = vpack.c.bf16 %v806_v12, %v805_v18  ;;  %v770_v16 = vadd.f32 %v2098_v3, %v2432_v61  ;;  %v771_v41 = vadd.f32 %v2089_v58, %v2433_v38 }
  0xb8   : > { %v2183_v33 = vpack.c.bf16 %v1045_v7, %v1044_v4  ;;  %v565_v5 = vadd.f32 %v549_v22, %v468_v27  ;;  %v787_v57 = vmul.f32 %v1688_v13, %v1882_v55  ;;  %v788_v10 = vmul.f32 %v1689_v19, %v1882_v55  ;;  %v1732_v38 = vpop.permute.xlu2 %1731 }
  0xb9   : > { %v566_v40 = vadd.f32 %v550_v26, %v469_v35  ;;  %889 = vmatpush.bf16.msra.mxu1 %v2181_v59  ;;  %v1009_v46 = vadd.f32 %v2101_v63, %v2434_v23  ;;  %v1010_v42 = vadd.f32 %v2092_v9, %v2435_v29  ;;  %v1026_v3 = vmul.f32 %v1688_v13, %v1884_v56 }
  0xba   : > { %1128 = vmatpush.bf16.msra.mxu2 %v2183_v33  ;;  %v1712_v21 = vunpack.i.h.bf16 %v1710_v11  ;;  %v803_v39 = vadd.f32 %v787_v57, %v770_v16  ;;  %v804_v25 = vadd.f32 %v788_v10, %v771_v41  ;;  %v1027_v17 = vmul.f32 %v1689_v19, %v1884_v56 }
  0xbb   : > { %v594_v58 = vpack.c.bf16 %v566_v40, %v565_v5  ;;  %v1042_v47 = vadd.f32 %v1026_v3, %v1009_v46  ;;  %v1711_v18 = vunpack.i.l.bf16 %v1710_v11  ;;  %v547_v19 = vmul.f32 %v2143_v15, %v1880_v54 }
  0xbc   : > { %v2200_v31 = vmul.f32 %v1712_v21, %v1874_v51  ;;  %v2203_v28 = vmul.f32 %v1712_v21, %v1876_v52  ;;  %v2206_v63 = vmul.f32 %v1712_v21, %v1878_v53  ;;  %v2208_v9 = vpack.c.bf16 %v804_v25, %v803_v39  ;;  %v1698_v14 = vpop.permute.xlu1 %1697 }
  0xbd   : > { %651 = vmatpush.bf16.msra.mxu0 %v594_v58  ;;  %1561 = vmatpush.bf16.msra.mxu3 %v594_v58  ;;  %v1043_v13 = vadd.f32 %v1027_v17, %v1010_v42  ;;  %v1700_v12 = vunpack.i.h.bf16 %v1698_v14  ;;  %v1699_v4 = vunpack.i.l.bf16 %v1698_v14  ;;  %v548_v7 = vmul.f32 %v2114_v62, %v1880_v54 }
  0xbe   : > { %v785_v6 = vmul.f32 %v2143_v15, %v1882_v55  ;;  %890 = vmatpush.bf16.msra.mxu1 %v2208_v9  ;;  %v351_v30 = vmul.f32 %v1711_v18, %v1874_v51  ;;  %v717_v35 = vmul.f32 %v1711_v18, %v1876_v52  ;;  %v956_v22 = vmul.f32 %v1711_v18, %v1878_v53 }
  0xbf   : > { %v2217_v27 = vpack.c.bf16 %v1043_v13, %v1042_v47  ;;  %v451_v26 = vmul.f32 %v1700_v12, %v1868_v43  ;;  %v753_v11 = vmul.f32 %v1700_v12, %v1870_v44  ;;  %v992_v61 = vmul.f32 %v1700_v12, %v1872_v45 }
  0xc0   : > { %v450_v16 = vmul.f32 %v1699_v4, %v1868_v43  ;;  %v752_v41 = vmul.f32 %v1699_v4, %v1870_v44  ;;  %v991_v5 = vmul.f32 %v1699_v4, %v1872_v45  ;;  %v786_v40 = vmul.f32 %v2114_v62, %v1882_v55  ;;  %v1738_v4 = vpop.permute.xlu0 %1737 }
  0xc1   : > { %1129 = vmatpush.bf16.msra.mxu2 %v2217_v27  ;;  %v1024_v57 = vmul.f32 %v2143_v15, %v1884_v56  ;;  %v467_v23 = vadd.f32 %v451_v26, %v2106_v0  ;;  %v769_v46 = vadd.f32 %v753_v11, %v2109_v1  ;;  %v1008_v29 = vadd.f32 %v992_v61, %v2112_v49 }
  0xc2   : > { %v466_v10 = vadd.f32 %v450_v16, %v2117_v2  ;;  %v768_v42 = vadd.f32 %v752_v41, %v2120_v32  ;;  %v1007_v3 = vadd.f32 %v991_v5, %v2123_v60  ;;  %v1025_v21 = vmul.f32 %v2114_v62, %v1884_v56 }
  0xc3   : > { %v1734_v58 = vunpack.i.h.bf16 %v1732_v38  ;;  %v564_v25 = vadd.f32 %v548_v7, %v467_v23  ;;  %v802_v17 = vadd.f32 %v786_v40, %v769_v46  ;;  %v1733_v15 = vunpack.i.l.bf16 %v1732_v38 }
  0xc4   : > { %v563_v39 = vadd.f32 %v547_v19, %v466_v10  ;;  %v1715_v47 = vpop.permute.xlu1 %1714  ;;  %v801_v2 = vadd.f32 %v785_v6, %v768_v42  ;;  %v1040_v13 = vadd.f32 %v1024_v57, %v1007_v3  ;;  %v1041_v0 = vadd.f32 %v1025_v21, %v1008_v29 }
  0xc5   : > { %v2242_v1 = vmul.f32 %v1734_v58, %v1868_v43  ;;  %v1717_v49 = vunpack.i.h.bf16 %v1715_v47  ;;  %v1716_v14 = vunpack.i.l.bf16 %v1715_v47  ;;  %v2245_v60 = vmul.f32 %v1734_v58, %v1870_v44 }
  0xc6   : > { %v593_v32 = vpack.c.bf16 %v564_v25, %v563_v39  ;;  %v2247_v18 = vpack.c.bf16 %v802_v17, %v801_v2  ;;  %v2249_v62 = vpack.c.bf16 %v1041_v0, %v1040_v13  ;;  %v2252_v19 = vmul.f32 %v1734_v58, %v1872_v45 }
  0xc7   : > { %v446_v12 = vmul.f32 %v1733_v15, %v1868_v43  ;;  %v449_v7 = vmul.f32 %v1717_v49, %v1868_v43  ;;  %v751_v6 = vmul.f32 %v1717_v49, %v1870_v44  ;;  %v990_v26 = vmul.f32 %v1717_v49, %v1872_v45 }
  0xc8   : > { %v448_v11 = vmul.f32 %v1716_v14, %v1868_v43  ;;  %652 = vmatpush.bf16.msra.mxu0 %v593_v32  ;;  %v750_v61 = vmul.f32 %v1716_v14, %v1870_v44  ;;  %v989_v16 = vmul.f32 %v1716_v14, %v1872_v45  ;;  %1562 = vmatpush.bf16.msra.mxu3 %v593_v32  ;;  %v1740_v57 = vunpack.i.h.bf16 %v1738_v4 }
  0xc9   : > { %891 = vmatpush.bf16.msra.mxu1 %v2247_v18  ;;  %v748_v38 = vmul.f32 %v1733_v15, %v1870_v44  ;;  %1130 = vmatpush.bf16.msra.mxu2 %v2249_v62  ;;  %v465_v5 = vadd.f32 %v449_v7, %v2200_v31  ;;  %v545_v40 = vmul.f32 %v2179_v48, %v1880_v54  ;;  %v1739_v0 = vunpack.i.l.bf16 %v1738_v4 }
  0xca   : > { %v464_v41 = vadd.f32 %v448_v11, %v351_v30  ;;  %v546_v43 = vmul.f32 %v2159_v24, %v1880_v54  ;;  %v766_v10 = vadd.f32 %v750_v61, %v717_v35  ;;  %v767_v23 = vadd.f32 %v751_v6, %v2203_v28 }
  0xcb   : > { %v783_v46 = vmul.f32 %v2179_v48, %v1882_v55  ;;  %v784_v44 = vmul.f32 %v2159_v24, %v1882_v55  ;;  %v1005_v30 = vadd.f32 %v989_v16, %v956_v22  ;;  %v1006_v31 = vadd.f32 %v990_v26, %v2206_v63 }
  0xcc   : > { %v561_v29 = vadd.f32 %v545_v40, %v464_v41  ;;  %v987_v42 = vmul.f32 %v1733_v15, %v1872_v45  ;;  %v562_v3 = vadd.f32 %v546_v43, %v465_v5  ;;  %v1022_v58 = vmul.f32 %v2179_v48, %v1884_v56 }
  0xcd   : > { %v799_v21 = vadd.f32 %v783_v46, %v766_v10  ;;  %v1726_v35 = vpop.permute.xlu1 %1725  ;;  %v800_v39 = vadd.f32 %v784_v44, %v767_v23  ;;  %v1023_v28 = vmul.f32 %v2159_v24, %v1884_v56  ;;  %v544_v25 = vmul.f32 %v1740_v57, %v1880_v54  ;;  %v1454_v46 = vld [vmem:[%s2415_s2 + $0x38] sm:$0xff]  ;;  %v1469_v44 = vld [vmem:[%s2415_s2 + $0xb0] sm:$0xff] }
  0xce   : > { %v782_v17 = vmul.f32 %v1740_v57, %v1882_v55  ;;  %v1728_v47 = vunpack.i.h.bf16 %v1726_v35  ;;  %v1727_v22 = vunpack.i.l.bf16 %v1726_v35  ;;  %v592_v2 = vpack.c.bf16 %v562_v3, %v561_v29  ;;  %v1458_v29 = vld [vmem:[%s2415_s2 + $0x58] sm:$0xff]  ;;  %v1468_v3 = vld [vmem:[%s2415_s2 + $0xa8] sm:$0xff]  ;;  %v234_v35 = vld [vmem:[#allocation2] sm:$0xff] }
  0xcf   : > { %v1038_v63 = vadd.f32 %v1022_v58, %v1005_v30  ;;  %v831_v13 = vpack.c.bf16 %v800_v39, %v799_v21  ;;  %v1039_v45 = vadd.f32 %v1023_v28, %v1006_v31  ;;  %v1021_v15 = vmul.f32 %v1740_v57, %v1884_v56  ;;  %v1452_v30 = vld [vmem:[%s2415_s2 + $0x28] sm:$0xff] }
  0xd0   : > { %v350_v48 = vmul.f32 %v1728_v47, %v1874_v51  ;;  %v716_v49 = vmul.f32 %v1728_v47, %v1876_v52  ;;  %v955_v14 = vmul.f32 %v1728_v47, %v1878_v53  ;;  %v349_v24 = vmul.f32 %v1727_v22, %v1874_v51  ;;  %653 = vmatpush.bf16.msra.mxu0 %v592_v2  ;;  %v1460_v31 = vld [vmem:[%s2415_s2 + $0x68] sm:$0xff] }
  0xd1   : > { %v715_v32 = vmul.f32 %v1727_v22, %v1876_v52  ;;  %v954_v7 = vmul.f32 %v1727_v22, %v1878_v53  ;;  %1563 = vmatpush.bf16.msra.mxu3 %v592_v2  ;;  %892 = vmatpush.bf16.msra.mxu1 %v831_v13  ;;  %v2289_v6 = vpack.c.bf16 %v1039_v45, %v1038_v63 }
  0xd2   : > { %v543_v26 = vmul.f32 %v1739_v0, %v1880_v54  ;;  %v781_v4 = vmul.f32 %v1739_v0, %v1882_v55  ;;  %v1020_v11 = vmul.f32 %v1739_v0, %v1884_v56  ;;  %v462_v61 = vadd.f32 %v446_v12, %v349_v24  ;;  %v1447_v12 = vld [vmem:[%s2415_s2] sm:$0xff] }
  0xd3   : > { %1131 = vmatpush.bf16.msra.mxu2 %v2289_v6  ;;  %v463_v51 = vadd.f32 %v2242_v1, %v350_v48  ;;  %v764_v16 = vadd.f32 %v748_v38, %v715_v32  ;;  %v765_v52 = vadd.f32 %v2245_v60, %v716_v49  ;;  %v1003_v41 = vadd.f32 %v987_v42, %v954_v7  ;;  %v1453_v1 = vld [vmem:[%s2415_s2 + $0x30] sm:$0xff]  ;;  %v1455_v60 = vld [vmem:[%s2415_s2 + $0x40] sm:$0xff]  ;;  %v1448_v38 = vld [vmem:[%s2415_s2 + $0x8] sm:$0xff] }
  0xd4   : > { %v559_v53 = vadd.f32 %v543_v26, %v462_v61  ;;  %v1004_v5 = vadd.f32 %v2252_v19, %v955_v14  ;;  %v1463_v19 = vld [vmem:[%s2415_s2 + $0x80] sm:$0xff]  ;;  %v1470_v42 = vld [vmem:[%s2415_s2 + $0xb8] sm:$0xff]  ;;  %v236_v7 = vld [vmem:[#allocation2 + $0x10] sm:$0xff] }
  0xd5   : > { %v560_v40 = vadd.f32 %v544_v25, %v463_v51  ;;  %v797_v57 = vadd.f32 %v781_v4, %v764_v16  ;;  %v798_v43 = vadd.f32 %v782_v17, %v765_v52  ;;  %v1036_v54 = vadd.f32 %v1020_v11, %v1003_v41  ;;  %v235_v17 = vld [vmem:[#allocation2 + $0x8] sm:$0xff]  ;;  %v237_v61 = vld [vmem:[#allocation2 + $0x18] sm:$0xff] }
  0xd6   : > { %v1037_v10 = vadd.f32 %v1021_v15, %v1004_v5 }
  0xd7   : > { %v591_v55 = vpack.c.bf16 %v560_v40, %v559_v53  ;;  %v830_v23 = vpack.c.bf16 %v798_v43, %v797_v57 }
  0xd8   : > { %v1069_v56 = vpack.c.bf16 %v1037_v10, %v1036_v54 }
  0xd9   : > { %654 = vmatpush.bf16.msra.mxu0 %v591_v55  ;;  %1564 = vmatpush.bf16.msra.mxu3 %v591_v55 }
  0xda   : > { %893 = vmatpush.bf16.msra.mxu1 %v830_v23  ;;  %1132 = vmatpush.bf16.msra.mxu2 %v1069_v56 }
  0xdc   : > { %655 = vmatmul.bf16.vlgmr.msra.gmra.mxu0 %v1447_v12  ;;  %685 = vmatmul.bf16.vlgmr.msra.gmra.mxu3 %v1453_v1  ;;  %v238_v12 = vld [vmem:[#allocation2 + $0x20] sm:$0xff] }
  0xdd   : > { %1565 = vmatpush.bf16.msrb.mxu3 %v2081_v36  ;;  %894 = vmatmul.bf16.vlgmr.msra.gmra.mxu1 %v1455_v60  ;;  %v1456_v36 = vld [vmem:[%s2415_s2 + $0x48] sm:$0xff] }
  0xde   : > { %1133 = vmatmul.bf16.vlgmr.msra.gmra.mxu2 %v1463_v19 }
  0xe1   : > { %1566 = vmatpush.bf16.msrb.mxu3 %v2056_v50  ;;  %v1464_v50 = vld [vmem:[%s2415_s2 + $0x88] sm:$0xff] }
  0xe5   : > { %1567 = vmatpush.bf16.msrb.mxu3 %v2154_v8  ;;  %v1449_v8 = vld [vmem:[%s2415_s2 + $0x10] sm:$0xff] }
  0xe9   : > { %1568 = vmatpush.bf16.msrb.mxu3 %v2181_v59  ;;  %v1457_v59 = vld [vmem:[%s2415_s2 + $0x50] sm:$0xff] }
  0xec   : > { %660 = vmatmul.bf16.gmra.mxu0 %v1448_v38  ;;  %690 = vmatmul.bf16.gmra.mxu3 %v1454_v46  ;;  %v239_v38 = vld [vmem:[#allocation2 + $0x28] sm:$0xff] }
  0xed   : > { %1569 = vmatpush.bf16.msrb.mxu3 %v2208_v9  ;;  %899 = vmatmul.bf16.gmra.mxu1 %v1456_v36  ;;  %v1461_v9 = vld [vmem:[%s2415_s2 + $0x70] sm:$0xff] }
  0xee   : > { %1138 = vmatmul.bf16.gmra.mxu2 %v1464_v50 }
  0xf1   : > { %1570 = vmatpush.bf16.msrb.mxu3 %v2247_v18  ;;  %v1465_v18 = vld [vmem:[%s2415_s2 + $0x90] sm:$0xff] }
  0xf5   : > { %1571 = vmatpush.bf16.msrb.mxu3 %v831_v13 }
  0xf9   : > { %1572 = vmatpush.bf16.msrb.mxu3 %v830_v23 }
  0xfc   : > { %665 = vmatmul.bf16.gmra.mxu0 %v1449_v8  ;;  %924 = vmatmul.bf16.vlgmr.msrb.gmra.mxu3 %v1461_v9 }
  0xfd   : > { %1573 = vmatpush.bf16.msra.mxu3 %v2083_v37  ;;  %904 = vmatmul.bf16.gmra.mxu1 %v1457_v59  ;;  %v1450_v37 = vld [vmem:[%s2415_s2 + $0x18] sm:$0xff] }
  0xfe   : > { %1143 = vmatmul.bf16.gmra.mxu2 %v1465_v18 }
 0x101   : > { %1574 = vmatpush.bf16.msra.mxu3 %v2065_v20  ;;  %v1462_v20 = vld [vmem:[%s2415_s2 + $0x78] sm:$0xff] }
 0x105   : > { %1575 = vmatpush.bf16.msra.mxu3 %v2162_v34  ;;  %v1466_v34 = vld [vmem:[%s2415_s2 + $0x98] sm:$0xff] }
 0x109   : > { %1576 = vmatpush.bf16.msra.mxu3 %v2183_v33  ;;  %v1451_v33 = vld [vmem:[%s2415_s2 + $0x20] sm:$0xff] }
 0x10c   : > { %670 = vmatmul.bf16.gmra.mxu0 %v1450_v37  ;;  %929 = vmatmul.bf16.gmra.mxu3 %v1462_v20 }
 0x10d   : > { %1577 = vmatpush.bf16.msra.mxu3 %v2217_v27  ;;  %909 = vmatmul.bf16.gmra.mxu1 %v1458_v29  ;;  %v1459_v27 = vld [vmem:[%s2415_s2 + $0x60] sm:$0xff] }
 0x10e   : > { %1148 = vmatmul.bf16.gmra.mxu2 %v1466_v34 }
 0x111   : > { %1578 = vmatpush.bf16.msra.mxu3 %v2249_v62  ;;  %v1467_v62 = vld [vmem:[%s2415_s2 + $0xa0] sm:$0xff] }
 0x115   : > { %1579 = vmatpush.bf16.msra.mxu3 %v2289_v6 }
 0x119   : > { %1580 = vmatpush.bf16.msra.mxu3 %v1069_v56 }
 0x11c   : > { %675 = vmatmul.bf16.gmra.mxu0 %v1451_v33  ;;  %1163 = vmatmul.bf16.vlgmr.msra.gmra.mxu3 %v1469_v44  ;;  %v240_v44 = vld [vmem:[#allocation2 + $0x30] sm:$0xff] }
 0x11d   : > { %914 = vmatmul.bf16.gmra.mxu1 %v1459_v27 }
 0x11e   : > { %1153 = vmatmul.bf16.gmra.mxu2 %v1467_v62 }
 0x12c   : > { %680 = vmatmul.bf16.gmra.mxu0 %v1452_v30  ;;  %1168 = vmatmul.bf16.gmra.mxu3 %v1470_v42 }
 0x12d   : > { %919 = vmatmul.bf16.gmra.mxu1 %v1460_v31 }
 0x12e   : > { %1158 = vmatmul.bf16.gmra.mxu2 %v1468_v3  ;;  %v241_v3 = vld [vmem:[#allocation2 + $0x38] sm:$0xff] }
 0x159   : > { %v656_v21 = vpop.f32.mrf.mxu0 }
 0x15a   : > { %v895_v58 = vpop.f32.mrf.mxu1  ;;  %v696_v39 = vadd.f32 %v656_v21, %v234_v35 }
 0x15c   : > { %v935_v2 = vadd.f32 %v895_v58, %v696_v39 }
 0x15f   : > { %v2383_v28 = vpop.f32.mrf.mxu3 }
 0x161   : > { %v1134_v25 = vpop.f32.mrf.mxu2  ;;  %v658_v47 = vpop.f32.mrf.mxu0 }
 0x162   : > { %v897_v22 = vpop.f32.mrf.mxu1  ;;  %v697_v63 = vadd.f32 %v658_v47, %v235_v17  ;;  %v1174_v13 = vadd.f32 %v1134_v25, %v935_v2 }
 0x164   : > { %v936_v45 = vadd.f32 %v897_v22, %v697_v63  ;;  %v1190_v24 = vmax.f32 %v1174_v13, 0.0 }
 0x167   : > { %v2385_v15 = vpop.f32.mrf.mxu3 }
 0x169   : > { %v1136_v0 = vpop.f32.mrf.mxu2  ;;  %v661_v49 = vpop.f32.mrf.mxu0 }
 0x16a   : > { %v1175_v48 = vadd.f32 %v1136_v0, %v936_v45  ;;  %v900_v14 = vpop.f32.mrf.mxu1  ;;  %v698_v26 = vadd.f32 %v661_v49, %v236_v7 }
 0x16c   : > { %v1191_v32 = vmax.f32 %v1175_v48, 0.0  ;;  %v937_v52 = vadd.f32 %v900_v14, %v698_v26  ;;  %v242_v48 = vld [vmem:[#allocation2 + $0x40] sm:$0xff] }
 0x16d   : > { %v246_v14 = vld [vmem:[#allocation2 + $0x60] sm:$0xff] }
 0x16e   : > { %v1506_v6 = vpack.c.bf16 %v1191_v32, %v1190_v24 }
 0x16f   : > { %v2395_v4 = vpop.f32.mrf.mxu3 }
 0x170   : > { %1507 = vst [vmem:[%s2392_s13] sm:$0xff] %v1506_v6   ;;  %v243_v6 = vld [vmem:[#allocation2 + $0x48] sm:$0xff] }
 0x171   : > { %v1139_v11 = vpop.f32.mrf.mxu2  ;;  %v663_v51 = vpop.f32.mrf.mxu0 }
 0x172   : > { %v902_v16 = vpop.f32.mrf.mxu1  ;;  %v699_v41 = vadd.f32 %v663_v51, %v237_v61  ;;  %v1176_v53 = vadd.f32 %v1139_v11, %v937_v52  ;;  %v247_v11 = vld [vmem:[#allocation2 + $0x68] sm:$0xff]  ;;  %v708_v61 = vadd.f32 %v2383_v28, %v246_v14 }
 0x174   : > { %v938_v5 = vadd.f32 %v902_v16, %v699_v41  ;;  %v1192_v55 = vmax.f32 %v1176_v53, 0.0  ;;  %v709_v41 = vadd.f32 %v2385_v15, %v247_v11 }
 0x177   : > { %v2397_v40 = vpop.f32.mrf.mxu3 }
 0x179   : > { %v1141_v57 = vpop.f32.mrf.mxu2  ;;  %v666_v54 = vpop.f32.mrf.mxu0 }
 0x17a   : > { %v1177_v43 = vadd.f32 %v1141_v57, %v938_v5  ;;  %v905_v10 = vpop.f32.mrf.mxu1  ;;  %v700_v1 = vadd.f32 %v666_v54, %v238_v12 }
 0x17c   : > { %v1193_v23 = vmax.f32 %v1177_v43, 0.0  ;;  %v939_v50 = vadd.f32 %v905_v10, %v700_v1 }
 0x17e   : > { %v1511_v56 = vpack.c.bf16 %v1193_v23, %v1192_v55 }
 0x17f   : > { %v925_v60 = vpop.f32.mrf.mxu3 }
 0x180   : > { %1550 = vst [vmem:[%s2392_s13 + $0x8] sm:$0xff] %v1511_v56   ;;  %v947_v53 = vadd.f32 %v925_v60, %v708_v61  ;;  %v248_v60 = vld [vmem:[#allocation2 + $0x70] sm:$0xff] }
 0x181   : > { %v1144_v19 = vpop.f32.mrf.mxu2  ;;  %v668_v46 = vpop.f32.mrf.mxu0 }
 0x182   : > { %v907_v36 = vpop.f32.mrf.mxu1  ;;  %v701_v8 = vadd.f32 %v668_v46, %v239_v38  ;;  %v1178_v59 = vadd.f32 %v1144_v19, %v939_v50 }
 0x184   : > { %v940_v9 = vadd.f32 %v907_v36, %v701_v8  ;;  %v1194_v33 = vmax.f32 %v1178_v59, 0.0  ;;  %v244_v36 = vld [vmem:[#allocation2 + $0x50] sm:$0xff] }
 0x187   : > { %v927_v18 = vpop.f32.mrf.mxu3 }
 0x188   : > { %v948_v5 = vadd.f32 %v927_v18, %v709_v41  ;;  %v245_v18 = vld [vmem:[#allocation2 + $0x58] sm:$0xff] }
 0x189   : > { %v1146_v37 = vpop.f32.mrf.mxu2  ;;  %v671_v29 = vpop.f32.mrf.mxu0 }
 0x18a   : > { %v1179_v20 = vadd.f32 %v1146_v37, %v940_v9  ;;  %v910_v34 = vpop.f32.mrf.mxu1  ;;  %v702_v30 = vadd.f32 %v671_v29, %v240_v44  ;;  %v249_v29 = vld [vmem:[#allocation2 + $0x78] sm:$0xff] }
 0x18c   : > { %v1195_v27 = vmax.f32 %v1179_v20, 0.0  ;;  %v941_v35 = vadd.f32 %v910_v34, %v702_v30  ;;  %v710_v20 = vadd.f32 %v2395_v4, %v248_v60 }
 0x18e   : > { %v1516_v62 = vpack.c.bf16 %v1195_v27, %v1194_v33  ;;  %v711_v27 = vadd.f32 %v2397_v40, %v249_v29 }
 0x18f   : > { %v930_v31 = vpop.f32.mrf.mxu3 }
 0x190   : > { %1551 = vst [vmem:[%s2392_s13 + $0x10] sm:$0xff] %v1516_v62   ;;  %v949_v44 = vadd.f32 %v930_v31, %v710_v20 }
 0x191   : > { %v1149_v42 = vpop.f32.mrf.mxu2  ;;  %v673_v21 = vpop.f32.mrf.mxu0 }
 0x192   : > { %v912_v58 = vpop.f32.mrf.mxu1  ;;  %v703_v39 = vadd.f32 %v673_v21, %v241_v3  ;;  %v1180_v25 = vadd.f32 %v1149_v42, %v941_v35 }
 0x194   : > { %v942_v17 = vadd.f32 %v912_v58, %v703_v39  ;;  %v1196_v45 = vmax.f32 %v1180_v25, 0.0 }
 0x197   : > { %v932_v47 = vpop.f32.mrf.mxu3 }
 0x198   : > { %v950_v62 = vadd.f32 %v932_v47, %v711_v27 }
 0x199   : > { %v1151_v22 = vpop.f32.mrf.mxu2  ;;  %v676_v2 = vpop.f32.mrf.mxu0 }
 0x19a   : > { %v1181_v63 = vadd.f32 %v1151_v22, %v942_v17  ;;  %v915_v13 = vpop.f32.mrf.mxu1  ;;  %v704_v24 = vadd.f32 %v676_v2, %v242_v48 }
 0x19c   : > { %v1197_v0 = vmax.f32 %v1181_v63, 0.0  ;;  %v943_v16 = vadd.f32 %v915_v13, %v704_v24 }
 0x19e   : > { %v1521_v49 = vpack.c.bf16 %v1197_v0, %v1196_v45 }
 0x19f   : > { %v1164_v32 = vpop.f32.mrf.mxu3 }
 0x1a0   : > { %1552 = vst [vmem:[%s2392_s13 + $0x18] sm:$0xff] %v1521_v49   ;;  %v1186_v57 = vadd.f32 %v1164_v32, %v947_v53 }
 0x1a1   : > { %v1154_v7 = vpop.f32.mrf.mxu2  ;;  %v678_v26 = vpop.f32.mrf.mxu0 }
 0x1a2   : > { %v917_v51 = vpop.f32.mrf.mxu1  ;;  %v705_v52 = vadd.f32 %v678_v26, %v243_v6  ;;  %v1182_v43 = vadd.f32 %v1154_v7, %v943_v16  ;;  %v1202_v1 = vmax.f32 %v1186_v57, 0.0 }
 0x1a4   : > { %v944_v54 = vadd.f32 %v917_v51, %v705_v52  ;;  %v1198_v28 = vmax.f32 %v1182_v43, 0.0 }
 0x1a7   : > { %v1166_v10 = vpop.f32.mrf.mxu3 }
 0x1a8   : > { %v1187_v23 = vadd.f32 %v1166_v10, %v948_v5 }
 0x1a9   : > { %v1156_v55 = vpop.f32.mrf.mxu2  ;;  %v681_v56 = vpop.f32.mrf.mxu0 }
 0x1aa   : > { %v1183_v12 = vadd.f32 %v1156_v55, %v944_v54  ;;  %v1203_v19 = vmax.f32 %v1187_v23, 0.0  ;;  %v920_v50 = vpop.f32.mrf.mxu1  ;;  %v706_v8 = vadd.f32 %v681_v56, %v244_v36 }
 0x1ac   : > { %v1199_v38 = vmax.f32 %v1183_v12, 0.0  ;;  %v1536_v46 = vpack.c.bf16 %v1203_v19, %v1202_v1  ;;  %v945_v34 = vadd.f32 %v920_v50, %v706_v8 }
 0x1ae   : > { %v1526_v15 = vpack.c.bf16 %v1199_v38, %v1198_v28  ;;  %1555 = vst [vmem:[%s2392_s13 + $0x30] sm:$0xff] %v1536_v46  }
 0x1af   : > { %v1169_v59 = vpop.f32.mrf.mxu3 }
 0x1b0   : > { %1553 = vst [vmem:[%s2392_s13 + $0x20] sm:$0xff] %v1526_v15   ;;  %v1188_v30 = vadd.f32 %v1169_v59, %v949_v44 }
 0x1b1   : > { %v1159_v9 = vpop.f32.mrf.mxu2  ;;  %v683_v37 = vpop.f32.mrf.mxu0 }
 0x1b2   : > { %v707_v33 = vadd.f32 %v683_v37, %v245_v18  ;;  %v922_v42 = vpop.f32.mrf.mxu1  ;;  %v1184_v3 = vadd.f32 %v1159_v9, %v945_v34  ;;  %v1204_v17 = vmax.f32 %v1188_v30, 0.0 }
 0x1b4   : > { %v946_v21 = vadd.f32 %v922_v42, %v707_v33  ;;  %v1200_v2 = vmax.f32 %v1184_v3, 0.0 }
 0x1b7   : > { %v1171_v58 = vpop.f32.mrf.mxu3 }
 0x1b8   : > { %v1189_v39 = vadd.f32 %v1171_v58, %v950_v62 }
 0x1b9   : > { %v1161_v35 = vpop.f32.mrf.mxu2 }
 0x1ba   : > { %v1185_v25 = vadd.f32 %v1161_v35, %v946_v21  ;;  %v1205_v22 = vmax.f32 %v1189_v39, 0.0 }
 0x1bc   : > { %v1201_v4 = vmax.f32 %v1185_v25, 0.0  ;;  %v1541_v63 = vpack.c.bf16 %v1205_v22, %v1204_v17 }
 0x1be   : > { %v1531_v13 = vpack.c.bf16 %v1201_v4, %v1200_v2  ;;  %1556 = vst [vmem:[%s2392_s13 + $0x38] sm:$0xff] %v1541_v63  }
 0x1c0   : > { %1554 = vst [vmem:[%s2392_s13 + $0x28] sm:$0xff] %v1531_v13  }
 0x1c1 PF: > { %s15_s15 = sadd.s32 1, %s1781_s15  }
 0x1c2   : > { %p12_p7 = scmp.ge.s32.totalorder %s15_s15, 4  }
 0x1c4   :  { %14 = sbr.rel (!%p12_p7) target bundleno = 1 (0x1), region = 73 }
 0x1c9   :  { %1260 = vsyncpa [#allocation3], 1 }
 0x1ca   :  { %1262 = vsyncpa [#allocation3 + $0x1], 1 }

// kernel: model_forward.6
= control target key start
LH: loop header
LB: loop body
LE: loop exit
PB: predicated region body
PF: predicated region fallthrough
CT: control target
= control target key end

     0   :  { %9 = vsyncpa [#allocation3], 0  ;;  %s1944_s0 = inlined_call_operand.vmem [shape: bf16[256,128], index: 0, kind: input, shape index: {}]   ;;  %s1945_s1 = inlined_call_operand.hbm [shape: bf16[128,384], index: 1, kind: input, shape index: {}]   ;;  %s1946_s2 = inlined_call_operand.vmem [shape: bf16[3,128,128], index: 2, kind: input, shape index: {}]   ;;  %s1947_s3 = inlined_call_operand.hbm [shape: f32[128,128], index: 3, kind: input, shape index: {}]   ;;  %s1948_s4 = inlined_call_operand.vmem [shape: bf16[256,128], index: 4, kind: output, shape index: {}]  }
   0x1   :  { %10 = vsyncpa [#allocation5], 0  ;;  %s1723_s15 = smov 0  }
   0x2 LB: > { %s147_s18 = sshll.u32 %s1945_s1, 4  ;;  %s1193_s19 = sadd.s32 4294967295, %s1690_s15   ;;  %s1690_s15 = sphi %s1723_s15, %s16_s15   ;;  %s148_s18 = int_to_ptr.hbm [resolvable:$true] %s147_s18 }
   0x3   : > { %p1195_p0 = scmp.ge.s32.totalorder %s1690_s15, 1  ;;  %p136_p1 = scmp.lt.s32.totalorder %s1690_s15, 3 }
   0x4   : > { %p1736_p2 = scmp.eq.s32.totalorder %s1193_s19, 0  ;;  %s1692_s22 = smov [#allocation2]  }
   0x5   : > { %p1740_p3 = pnand %p1195_p0, %p136_p1  ;;  %s149_s23 = sshll.u32 %s1692_s22, 4  ;;  %s150_s23 = int_to_ptr.vmem [resolvable:$true] %s149_s23 }
   0x6   : > { %s164_s26 = sshll.u32 %s1947_s3, 4  ;;  %s1693_s27 = smov [#allocation4]   ;;  %s165_s26 = int_to_ptr.hbm [resolvable:$true] %s164_s26 }
   0x7   : > { %p1591_p4 = pneg %p1740_p3  ;;  %s166_s28 = sshll.u32 %s1693_s27, 4  ;;  %s167_s28 = int_to_ptr.vmem [resolvable:$true] %s166_s28 }
   0x8   : > { %s1694_s29 = smov 192   ;;  %s1695_s30 = smov 12  }
   0x9   : > { %p1592_p5 = pnand %p1736_p2, %p1591_p4  ;;  %s1696_s5 = smov 128  }
   0xa   : > { %s1697_s6 = smov 8   ;;  %191 = sbr.rel (%p1740_p3) target bundleno = 662 (0x296), region = 36 }
   0xb   : > { %1594 = dma.hbm_to_vmem [thread:$0]  (!%p1592_p5), %s148_s18, 3072, %s150_s23, [#allocation3], %s1694_s29, %s1694_s29, %s1695_s30  }
   0xc   : > { %1597 = dma.hbm_to_vmem [thread:$0]  (!%p1592_p5), %s165_s26, 2048, %s167_s28, [#allocation5], %s1696_s5, %s1696_s5, %s1697_s6  }
   0xf   : > { %1681 = dma.done.wait (%p1736_p2), [#allocation3], 3072  }
  0x10   : > { %1683 = vsyncadd (%p1736_p2), [#allocation3], 4294964224 }
  0x11   : > { %1685 = dma.done.wait (%p1736_p2), [#allocation5], 2048  }
  0x12   : > { %1687 = vsyncadd (%p1736_p2), [#allocation5], 4294965248  ;;  %v1268_v0 = vld [vmem:[#allocation2 + $0xa8] sm:$0xf]  ;;  %v1479_v1 = vld [vmem:[#allocation2 + $0xb0] sm:$0xf0] }
  0x13   : > { %v1264_v2 = vld [vmem:[#allocation2 + $0x90] sm:$0xf]  ;;  %v1269_v3 = vor.u32 %v1479_v1, %v1268_v0  ;;  %v1478_v4 = vld [vmem:[#allocation2 + $0x98] sm:$0xf0]  ;;  %v1260_v6 = vld [vmem:[#allocation2 + $0x78] sm:$0xf] }
  0x14   : > { %v1265_v5 = vor.u32 %v1478_v4, %v1264_v2  ;;  %v1477_v7 = vld [vmem:[#allocation2 + $0x80] sm:$0xf0]  ;;  %v1256_v9 = vld [vmem:[#allocation2 + $0x60] sm:$0xf]  ;;  %v1476_v10 = vld [vmem:[#allocation2 + $0x68] sm:$0xf0] }
  0x15   : > { %379 = vmatpush.bf16.msra.mxu0 %v1269_v3  ;;  %1567 = vmatpush.bf16.msra.mxu2 %v1269_v3  ;;  %v1261_v8 = vor.u32 %v1477_v7, %v1260_v6  ;;  %v1257_v11 = vor.u32 %v1476_v10, %v1256_v9  ;;  %v1252_v12 = vld [vmem:[#allocation2 + $0x48] sm:$0xf]  ;;  %v1475_v13 = vld [vmem:[#allocation2 + $0x50] sm:$0xf0]  ;;  %s1202_s7 = sshll.u32 %s1193_s19, 4 }
  0x16   : > { %v1253_v14 = vor.u32 %v1475_v13, %v1252_v12  ;;  %v1248_v15 = vld [vmem:[#allocation2 + $0x30] sm:$0xf]  ;;  %v1474_v16 = vld [vmem:[#allocation2 + $0x38] sm:$0xf0]  ;;  %p224_p6 = scmp.lt.s32.totalorder %s1202_s7, 31 }
  0x17   : > { %v1249_v17 = vor.u32 %v1474_v16, %v1248_v15  ;;  %v1244_v18 = vld [vmem:[#allocation2 + $0x18] sm:$0xf]  ;;  %v1473_v19 = vld [vmem:[#allocation2 + $0x20] sm:$0xf0]  ;;  %v1240_v21 = vld [vmem:[#allocation2] sm:$0xf] }
  0x18   : > { %s1952_s7 = smov (!%p224_p6, %s1202_s7), 31  ;;  %v1245_v20 = vor.u32 %v1473_v19, %v1244_v18  ;;  %v1472_v22 = vld [vmem:[#allocation2 + $0x8] sm:$0xf0]  ;;  %v1495_v27 = vld [vmem:[#allocation2 + $0xb4] sm:$0xf0] }
  0x19   : > { %380 = vmatpush.bf16.msra.mxu0 %v1265_v5  ;;  %1568 = vmatpush.bf16.msra.mxu2 %v1265_v5  ;;  %s1203_s8 = sshll.u32 %s1952_s7, 2  ;;  %v1241_v23 = vor.u32 %v1472_v22, %v1240_v21  ;;  %v1332_v26 = vld [vmem:[#allocation2 + $0xac] sm:$0xf]  ;;  %v1412_v29 = vld [vmem:[#allocation2 + $0xb0] sm:$0xf] }
  0x1a   : > { %s1771_s11 = scalar_lea.vmem %s1944_s0, %s1203_s8  ;;  %v1333_v28 = vor.u32 %v1495_v27, %v1332_v26  ;;  %v1511_v30 = vld [vmem:[#allocation2 + $0xb8] sm:$0xf0]  ;;  %v1328_v32 = vld [vmem:[#allocation2 + $0x94] sm:$0xf]  ;;  %v1494_v33 = vld [vmem:[#allocation2 + $0x9c] sm:$0xf0]  ;;  %s1923_s17 = scalar_lea.vmem %s1948_s4, %s1203_s8 }
  0x1b   : > { %v1774_v24 = vld [vmem:[%s1771_s11] sm:$0xff]  ;;  %v1413_v31 = vor.u32 %v1511_v30, %v1412_v29  ;;  %v1408_v34 = vld [vmem:[#allocation2 + $0x98] sm:$0xf]  ;;  %v1329_v35 = vor.u32 %v1494_v33, %v1328_v32  ;;  %v1324_v38 = vld [vmem:[#allocation2 + $0x7c] sm:$0xf] }
  0x1c   : > { %v1777_v25 = vld [vmem:[%s1771_s11 + $0x20] sm:$0xff]  ;;  %v1493_v39 = vld [vmem:[#allocation2 + $0x84] sm:$0xf0]  ;;  %v1509_v41 = vld [vmem:[#allocation2 + $0x88] sm:$0xf0] }
  0x1d   : > { %381 = vmatpush.bf16.msra.mxu0 %v1261_v8  ;;  %1569 = vmatpush.bf16.msra.mxu2 %v1261_v8  ;;  %v1510_v36 = vld [vmem:[#allocation2 + $0xa0] sm:$0xf0]  ;;  %v1404_v40 = vld [vmem:[#allocation2 + $0x80] sm:$0xf]  ;;  %v1325_v42 = vor.u32 %v1493_v39, %v1324_v38  ;;  %v1492_v45 = vld [vmem:[#allocation2 + $0x6c] sm:$0xf0] }
  0x1e   : > { %v1409_v37 = vor.u32 %v1510_v36, %v1408_v34  ;;  %v1405_v43 = vor.u32 %v1509_v41, %v1404_v40  ;;  %v1320_v44 = vld [vmem:[#allocation2 + $0x64] sm:$0xf]  ;;  %v1400_v46 = vld [vmem:[#allocation2 + $0x68] sm:$0xf]  ;;  %v1508_v47 = vld [vmem:[#allocation2 + $0x70] sm:$0xf0] }
  0x1f   : > { %v1321_v48 = vor.u32 %v1492_v45, %v1320_v44  ;;  %v1401_v49 = vor.u32 %v1508_v47, %v1400_v46  ;;  %v1465_v50 = vld [vmem:[%s1771_s11 + $0x8] sm:$0xff]  ;;  %v1491_v53 = vld [vmem:[#allocation2 + $0x54] sm:$0xf0]  ;;  %v1396_v55 = vld [vmem:[#allocation2 + $0x50] sm:$0xf] }
  0x20   : > { %v1469_v51 = vld [vmem:[%s1771_s11 + $0x28] sm:$0xff]  ;;  %v1507_v56 = vld [vmem:[#allocation2 + $0x58] sm:$0xf0]  ;;  %v1312_v58 = vld [vmem:[#allocation2 + $0x34] sm:$0xf] }
  0x21   : > { %382 = vmatpush.bf16.msra.mxu0 %v1257_v11  ;;  %1570 = vmatpush.bf16.msra.mxu2 %v1257_v11  ;;  %v1316_v52 = vld [vmem:[#allocation2 + $0x4c] sm:$0xf]  ;;  %v1397_v57 = vor.u32 %v1507_v56, %v1396_v55  ;;  %v1490_v59 = vld [vmem:[#allocation2 + $0x3c] sm:$0xf0]  ;;  %v1392_v60 = vld [vmem:[#allocation2 + $0x38] sm:$0xf] }
  0x22   : > { %v1317_v54 = vor.u32 %v1491_v53, %v1316_v52  ;;  %v1313_v61 = vor.u32 %v1490_v59, %v1312_v58  ;;  %v1506_v62 = vld [vmem:[#allocation2 + $0x40] sm:$0xf0]  ;;  %v1308_v0 = vld [vmem:[#allocation2 + $0x1c] sm:$0xf]  ;;  %v1489_v1 = vld [vmem:[#allocation2 + $0x24] sm:$0xf0] }
  0x23   : > { %v1393_v63 = vor.u32 %v1506_v62, %v1392_v60  ;;  %v1388_v2 = vld [vmem:[#allocation2 + $0x20] sm:$0xf]  ;;  %v1505_v3 = vld [vmem:[#allocation2 + $0x28] sm:$0xf0]  ;;  %v1309_v4 = vor.u32 %v1489_v1, %v1308_v0  ;;  %v1304_v6 = vld [vmem:[#allocation2 + $0x4] sm:$0xf] }
  0x24   : > { %v1389_v5 = vor.u32 %v1505_v3, %v1388_v2  ;;  %v1488_v7 = vld [vmem:[#allocation2 + $0xc] sm:$0xf0]  ;;  %v1384_v8 = vld [vmem:[#allocation2 + $0x8] sm:$0xf]  ;;  %v1504_v9 = vld [vmem:[#allocation2 + $0x10] sm:$0xf0] }
  0x25   : > { %383 = vmatpush.bf16.msra.mxu0 %v1253_v14  ;;  %1571 = vmatpush.bf16.msra.mxu2 %v1253_v14  ;;  %v1305_v10 = vor.u32 %v1488_v7, %v1304_v6  ;;  %v1385_v11 = vor.u32 %v1504_v9, %v1384_v8  ;;  %v1466_v12 = vld [vmem:[%s1771_s11 + $0x10] sm:$0xff]  ;;  %v1467_v14 = vld [vmem:[%s1771_s11 + $0x18] sm:$0xff]  ;;  %v1484_v60 = vld [vmem:[%s1946_s2 + $0x20] sm:$0xff] }
  0x26   : > { %v1470_v13 = vld [vmem:[%s1771_s11 + $0x30] sm:$0xff]  ;;  %v1471_v15 = vld [vmem:[%s1771_s11 + $0x38] sm:$0xff]  ;;  %v1480_v0 = vld [vmem:[%s1946_s2] sm:$0xff] }
  0x27   : > { %v1481_v7 = vld [vmem:[%s1946_s2 + $0x8] sm:$0xff] }
  0x29   : > { %384 = vmatpush.bf16.msra.mxu0 %v1249_v17  ;;  %1572 = vmatpush.bf16.msra.mxu2 %v1249_v17 }
  0x2d   : > { %385 = vmatpush.bf16.msra.mxu0 %v1245_v20  ;;  %1573 = vmatpush.bf16.msra.mxu2 %v1245_v20 }
  0x31   : > { %386 = vmatpush.bf16.msra.mxu0 %v1241_v23  ;;  %1574 = vmatpush.bf16.msra.mxu2 %v1241_v23 }
  0x34   : > { %387 = vmatmul.bf16.vlgmr.msra.gmra.mxu0 %v1774_v24  ;;  %407 = vmatmul.bf16.vlgmr.msra.gmra.mxu2 %v1777_v25 }
  0x35   : > { %629 = vmatpush.bf16.msrb.mxu2 %v1333_v28  ;;  %880 = vmatpush.bf16.msrb.mxu0 %v1413_v31 }
  0x39   : > { %630 = vmatpush.bf16.msrb.mxu2 %v1329_v35  ;;  %881 = vmatpush.bf16.msrb.mxu0 %v1409_v37 }
  0x3d   : > { %631 = vmatpush.bf16.msrb.mxu2 %v1325_v42  ;;  %882 = vmatpush.bf16.msrb.mxu0 %v1405_v43 }
  0x41   : > { %632 = vmatpush.bf16.msrb.mxu2 %v1321_v48  ;;  %883 = vmatpush.bf16.msrb.mxu0 %v1401_v49 }
  0x44   : > { %392 = vmatmul.bf16.gmra.mxu0 %v1465_v50  ;;  %412 = vmatmul.bf16.gmra.mxu2 %v1469_v51 }
  0x45   : > { %633 = vmatpush.bf16.msrb.mxu2 %v1317_v54  ;;  %884 = vmatpush.bf16.msrb.mxu0 %v1397_v57 }
  0x49   : > { %634 = vmatpush.bf16.msrb.mxu2 %v1313_v61  ;;  %885 = vmatpush.bf16.msrb.mxu0 %v1393_v63 }
  0x4d   : > { %635 = vmatpush.bf16.msrb.mxu2 %v1309_v4  ;;  %886 = vmatpush.bf16.msrb.mxu0 %v1389_v5  ;;  %v1485_v4 = vld [vmem:[%s1946_s2 + $0x28] sm:$0xff] }
  0x51   : > { %636 = vmatpush.bf16.msrb.mxu2 %v1305_v10  ;;  %887 = vmatpush.bf16.msrb.mxu0 %v1385_v11  ;;  %v1486_v10 = vld [vmem:[%s1946_s2 + $0x30] sm:$0xff] }
  0x54   : > { %397 = vmatmul.bf16.gmra.mxu0 %v1466_v12  ;;  %417 = vmatmul.bf16.gmra.mxu2 %v1470_v13 }
  0x64   : > { %402 = vmatmul.bf16.gmra.mxu0 %v1467_v14  ;;  %422 = vmatmul.bf16.gmra.mxu2 %v1471_v15 }
  0x74   : > { %637 = vmatmul.bf16.vlgmr.msrb.gmra.mxu2 %v1774_v24  ;;  %888 = vmatmul.bf16.vlgmr.msrb.gmra.mxu0 %v1774_v24 }
  0x84   : > { %642 = vmatmul.bf16.gmra.mxu2 %v1465_v50  ;;  %893 = vmatmul.bf16.gmra.mxu0 %v1465_v50 }
  0x94   : > { %647 = vmatmul.bf16.gmra.mxu2 %v1466_v12  ;;  %898 = vmatmul.bf16.gmra.mxu0 %v1466_v12 }
  0xa4   : > { %652 = vmatmul.bf16.gmra.mxu2 %v1467_v14  ;;  %903 = vmatmul.bf16.gmra.mxu0 %v1467_v14 }
  0xb1   : > { %v388_v16 = vpop.f32.mrf.mxu0 }
  0xb4   : > { %657 = vmatmul.bf16.gmra.mxu2 %v1777_v25  ;;  %908 = vmatmul.bf16.gmra.mxu0 %v1777_v25 }
  0xb7   : > { %v408_v17 = vpop.f32.mrf.mxu2 }
  0xb9   : > { %v390_v18 = vpop.f32.mrf.mxu0 }
  0xba   : > { %v444_v19 = vpack.c.bf16 %v390_v18, %v388_v16  ;;  %v1487_v16 = vld [vmem:[%s1946_s2 + $0x38] sm:$0xff] }
  0xbf   : > { %v410_v20 = vpop.f32.mrf.mxu2 }
  0xc0   : > { %v448_v40 = vpack.c.bf16 %v410_v20, %v408_v17 }
  0xc1   : > { %v393_v21 = vpop.f32.mrf.mxu0 }
  0xc4   : > { %662 = vmatmul.bf16.gmra.mxu2 %v1469_v51  ;;  %913 = vmatmul.bf16.gmra.mxu0 %v1469_v51 }
  0xc7   : > { %v413_v22 = vpop.f32.mrf.mxu2 }
  0xc9   : > { %v395_v23 = vpop.f32.mrf.mxu0 }
  0xca   : > { %v445_v47 = vpack.c.bf16 %v395_v23, %v393_v21 }
  0xcf   : > { %v415_v24 = vpop.f32.mrf.mxu2 }
  0xd0   : > { %v449_v37 = vpack.c.bf16 %v415_v24, %v413_v22 }
  0xd1   : > { %v398_v26 = vpop.f32.mrf.mxu0 }
  0xd4   : > { %667 = vmatmul.bf16.gmra.mxu2 %v1470_v13  ;;  %918 = vmatmul.bf16.gmra.mxu0 %v1470_v13  ;;  %v1482_v13 = vld [vmem:[%s1946_s2 + $0x10] sm:$0xff] }
  0xd7   : > { %v418_v27 = vpop.f32.mrf.mxu2 }
  0xd9   : > { %v400_v28 = vpop.f32.mrf.mxu0 }
  0xda   : > { %v446_v45 = vpack.c.bf16 %v400_v28, %v398_v26 }
  0xdf   : > { %v420_v29 = vpop.f32.mrf.mxu2 }
  0xe0   : > { %v450_v35 = vpack.c.bf16 %v420_v29, %v418_v27 }
  0xe1   : > { %v403_v30 = vpop.f32.mrf.mxu0 }
  0xe4   : > { %672 = vmatmul.bf16.gmra.mxu2 %v1471_v15  ;;  %923 = vmatmul.bf16.gmra.mxu0 %v1471_v15 }
  0xe7   : > { %v423_v25 = vpop.f32.mrf.mxu2 }
  0xe9   : > { %v405_v31 = vpop.f32.mrf.mxu0 }
  0xea   : > { %v447_v42 = vpack.c.bf16 %v405_v31, %v403_v30 }
  0xef   : > { %v425_v32 = vpop.f32.mrf.mxu2 }
  0xf0   : > { %v451_v33 = vpack.c.bf16 %v425_v32, %v423_v25  ;;  %v1512_v32 = vld [vmem:[%s1946_s2 + $0x80] sm:$0xff] }
  0xf1   : > { %v1791_v34 = vpop.f32.mrf.mxu0 }
  0xf2   : > { %500 = vmatpush.bf16.msra.mxu1 %v451_v33  ;;  %1575 = vmatpush.bf16.msra.mxu3 %v451_v33  ;;  %v1496_v33 = vld [vmem:[%s1946_s2 + $0x40] sm:$0xff] }
  0xf6   : > { %501 = vmatpush.bf16.msra.mxu1 %v450_v35  ;;  %1576 = vmatpush.bf16.msra.mxu3 %v450_v35  ;;  %v1513_v35 = vld [vmem:[%s1946_s2 + $0x88] sm:$0xff] }
  0xf7   : > { %v1793_v36 = vpop.f32.mrf.mxu2 }
  0xf9   : > { %v1795_v38 = vpop.f32.mrf.mxu0 }
  0xfa   : > { %v946_v39 = vpack.c.bf16 %v1795_v38, %v1791_v34  ;;  %502 = vmatpush.bf16.msra.mxu1 %v449_v37  ;;  %1577 = vmatpush.bf16.msra.mxu3 %v449_v37  ;;  %v1497_v34 = vld [vmem:[%s1946_s2 + $0x48] sm:$0xff]  ;;  %v1514_v37 = vld [vmem:[%s1946_s2 + $0x90] sm:$0xff]  ;;  %v1515_v38 = vld [vmem:[%s1946_s2 + $0x98] sm:$0xff] }
  0xfe   : > { %503 = vmatpush.bf16.msra.mxu1 %v448_v40  ;;  %1578 = vmatpush.bf16.msra.mxu3 %v448_v40  ;;  %v1499_v40 = vld [vmem:[%s1946_s2 + $0x58] sm:$0xff] }
  0xff   : > { %v1799_v41 = vpop.f32.mrf.mxu2 }
 0x100   : > { %v695_v43 = vpack.c.bf16 %v1799_v41, %v1793_v36  ;;  %v1498_v36 = vld [vmem:[%s1946_s2 + $0x50] sm:$0xff] }
 0x101   : > { %v1803_v44 = vpop.f32.mrf.mxu0 }
 0x102   : > { %504 = vmatpush.bf16.msra.mxu1 %v447_v42  ;;  %1579 = vmatpush.bf16.msra.mxu3 %v447_v42 }
 0x106   : > { %505 = vmatpush.bf16.msra.mxu1 %v446_v45  ;;  %1580 = vmatpush.bf16.msra.mxu3 %v446_v45  ;;  %v1500_v45 = vld [vmem:[%s1946_s2 + $0x60] sm:$0xff] }
 0x107   : > { %v1805_v46 = vpop.f32.mrf.mxu2 }
 0x109   : > { %v1807_v48 = vpop.f32.mrf.mxu0 }
 0x10a   : > { %v947_v49 = vpack.c.bf16 %v1807_v48, %v1803_v44  ;;  %506 = vmatpush.bf16.msra.mxu1 %v445_v47  ;;  %1581 = vmatpush.bf16.msra.mxu3 %v445_v47  ;;  %v1517_v48 = vld [vmem:[%s1946_s2 + $0xa8] sm:$0xff] }
 0x10e   : > { %507 = vmatpush.bf16.msra.mxu1 %v444_v19  ;;  %1582 = vmatpush.bf16.msra.mxu3 %v444_v19  ;;  %v1483_v19 = vld [vmem:[%s1946_s2 + $0x18] sm:$0xff] }
 0x10f   : > { %v1811_v50 = vpop.f32.mrf.mxu2 }
 0x110   : > { %v696_v51 = vpack.c.bf16 %v1811_v50, %v1805_v46  ;;  %v1501_v50 = vld [vmem:[%s1946_s2 + $0x68] sm:$0xff] }
 0x111   : > { %v899_v52 = vpop.f32.mrf.mxu0  ;;  %528 = vmatmul.bf16.vlgmr.msra.gmra.mxu3 %v1484_v60  ;;  %508 = vmatmul.bf16.vlgmr.msra.gmra.mxu1 %v1480_v0  ;;  %v1503_v60 = vld [vmem:[%s1946_s2 + $0x78] sm:$0xff] }
 0x117   : > { %v1815_v53 = vpop.f32.mrf.mxu2 }
 0x119   : > { %v901_v54 = vpop.f32.mrf.mxu0 }
 0x11a   : > { %v948_v55 = vpack.c.bf16 %v901_v54, %v899_v52 }
 0x11f   : > { %v650_v56 = vpop.f32.mrf.mxu2 }
 0x120   : > { %v697_v57 = vpack.c.bf16 %v650_v56, %v1815_v53  ;;  %v1518_v53 = vld [vmem:[%s1946_s2 + $0xb0] sm:$0xff] }
 0x121   : > { %v904_v58 = vpop.f32.mrf.mxu0  ;;  %533 = vmatmul.bf16.gmra.mxu3 %v1485_v4  ;;  %513 = vmatmul.bf16.gmra.mxu1 %v1481_v7 }
 0x127   : > { %v653_v59 = vpop.f32.mrf.mxu2 }
 0x129   : > { %v906_v61 = vpop.f32.mrf.mxu0 }
 0x12a   : > { %v949_v62 = vpack.c.bf16 %v906_v61, %v904_v58  ;;  %v1519_v58 = vld [vmem:[%s1946_s2 + $0xb8] sm:$0xff] }
 0x12f   : > { %v655_v63 = vpop.f32.mrf.mxu2 }
 0x130   : > { %v698_v1 = vpack.c.bf16 %v655_v63, %v653_v59 }
 0x131   : > { %v909_v2 = vpop.f32.mrf.mxu0  ;;  %538 = vmatmul.bf16.gmra.mxu3 %v1486_v10  ;;  %518 = vmatmul.bf16.gmra.mxu1 %v1482_v13 }
 0x137   : > { %v658_v3 = vpop.f32.mrf.mxu2 }
 0x139   : > { %v911_v5 = vpop.f32.mrf.mxu0 }
 0x13a   : > { %v950_v30 = vpack.c.bf16 %v911_v5, %v909_v2  ;;  %v251_v2 = vld [vmem:[#allocation4] sm:$0xff]  ;;  %v252_v5 = vld [vmem:[#allocation4 + $0x8] sm:$0xff] }
 0x13f   : > { %v660_v6 = vpop.f32.mrf.mxu2 }
 0x140   : > { %v699_v31 = vpack.c.bf16 %v660_v6, %v658_v3 }
 0x141   : > { %v914_v8 = vpop.f32.mrf.mxu0  ;;  %543 = vmatmul.bf16.gmra.mxu3 %v1487_v16  ;;  %523 = vmatmul.bf16.gmra.mxu1 %v1483_v19 }
 0x147   : > { %v663_v9 = vpop.f32.mrf.mxu2 }
 0x149   : > { %v916_v11 = vpop.f32.mrf.mxu0 }
 0x14a   : > { %v951_v28 = vpack.c.bf16 %v916_v11, %v914_v8 }
 0x14f   : > { %v665_v12 = vpop.f32.mrf.mxu2 }
 0x150   : > { %v700_v25 = vpack.c.bf16 %v665_v12, %v663_v9 }
 0x151   : > { %v919_v14 = vpop.f32.mrf.mxu0 }
 0x157   : > { %v668_v15 = vpop.f32.mrf.mxu2 }
 0x159   : > { %v921_v17 = vpop.f32.mrf.mxu0 }
 0x15a   : > { %v952_v24 = vpack.c.bf16 %v921_v17, %v919_v14  ;;  %v253_v17 = vld [vmem:[#allocation4 + $0x10] sm:$0xff] }
 0x15f   : > { %v670_v18 = vpop.f32.mrf.mxu2 }
 0x160   : > { %v701_v29 = vpack.c.bf16 %v670_v18, %v668_v15 }
 0x161   : > { %v924_v20 = vpop.f32.mrf.mxu0 }
 0x167   : > { %v673_v21 = vpop.f32.mrf.mxu2 }
 0x169   : > { %v926_v22 = vpop.f32.mrf.mxu0 }
 0x16a   : > { %v953_v23 = vpack.c.bf16 %v926_v22, %v924_v20  ;;  %v254_v20 = vld [vmem:[#allocation4 + $0x18] sm:$0xff] }
 0x16c   : > { %1002 = vmatpush.bf16.msrb.mxu1 %v953_v23 }
 0x16f   : > { %v675_v26 = vpop.f32.mrf.mxu2 }
 0x170   : > { %v702_v27 = vpack.c.bf16 %v675_v26, %v673_v21  ;;  %1003 = vmatpush.bf16.msrb.mxu1 %v952_v24 }
 0x172   : > { %751 = vmatpush.bf16.msrb.mxu3 %v702_v27 }
 0x174   : > { %1004 = vmatpush.bf16.msrb.mxu1 %v951_v28 }
 0x176   : > { %752 = vmatpush.bf16.msrb.mxu3 %v701_v29 }
 0x178   : > { %1005 = vmatpush.bf16.msrb.mxu1 %v950_v30 }
 0x17a   : > { %753 = vmatpush.bf16.msrb.mxu3 %v700_v25 }
 0x17c   : > { %1006 = vmatpush.bf16.msrb.mxu1 %v949_v62 }
 0x17e   : > { %754 = vmatpush.bf16.msrb.mxu3 %v699_v31 }
 0x180   : > { %1007 = vmatpush.bf16.msrb.mxu1 %v948_v55  ;;  %v1502_v55 = vld [vmem:[%s1946_s2 + $0x70] sm:$0xff] }
 0x182   : > { %755 = vmatpush.bf16.msrb.mxu3 %v698_v1 }
 0x184   : > { %1008 = vmatpush.bf16.msrb.mxu1 %v947_v49 }
 0x186   : > { %756 = vmatpush.bf16.msrb.mxu3 %v697_v57 }
 0x188   : > { %1009 = vmatpush.bf16.msrb.mxu1 %v946_v39 }
 0x18a   : > { %757 = vmatpush.bf16.msrb.mxu3 %v696_v51 }
 0x18b   : > { %1010 = vmatmul.bf16.vlgmr.msrb.gmra.mxu1 %v1512_v32  ;;  %v255_v32 = vld [vmem:[#allocation4 + $0x20] sm:$0xff] }
 0x18e   : > { %758 = vmatpush.bf16.msrb.mxu3 %v695_v43  ;;  %v509_v39 = vpop.f32.mrf.mxu1  ;;  %v1516_v43 = vld [vmem:[%s1946_s2 + $0xa0] sm:$0xff] }
 0x18f   : > { %v549_v4 = vadd.f32 %v509_v39, %v251_v2 }
 0x191   : > { %759 = vmatmul.bf16.vlgmr.msrb.gmra.mxu3 %v1496_v33 }
 0x194   : > { %v1878_v42 = vpop.f32.mrf.mxu3 }
 0x196   : > { %v511_v41 = vpop.f32.mrf.mxu1 }
 0x197   : > { %v550_v8 = vadd.f32 %v511_v41, %v252_v5 }
 0x19b   : > { %1015 = vmatmul.bf16.gmra.mxu1 %v1513_v35 }
 0x19c   : > { %v1886_v46 = vpop.f32.mrf.mxu3 }
 0x19e   : > { %v514_v44 = vpop.f32.mrf.mxu1 }
 0x19f   : > { %v551_v19 = vadd.f32 %v514_v44, %v253_v17 }
 0x1a1   : > { %764 = vmatmul.bf16.gmra.mxu3 %v1497_v34  ;;  %v256_v34 = vld [vmem:[#allocation4 + $0x28] sm:$0xff] }
 0x1a4   : > { %v1891_v49 = vpop.f32.mrf.mxu3 }
 0x1a6   : > { %v516_v47 = vpop.f32.mrf.mxu1 }
 0x1a7   : > { %v552_v23 = vadd.f32 %v516_v47, %v254_v20  ;;  %v261_v20 = vld [vmem:[#allocation4 + $0x50] sm:$0xff] }
 0x1ab   : > { %1020 = vmatmul.bf16.gmra.mxu1 %v1514_v37 }
 0x1ac   : > { %v1896_v52 = vpop.f32.mrf.mxu3 }
 0x1ae   : > { %v519_v51 = vpop.f32.mrf.mxu1 }
 0x1af   : > { %v553_v35 = vadd.f32 %v519_v51, %v255_v32 }
 0x1b1   : > { %769 = vmatmul.bf16.gmra.mxu3 %v1498_v36 }
 0x1b4   : > { %v1904_v56 = vpop.f32.mrf.mxu3 }
 0x1b6   : > { %v521_v54 = vpop.f32.mrf.mxu1 }
 0x1bb   : > { %1025 = vmatmul.bf16.gmra.mxu1 %v1515_v38  ;;  %v554_v38 = vadd.f32 %v521_v54, %v256_v34 }
 0x1bc   : > { %v1909_v59 = vpop.f32.mrf.mxu3 }
 0x1be   : > { %v524_v57 = vpop.f32.mrf.mxu1 }
 0x1c1   : > { %774 = vmatmul.bf16.gmra.mxu3 %v1499_v40 }
 0x1c4   : > { %v1914_v62 = vpop.f32.mrf.mxu3 }
 0x1c6   : > { %v526_v61 = vpop.f32.mrf.mxu1 }
 0x1cb   : > { %1030 = vmatmul.bf16.gmra.mxu1 %v1516_v43 }
 0x1cc   : > { %v1916_v0 = vpop.f32.mrf.mxu3 }
 0x1d1   : > { %779 = vmatmul.bf16.gmra.mxu3 %v1500_v45 }
 0x1db   : > { %1035 = vmatmul.bf16.gmra.mxu1 %v1517_v48 }
 0x1e1   : > { %784 = vmatmul.bf16.gmra.mxu3 %v1501_v50  ;;  %v257_v50 = vld [vmem:[#allocation4 + $0x30] sm:$0xff] }
 0x1eb   : > { %1040 = vmatmul.bf16.gmra.mxu1 %v1518_v53 }
 0x1f1   : > { %789 = vmatmul.bf16.gmra.mxu3 %v1502_v55  ;;  %v555_v55 = vadd.f32 %v524_v57, %v257_v50 }
 0x1fb   : > { %1045 = vmatmul.bf16.gmra.mxu1 %v1519_v58  ;;  %v258_v58 = vld [vmem:[#allocation4 + $0x38] sm:$0xff] }
 0x201   : > { %794 = vmatmul.bf16.gmra.mxu3 %v1503_v60 }
 0x208   : > { %v1011_v63 = vpop.f32.mrf.mxu1 }
 0x210   : > { %v1013_v1 = vpop.f32.mrf.mxu1 }
 0x214   : > { %v760_v3 = vpop.f32.mrf.mxu3 }
 0x215   : > { %v800_v7 = vadd.f32 %v760_v3, %v549_v4 }
 0x217   : > { %v1051_v10 = vadd.f32 %v1011_v63, %v800_v7  ;;  %v556_v63 = vadd.f32 %v526_v61, %v258_v58 }
 0x218   : > { %v1016_v6 = vpop.f32.mrf.mxu1 }
 0x219   : > { %v1067_v14 = vmax.f32 %v1051_v10, 0.0 }
 0x21c   : > { %v762_v9 = vpop.f32.mrf.mxu3 }
 0x21d   : > { %v801_v11 = vadd.f32 %v762_v9, %v550_v8  ;;  %v259_v8 = vld [vmem:[#allocation4 + $0x40] sm:$0xff] }
 0x21e   : > { %v557_v10 = vadd.f32 %v1878_v42, %v259_v8  ;;  %v262_v42 = vld [vmem:[#allocation4 + $0x58] sm:$0xff] }
 0x21f   : > { %v1052_v12 = vadd.f32 %v1013_v1, %v801_v11  ;;  %v260_v11 = vld [vmem:[#allocation4 + $0x48] sm:$0xff] }
 0x220   : > { %v1018_v13 = vpop.f32.mrf.mxu1 }
 0x221   : > { %v1068_v15 = vmax.f32 %v1052_v12, 0.0  ;;  %v558_v12 = vadd.f32 %v1886_v46, %v260_v11 }
 0x223   : > { %v1523_v16 = vpack.c.bf16 %v1068_v15, %v1067_v14 }
 0x224   : > { %v765_v18 = vpop.f32.mrf.mxu3 }
 0x225   : > { %1524 = vst [vmem:[%s1923_s17] sm:$0xff] %v1523_v16   ;;  %v802_v22 = vadd.f32 %v765_v18, %v551_v19 }
 0x227   : > { %v1053_v26 = vadd.f32 %v1016_v6, %v802_v22 }
 0x228   : > { %v1021_v21 = vpop.f32.mrf.mxu1 }
 0x229   : > { %v1069_v30 = vmax.f32 %v1053_v26, 0.0  ;;  %v560_v26 = vadd.f32 %v1896_v52, %v262_v42 }
 0x22c   : > { %v767_v24 = vpop.f32.mrf.mxu3 }
 0x22d   : > { %v803_v27 = vadd.f32 %v767_v24, %v552_v23  ;;  %v559_v23 = vadd.f32 %v1891_v49, %v261_v20 }
 0x22f   : > { %v1054_v28 = vadd.f32 %v1018_v13, %v803_v27 }
 0x230   : > { %v1023_v29 = vpop.f32.mrf.mxu1 }
 0x231   : > { %v1070_v25 = vmax.f32 %v1054_v28, 0.0 }
 0x233   : > { %v1528_v31 = vpack.c.bf16 %v1070_v25, %v1069_v30 }
 0x234   : > { %v770_v33 = vpop.f32.mrf.mxu3 }
 0x235   : > { %1560 = vst [vmem:[%s1923_s17 + $0x8] sm:$0xff] %v1528_v31   ;;  %v804_v36 = vadd.f32 %v770_v33, %v553_v35  ;;  %v263_v33 = vld [vmem:[#allocation4 + $0x60] sm:$0xff] }
 0x236   : > { %v561_v34 = vadd.f32 %v1904_v56, %v263_v33  ;;  %v266_v56 = vld [vmem:[#allocation4 + $0x78] sm:$0xff] }
 0x237   : > { %v1055_v40 = vadd.f32 %v1021_v21, %v804_v36  ;;  %v564_v58 = vadd.f32 %v1916_v0, %v266_v56 }
 0x238   : > { %v1026_v37 = vpop.f32.mrf.mxu1 }
 0x239   : > { %v1071_v45 = vmax.f32 %v1055_v40, 0.0 }
 0x23c   : > { %v772_v39 = vpop.f32.mrf.mxu3 }
 0x23d   : > { %v805_v41 = vadd.f32 %v772_v39, %v554_v38 }
 0x23f   : > { %v1056_v43 = vadd.f32 %v1023_v29, %v805_v41 }
 0x240   : > { %v1028_v44 = vpop.f32.mrf.mxu1 }
 0x241   : > { %v1072_v47 = vmax.f32 %v1056_v43, 0.0 }
 0x243   : > { %v1533_v48 = vpack.c.bf16 %v1072_v47, %v1071_v45  ;;  %v265_v47 = vld [vmem:[#allocation4 + $0x70] sm:$0xff] }
 0x244   : > { %v775_v53 = vpop.f32.mrf.mxu3 }
 0x245   : > { %1561 = vst [vmem:[%s1923_s17 + $0x10] sm:$0xff] %v1533_v48   ;;  %v806_v51 = vadd.f32 %v775_v53, %v555_v55  ;;  %v563_v53 = vadd.f32 %v1914_v62, %v265_v47 }
 0x247   : > { %v1057_v2 = vadd.f32 %v1026_v37, %v806_v51  ;;  %v264_v37 = vld [vmem:[#allocation4 + $0x68] sm:$0xff] }
 0x248   : > { %v1031_v60 = vpop.f32.mrf.mxu1  ;;  %v562_v38 = vadd.f32 %v1909_v59, %v264_v37 }
 0x249   : > { %v1073_v4 = vmax.f32 %v1057_v2, 0.0 }
 0x24c   : > { %v777_v1 = vpop.f32.mrf.mxu3 }
 0x24d   : > { %v807_v54 = vadd.f32 %v777_v1, %v556_v63 }
 0x24f   : > { %v1058_v3 = vadd.f32 %v1028_v44, %v807_v54 }
 0x250   : > { %v1033_v6 = vpop.f32.mrf.mxu1 }
 0x251   : > { %v1074_v5 = vmax.f32 %v1058_v3, 0.0 }
 0x253   : > { %v1538_v7 = vpack.c.bf16 %v1074_v5, %v1073_v4 }
 0x254   : > { %v780_v9 = vpop.f32.mrf.mxu3 }
 0x255   : > { %1562 = vst [vmem:[%s1923_s17 + $0x18] sm:$0xff] %v1538_v7   ;;  %v808_v57 = vadd.f32 %v780_v9, %v557_v10 }
 0x257   : > { %v1059_v14 = vadd.f32 %v1031_v60, %v808_v57 }
 0x258   : > { %v1036_v61 = vpop.f32.mrf.mxu1 }
 0x259   : > { %v1075_v17 = vmax.f32 %v1059_v14, 0.0 }
 0x25c   : > { %v782_v13 = vpop.f32.mrf.mxu3 }
 0x25d   : > { %v809_v15 = vadd.f32 %v782_v13, %v558_v12 }
 0x25f   : > { %v1060_v16 = vadd.f32 %v1033_v6, %v809_v15 }
 0x260   : > { %v1038_v22 = vpop.f32.mrf.mxu1 }
 0x261   : > { %v1076_v18 = vmax.f32 %v1060_v16, 0.0 }
 0x263   : > { %v1543_v19 = vpack.c.bf16 %v1076_v18, %v1075_v17 }
 0x264   : > { %v785_v21 = vpop.f32.mrf.mxu3 }
 0x265   : > { %1563 = vst [vmem:[%s1923_s17 + $0x20] sm:$0xff] %v1543_v19   ;;  %v810_v24 = vadd.f32 %v785_v21, %v559_v23 }
 0x267   : > { %v1061_v27 = vadd.f32 %v1036_v61, %v810_v24 }
 0x268   : > { %v1041_v30 = vpop.f32.mrf.mxu1 }
 0x269   : > { %v1077_v25 = vmax.f32 %v1061_v27, 0.0 }
 0x26c   : > { %v787_v46 = vpop.f32.mrf.mxu3 }
 0x26d   : > { %v811_v28 = vadd.f32 %v787_v46, %v560_v26 }
 0x26f   : > { %v1062_v29 = vadd.f32 %v1038_v22, %v811_v28 }
 0x270   : > { %v1043_v36 = vpop.f32.mrf.mxu1 }
 0x271   : > { %v1078_v31 = vmax.f32 %v1062_v29, 0.0 }
 0x273   : > { %v1548_v32 = vpack.c.bf16 %v1078_v31, %v1077_v25 }
 0x274   : > { %v790_v35 = vpop.f32.mrf.mxu3 }
 0x275   : > { %1564 = vst [vmem:[%s1923_s17 + $0x28] sm:$0xff] %v1548_v32   ;;  %v812_v49 = vadd.f32 %v790_v35, %v561_v34 }
 0x277   : > { %v1063_v39 = vadd.f32 %v1041_v30, %v812_v49 }
 0x278   : > { %v1046_v50 = vpop.f32.mrf.mxu1 }
 0x279   : > { %v1079_v43 = vmax.f32 %v1063_v39, 0.0 }
 0x27c   : > { %v792_v52 = vpop.f32.mrf.mxu3 }
 0x27d   : > { %v813_v40 = vadd.f32 %v792_v52, %v562_v38 }
 0x27f   : > { %v1064_v41 = vadd.f32 %v1043_v36, %v813_v40 }
 0x280   : > { %v1048_v63 = vpop.f32.mrf.mxu1 }
 0x281   : > { %v1080_v44 = vmax.f32 %v1064_v41, 0.0 }
 0x283   : > { %v1553_v45 = vpack.c.bf16 %v1080_v44, %v1079_v43 }
 0x284   : > { %v795_v48 = vpop.f32.mrf.mxu3 }
 0x285   : > { %1565 = vst [vmem:[%s1923_s17 + $0x30] sm:$0xff] %v1553_v45   ;;  %v814_v55 = vadd.f32 %v795_v48, %v563_v53 }
 0x287   : > { %v1065_v59 = vadd.f32 %v1046_v50, %v814_v55 }
 0x289   : > { %v1081_v2 = vmax.f32 %v1065_v59, 0.0 }
 0x28c   : > { %v797_v60 = vpop.f32.mrf.mxu3 }
 0x28d   : > { %v815_v51 = vadd.f32 %v797_v60, %v564_v58 }
 0x28f   : > { %v1066_v1 = vadd.f32 %v1048_v63, %v815_v51 }
 0x291   : > { %v1082_v54 = vmax.f32 %v1066_v1, 0.0 }
 0x293   : > { %v1558_v3 = vpack.c.bf16 %v1082_v54, %v1081_v2 }
 0x295   : > { %1566 = vst [vmem:[%s1923_s17 + $0x38] sm:$0xff] %v1558_v3  }
 0x296 PF: > { %s16_s15 = sadd.s32 1, %s1690_s15  }
 0x297   : > { %p13_p7 = scmp.ge.s32.totalorder %s16_s15, 4  }
 0x299   :  { %15 = sbr.rel (!%p13_p7) target bundleno = 2 (0x2), region = 77 }
 0x29e   :  { %1137 = vsyncpa [#allocation3], 1 }
 0x29f   :  { %1139 = vsyncpa [#allocation3 + $0x1], 1 }
 0x2a0   :  { %1140 = vsyncpa [#allocation5], 1 }

// kernel: model_forward.8
= control target key start
LH: loop header
LB: loop body
LE: loop exit
PB: predicated region body
PF: predicated region fallthrough
CT: control target
= control target key end

     0   :  { %9 = vsyncpa [#allocation3], 0  ;;  %s2923_s0 = inlined_call_operand.vmem [shape: bf16[256,128], index: 0, kind: input, shape index: {}]   ;;  %s2924_s1 = inlined_call_operand.hbm [shape: bf16[128,768], index: 1, kind: input, shape index: {}]   ;;  %s2925_s2 = inlined_call_operand.vmem [shape: bf16[3,128,128], index: 2, kind: input, shape index: {}]   ;;  %s2926_s3 = inlined_call_operand.hbm [shape: f32[128,256], index: 3, kind: input, shape index: {}]   ;;  %s2927_s4 = inlined_call_operand.vmem [shape: bf16[256,256], index: 4, kind: output, shape index: {}]  }
   0x1   :  { %10 = vsyncpa [#allocation5], 0  ;;  %s2280_s15 = smov 0  }
   0x2 LB: > { %s147_s18 = sshll.u32 %s2924_s1, 4  ;;  %s1691_s19 = sadd.s32 4294967295, %s2247_s15   ;;  %s2247_s15 = sphi %s2280_s15, %s16_s15   ;;  %s148_s18 = int_to_ptr.hbm [resolvable:$true] %s147_s18 }
   0x3   : > { %p1693_p0 = scmp.ge.s32.totalorder %s2247_s15, 1  ;;  %p136_p1 = scmp.lt.s32.totalorder %s2247_s15, 3 }
   0x4   : > { %p2293_p2 = scmp.eq.s32.totalorder %s1691_s19, 0  ;;  %s2249_s22 = smov [#allocation2]  }
   0x5   : > { %p2297_p3 = pnand %p1693_p0, %p136_p1  ;;  %s149_s23 = sshll.u32 %s2249_s22, 4  ;;  %s150_s23 = int_to_ptr.vmem [resolvable:$true] %s149_s23 }
   0x6   : > { %s164_s26 = sshll.u32 %s2926_s3, 4  ;;  %s2250_s27 = smov [#allocation4]   ;;  %s165_s26 = int_to_ptr.hbm [resolvable:$true] %s164_s26 }
   0x7   : > { %p2148_p4 = pneg %p2297_p3  ;;  %s166_s28 = sshll.u32 %s2250_s27, 4  ;;  %s167_s28 = int_to_ptr.vmem [resolvable:$true] %s166_s28 }
   0x8   : > { %s2251_s29 = smov 384   ;;  %s2252_s30 = smov 24  }
   0x9   : > { %p2149_p5 = pnand %p2293_p2, %p2148_p4  ;;  %s2253_s5 = smov 256  }
   0xa   : > { %s2254_s6 = smov 16   ;;  %191 = sbr.rel (%p2297_p3) target bundleno = 847 (0x34f), region = 36 }
   0xb   : > { %2151 = dma.hbm_to_vmem [thread:$0]  (!%p2149_p5), %s148_s18, 6144, %s150_s23, [#allocation3], %s2251_s29, %s2251_s29, %s2252_s30  }
   0xc   : > { %2154 = dma.hbm_to_vmem [thread:$0]  (!%p2149_p5), %s165_s26, 4096, %s167_s28, [#allocation5], %s2253_s5, %s2253_s5, %s2254_s6  }
   0xf   : > { %2238 = dma.done.wait (%p2293_p2), [#allocation3], 6144  }
  0x10   : > { %2240 = vsyncadd (%p2293_p2), [#allocation3], 4294961152 }
  0x11   : > { %2242 = dma.done.wait (%p2293_p2), [#allocation5], 4096  }
  0x12   : > { %2244 = vsyncadd (%p2293_p2), [#allocation5], 4294963200  ;;  %v1795_v0 = vld [vmem:[#allocation2 + $0x150] sm:$0xf]  ;;  %v2083_v1 = vld [vmem:[#allocation2 + $0x164] sm:$0xf0] }
  0x13   : > { %v2082_v2 = vld [vmem:[#allocation2 + $0x154] sm:$0xf]  ;;  %v1796_v3 = vor.u32 %v2083_v1, %v1795_v0  ;;  %v1797_v4 = vld [vmem:[#allocation2 + $0x168] sm:$0xf0]  ;;  %v1787_v5 = vld [vmem:[#allocation2 + $0x120] sm:$0xf] }
  0x14   : > { %v2081_v6 = vld [vmem:[#allocation2 + $0x134] sm:$0xf0]  ;;  %v1800_v7 = vor.u32 %v2082_v2, %v1797_v4  ;;  %v2080_v8 = vld [vmem:[#allocation2 + $0x124] sm:$0xf]  ;;  %v1789_v9 = vld [vmem:[#allocation2 + $0x138] sm:$0xf0] }
  0x15   : > { %429 = vmatpush.bf16.msra.mxu0 %v1796_v3  ;;  %v1788_v10 = vor.u32 %v2081_v6, %v1787_v5  ;;  %v1792_v11 = vor.u32 %v2080_v8, %v1789_v9  ;;  %v1779_v12 = vld [vmem:[#allocation2 + $0xf0] sm:$0xf]  ;;  %v2079_v13 = vld [vmem:[#allocation2 + $0x104] sm:$0xf0]  ;;  %v2078_v14 = vld [vmem:[#allocation2 + $0xf4] sm:$0xf] }
  0x16   : > { %478 = vmatpush.bf16.msra.mxu1 %v1800_v7  ;;  %v1781_v15 = vld [vmem:[#allocation2 + $0x108] sm:$0xf0]  ;;  %v1780_v16 = vor.u32 %v2079_v13, %v1779_v12  ;;  %v1771_v18 = vld [vmem:[#allocation2 + $0xc0] sm:$0xf]  ;;  %v2077_v19 = vld [vmem:[#allocation2 + $0xd4] sm:$0xf0] }
  0x17   : > { %v1784_v17 = vor.u32 %v2078_v14, %v1781_v15  ;;  %v2076_v20 = vld [vmem:[#allocation2 + $0xc4] sm:$0xf]  ;;  %v1773_v21 = vld [vmem:[#allocation2 + $0xd8] sm:$0xf0]  ;;  %v1772_v22 = vor.u32 %v2077_v19, %v1771_v18  ;;  %v1763_v24 = vld [vmem:[#allocation2 + $0x90] sm:$0xf] }
  0x18   : > { %v1776_v23 = vor.u32 %v2076_v20, %v1773_v21  ;;  %v2075_v25 = vld [vmem:[#allocation2 + $0xa4] sm:$0xf0]  ;;  %v2074_v26 = vld [vmem:[#allocation2 + $0x94] sm:$0xf]  ;;  %v1765_v27 = vld [vmem:[#allocation2 + $0xa8] sm:$0xf0] }
  0x19   : > { %430 = vmatpush.bf16.msra.mxu0 %v1788_v10  ;;  %s1700_s7 = sshll.u32 %s1691_s19, 4  ;;  %v1764_v28 = vor.u32 %v2075_v25, %v1763_v24  ;;  %v1768_v29 = vor.u32 %v2074_v26, %v1765_v27  ;;  %v1755_v30 = vld [vmem:[#allocation2 + $0x60] sm:$0xf]  ;;  %v2073_v31 = vld [vmem:[#allocation2 + $0x74] sm:$0xf0] }
  0x1a   : > { %479 = vmatpush.bf16.msra.mxu1 %v1792_v11  ;;  %p225_p6 = scmp.lt.s32.totalorder %s1700_s7, 31  ;;  %v2072_v32 = vld [vmem:[#allocation2 + $0x64] sm:$0xf]  ;;  %v1757_v33 = vld [vmem:[#allocation2 + $0x78] sm:$0xf0]  ;;  %v1756_v34 = vor.u32 %v2073_v31, %v1755_v30 }
  0x1b   : > { %v1760_v35 = vor.u32 %v2072_v32, %v1757_v33  ;;  %v1747_v36 = vld [vmem:[#allocation2 + $0x30] sm:$0xf]  ;;  %v2071_v37 = vld [vmem:[#allocation2 + $0x44] sm:$0xf0]  ;;  %v2070_v38 = vld [vmem:[#allocation2 + $0x34] sm:$0xf] }
  0x1c   : > { %s2943_s7 = smov (!%p225_p6, %s1700_s7), 31  ;;  %v1749_v39 = vld [vmem:[#allocation2 + $0x48] sm:$0xf0]  ;;  %v1748_v40 = vor.u32 %v2071_v37, %v1747_v36  ;;  %v1739_v42 = vld [vmem:[#allocation2] sm:$0xf] }
  0x1d   : > { %431 = vmatpush.bf16.msra.mxu0 %v1780_v16  ;;  %v1752_v41 = vor.u32 %v2070_v38, %v1749_v39  ;;  %v2069_v43 = vld [vmem:[#allocation2 + $0x14] sm:$0xf0]  ;;  %s1701_s8 = sshll.u32 %s2943_s7, 2  ;;  %v2068_v44 = vld [vmem:[#allocation2 + $0x4] sm:$0xf]  ;;  %s2059_s12 = sshll.u32 %s2943_s7, 3 }
  0x1e   : > { %480 = vmatpush.bf16.msra.mxu1 %v1784_v17  ;;  %v1741_v45 = vld [vmem:[#allocation2 + $0x18] sm:$0xf0]  ;;  %v1740_v46 = vor.u32 %v2069_v43, %v1739_v42  ;;  %s2326_s11 = scalar_lea.vmem %s2923_s0, %s1701_s8  ;;  %v1891_v53 = vld [vmem:[#allocation2 + $0x158] sm:$0xf]  ;;  %v2107_v54 = vld [vmem:[#allocation2 + $0x16c] sm:$0xf0]  ;;  %s2872_s16 = scalar_lea.vmem %s2927_s4, %s2059_s12 }
  0x1f   : > { %v1744_v47 = vor.u32 %v2068_v44, %v1741_v45  ;;  %v2329_v48 = vld [vmem:[%s2326_s11] sm:$0xff]  ;;  %v2334_v49 = vld [vmem:[%s2326_s11 + $0x8] sm:$0xff]  ;;  %v2339_v50 = vld [vmem:[%s2326_s11 + $0x10] sm:$0xff]  ;;  %v1892_v56 = vor.u32 %v2107_v54, %v1891_v53 }
  0x20   : > { %v2344_v51 = vld [vmem:[%s2326_s11 + $0x18] sm:$0xff]  ;;  %v2349_v52 = vld [vmem:[%s2326_s11 + $0x20] sm:$0xff]  ;;  %v1893_v57 = vld [vmem:[#allocation2 + $0x170] sm:$0xf0] }
  0x21   : > { %432 = vmatpush.bf16.msra.mxu0 %v1772_v22  ;;  %v2106_v55 = vld [vmem:[#allocation2 + $0x15c] sm:$0xf]  ;;  %v1883_v59 = vld [vmem:[#allocation2 + $0x128] sm:$0xf]  ;;  %v2105_v60 = vld [vmem:[#allocation2 + $0x13c] sm:$0xf0] }
  0x22   : > { %481 = vmatpush.bf16.msra.mxu1 %v1776_v23  ;;  %v1896_v58 = vor.u32 %v2106_v55, %v1893_v57  ;;  %v2104_v61 = vld [vmem:[#allocation2 + $0x12c] sm:$0xf]  ;;  %v1884_v62 = vor.u32 %v2105_v60, %v1883_v59  ;;  %v1885_v63 = vld [vmem:[#allocation2 + $0x140] sm:$0xf0]  ;;  %v1875_v1 = vld [vmem:[#allocation2 + $0xf8] sm:$0xf] }
  0x23   : > { %v1888_v0 = vor.u32 %v2104_v61, %v1885_v63  ;;  %v2103_v2 = vld [vmem:[#allocation2 + $0x10c] sm:$0xf0]  ;;  %v2102_v3 = vld [vmem:[#allocation2 + $0xfc] sm:$0xf]  ;;  %v1877_v4 = vld [vmem:[#allocation2 + $0x110] sm:$0xf0] }
  0x24   : > { %v1876_v5 = vor.u32 %v2103_v2, %v1875_v1  ;;  %v1880_v6 = vor.u32 %v2102_v3, %v1877_v4  ;;  %v1867_v7 = vld [vmem:[#allocation2 + $0xc8] sm:$0xf]  ;;  %v2101_v8 = vld [vmem:[#allocation2 + $0xdc] sm:$0xf0]  ;;  %v2100_v9 = vld [vmem:[#allocation2 + $0xcc] sm:$0xf] }
  0x25   : > { %433 = vmatpush.bf16.msra.mxu0 %v1764_v28  ;;  %v1869_v10 = vld [vmem:[#allocation2 + $0xe0] sm:$0xf0]  ;;  %v1868_v11 = vor.u32 %v2101_v8, %v1867_v7  ;;  %v2354_v13 = vld [vmem:[%s2326_s11 + $0x28] sm:$0xff]  ;;  %v1859_v14 = vld [vmem:[#allocation2 + $0x98] sm:$0xf] }
  0x26   : > { %482 = vmatpush.bf16.msra.mxu1 %v1768_v29  ;;  %v1872_v12 = vor.u32 %v2100_v9, %v1869_v10  ;;  %v2099_v15 = vld [vmem:[#allocation2 + $0xac] sm:$0xf0]  ;;  %v2098_v16 = vld [vmem:[#allocation2 + $0x9c] sm:$0xf]  ;;  %v1861_v18 = vld [vmem:[#allocation2 + $0xb0] sm:$0xf0] }
  0x27   : > { %v1860_v17 = vor.u32 %v2099_v15, %v1859_v14  ;;  %v1864_v19 = vor.u32 %v2098_v16, %v1861_v18  ;;  %v1851_v20 = vld [vmem:[#allocation2 + $0x68] sm:$0xf]  ;;  %v2097_v21 = vld [vmem:[#allocation2 + $0x7c] sm:$0xf0]  ;;  %v2096_v22 = vld [vmem:[#allocation2 + $0x6c] sm:$0xf] }
  0x28   : > { %v1852_v23 = vor.u32 %v2097_v21, %v1851_v20  ;;  %v1853_v24 = vld [vmem:[#allocation2 + $0x80] sm:$0xf0]  ;;  %v1843_v26 = vld [vmem:[#allocation2 + $0x38] sm:$0xf]  ;;  %v2095_v27 = vld [vmem:[#allocation2 + $0x4c] sm:$0xf0] }
  0x29   : > { %434 = vmatpush.bf16.msra.mxu0 %v1756_v34  ;;  %v1856_v25 = vor.u32 %v2096_v22, %v1853_v24  ;;  %v2094_v28 = vld [vmem:[#allocation2 + $0x3c] sm:$0xf]  ;;  %v1845_v29 = vld [vmem:[#allocation2 + $0x50] sm:$0xf0]  ;;  %v1844_v30 = vor.u32 %v2095_v27, %v1843_v26  ;;  %v1835_v32 = vld [vmem:[#allocation2 + $0x8] sm:$0xf] }
  0x2a   : > { %483 = vmatpush.bf16.msra.mxu1 %v1760_v35  ;;  %v1848_v31 = vor.u32 %v2094_v28, %v1845_v29  ;;  %v2093_v33 = vld [vmem:[#allocation2 + $0x1c] sm:$0xf0]  ;;  %v2092_v34 = vld [vmem:[#allocation2 + $0xc] sm:$0xf]  ;;  %v2359_v35 = vld [vmem:[%s2326_s11 + $0x30] sm:$0xff] }
  0x2b   : > { %v1836_v36 = vor.u32 %v2093_v33, %v1835_v32  ;;  %v1837_v37 = vld [vmem:[#allocation2 + $0x20] sm:$0xf0]  ;;  %v2364_v39 = vld [vmem:[%s2326_s11 + $0x38] sm:$0xff]  ;;  %v2003_v7 = vld [vmem:[#allocation2 + $0x160] sm:$0xf] }
  0x2c   : > { %v1840_v38 = vor.u32 %v2092_v34, %v1837_v37  ;;  %v2131_v8 = vld [vmem:[#allocation2 + $0x174] sm:$0xf0]  ;;  %v2130_v9 = vld [vmem:[#allocation2 + $0x164] sm:$0xf]  ;;  %v1995_v14 = vld [vmem:[#allocation2 + $0x130] sm:$0xf] }
  0x2d   : > { %435 = vmatpush.bf16.msra.mxu0 %v1748_v40  ;;  %v2004_v10 = vor.u32 %v2131_v8, %v2003_v7  ;;  %v2129_v15 = vld [vmem:[#allocation2 + $0x144] sm:$0xf0]  ;;  %v2128_v16 = vld [vmem:[#allocation2 + $0x134] sm:$0xf]  ;;  %v1997_v18 = vld [vmem:[#allocation2 + $0x148] sm:$0xf0] }
  0x2e   : > { %484 = vmatpush.bf16.msra.mxu1 %v1752_v41  ;;  %v2000_v20 = vor.u32 %v2128_v16, %v1997_v18  ;;  %v1987_v22 = vld [vmem:[#allocation2 + $0x100] sm:$0xf]  ;;  %v2126_v24 = vld [vmem:[#allocation2 + $0x104] sm:$0xf]  ;;  %v1989_v26 = vld [vmem:[#allocation2 + $0x118] sm:$0xf0] }
  0x2f   : > { %v1992_v27 = vor.u32 %v2126_v24, %v1989_v26  ;;  %v1979_v28 = vld [vmem:[#allocation2 + $0xd0] sm:$0xf]  ;;  %v2125_v29 = vld [vmem:[#allocation2 + $0xe4] sm:$0xf0]  ;;  %v1981_v32 = vld [vmem:[#allocation2 + $0xe8] sm:$0xf0] }
  0x30   : > { %v1971_v37 = vld [vmem:[#allocation2 + $0xa0] sm:$0xf]  ;;  %v2122_v7 = vld [vmem:[#allocation2 + $0xa4] sm:$0xf]  ;;  %v1965_v16 = vld [vmem:[#allocation2 + $0x88] sm:$0xf0] }
  0x31   : > { %436 = vmatpush.bf16.msra.mxu0 %v1740_v46  ;;  %v2118_v24 = vld [vmem:[#allocation2 + $0x44] sm:$0xf]  ;;  %v1957_v26 = vld [vmem:[#allocation2 + $0x58] sm:$0xf0] }
  0x32   : > { %485 = vmatpush.bf16.msra.mxu1 %v1744_v47 }
  0x34   : > { %437 = vmatmul.bf16.vlgmr.msra.gmra.mxu0 %v2329_v48 }
  0x35   : > { %486 = vmatmul.bf16.vlgmr.msra.gmra.mxu1 %v2329_v48  ;;  %833 = vmatpush.bf16.msrb.mxu0 %v1892_v56 }
  0x36   : > { %882 = vmatpush.bf16.msrb.mxu1 %v1896_v58 }
  0x39   : > { %834 = vmatpush.bf16.msrb.mxu0 %v1884_v62 }
  0x3a   : > { %883 = vmatpush.bf16.msrb.mxu1 %v1888_v0 }
  0x3d   : > { %835 = vmatpush.bf16.msrb.mxu0 %v1876_v5 }
  0x3e   : > { %884 = vmatpush.bf16.msrb.mxu1 %v1880_v6 }
  0x41   : > { %836 = vmatpush.bf16.msrb.mxu0 %v1868_v11  ;;  %v2005_v11 = vld [vmem:[#allocation2 + $0x178] sm:$0xf0] }
  0x42   : > { %885 = vmatpush.bf16.msrb.mxu1 %v1872_v12  ;;  %v2008_v12 = vor.u32 %v2130_v9, %v2005_v11  ;;  %v1973_v9 = vld [vmem:[#allocation2 + $0xb8] sm:$0xf0]  ;;  %v1963_v11 = vld [vmem:[#allocation2 + $0x70] sm:$0xf] }
  0x44   : > { %442 = vmatmul.bf16.gmra.mxu0 %v2334_v49 }
  0x45   : > { %491 = vmatmul.bf16.gmra.mxu1 %v2334_v49  ;;  %837 = vmatpush.bf16.msrb.mxu0 %v1860_v17  ;;  %v1996_v17 = vor.u32 %v2129_v15, %v1995_v14  ;;  %v2120_v14 = vld [vmem:[#allocation2 + $0x74] sm:$0xf] }
  0x46   : > { %886 = vmatpush.bf16.msrb.mxu1 %v1864_v19  ;;  %v1968_v18 = vor.u32 %v2120_v14, %v1965_v16 }
  0x49   : > { %838 = vmatpush.bf16.msrb.mxu0 %v1852_v23  ;;  %v2127_v23 = vld [vmem:[#allocation2 + $0x114] sm:$0xf0] }
  0x4a   : > { %887 = vmatpush.bf16.msrb.mxu1 %v1856_v25  ;;  %v1988_v25 = vor.u32 %v2127_v23, %v1987_v22  ;;  %v1955_v22 = vld [vmem:[#allocation2 + $0x40] sm:$0xf]  ;;  %v2119_v23 = vld [vmem:[#allocation2 + $0x54] sm:$0xf0] }
  0x4d   : > { %839 = vmatpush.bf16.msrb.mxu0 %v1844_v30  ;;  %v2124_v30 = vld [vmem:[#allocation2 + $0xd4] sm:$0xf] }
  0x4e   : > { %888 = vmatpush.bf16.msrb.mxu1 %v1848_v31  ;;  %v1980_v31 = vor.u32 %v2125_v29, %v1979_v28  ;;  %v1984_v34 = vor.u32 %v2124_v30, %v1981_v32  ;;  %v1947_v28 = vld [vmem:[#allocation2 + $0x10] sm:$0xf]  ;;  %v2117_v29 = vld [vmem:[#allocation2 + $0x24] sm:$0xf0]  ;;  %v2116_v30 = vld [vmem:[#allocation2 + $0x14] sm:$0xf] }
  0x4f   : > { %v1949_v32 = vld [vmem:[#allocation2 + $0x28] sm:$0xf0] }
  0x51   : > { %840 = vmatpush.bf16.msrb.mxu0 %v1836_v36 }
  0x52   : > { %889 = vmatpush.bf16.msrb.mxu1 %v1840_v38  ;;  %v2123_v38 = vld [vmem:[#allocation2 + $0xb4] sm:$0xf0] }
  0x53   : > { %v1972_v8 = vor.u32 %v2123_v38, %v1971_v37  ;;  %v1952_v37 = vor.u32 %v2116_v30, %v1949_v32  ;;  %v2090_v32 = vld [vmem:[%s2925_s2 + $0x30] sm:$0xff] }
  0x54   : > { %447 = vmatmul.bf16.gmra.mxu0 %v2339_v50 }
  0x55   : > { %496 = vmatmul.bf16.gmra.mxu1 %v2339_v50  ;;  %1238 = vmatpush.bf16.msra.mxu0 %v2004_v10  ;;  %v1976_v10 = vor.u32 %v2122_v7, %v1973_v9 }
  0x56   : > { %1287 = vmatpush.bf16.msra.mxu1 %v2008_v12  ;;  %v2121_v12 = vld [vmem:[#allocation2 + $0x84] sm:$0xf0] }
  0x57   : > { %v1964_v15 = vor.u32 %v2121_v12, %v1963_v11 }
  0x59   : > { %1239 = vmatpush.bf16.msra.mxu0 %v1996_v17 }
  0x5a   : > { %1288 = vmatpush.bf16.msra.mxu1 %v2000_v20 }
  0x5d   : > { %1240 = vmatpush.bf16.msra.mxu0 %v1988_v25  ;;  %v1956_v25 = vor.u32 %v2119_v23, %v1955_v22 }
  0x5e   : > { %1289 = vmatpush.bf16.msra.mxu1 %v1992_v27  ;;  %v1960_v27 = vor.u32 %v2118_v24, %v1957_v26 }
  0x61   : > { %1241 = vmatpush.bf16.msra.mxu0 %v1980_v31  ;;  %v1948_v31 = vor.u32 %v2117_v29, %v1947_v28 }
  0x62   : > { %1290 = vmatpush.bf16.msra.mxu1 %v1984_v34 }
  0x64   : > { %452 = vmatmul.bf16.gmra.mxu0 %v2344_v51 }
  0x65   : > { %501 = vmatmul.bf16.gmra.mxu1 %v2344_v51  ;;  %1242 = vmatpush.bf16.msra.mxu0 %v1972_v8 }
  0x66   : > { %1291 = vmatpush.bf16.msra.mxu1 %v1976_v10 }
  0x69   : > { %1243 = vmatpush.bf16.msra.mxu0 %v1964_v15 }
  0x6a   : > { %1292 = vmatpush.bf16.msra.mxu1 %v1968_v18 }
  0x6d   : > { %1244 = vmatpush.bf16.msra.mxu0 %v1956_v25 }
  0x6e   : > { %1293 = vmatpush.bf16.msra.mxu1 %v1960_v27 }
  0x71   : > { %1245 = vmatpush.bf16.msra.mxu0 %v1948_v31 }
  0x72   : > { %1294 = vmatpush.bf16.msra.mxu1 %v1952_v37 }
  0x74   : > { %457 = vmatmul.bf16.gmra.mxu0 %v2349_v52 }
  0x75   : > { %506 = vmatmul.bf16.gmra.mxu1 %v2349_v52 }
  0x84   : > { %462 = vmatmul.bf16.gmra.mxu0 %v2354_v13 }
  0x85   : > { %511 = vmatmul.bf16.gmra.mxu1 %v2354_v13 }
  0x94   : > { %467 = vmatmul.bf16.gmra.mxu0 %v2359_v35 }
  0x95   : > { %516 = vmatmul.bf16.gmra.mxu1 %v2359_v35 }
  0xa4   : > { %472 = vmatmul.bf16.gmra.mxu0 %v2364_v39 }
  0xa5   : > { %521 = vmatmul.bf16.gmra.mxu1 %v2364_v39 }
  0xb1   : > { %v2368_v40 = vpop.f32.mrf.mxu0 }
  0xb2   : > { %v2370_v41 = vpop.f32.mrf.mxu1 }
  0xb4   : > { %841 = vmatmul.bf16.vlgmr.msrb.gmra.mxu0 %v2329_v48 }
  0xb5   : > { %890 = vmatmul.bf16.vlgmr.msrb.gmra.mxu1 %v2329_v48 }
  0xb9   : > { %v2374_v42 = vpop.f32.mrf.mxu0 }
  0xba   : > { %v2376_v43 = vpop.f32.mrf.mxu1  ;;  %v543_v44 = vpack.c.bf16 %v2374_v42, %v2368_v40 }
  0xbb   : > { %v544_v45 = vpack.c.bf16 %v2376_v43, %v2370_v41  ;;  %v2085_v41 = vld [vmem:[%s2925_s2 + $0x8] sm:$0xff] }
  0xc1   : > { %v2382_v46 = vpop.f32.mrf.mxu0 }
  0xc2   : > { %v2384_v47 = vpop.f32.mrf.mxu1 }
  0xc4   : > { %846 = vmatmul.bf16.gmra.mxu0 %v2334_v49 }
  0xc5   : > { %895 = vmatmul.bf16.gmra.mxu1 %v2334_v49 }
  0xc9   : > { %v2388_v53 = vpop.f32.mrf.mxu0 }
  0xca   : > { %v2390_v54 = vpop.f32.mrf.mxu1  ;;  %v545_v55 = vpack.c.bf16 %v2388_v53, %v2382_v46 }
  0xcb   : > { %v546_v56 = vpack.c.bf16 %v2390_v54, %v2384_v47 }
  0xd1   : > { %v2396_v57 = vpop.f32.mrf.mxu0 }
  0xd2   : > { %v2398_v58 = vpop.f32.mrf.mxu1 }
  0xd4   : > { %851 = vmatmul.bf16.gmra.mxu0 %v2339_v50 }
  0xd5   : > { %900 = vmatmul.bf16.gmra.mxu1 %v2339_v50 }
  0xd9   : > { %v2402_v59 = vpop.f32.mrf.mxu0 }
  0xda   : > { %v2404_v60 = vpop.f32.mrf.mxu1  ;;  %v547_v61 = vpack.c.bf16 %v2402_v59, %v2396_v57  ;;  %v2084_v57 = vld [vmem:[%s2925_s2] sm:$0xff] }
  0xdb   : > { %v548_v62 = vpack.c.bf16 %v2404_v60, %v2398_v58 }
  0xe1   : > { %v2410_v63 = vpop.f32.mrf.mxu0 }
  0xe2   : > { %v2412_v0 = vpop.f32.mrf.mxu1 }
  0xe4   : > { %856 = vmatmul.bf16.gmra.mxu0 %v2344_v51 }
  0xe5   : > { %905 = vmatmul.bf16.gmra.mxu1 %v2344_v51 }
  0xe9   : > { %v2416_v1 = vpop.f32.mrf.mxu0 }
  0xea   : > { %v2418_v2 = vpop.f32.mrf.mxu1  ;;  %v549_v3 = vpack.c.bf16 %v2416_v1, %v2410_v63 }
  0xeb   : > { %v550_v4 = vpack.c.bf16 %v2418_v2, %v2412_v0 }
  0xf1   : > { %v2424_v5 = vpop.f32.mrf.mxu0 }
  0xf2   : > { %v2426_v6 = vpop.f32.mrf.mxu1 }
  0xf4   : > { %861 = vmatmul.bf16.gmra.mxu0 %v2349_v52 }
  0xf5   : > { %910 = vmatmul.bf16.gmra.mxu1 %v2349_v52 }
  0xf9   : > { %v2430_v19 = vpop.f32.mrf.mxu0 }
  0xfa   : > { %v2432_v21 = vpop.f32.mrf.mxu1  ;;  %v551_v26 = vpack.c.bf16 %v2430_v19, %v2424_v5 }
  0xfb   : > { %v552_v27 = vpack.c.bf16 %v2432_v21, %v2426_v6 }
 0x101   : > { %v2434_v33 = vpop.f32.mrf.mxu0 }
 0x102   : > { %v2436_v36 = vpop.f32.mrf.mxu1 }
 0x104   : > { %866 = vmatmul.bf16.gmra.mxu0 %v2354_v13 }
 0x105   : > { %915 = vmatmul.bf16.gmra.mxu1 %v2354_v13 }
 0x109   : > { %v465_v17 = vpop.f32.mrf.mxu0 }
 0x10a   : > { %v514_v20 = vpop.f32.mrf.mxu1  ;;  %v553_v24 = vpack.c.bf16 %v465_v17, %v2434_v33  ;;  %v2089_v17 = vld [vmem:[%s2925_s2 + $0x28] sm:$0xff] }
 0x10b   : > { %v554_v25 = vpack.c.bf16 %v514_v20, %v2436_v36 }
 0x111   : > { %v468_v34 = vpop.f32.mrf.mxu0 }
 0x112   : > { %v517_v38 = vpop.f32.mrf.mxu1 }
 0x114   : > { %871 = vmatmul.bf16.gmra.mxu0 %v2359_v35 }
 0x115   : > { %920 = vmatmul.bf16.gmra.mxu1 %v2359_v35 }
 0x119   : > { %v470_v7 = vpop.f32.mrf.mxu0 }
 0x11a   : > { %v519_v8 = vpop.f32.mrf.mxu1  ;;  %v555_v16 = vpack.c.bf16 %v470_v7, %v468_v34 }
 0x11b   : > { %v556_v18 = vpack.c.bf16 %v519_v8, %v517_v38 }
 0x121   : > { %v473_v9 = vpop.f32.mrf.mxu0 }
 0x122   : > { %v522_v10 = vpop.f32.mrf.mxu1 }
 0x124   : > { %876 = vmatmul.bf16.gmra.mxu0 %v2364_v39 }
 0x125   : > { %925 = vmatmul.bf16.gmra.mxu1 %v2364_v39 }
 0x129   : > { %v475_v11 = vpop.f32.mrf.mxu0 }
 0x12a   : > { %v524_v12 = vpop.f32.mrf.mxu1  ;;  %v557_v14 = vpack.c.bf16 %v475_v11, %v473_v9 }
 0x12b   : > { %v558_v15 = vpack.c.bf16 %v524_v12, %v522_v10 }
 0x12c   : > { %607 = vmatpush.bf16.msra.mxu2 %v557_v14 }
 0x12d   : > { %656 = vmatpush.bf16.msra.mxu3 %v558_v15  ;;  %v2091_v15 = vld [vmem:[%s2925_s2 + $0x38] sm:$0xff] }
 0x130   : > { %608 = vmatpush.bf16.msra.mxu2 %v555_v16 }
 0x131   : > { %657 = vmatpush.bf16.msra.mxu3 %v556_v18  ;;  %v2444_v22 = vpop.f32.mrf.mxu0 }
 0x132   : > { %v2446_v23 = vpop.f32.mrf.mxu1 }
 0x134   : > { %609 = vmatpush.bf16.msra.mxu2 %v553_v24  ;;  %1246 = vmatmul.bf16.vlgmr.msra.gmra.mxu0 %v2329_v48 }
 0x135   : > { %658 = vmatpush.bf16.msra.mxu3 %v554_v25  ;;  %1295 = vmatmul.bf16.vlgmr.msra.gmra.mxu1 %v2329_v48 }
 0x138   : > { %610 = vmatpush.bf16.msra.mxu2 %v551_v26 }
 0x139   : > { %659 = vmatpush.bf16.msra.mxu3 %v552_v27  ;;  %v2456_v28 = vpop.f32.mrf.mxu0 }
 0x13a   : > { %v2458_v29 = vpop.f32.mrf.mxu1  ;;  %v948_v33 = vpack.c.bf16 %v2456_v28, %v2444_v22 }
 0x13b   : > { %v949_v36 = vpack.c.bf16 %v2458_v29, %v2446_v23 }
 0x13c   : > { %611 = vmatpush.bf16.msra.mxu2 %v549_v3 }
 0x13d   : > { %660 = vmatpush.bf16.msra.mxu3 %v550_v4  ;;  %v2088_v4 = vld [vmem:[%s2925_s2 + $0x20] sm:$0xff] }
 0x140   : > { %612 = vmatpush.bf16.msra.mxu2 %v547_v61 }
 0x141   : > { %661 = vmatpush.bf16.msra.mxu3 %v548_v62  ;;  %v2476_v48 = vpop.f32.mrf.mxu0 }
 0x142   : > { %v2478_v5 = vpop.f32.mrf.mxu1 }
 0x144   : > { %613 = vmatpush.bf16.msra.mxu2 %v545_v55  ;;  %1251 = vmatmul.bf16.gmra.mxu0 %v2334_v49 }
 0x145   : > { %662 = vmatpush.bf16.msra.mxu3 %v546_v56  ;;  %1300 = vmatmul.bf16.gmra.mxu1 %v2334_v49 }
 0x148   : > { %614 = vmatpush.bf16.msra.mxu2 %v543_v44 }
 0x149   : > { %663 = vmatpush.bf16.msra.mxu3 %v544_v45  ;;  %v2497_v46 = vpop.f32.mrf.mxu0 }
 0x14a   : > { %v2499_v53 = vpop.f32.mrf.mxu1  ;;  %v950_v47 = vpack.c.bf16 %v2497_v46, %v2476_v48 }
 0x14b   : > { %615 = vmatmul.bf16.vlgmr.msra.gmra.mxu2 %v2084_v57  ;;  %v951_v49 = vpack.c.bf16 %v2499_v53, %v2478_v5 }
 0x14c   : > { %664 = vmatmul.bf16.vlgmr.msra.gmra.mxu3 %v2084_v57  ;;  %v2108_v57 = vld [vmem:[%s2925_s2 + $0x40] sm:$0xff] }
 0x151   : > { %v2505_v54 = vpop.f32.mrf.mxu0 }
 0x152   : > { %v2507_v40 = vpop.f32.mrf.mxu1 }
 0x154   : > { %1256 = vmatmul.bf16.gmra.mxu0 %v2339_v50 }
 0x155   : > { %1305 = vmatmul.bf16.gmra.mxu1 %v2339_v50  ;;  %v2086_v50 = vld [vmem:[%s2925_s2 + $0x10] sm:$0xff] }
 0x159   : > { %v2514_v42 = vpop.f32.mrf.mxu0 }
 0x15a   : > { %v2516_v43 = vpop.f32.mrf.mxu1  ;;  %v952_v44 = vpack.c.bf16 %v2514_v42, %v2505_v54 }
 0x15b   : > { %620 = vmatmul.bf16.gmra.mxu2 %v2085_v41  ;;  %v953_v45 = vpack.c.bf16 %v2516_v43, %v2507_v40 }
 0x15c   : > { %669 = vmatmul.bf16.gmra.mxu3 %v2085_v41 }
 0x161   : > { %v2522_v55 = vpop.f32.mrf.mxu0 }
 0x162   : > { %v2524_v56 = vpop.f32.mrf.mxu1 }
 0x164   : > { %1261 = vmatmul.bf16.gmra.mxu0 %v2344_v51 }
 0x165   : > { %1310 = vmatmul.bf16.gmra.mxu1 %v2344_v51  ;;  %v2087_v51 = vld [vmem:[%s2925_s2 + $0x18] sm:$0xff] }
 0x169   : > { %v2531_v58 = vpop.f32.mrf.mxu0 }
 0x16a   : > { %v2533_v59 = vpop.f32.mrf.mxu1  ;;  %v954_v60 = vpack.c.bf16 %v2531_v58, %v2522_v55 }
 0x16b   : > { %625 = vmatmul.bf16.gmra.mxu2 %v2086_v50  ;;  %v955_v61 = vpack.c.bf16 %v2533_v59, %v2524_v56 }
 0x16c   : > { %674 = vmatmul.bf16.gmra.mxu3 %v2086_v50  ;;  %v2110_v50 = vld [vmem:[%s2925_s2 + $0x50] sm:$0xff] }
 0x171   : > { %v862_v62 = vpop.f32.mrf.mxu0 }
 0x172   : > { %v911_v63 = vpop.f32.mrf.mxu1 }
 0x174   : > { %1266 = vmatmul.bf16.gmra.mxu0 %v2349_v52 }
 0x175   : > { %1315 = vmatmul.bf16.gmra.mxu1 %v2349_v52 }
 0x179   : > { %v864_v0 = vpop.f32.mrf.mxu0 }
 0x17a   : > { %v913_v1 = vpop.f32.mrf.mxu1  ;;  %v956_v12 = vpack.c.bf16 %v864_v0, %v862_v62 }
 0x17b   : > { %630 = vmatmul.bf16.gmra.mxu2 %v2087_v51  ;;  %v957_v14 = vpack.c.bf16 %v913_v1, %v911_v63 }
 0x17c   : > { %679 = vmatmul.bf16.gmra.mxu3 %v2087_v51 }
 0x181   : > { %v867_v2 = vpop.f32.mrf.mxu0 }
 0x182   : > { %v916_v3 = vpop.f32.mrf.mxu1 }
 0x184   : > { %1271 = vmatmul.bf16.gmra.mxu0 %v2354_v13 }
 0x185   : > { %1320 = vmatmul.bf16.gmra.mxu1 %v2354_v13 }
 0x189   : > { %v869_v6 = vpop.f32.mrf.mxu0 }
 0x18a   : > { %v918_v52 = vpop.f32.mrf.mxu1  ;;  %v958_v10 = vpack.c.bf16 %v869_v6, %v867_v2 }
 0x18b   : > { %635 = vmatmul.bf16.gmra.mxu2 %v2088_v4  ;;  %v959_v11 = vpack.c.bf16 %v918_v52, %v916_v3  ;;  %v2111_v3 = vld [vmem:[%s2925_s2 + $0x58] sm:$0xff] }
 0x18c   : > { %684 = vmatmul.bf16.gmra.mxu3 %v2088_v4 }
 0x191   : > { %v872_v19 = vpop.f32.mrf.mxu0 }
 0x192   : > { %v921_v21 = vpop.f32.mrf.mxu1 }
 0x194   : > { %1276 = vmatmul.bf16.gmra.mxu0 %v2359_v35 }
 0x195   : > { %1325 = vmatmul.bf16.gmra.mxu1 %v2359_v35 }
 0x199   : > { %v874_v20 = vpop.f32.mrf.mxu0 }
 0x19a   : > { %v923_v13 = vpop.f32.mrf.mxu1  ;;  %v960_v7 = vpack.c.bf16 %v874_v20, %v872_v19 }
 0x19b   : > { %640 = vmatmul.bf16.gmra.mxu2 %v2089_v17  ;;  %v961_v8 = vpack.c.bf16 %v923_v13, %v921_v21 }
 0x19c   : > { %689 = vmatmul.bf16.gmra.mxu3 %v2089_v17 }
 0x1a1   : > { %v877_v30 = vpop.f32.mrf.mxu0 }
 0x1a2   : > { %v926_v31 = vpop.f32.mrf.mxu1 }
 0x1a4   : > { %1281 = vmatmul.bf16.gmra.mxu0 %v2364_v39 }
 0x1a5   : > { %1330 = vmatmul.bf16.gmra.mxu1 %v2364_v39 }
 0x1a9   : > { %v879_v34 = vpop.f32.mrf.mxu0 }
 0x1aa   : > { %v962_v35 = vpack.c.bf16 %v879_v34, %v877_v30  ;;  %v928_v37 = vpop.f32.mrf.mxu1  ;;  %v2112_v30 = vld [vmem:[%s2925_s2 + $0x60] sm:$0xff] }
 0x1ab   : > { %v963_v38 = vpack.c.bf16 %v928_v37, %v926_v31  ;;  %645 = vmatmul.bf16.gmra.mxu2 %v2090_v32 }
 0x1ac   : > { %694 = vmatmul.bf16.gmra.mxu3 %v2090_v32  ;;  %1012 = vmatpush.bf16.msrb.mxu2 %v962_v35 }
 0x1ad   : > { %1061 = vmatpush.bf16.msrb.mxu3 %v963_v38 }
 0x1b0   : > { %1013 = vmatpush.bf16.msrb.mxu2 %v960_v7 }
 0x1b1   : > { %1062 = vmatpush.bf16.msrb.mxu3 %v961_v8  ;;  %v2559_v9 = vpop.f32.mrf.mxu0 }
 0x1b2   : > { %v2561_v39 = vpop.f32.mrf.mxu1 }
 0x1b4   : > { %1014 = vmatpush.bf16.msrb.mxu2 %v958_v10  ;;  %v2113_v10 = vld [vmem:[%s2925_s2 + $0x68] sm:$0xff] }
 0x1b5   : > { %1063 = vmatpush.bf16.msrb.mxu3 %v959_v11 }
 0x1b8   : > { %1015 = vmatpush.bf16.msrb.mxu2 %v956_v12 }
 0x1b9   : > { %1064 = vmatpush.bf16.msrb.mxu3 %v957_v14  ;;  %v2566_v16 = vpop.f32.mrf.mxu0 }
 0x1ba   : > { %v2570_v24 = vpop.f32.mrf.mxu1 }
 0x1bb   : > { %650 = vmatmul.bf16.gmra.mxu2 %v2091_v15 }
 0x1bc   : > { %699 = vmatmul.bf16.gmra.mxu3 %v2091_v15  ;;  %1016 = vmatpush.bf16.msrb.mxu2 %v954_v60 }
 0x1bd   : > { %1065 = vmatpush.bf16.msrb.mxu3 %v955_v61 }
 0x1c0   : > { %1017 = vmatpush.bf16.msrb.mxu2 %v952_v44 }
 0x1c1   : > { %1066 = vmatpush.bf16.msrb.mxu3 %v953_v45  ;;  %v2586_v26 = vpop.f32.mrf.mxu0 }
 0x1c2   : > { %v2588_v27 = vpop.f32.mrf.mxu1 }
 0x1c4   : > { %1018 = vmatpush.bf16.msrb.mxu2 %v950_v47 }
 0x1c5   : > { %1067 = vmatpush.bf16.msrb.mxu3 %v951_v49 }
 0x1c8   : > { %1019 = vmatpush.bf16.msrb.mxu2 %v948_v33 }
 0x1c9   : > { %1068 = vmatpush.bf16.msrb.mxu3 %v949_v36  ;;  %v2605_v54 = vpop.f32.mrf.mxu0  ;;  %v2109_v36 = vld [vmem:[%s2925_s2 + $0x48] sm:$0xff] }
 0x1ca   : > { %v2609_v46 = vpop.f32.mrf.mxu1 }
 0x1cb   : > { %1020 = vmatmul.bf16.vlgmr.msrb.gmra.mxu2 %v2108_v57 }
 0x1cc   : > { %1069 = vmatmul.bf16.vlgmr.msrb.gmra.mxu3 %v2108_v57 }
 0x1ce   : > { %v2613_v53 = vpop.f32.mrf.mxu2 }
 0x1cf   : > { %v2615_v22 = vpop.f32.mrf.mxu3 }
 0x1d1   : > { %v2617_v28 = vpop.f32.mrf.mxu0 }
 0x1d2   : > { %v2619_v23 = vpop.f32.mrf.mxu1 }
 0x1d6   : > { %v2621_v29 = vpop.f32.mrf.mxu2 }
 0x1d7   : > { %v2623_v33 = vpop.f32.mrf.mxu3 }
 0x1d9   : > { %v2628_v47 = vpop.f32.mrf.mxu0 }
 0x1da   : > { %v2632_v40 = vpop.f32.mrf.mxu1 }
 0x1db   : > { %1025 = vmatmul.bf16.gmra.mxu2 %v2109_v36 }
 0x1dc   : > { %1074 = vmatmul.bf16.gmra.mxu3 %v2109_v36 }
 0x1de   : > { %v2636_v42 = vpop.f32.mrf.mxu2 }
 0x1df   : > { %v2638_v43 = vpop.f32.mrf.mxu3 }
 0x1e1   : > { %v2640_v44 = vpop.f32.mrf.mxu0 }
 0x1e2   : > { %v2642_v45 = vpop.f32.mrf.mxu1 }
 0x1e6   : > { %v2644_v55 = vpop.f32.mrf.mxu2 }
 0x1e7   : > { %v2646_v56 = vpop.f32.mrf.mxu3 }
 0x1e9   : > { %v2651_v58 = vpop.f32.mrf.mxu0 }
 0x1ea   : > { %v2655_v60 = vpop.f32.mrf.mxu1 }
 0x1eb   : > { %1030 = vmatmul.bf16.gmra.mxu2 %v2110_v50 }
 0x1ec   : > { %1079 = vmatmul.bf16.gmra.mxu3 %v2110_v50 }
 0x1ee   : > { %v2659_v62 = vpop.f32.mrf.mxu2 }
 0x1ef   : > { %v2661_v63 = vpop.f32.mrf.mxu3 }
 0x1f1   : > { %v1267_v51 = vpop.f32.mrf.mxu0 }
 0x1f2   : > { %v1316_v0 = vpop.f32.mrf.mxu1 }
 0x1f6   : > { %v2663_v1 = vpop.f32.mrf.mxu2 }
 0x1f7   : > { %v2665_v2 = vpop.f32.mrf.mxu3 }
 0x1f9   : > { %v1269_v4 = vpop.f32.mrf.mxu0 }
 0x1fa   : > { %v1318_v6 = vpop.f32.mrf.mxu1 }
 0x1fb   : > { %1035 = vmatmul.bf16.gmra.mxu2 %v2111_v3 }
 0x1fc   : > { %1084 = vmatmul.bf16.gmra.mxu3 %v2111_v3 }
 0x1fe   : > { %v2670_v52 = vpop.f32.mrf.mxu2 }
 0x1ff   : > { %v2672_v19 = vpop.f32.mrf.mxu3 }
 0x201   : > { %v1272_v21 = vpop.f32.mrf.mxu0 }
 0x202   : > { %v1321_v17 = vpop.f32.mrf.mxu1 }
 0x206   : > { %v2674_v20 = vpop.f32.mrf.mxu2 }
 0x207   : > { %v2676_v13 = vpop.f32.mrf.mxu3 }
 0x209   : > { %v1274_v31 = vpop.f32.mrf.mxu0 }
 0x20a   : > { %v1323_v32 = vpop.f32.mrf.mxu1  ;;  %v1363_v59 = vpack.c.bf16 %v1274_v31, %v1272_v21 }
 0x20b   : > { %1040 = vmatmul.bf16.gmra.mxu2 %v2112_v30 }
 0x20c   : > { %1089 = vmatmul.bf16.gmra.mxu3 %v2112_v30  ;;  %v2114_v30 = vld [vmem:[%s2925_s2 + $0x70] sm:$0xff] }
 0x20e   : > { %v2681_v34 = vpop.f32.mrf.mxu2 }
 0x20f   : > { %v2683_v35 = vpop.f32.mrf.mxu3 }
 0x211   : > { %v1277_v37 = vpop.f32.mrf.mxu0 }
 0x212   : > { %v1326_v38 = vpop.f32.mrf.mxu1 }
 0x216   : > { %v2685_v7 = vpop.f32.mrf.mxu2 }
 0x217   : > { %v2687_v8 = vpop.f32.mrf.mxu3 }
 0x219   : > { %v1279_v11 = vpop.f32.mrf.mxu0 }
 0x21a   : > { %v1328_v12 = vpop.f32.mrf.mxu1 }
 0x21b   : > { %1045 = vmatmul.bf16.gmra.mxu2 %v2113_v10  ;;  %v1366_v49 = vpack.c.bf16 %v1328_v12, %v1326_v38  ;;  %v257_v38 = vld [vmem:[#allocation4 + $0x20] sm:$0xff] }
 0x21c   : > { %1094 = vmatmul.bf16.gmra.mxu3 %v2113_v10  ;;  %v1365_v10 = vpack.c.bf16 %v1279_v11, %v1277_v37  ;;  %v258_v11 = vld [vmem:[#allocation4 + $0x28] sm:$0xff]  ;;  %v709_v12 = vadd.f32 %v2636_v42, %v257_v38  ;;  %v2134_v42 = vld [vmem:[%s2925_s2 + $0x90] sm:$0xff] }
 0x21d   : > { %v267_v38 = vld [vmem:[#allocation4 + $0x70] sm:$0xff] }
 0x21e   : > { %v2692_v14 = vpop.f32.mrf.mxu2 }
 0x21f   : > { %v2694_v15 = vpop.f32.mrf.mxu3 }
 0x221   : > { %v1282_v57 = vpop.f32.mrf.mxu0 }
 0x222   : > { %v1331_v36 = vpop.f32.mrf.mxu1 }
 0x226   : > { %v2696_v50 = vpop.f32.mrf.mxu2 }
 0x227   : > { %2930 = vst [vmem:[#allocation8_spill] sm:$0xff] %v2696_v50  ;;  %v2698_v3 = vpop.f32.mrf.mxu3  ;;  %v1361_v50 = vpack.c.bf16 %v1269_v4, %v1267_v51  ;;  %v2935_v4 = vpack.c.bf16 %v2632_v40, %v2619_v23  ;;  %v2938_v23 = vpack.c.bf16 %v2566_v16, %v2559_v9  ;;  %v255_v9 = vld [vmem:[#allocation4 + $0x10] sm:$0xff]  ;;  %v256_v16 = vld [vmem:[#allocation4 + $0x18] sm:$0xff] }
 0x228   : > { %2931 = vst [vmem:[#allocation9_spill] sm:$0xff] %v2698_v3  ;;  %v1364_v3 = vpack.c.bf16 %v1323_v32, %v1321_v17  ;;  %v707_v31 = vadd.f32 %v2621_v29, %v255_v9  ;;  %v710_v29 = vadd.f32 %v2638_v43, %v258_v11  ;;  %v268_v11 = vld [vmem:[#allocation4 + $0x78] sm:$0xff] }
 0x229   : > { %v1284_v25 = vpop.f32.mrf.mxu0 }
 0x22a   : > { %v1367_v18 = vpack.c.bf16 %v1284_v25, %v1282_v57  ;;  %v1333_v5 = vpop.f32.mrf.mxu1 }
 0x22b   : > { %v1368_v48 = vpack.c.bf16 %v1333_v5, %v1331_v36  ;;  %1050 = vmatmul.bf16.gmra.mxu2 %v2114_v30  ;;  %v1362_v5 = vpack.c.bf16 %v1318_v6, %v1316_v0  ;;  %v2934_v0 = vpack.c.bf16 %v2628_v47, %v2617_v28  ;;  %v2132_v28 = vld [vmem:[%s2925_s2 + $0x80] sm:$0xff]  ;;  %v254_v47 = vld [vmem:[#allocation4 + $0x8] sm:$0xff] }
 0x22c   : > { %1099 = vmatmul.bf16.gmra.mxu3 %v2114_v30  ;;  %1417 = vmatpush.bf16.msra.mxu2 %v1367_v18  ;;  %v2115_v18 = vld [vmem:[%s2925_s2 + $0x78] sm:$0xff]  ;;  %v259_v30 = vld [vmem:[#allocation4 + $0x30] sm:$0xff] }
 0x22d   : > { %1466 = vmatpush.bf16.msra.mxu3 %v1368_v48  ;;  %v2932_v48 = vpack.c.bf16 %v2651_v58, %v2640_v44  ;;  %v2936_v44 = vpack.c.bf16 %v2605_v54, %v2586_v26  ;;  %v2939_v26 = vpack.c.bf16 %v2570_v24, %v2561_v39  ;;  %v253_v54 = vld [vmem:[#allocation4] sm:$0xff]  ;;  %v708_v39 = vadd.f32 %v2623_v33, %v256_v16 }
 0x22e   : > { %v2703_v41 = vpop.f32.mrf.mxu2  ;;  %v265_v16 = vld [vmem:[#allocation4 + $0x60] sm:$0xff] }
 0x22f   : > { %v2705_v61 = vpop.f32.mrf.mxu3 }
 0x230   : > { %1418 = vmatpush.bf16.msra.mxu2 %v1365_v10  ;;  %v260_v10 = vld [vmem:[#allocation4 + $0x38] sm:$0xff] }
 0x231   : > { %1467 = vmatpush.bf16.msra.mxu3 %v1366_v49  ;;  %v2933_v49 = vpack.c.bf16 %v2655_v60, %v2642_v45  ;;  %v2937_v45 = vpack.c.bf16 %v2609_v46, %v2588_v27  ;;  %v705_v27 = vadd.f32 %v2613_v53, %v253_v54  ;;  %v706_v46 = vadd.f32 %v2615_v22, %v254_v47  ;;  %v2133_v53 = vld [vmem:[%s2925_s2 + $0x88] sm:$0xff]  ;;  %v263_v54 = vld [vmem:[#allocation4 + $0x50] sm:$0xff]  ;;  %v264_v47 = vld [vmem:[#allocation4 + $0x58] sm:$0xff] }
 0x234   : > { %1419 = vmatpush.bf16.msra.mxu2 %v1363_v59 }
 0x235   : > { %1468 = vmatpush.bf16.msra.mxu3 %v1364_v3 }
 0x236   : > { %v2707_v25 = vpop.f32.mrf.mxu2 }
 0x237   : > { %v2709_v57 = vpop.f32.mrf.mxu3 }
 0x238   : > { %1420 = vmatpush.bf16.msra.mxu2 %v1361_v50 }
 0x239   : > { %1469 = vmatpush.bf16.msra.mxu3 %v1362_v5  ;;  %v711_v5 = vadd.f32 %v2644_v55, %v259_v30 }
 0x23b   : > { %1055 = vmatmul.bf16.gmra.mxu2 %v2115_v18 }
 0x23c   : > { %1104 = vmatmul.bf16.gmra.mxu3 %v2115_v18  ;;  %1421 = vmatpush.bf16.msra.mxu2 %v2932_v48  ;;  %v712_v18 = vadd.f32 %v2646_v56, %v260_v10  ;;  %v269_v10 = vld [vmem:[#allocation4 + $0x80] sm:$0xff] }
 0x23d   : > { %1470 = vmatpush.bf16.msra.mxu3 %v2933_v49 }
 0x23e   : > { %v2720_v59 = vpop.f32.mrf.mxu2 }
 0x23f   : > { %v2722_v51 = vpop.f32.mrf.mxu3 }
 0x240   : > { %1422 = vmatpush.bf16.msra.mxu2 %v2934_v0 }
 0x241   : > { %1471 = vmatpush.bf16.msra.mxu3 %v2935_v4  ;;  %v261_v4 = vld [vmem:[#allocation4 + $0x40] sm:$0xff] }
 0x244   : > { %1423 = vmatpush.bf16.msra.mxu2 %v2936_v44  ;;  %v262_v44 = vld [vmem:[#allocation4 + $0x48] sm:$0xff] }
 0x245   : > { %1472 = vmatpush.bf16.msra.mxu3 %v2937_v45  ;;  %v713_v45 = vadd.f32 %v2659_v62, %v261_v4  ;;  %v714_v55 = vadd.f32 %v2661_v63, %v262_v44  ;;  %v2135_v62 = vld [vmem:[%s2925_s2 + $0x98] sm:$0xff]  ;;  %v271_v4 = vld [vmem:[#allocation4 + $0x90] sm:$0xff] }
 0x246   : > { %v2736_v58 = vpop.f32.mrf.mxu2  ;;  %v272_v44 = vld [vmem:[#allocation4 + $0x98] sm:$0xff] }
 0x247   : > { %v2738_v60 = vpop.f32.mrf.mxu3 }
 0x248   : > { %1424 = vmatpush.bf16.msra.mxu2 %v2938_v23 }
 0x249   : > { %1473 = vmatpush.bf16.msra.mxu3 %v2939_v26 }
 0x24b   : > { %1425 = vmatmul.bf16.vlgmr.msra.gmra.mxu2 %v2132_v28 }
 0x24c   : > { %1474 = vmatmul.bf16.vlgmr.msra.gmra.mxu3 %v2132_v28 }
 0x24e   : > { %v1021_v40 = vpop.f32.mrf.mxu2 }
 0x24f   : > { %v2751_v6 = vadd.f32 %v1021_v40, %v705_v27  ;;  %v1070_v21 = vpop.f32.mrf.mxu3  ;;  %v715_v27 = vadd.f32 %v2663_v1, %v263_v54 }
 0x250   : > { %v2753_v17 = vadd.f32 %v1070_v21, %v706_v46  ;;  %v716_v46 = vadd.f32 %v2665_v2, %v264_v47  ;;  %v273_v47 = vld [vmem:[#allocation4 + $0xa0] sm:$0xff] }
 0x256   : > { %v1023_v24 = vpop.f32.mrf.mxu2 }
 0x257   : > { %v2757_v32 = vadd.f32 %v1023_v24, %v707_v31  ;;  %v1072_v37 = vpop.f32.mrf.mxu3  ;;  %v266_v31 = vld [vmem:[#allocation4 + $0x68] sm:$0xff] }
 0x258   : > { %v2762_v22 = vadd.f32 %v1072_v37, %v708_v39  ;;  %v717_v39 = vadd.f32 %v2670_v52, %v265_v16  ;;  %v718_v1 = vadd.f32 %v2672_v19, %v266_v31  ;;  %v2136_v52 = vld [vmem:[%s2925_s2 + $0xa0] sm:$0xff]  ;;  %v275_v16 = vld [vmem:[#allocation4 + $0xb0] sm:$0xff]  ;;  %v276_v31 = vld [vmem:[#allocation4 + $0xb8] sm:$0xff] }
 0x25b   : > { %1430 = vmatmul.bf16.gmra.mxu2 %v2133_v53 }
 0x25c   : > { %1479 = vmatmul.bf16.gmra.mxu3 %v2133_v53 }
 0x25e   : > { %v1026_v36 = vpop.f32.mrf.mxu2 }
 0x25f   : > { %v2766_v33 = vadd.f32 %v1026_v36, %v709_v12  ;;  %v1075_v50 = vpop.f32.mrf.mxu3  ;;  %v719_v12 = vadd.f32 %v2674_v20, %v267_v38 }
 0x260   : > { %v2768_v3 = vadd.f32 %v1075_v50, %v710_v29  ;;  %v720_v29 = vadd.f32 %v2676_v13, %v268_v11 }
 0x266   : > { %v1028_v48 = vpop.f32.mrf.mxu2 }
 0x267   : > { %v2772_v49 = vadd.f32 %v1028_v48, %v711_v5  ;;  %v1077_v0 = vpop.f32.mrf.mxu3  ;;  %v270_v5 = vld [vmem:[#allocation4 + $0x88] sm:$0xff] }
 0x268   : > { %v2777_v43 = vadd.f32 %v1077_v0, %v712_v18  ;;  %v721_v18 = vadd.f32 %v2681_v34, %v269_v10  ;;  %v722_v20 = vadd.f32 %v2683_v35, %v270_v5  ;;  %v2137_v34 = vld [vmem:[%s2925_s2 + $0xa8] sm:$0xff] }
 0x26b   : > { %1435 = vmatmul.bf16.gmra.mxu2 %v2134_v42 }
 0x26c   : > { %1484 = vmatmul.bf16.gmra.mxu3 %v2134_v42 }
 0x26e   : > { %v1031_v28 = vpop.f32.mrf.mxu2 }
 0x26f   : > { %v2781_v56 = vadd.f32 %v1031_v28, %v713_v45  ;;  %v1080_v23 = vpop.f32.mrf.mxu3  ;;  %v723_v45 = vadd.f32 %v2685_v7, %v271_v4 }
 0x270   : > { %v2783_v26 = vadd.f32 %v1080_v23, %v714_v55  ;;  %v724_v55 = vadd.f32 %v2687_v8, %v272_v44 }
 0x276   : > { %v1033_v40 = vpop.f32.mrf.mxu2 }
 0x277   : > { %v2787_v21 = vadd.f32 %v1033_v40, %v715_v27  ;;  %v1082_v9 = vpop.f32.mrf.mxu3  ;;  %v274_v27 = vld [vmem:[#allocation4 + $0xa8] sm:$0xff] }
 0x278   : > { %v2792_v63 = vadd.f32 %v1082_v9, %v716_v46  ;;  %v725_v46 = vadd.f32 %v2692_v14, %v273_v47  ;;  %v726_v7 = vadd.f32 %v2694_v15, %v274_v27  ;;  %v2138_v14 = vld [vmem:[%s2925_s2 + $0xb0] sm:$0xff] }
 0x27b   : > { %1440 = vmatmul.bf16.gmra.mxu2 %v2135_v62 }
 0x27c   : > { %1489 = vmatmul.bf16.gmra.mxu3 %v2135_v62 }
 0x27e   : > { %v1036_v24 = vpop.f32.mrf.mxu2 }
 0x27f   : > { %v2796_v2 = vadd.f32 %v1036_v24, %v717_v39  ;;  %v1085_v37 = vpop.f32.mrf.mxu3  ;;  %v2940_v39 = vld [vmem:[#allocation8_spill] sm:$0xff]  ;;  %v2941_v24 = vld [vmem:[#allocation9_spill] sm:$0xff] }
 0x280   : > { %v2798_v53 = vadd.f32 %v1085_v37, %v718_v1  ;;  %v727_v1 = vadd.f32 %v2940_v39, %v275_v16  ;;  %v728_v37 = vadd.f32 %v2941_v24, %v276_v31 }
 0x286   : > { %v1038_v36 = vpop.f32.mrf.mxu2 }
 0x287   : > { %v2802_v50 = vadd.f32 %v1038_v36, %v719_v12  ;;  %v1087_v30 = vpop.f32.mrf.mxu3  ;;  %v278_v36 = vld [vmem:[#allocation4 + $0xc8] sm:$0xff] }
 0x288   : > { %v2807_v19 = vadd.f32 %v1087_v30, %v720_v29  ;;  %v277_v29 = vld [vmem:[#allocation4 + $0xc0] sm:$0xff] }
 0x289   : > { %v729_v30 = vadd.f32 %v2703_v41, %v277_v29  ;;  %v2139_v41 = vld [vmem:[%s2925_s2 + $0xb8] sm:$0xff] }
 0x28b   : > { %1445 = vmatmul.bf16.gmra.mxu2 %v2136_v52 }
 0x28c   : > { %1494 = vmatmul.bf16.gmra.mxu3 %v2136_v52  ;;  %v730_v52 = vadd.f32 %v2705_v61, %v278_v36 }
 0x28e   : > { %v1041_v48 = vpop.f32.mrf.mxu2 }
 0x28f   : > { %v2811_v13 = vadd.f32 %v1041_v48, %v721_v18  ;;  %v1090_v0 = vpop.f32.mrf.mxu3  ;;  %v279_v48 = vld [vmem:[#allocation4 + $0xd0] sm:$0xff] }
 0x290   : > { %v2813_v42 = vadd.f32 %v1090_v0, %v722_v20  ;;  %v280_v0 = vld [vmem:[#allocation4 + $0xd8] sm:$0xff]  ;;  %v731_v4 = vadd.f32 %v2707_v25, %v279_v48 }
 0x291   : > { %v732_v44 = vadd.f32 %v2709_v57, %v280_v0 }
 0x296   : > { %v1043_v28 = vpop.f32.mrf.mxu2 }
 0x297   : > { %v2817_v23 = vadd.f32 %v1043_v28, %v723_v45  ;;  %v1092_v54 = vpop.f32.mrf.mxu3 }
 0x298   : > { %v2822_v35 = vadd.f32 %v1092_v54, %v724_v55  ;;  %v281_v54 = vld [vmem:[#allocation4 + $0xe0] sm:$0xff] }
 0x299   : > { %v733_v47 = vadd.f32 %v2720_v59, %v281_v54 }
 0x29b   : > { %1450 = vmatmul.bf16.gmra.mxu2 %v2137_v34 }
 0x29c   : > { %1499 = vmatmul.bf16.gmra.mxu3 %v2137_v34  ;;  %v282_v34 = vld [vmem:[#allocation4 + $0xe8] sm:$0xff] }
 0x29d   : > { %v734_v25 = vadd.f32 %v2722_v51, %v282_v34 }
 0x29e   : > { %v1046_v40 = vpop.f32.mrf.mxu2 }
 0x29f   : > { %v2826_v8 = vadd.f32 %v1046_v40, %v725_v46  ;;  %v1095_v9 = vpop.f32.mrf.mxu3  ;;  %v283_v40 = vld [vmem:[#allocation4 + $0xf0] sm:$0xff] }
 0x2a0   : > { %v2828_v62 = vadd.f32 %v1095_v9, %v726_v7  ;;  %v284_v9 = vld [vmem:[#allocation4 + $0xf8] sm:$0xff]  ;;  %v735_v16 = vadd.f32 %v2736_v58, %v283_v40 }
 0x2a1   : > { %v736_v31 = vadd.f32 %v2738_v60, %v284_v9 }
 0x2a6   : > { %v1048_v38 = vpop.f32.mrf.mxu2 }
 0x2a7   : > { %v2832_v11 = vadd.f32 %v1048_v38, %v727_v1  ;;  %v1097_v12 = vpop.f32.mrf.mxu3 }
 0x2a8   : > { %v2837_v15 = vadd.f32 %v1097_v12, %v728_v37 }
 0x2ab   : > { %1455 = vmatmul.bf16.gmra.mxu2 %v2138_v14 }
 0x2ac   : > { %1504 = vmatmul.bf16.gmra.mxu3 %v2138_v14 }
 0x2ae   : > { %v1051_v10 = vpop.f32.mrf.mxu2 }
 0x2af   : > { %v2841_v5 = vadd.f32 %v1051_v10, %v729_v30  ;;  %v1100_v18 = vpop.f32.mrf.mxu3 }
 0x2b0   : > { %v2843_v20 = vadd.f32 %v1100_v18, %v730_v52 }
 0x2b6   : > { %v1053_v45 = vpop.f32.mrf.mxu2 }
 0x2b7   : > { %v2847_v55 = vadd.f32 %v1053_v45, %v731_v4  ;;  %v1102_v28 = vpop.f32.mrf.mxu3 }
 0x2b8   : > { %v2852_v61 = vadd.f32 %v1102_v28, %v732_v44 }
 0x2bb   : > { %1460 = vmatmul.bf16.gmra.mxu2 %v2139_v41 }
 0x2bc   : > { %1509 = vmatmul.bf16.gmra.mxu3 %v2139_v41 }
 0x2be   : > { %v1056_v57 = vpop.f32.mrf.mxu2 }
 0x2bf   : > { %v2856_v27 = vadd.f32 %v1056_v57, %v733_v47  ;;  %v1105_v46 = vpop.f32.mrf.mxu3 }
 0x2c0   : > { %v2858_v7 = vadd.f32 %v1105_v46, %v734_v25 }
 0x2c6   : > { %v1058_v39 = vpop.f32.mrf.mxu2 }
 0x2c7   : > { %v2862_v1 = vadd.f32 %v1058_v39, %v735_v16  ;;  %v1107_v24 = vpop.f32.mrf.mxu3 }
 0x2c8   : > { %v2864_v59 = vadd.f32 %v1107_v24, %v736_v31 }
 0x2ce   : > { %v1426_v51 = vpop.f32.mrf.mxu2 }
 0x2cf   : > { %v1515_v37 = vadd.f32 %v1426_v51, %v2751_v6  ;;  %v1475_v38 = vpop.f32.mrf.mxu3 }
 0x2d0   : > { %v1516_v12 = vadd.f32 %v1475_v38, %v2753_v17 }
 0x2d1   : > { %v1547_v14 = vmax.f32 %v1515_v37, 0.0 }
 0x2d2   : > { %v1548_v29 = vmax.f32 %v1516_v12, 0.0 }
 0x2d4   : > { %v1579_v58 = vpack.c.bf16 %v1548_v29, %v1547_v14 }
 0x2d6   : > { %1595 = vst [vmem:[%s2872_s16] sm:$0xff] %v1579_v58  ;;  %v1428_v60 = vpop.f32.mrf.mxu2 }
 0x2d7   : > { %v1517_v36 = vadd.f32 %v1428_v60, %v2757_v32  ;;  %v1477_v6 = vpop.f32.mrf.mxu3 }
 0x2d8   : > { %v1518_v30 = vadd.f32 %v1477_v6, %v2762_v22 }
 0x2d9   : > { %v1549_v52 = vmax.f32 %v1517_v36, 0.0 }
 0x2da   : > { %v1550_v17 = vmax.f32 %v1518_v30, 0.0 }
 0x2dc   : > { %v1580_v10 = vpack.c.bf16 %v1550_v17, %v1549_v52 }
 0x2de   : > { %1596 = vst [vmem:[%s2872_s16 + $0x8] sm:$0xff] %v1580_v10  ;;  %v1431_v18 = vpop.f32.mrf.mxu2 }
 0x2df   : > { %v1519_v48 = vadd.f32 %v1431_v18, %v2766_v33  ;;  %v1480_v0 = vpop.f32.mrf.mxu3 }
 0x2e0   : > { %v1520_v4 = vadd.f32 %v1480_v0, %v2768_v3 }
 0x2e1   : > { %v1551_v44 = vmax.f32 %v1519_v48, 0.0 }
 0x2e2   : > { %v1552_v45 = vmax.f32 %v1520_v4, 0.0 }
 0x2e4   : > { %v1581_v28 = vpack.c.bf16 %v1552_v45, %v1551_v44 }
 0x2e6   : > { %1597 = vst [vmem:[%s2872_s16 + $0x10] sm:$0xff] %v1581_v28  ;;  %v1433_v32 = vpop.f32.mrf.mxu2 }
 0x2e7   : > { %v1521_v41 = vadd.f32 %v1433_v32, %v2772_v49  ;;  %v1482_v22 = vpop.f32.mrf.mxu3 }
 0x2e8   : > { %v1522_v54 = vadd.f32 %v1482_v22, %v2777_v43 }
 0x2e9   : > { %v1553_v34 = vmax.f32 %v1521_v41, 0.0 }
 0x2ea   : > { %v1554_v47 = vmax.f32 %v1522_v54, 0.0 }
 0x2ec   : > { %v1582_v25 = vpack.c.bf16 %v1554_v47, %v1553_v34 }
 0x2ee   : > { %1598 = vst [vmem:[%s2872_s16 + $0x18] sm:$0xff] %v1582_v25  ;;  %v1436_v33 = vpop.f32.mrf.mxu2 }
 0x2ef   : > { %v1523_v57 = vadd.f32 %v1436_v33, %v2781_v56  ;;  %v1485_v3 = vpop.f32.mrf.mxu3 }
 0x2f0   : > { %v1524_v46 = vadd.f32 %v1485_v3, %v2783_v26 }
 0x2f1   : > { %v1555_v40 = vmax.f32 %v1523_v57, 0.0 }
 0x2f2   : > { %v1556_v9 = vmax.f32 %v1524_v46, 0.0 }
 0x2f4   : > { %v1583_v16 = vpack.c.bf16 %v1556_v9, %v1555_v40 }
 0x2f6   : > { %1599 = vst [vmem:[%s2872_s16 + $0x20] sm:$0xff] %v1583_v16  ;;  %v1438_v49 = vpop.f32.mrf.mxu2 }
 0x2f7   : > { %v1525_v31 = vadd.f32 %v1438_v49, %v2787_v21  ;;  %v1487_v43 = vpop.f32.mrf.mxu3 }
 0x2f8   : > { %v1526_v39 = vadd.f32 %v1487_v43, %v2792_v63 }
 0x2f9   : > { %v1557_v24 = vmax.f32 %v1525_v31, 0.0 }
 0x2fa   : > { %v1558_v51 = vmax.f32 %v1526_v39, 0.0 }
 0x2fc   : > { %v1584_v37 = vpack.c.bf16 %v1558_v51, %v1557_v24 }
 0x2fe   : > { %1600 = vst [vmem:[%s2872_s16 + $0x28] sm:$0xff] %v1584_v37  ;;  %v1441_v56 = vpop.f32.mrf.mxu2 }
 0x2ff   : > { %v1527_v38 = vadd.f32 %v1441_v56, %v2796_v2  ;;  %v1490_v26 = vpop.f32.mrf.mxu3 }
 0x300   : > { %v1528_v12 = vadd.f32 %v1490_v26, %v2798_v53 }
 0x301   : > { %v1559_v14 = vmax.f32 %v1527_v38, 0.0 }
 0x302   : > { %v1560_v29 = vmax.f32 %v1528_v12, 0.0 }
 0x304   : > { %v1585_v58 = vpack.c.bf16 %v1560_v29, %v1559_v14 }
 0x306   : > { %1601 = vst [vmem:[%s2872_s16 + $0x30] sm:$0xff] %v1585_v58  ;;  %v1443_v21 = vpop.f32.mrf.mxu2 }
 0x307   : > { %v1529_v60 = vadd.f32 %v1443_v21, %v2802_v50  ;;  %v1492_v63 = vpop.f32.mrf.mxu3 }
 0x308   : > { %v1530_v36 = vadd.f32 %v1492_v63, %v2807_v19 }
 0x309   : > { %v1561_v6 = vmax.f32 %v1529_v60, 0.0 }
 0x30a   : > { %v1562_v30 = vmax.f32 %v1530_v36, 0.0 }
 0x30c   : > { %v1586_v52 = vpack.c.bf16 %v1562_v30, %v1561_v6 }
 0x30e   : > { %1602 = vst [vmem:[%s2872_s16 + $0x38] sm:$0xff] %v1586_v52  ;;  %v1446_v2 = vpop.f32.mrf.mxu2 }
 0x30f   : > { %v1531_v17 = vadd.f32 %v1446_v2, %v2811_v13  ;;  %v1495_v53 = vpop.f32.mrf.mxu3 }
 0x310   : > { %v1532_v10 = vadd.f32 %v1495_v53, %v2813_v42 }
 0x311   : > { %v1563_v18 = vmax.f32 %v1531_v17, 0.0 }
 0x312   : > { %v1564_v48 = vmax.f32 %v1532_v10, 0.0 }
 0x314   : > { %v1587_v0 = vpack.c.bf16 %v1564_v48, %v1563_v18 }
 0x316   : > { %1603 = vst [vmem:[%s2872_s16 + $0x40] sm:$0xff] %v1587_v0  ;;  %v1448_v50 = vpop.f32.mrf.mxu2 }
 0x317   : > { %v1533_v4 = vadd.f32 %v1448_v50, %v2817_v23  ;;  %v1497_v19 = vpop.f32.mrf.mxu3 }
 0x318   : > { %v1534_v44 = vadd.f32 %v1497_v19, %v2822_v35 }
 0x319   : > { %v1565_v45 = vmax.f32 %v1533_v4, 0.0 }
 0x31a   : > { %v1566_v28 = vmax.f32 %v1534_v44, 0.0 }
 0x31c   : > { %v1588_v32 = vpack.c.bf16 %v1566_v28, %v1565_v45 }
 0x31e   : > { %1604 = vst [vmem:[%s2872_s16 + $0x48] sm:$0xff] %v1588_v32  ;;  %v1451_v13 = vpop.f32.mrf.mxu2 }
 0x31f   : > { %v1535_v41 = vadd.f32 %v1451_v13, %v2826_v8  ;;  %v1500_v42 = vpop.f32.mrf.mxu3 }
 0x320   : > { %v1536_v22 = vadd.f32 %v1500_v42, %v2828_v62 }
 0x321   : > { %v1567_v54 = vmax.f32 %v1535_v41, 0.0 }
 0x322   : > { %v1568_v34 = vmax.f32 %v1536_v22, 0.0 }
 0x324   : > { %v1589_v47 = vpack.c.bf16 %v1568_v34, %v1567_v54 }
 0x326   : > { %1605 = vst [vmem:[%s2872_s16 + $0x50] sm:$0xff] %v1589_v47  ;;  %v1453_v23 = vpop.f32.mrf.mxu2 }
 0x327   : > { %v1537_v25 = vadd.f32 %v1453_v23, %v2832_v11  ;;  %v1502_v35 = vpop.f32.mrf.mxu3 }
 0x328   : > { %v1538_v33 = vadd.f32 %v1502_v35, %v2837_v15 }
 0x329   : > { %v1569_v57 = vmax.f32 %v1537_v25, 0.0 }
 0x32a   : > { %v1570_v3 = vmax.f32 %v1538_v33, 0.0 }
 0x32c   : > { %v1590_v46 = vpack.c.bf16 %v1570_v3, %v1569_v57 }
 0x32e   : > { %1606 = vst [vmem:[%s2872_s16 + $0x58] sm:$0xff] %v1590_v46  ;;  %v1456_v8 = vpop.f32.mrf.mxu2 }
 0x32f   : > { %v1539_v40 = vadd.f32 %v1456_v8, %v2841_v5  ;;  %v1505_v62 = vpop.f32.mrf.mxu3 }
 0x330   : > { %v1540_v9 = vadd.f32 %v1505_v62, %v2843_v20 }
 0x331   : > { %v1571_v16 = vmax.f32 %v1539_v40, 0.0 }
 0x332   : > { %v1572_v49 = vmax.f32 %v1540_v9, 0.0 }
 0x334   : > { %v1591_v31 = vpack.c.bf16 %v1572_v49, %v1571_v16 }
 0x336   : > { %1607 = vst [vmem:[%s2872_s16 + $0x60] sm:$0xff] %v1591_v31  ;;  %v1458_v11 = vpop.f32.mrf.mxu2 }
 0x337   : > { %v1541_v43 = vadd.f32 %v1458_v11, %v2847_v55  ;;  %v1507_v15 = vpop.f32.mrf.mxu3 }
 0x338   : > { %v1542_v39 = vadd.f32 %v1507_v15, %v2852_v61 }
 0x339   : > { %v1573_v24 = vmax.f32 %v1541_v43, 0.0 }
 0x33a   : > { %v1574_v51 = vmax.f32 %v1542_v39, 0.0 }
 0x33c   : > { %v1592_v37 = vpack.c.bf16 %v1574_v51, %v1573_v24 }
 0x33e   : > { %1608 = vst [vmem:[%s2872_s16 + $0x68] sm:$0xff] %v1592_v37  ;;  %v1461_v5 = vpop.f32.mrf.mxu2 }
 0x33f   : > { %v1543_v56 = vadd.f32 %v1461_v5, %v2856_v27  ;;  %v1510_v20 = vpop.f32.mrf.mxu3 }
 0x340   : > { %v1544_v38 = vadd.f32 %v1510_v20, %v2858_v7 }
 0x341   : > { %v1575_v26 = vmax.f32 %v1543_v56, 0.0 }
 0x342   : > { %v1576_v12 = vmax.f32 %v1544_v38, 0.0 }
 0x344   : > { %v1593_v14 = vpack.c.bf16 %v1576_v12, %v1575_v26 }
 0x346   : > { %1609 = vst [vmem:[%s2872_s16 + $0x70] sm:$0xff] %v1593_v14  ;;  %v1463_v29 = vpop.f32.mrf.mxu2 }
 0x347   : > { %v1545_v55 = vadd.f32 %v1463_v29, %v2862_v1  ;;  %v1512_v58 = vpop.f32.mrf.mxu3 }
 0x348   : > { %v1546_v61 = vadd.f32 %v1512_v58, %v2864_v59 }
 0x349   : > { %v1577_v21 = vmax.f32 %v1545_v55, 0.0 }
 0x34a   : > { %v1578_v60 = vmax.f32 %v1546_v61, 0.0 }
 0x34c   : > { %v1594_v63 = vpack.c.bf16 %v1578_v60, %v1577_v21 }
 0x34e   : > { %1610 = vst [vmem:[%s2872_s16 + $0x78] sm:$0xff] %v1594_v63 }
 0x34f PF: > { %s16_s15 = sadd.s32 1, %s2247_s15  }
 0x350   : > { %p13_p7 = scmp.ge.s32.totalorder %s16_s15, 4  }
 0x352   :  { %15 = sbr.rel (!%p13_p7) target bundleno = 2 (0x2), region = 77 }
 0x357   :  { %1635 = vsyncpa [#allocation3], 1 }
 0x358   :  { %1637 = vsyncpa [#allocation3 + $0x1], 1 }
 0x359   :  { %1638 = vsyncpa [#allocation5], 1 }

// kernel: model_forward.9
= control target key start
LH: loop header
LB: loop body
LE: loop exit
PB: predicated region body
PF: predicated region fallthrough
CT: control target
= control target key end

     0   :  { %13 = vsyncpa [#allocation3], 0  ;;  %s4661_s0 = inlined_call_operand.vmem [shape: bf16[256,256], index: 0, kind: input, shape index: {}]   ;;  %s4662_s1 = inlined_call_operand.hbm [shape: bf16[256,768], index: 1, kind: input, shape index: {}]   ;;  %s4663_s2 = inlined_call_operand.vmem [shape: bf16[3,128,128], index: 2, kind: input, shape index: {}]   ;;  %s4664_s3 = inlined_call_operand.hbm [shape: f32[128,256], index: 3, kind: input, shape index: {}]   ;;  %s4665_s4 = inlined_call_operand.hbm [shape: bf16[256,128], index: 4, kind: input, shape index: {}]   ;;  %s4666_s5 = inlined_call_operand.vmem [shape: f32[1,128], index: 5, kind: input, shape index: {}]   ;;  %s4667_s6 = inlined_call_operand.vmem [shape: bf16[256,256], index: 6, kind: output, shape index: {0}]   ;;  %s4668_s7 = inlined_call_operand.vmem [shape: f32[256,128], index: 7, kind: output, shape index: {1}]  }
   0x1   :  { %14 = vsyncpa [#allocation5], 0  ;;  %s3804_s24 = smov 0  }
   0x2 LB: > { %s236_s27 = sshll.u32 %s4664_s3, 4  ;;  %s2788_s28 = sadd.s32 4294967295, %s3753_s24   ;;  %s3753_s24 = sphi %s3804_s24, %s20_s24   ;;  %s237_s27 = int_to_ptr.hbm [resolvable:$true] %s236_s27 }
   0x3   : > { %p2790_p0 = scmp.ge.s32.totalorder %s3753_s24, 1  ;;  %p208_p1 = scmp.lt.s32.totalorder %s3753_s24, 3 }
   0x4   : > { %p3817_p2 = scmp.eq.s32.totalorder %s2788_s28, 0  ;;  %s3755_s8 = smov [#allocation4]  }
   0x5   : > { %p3821_p3 = pnand %p2790_p0, %p208_p1  ;;  %s238_s9 = sshll.u32 %s3755_s8, 4  ;;  %s239_s9 = int_to_ptr.vmem [resolvable:$true] %s238_s9 }
   0x6   : > { %s219_s12 = sshll.u32 %s4662_s1, 4  ;;  %s3756_s14 = smov [#allocation2]   ;;  %s220_s12 = int_to_ptr.hbm [resolvable:$true] %s219_s12 }
   0x7   : > { %p3615_p4 = pneg %p3821_p3  ;;  %s221_s15 = sshll.u32 %s3756_s14, 4  ;;  %s222_s15 = int_to_ptr.vmem [resolvable:$true] %s221_s15 }
   0x8   : > { %s3757_s16 = smov 256   ;;  %s3758_s17 = smov 16  }
   0x9   : > { %p3832_p5 = pnand %p3817_p2, %p3615_p4  ;;  %s250_s20 = sshll.u32 %s4665_s4, 4  ;;  %s251_s20 = int_to_ptr.hbm [resolvable:$true] %s250_s20 }
   0xa   : > { %s3759_s21 = smov 384   ;;  %s3760_s22 = smov 24  }
   0xb   : > { %3621 = dma.hbm_to_vmem [thread:$0]  (!%p3832_p5), %s237_s27, 4096, %s239_s9, [#allocation5], %s3757_s16, %s3757_s16, %s3758_s17  }
   0xc   : > { %3618 = dma.hbm_to_vmem [thread:$0]  (!%p3832_p5), %s220_s12, 12288, %s222_s15, [#allocation3], %s3759_s21, %s3759_s21, %s3760_s22  }
   0xd   : > { %s3761_s23 = smov [#allocation6]   ;;  %s3762_s26 = smov 64  }
   0xe   : > { %s252_s25 = sshll.u32 %s3761_s23, 4  ;;  %s3763_s8 = smov 4   ;;  %s253_s25 = int_to_ptr.vmem [resolvable:$true] %s252_s25 }
   0xf   : > { %3624 = dma.hbm_to_vmem [thread:$0]  (!%p3832_p5), %s251_s20, 2048, %s253_s25, [#allocation5], %s3762_s26, %s3762_s26, %s3763_s8  }
  0x10   : > { %281 = sbr.rel (%p3821_p3) target bundleno = 1573 (0x625), region = 44 }
  0x15   : > { %3744 = dma.done.wait (%p3817_p2), [#allocation3], 12288  }
  0x16   : > { %3746 = vsyncadd (%p3817_p2), [#allocation3], 4294955008 }
  0x17   : > { %3748 = dma.done.wait (%p3817_p2), [#allocation5], 6144  }
  0x18   : > { %3750 = vsyncadd (%p3817_p2), [#allocation5], 4294961152  ;;  %s3857_s27 = sshll.u32 %s2788_s28, 4  ;;  %v2929_v0 = vld [vmem:[#allocation2 + $0x150] sm:$0xf] }
  0x19   : > { %v3482_v1 = vld [vmem:[#allocation2 + $0x164] sm:$0xf0]  ;;  %v2993_v2 = vld [vmem:[#allocation2 + $0x2d0] sm:$0xf]  ;;  %v3481_v5 = vld [vmem:[#allocation2 + $0x154] sm:$0xf] }
  0x1a   : > { %v2930_v3 = vor.u32 %v3482_v1, %v2929_v0  ;;  %v3498_v4 = vld [vmem:[#allocation2 + $0x2e4] sm:$0xf0]  ;;  %v2931_v6 = vld [vmem:[#allocation2 + $0x168] sm:$0xf0]  ;;  %v3497_v9 = vld [vmem:[#allocation2 + $0x2d4] sm:$0xf] }
  0x1b   : > { %v2994_v7 = vor.u32 %v3498_v4, %v2993_v2  ;;  %v2934_v8 = vor.u32 %v3481_v5, %v2931_v6  ;;  %v2995_v10 = vld [vmem:[#allocation2 + $0x2e8] sm:$0xf0]  ;;  %v2921_v11 = vld [vmem:[#allocation2 + $0x120] sm:$0xf]  ;;  %v3480_v13 = vld [vmem:[#allocation2 + $0x134] sm:$0xf0] }
  0x1c   : > { %671 = vmatpush.bf16.msra.mxu0 %v2930_v3  ;;  %v2998_v12 = vor.u32 %v3497_v9, %v2995_v10  ;;  %v2985_v14 = vld [vmem:[#allocation2 + $0x2a0] sm:$0xf]  ;;  %v3496_v15 = vld [vmem:[#allocation2 + $0x2b4] sm:$0xf0]  ;;  %v2922_v16 = vor.u32 %v3480_v13, %v2921_v11  ;;  %v3479_v18 = vld [vmem:[#allocation2 + $0x124] sm:$0xf] }
  0x1d   : > { %720 = vmatpush.bf16.msra.mxu1 %v2994_v7  ;;  %769 = vmatpush.bf16.msra.mxu2 %v2934_v8  ;;  %v2986_v17 = vor.u32 %v3496_v15, %v2985_v14  ;;  %v2923_v19 = vld [vmem:[#allocation2 + $0x138] sm:$0xf0]  ;;  %v3495_v20 = vld [vmem:[#allocation2 + $0x2a4] sm:$0xf]  ;;  %v2913_v23 = vld [vmem:[#allocation2 + $0xf0] sm:$0xf] }
  0x1e   : > { %818 = vmatpush.bf16.msra.mxu3 %v2998_v12  ;;  %v2926_v21 = vor.u32 %v3479_v18, %v2923_v19  ;;  %v2987_v22 = vld [vmem:[#allocation2 + $0x2b8] sm:$0xf0]  ;;  %v3478_v24 = vld [vmem:[#allocation2 + $0x104] sm:$0xf0]  ;;  %v2977_v26 = vld [vmem:[#allocation2 + $0x270] sm:$0xf] }
  0x1f   : > { %v2990_v25 = vor.u32 %v3495_v20, %v2987_v22  ;;  %v3494_v27 = vld [vmem:[#allocation2 + $0x284] sm:$0xf0]  ;;  %v3477_v28 = vld [vmem:[#allocation2 + $0xf4] sm:$0xf]  ;;  %v2914_v29 = vor.u32 %v3478_v24, %v2913_v23  ;;  %v2915_v30 = vld [vmem:[#allocation2 + $0x108] sm:$0xf0] }
  0x20   : > { %672 = vmatpush.bf16.msra.mxu0 %v2922_v16  ;;  %v3493_v31 = vld [vmem:[#allocation2 + $0x274] sm:$0xf]  ;;  %v2979_v32 = vld [vmem:[#allocation2 + $0x288] sm:$0xf0]  ;;  %v2978_v33 = vor.u32 %v3494_v27, %v2977_v26  ;;  %v2918_v34 = vor.u32 %v3477_v28, %v2915_v30  ;;  %v2905_v35 = vld [vmem:[#allocation2 + $0xc0] sm:$0xf] }
  0x21   : > { %721 = vmatpush.bf16.msra.mxu1 %v2986_v17  ;;  %770 = vmatpush.bf16.msra.mxu2 %v2926_v21  ;;  %v3476_v36 = vld [vmem:[#allocation2 + $0xd4] sm:$0xf0]  ;;  %v2969_v37 = vld [vmem:[#allocation2 + $0x240] sm:$0xf]  ;;  %v2982_v38 = vor.u32 %v3493_v31, %v2979_v32  ;;  %v3475_v40 = vld [vmem:[#allocation2 + $0xc4] sm:$0xf] }
  0x22   : > { %819 = vmatpush.bf16.msra.mxu3 %v2990_v25  ;;  %v3492_v39 = vld [vmem:[#allocation2 + $0x254] sm:$0xf0]  ;;  %v2907_v41 = vld [vmem:[#allocation2 + $0xd8] sm:$0xf0]  ;;  %v3491_v42 = vld [vmem:[#allocation2 + $0x244] sm:$0xf]  ;;  %v2906_v44 = vor.u32 %v3476_v36, %v2905_v35 }
  0x23   : > { %v2971_v43 = vld [vmem:[#allocation2 + $0x258] sm:$0xf0]  ;;  %p332_p6 = scmp.lt.s32.totalorder %s3857_s27, 31  ;;  %v2970_v45 = vor.u32 %v3492_v39, %v2969_v37  ;;  %v2910_v46 = vor.u32 %v3475_v40, %v2907_v41  ;;  %v2897_v47 = vld [vmem:[#allocation2 + $0x90] sm:$0xf] }
  0x24   : > { %673 = vmatpush.bf16.msra.mxu0 %v2914_v29  ;;  %v3474_v48 = vld [vmem:[#allocation2 + $0xa4] sm:$0xf0]  ;;  %v2961_v49 = vld [vmem:[#allocation2 + $0x210] sm:$0xf]  ;;  %v2974_v50 = vor.u32 %v3491_v42, %v2971_v43  ;;  %v3473_v52 = vld [vmem:[#allocation2 + $0x94] sm:$0xf] }
  0x25   : > { %722 = vmatpush.bf16.msra.mxu1 %v2978_v33  ;;  %771 = vmatpush.bf16.msra.mxu2 %v2918_v34  ;;  %v3490_v51 = vld [vmem:[#allocation2 + $0x224] sm:$0xf0]  ;;  %v2899_v53 = vld [vmem:[#allocation2 + $0xa8] sm:$0xf0]  ;;  %v3489_v54 = vld [vmem:[#allocation2 + $0x214] sm:$0xf]  ;;  %v2898_v56 = vor.u32 %v3474_v48, %v2897_v47 }
  0x26   : > { %820 = vmatpush.bf16.msra.mxu3 %v2982_v38  ;;  %v2963_v55 = vld [vmem:[#allocation2 + $0x228] sm:$0xf0]  ;;  %s4832_s27 = smov (!%p332_p6, %s3857_s27), 31  ;;  %v2962_v57 = vor.u32 %v3490_v51, %v2961_v49  ;;  %v2902_v58 = vor.u32 %v3473_v52, %v2899_v53  ;;  %v2889_v59 = vld [vmem:[#allocation2 + $0x60] sm:$0xf] }
  0x27   : > { %v3472_v60 = vld [vmem:[#allocation2 + $0x74] sm:$0xf0]  ;;  %v2953_v61 = vld [vmem:[#allocation2 + $0x1e0] sm:$0xf]  ;;  %v2966_v62 = vor.u32 %v3489_v54, %v2963_v55  ;;  %v3471_v0 = vld [vmem:[#allocation2 + $0x64] sm:$0xf] }
  0x28   : > { %674 = vmatpush.bf16.msra.mxu0 %v2906_v44  ;;  %v3488_v63 = vld [vmem:[#allocation2 + $0x1f4] sm:$0xf0]  ;;  %v2891_v1 = vld [vmem:[#allocation2 + $0x78] sm:$0xf0]  ;;  %v3487_v2 = vld [vmem:[#allocation2 + $0x1e4] sm:$0xf]  ;;  %v2890_v4 = vor.u32 %v3472_v60, %v2889_v59 }
  0x29   : > { %723 = vmatpush.bf16.msra.mxu1 %v2970_v45  ;;  %772 = vmatpush.bf16.msra.mxu2 %v2910_v46  ;;  %v2955_v3 = vld [vmem:[#allocation2 + $0x1f8] sm:$0xf0]  ;;  %s3863_s28 = sshll.u32 %s4832_s27, 3  ;;  %v2954_v5 = vor.u32 %v3488_v63, %v2953_v61  ;;  %v2894_v6 = vor.u32 %v3471_v0, %v2891_v1  ;;  %v2881_v7 = vld [vmem:[#allocation2 + $0x30] sm:$0xf] }
  0x2a   : > { %821 = vmatpush.bf16.msra.mxu3 %v2974_v50  ;;  %v3470_v8 = vld [vmem:[#allocation2 + $0x44] sm:$0xf0]  ;;  %v2945_v9 = vld [vmem:[#allocation2 + $0x1b0] sm:$0xf]  ;;  %v2958_v10 = vor.u32 %v3487_v2, %v2955_v3  ;;  %v3469_v12 = vld [vmem:[#allocation2 + $0x34] sm:$0xf]  ;;  %s3869_s9 = scalar_lea.vmem %s4661_s0, %s3863_s28  ;;  %s4556_s18 = scalar_lea.vmem %s4667_s6, %s3863_s28 }
  0x2b   : > { %v3486_v11 = vld [vmem:[#allocation2 + $0x1c4] sm:$0xf0]  ;;  %v2883_v13 = vld [vmem:[#allocation2 + $0x48] sm:$0xf0]  ;;  %v3485_v14 = vld [vmem:[#allocation2 + $0x1b4] sm:$0xf]  ;;  %v2882_v16 = vor.u32 %v3470_v8, %v2881_v7  ;;  %s4625_s23 = scalar_lea.vmem %s4668_s7, %s3863_s28 }
  0x2c   : > { %675 = vmatpush.bf16.msra.mxu0 %v2898_v56  ;;  %v2947_v15 = vld [vmem:[#allocation2 + $0x1c8] sm:$0xf0]  ;;  %v2873_v17 = vld [vmem:[#allocation2] sm:$0xf]  ;;  %v2946_v18 = vor.u32 %v3486_v11, %v2945_v9  ;;  %v2886_v19 = vor.u32 %v3469_v12, %v2883_v13  ;;  %v3468_v20 = vld [vmem:[#allocation2 + $0x14] sm:$0xf0] }
  0x2d   : > { %724 = vmatpush.bf16.msra.mxu1 %v2962_v57  ;;  %773 = vmatpush.bf16.msra.mxu2 %v2902_v58  ;;  %v2937_v21 = vld [vmem:[#allocation2 + $0x180] sm:$0xf]  ;;  %v2950_v22 = vor.u32 %v3485_v14, %v2947_v15  ;;  %v3484_v23 = vld [vmem:[#allocation2 + $0x194] sm:$0xf0]  ;;  %v3467_v24 = vld [vmem:[#allocation2 + $0x4] sm:$0xf]  ;;  %v2874_v28 = vor.u32 %v3468_v20, %v2873_v17 }
  0x2e   : > { %822 = vmatpush.bf16.msra.mxu3 %v2966_v62  ;;  %v2875_v25 = vld [vmem:[#allocation2 + $0x18] sm:$0xf0]  ;;  %v3483_v26 = vld [vmem:[#allocation2 + $0x184] sm:$0xf]  ;;  %v2809_v29 = vld [vmem:[%s3869_s9] sm:$0xf]  ;;  %v2938_v31 = vor.u32 %v3484_v23, %v2937_v21 }
  0x2f   : > { %v2939_v27 = vld [vmem:[#allocation2 + $0x198] sm:$0xf0]  ;;  %v3452_v30 = vld [vmem:[%s3869_s9 + $0x4] sm:$0xf0]  ;;  %v2878_v32 = vor.u32 %v3467_v24, %v2875_v25  ;;  %v3451_v33 = vld [vmem:[%s3869_s9 + $0x4] sm:$0xf] }
  0x30   : > { %676 = vmatpush.bf16.msra.mxu0 %v2890_v4  ;;  %v2811_v34 = vld [vmem:[%s3869_s9 + $0x8] sm:$0xf0]  ;;  %v2942_v35 = vor.u32 %v3483_v26, %v2939_v27  ;;  %v3875_v36 = vor.u32 %v3452_v30, %v2809_v29  ;;  %v2817_v38 = vld [vmem:[%s3869_s9 + $0x10] sm:$0xf]  ;;  %v3454_v39 = vld [vmem:[%s3869_s9 + $0x14] sm:$0xf0] }
  0x31   : > { %725 = vmatpush.bf16.msra.mxu1 %v2954_v5  ;;  %774 = vmatpush.bf16.msra.mxu2 %v2894_v6  ;;  %v3877_v37 = vor.u32 %v3451_v33, %v2811_v34  ;;  %v3453_v40 = vld [vmem:[%s3869_s9 + $0x14] sm:$0xf]  ;;  %v2819_v41 = vld [vmem:[%s3869_s9 + $0x18] sm:$0xf0]  ;;  %v3887_v42 = vor.u32 %v3454_v39, %v2817_v38  ;;  %v2825_v44 = vld [vmem:[%s3869_s9 + $0x20] sm:$0xf] }
  0x32   : > { %823 = vmatpush.bf16.msra.mxu3 %v2958_v10  ;;  %4711 = vst [vmem:[#allocation9_spill] sm:$0xff] %v3875_v36  ;;  %v3889_v43 = vor.u32 %v3453_v40, %v2819_v41  ;;  %v3456_v45 = vld [vmem:[%s3869_s9 + $0x24] sm:$0xf0]  ;;  %v3455_v46 = vld [vmem:[%s3869_s9 + $0x24] sm:$0xf] }
  0x33   : > { %4712 = vst [vmem:[#allocation10_spill] sm:$0xff] %v3877_v37  ;;  %v2827_v47 = vld [vmem:[%s3869_s9 + $0x28] sm:$0xf0]  ;;  %v3899_v48 = vor.u32 %v3456_v45, %v2825_v44  ;;  %v2833_v50 = vld [vmem:[%s3869_s9 + $0x30] sm:$0xf] }
  0x34   : > { %677 = vmatpush.bf16.msra.mxu0 %v2882_v16  ;;  %4713 = vst [vmem:[#allocation11_spill] sm:$0xff] %v3887_v42  ;;  %v3901_v49 = vor.u32 %v3455_v46, %v2827_v47  ;;  %v3458_v51 = vld [vmem:[%s3869_s9 + $0x34] sm:$0xf0]  ;;  %v3457_v52 = vld [vmem:[%s3869_s9 + $0x34] sm:$0xf] }
  0x35   : > { %726 = vmatpush.bf16.msra.mxu1 %v2946_v18  ;;  %775 = vmatpush.bf16.msra.mxu2 %v2886_v19  ;;  %4714 = vst [vmem:[#allocation12_spill] sm:$0xff] %v3889_v43  ;;  %v2835_v53 = vld [vmem:[%s3869_s9 + $0x38] sm:$0xf0]  ;;  %v3911_v54 = vor.u32 %v3458_v51, %v2833_v50  ;;  %v2841_v56 = vld [vmem:[%s3869_s9 + $0x40] sm:$0xf] }
  0x36   : > { %824 = vmatpush.bf16.msra.mxu3 %v2950_v22  ;;  %4715 = vst [vmem:[#allocation13_spill] sm:$0xff] %v3899_v48  ;;  %v3913_v55 = vor.u32 %v3457_v52, %v2835_v53  ;;  %v3460_v57 = vld [vmem:[%s3869_s9 + $0x44] sm:$0xf0]  ;;  %v3459_v58 = vld [vmem:[%s3869_s9 + $0x44] sm:$0xf] }
  0x37   : > { %4716 = vst [vmem:[#allocation14_spill] sm:$0xff] %v3901_v49  ;;  %v2843_v59 = vld [vmem:[%s3869_s9 + $0x48] sm:$0xf0]  ;;  %v3923_v60 = vor.u32 %v3460_v57, %v2841_v56  ;;  %v3089_v62 = vld [vmem:[#allocation2 + $0x158] sm:$0xf] }
  0x38   : > { %678 = vmatpush.bf16.msra.mxu0 %v2874_v28  ;;  %4717 = vst [vmem:[#allocation15_spill] sm:$0xff] %v3911_v54  ;;  %v3925_v61 = vor.u32 %v3459_v58, %v2843_v59  ;;  %v3522_v63 = vld [vmem:[#allocation2 + $0x16c] sm:$0xf0]  ;;  %v3153_v0 = vld [vmem:[#allocation2 + $0x2d8] sm:$0xf] }
  0x39   : > { %727 = vmatpush.bf16.msra.mxu1 %v2938_v31  ;;  %776 = vmatpush.bf16.msra.mxu2 %v2878_v32  ;;  %4718 = vst [vmem:[#allocation16_spill] sm:$0xff] %v3913_v55  ;;  %v3090_v1 = vor.u32 %v3522_v63, %v3089_v62  ;;  %v3538_v2 = vld [vmem:[#allocation2 + $0x2ec] sm:$0xf0]  ;;  %v3081_v4 = vld [vmem:[#allocation2 + $0x128] sm:$0xf] }
  0x3a   : > { %825 = vmatpush.bf16.msra.mxu3 %v2942_v35  ;;  %4719 = vst [vmem:[#allocation17_spill] sm:$0xff] %v3923_v60  ;;  %v3154_v3 = vor.u32 %v3538_v2, %v3153_v0  ;;  %v3520_v5 = vld [vmem:[#allocation2 + $0x13c] sm:$0xf0]  ;;  %v3145_v6 = vld [vmem:[#allocation2 + $0x2a8] sm:$0xf] }
  0x3b   : > { %679 = vmatmul.bf16.vlgmr.msra.gmra.mxu0 %v3875_v36  ;;  %4720 = vst [vmem:[#allocation18_spill] sm:$0xff] %v3925_v61  ;;  %v3082_v7 = vor.u32 %v3520_v5, %v3081_v4  ;;  %v3536_v8 = vld [vmem:[#allocation2 + $0x2bc] sm:$0xf0]  ;;  %v3073_v10 = vld [vmem:[#allocation2 + $0xf8] sm:$0xf] }
  0x3c   : > { %728 = vmatmul.bf16.vlgmr.msra.gmra.mxu1 %v3877_v37  ;;  %777 = vmatmul.bf16.vlgmr.msra.gmra.mxu2 %v3875_v36  ;;  %v3146_v9 = vor.u32 %v3536_v8, %v3145_v6  ;;  %v3518_v11 = vld [vmem:[#allocation2 + $0x10c] sm:$0xf0]  ;;  %v3137_v12 = vld [vmem:[#allocation2 + $0x278] sm:$0xf]  ;;  %v3065_v17 = vld [vmem:[#allocation2 + $0xc8] sm:$0xf] }
  0x3d   : > { %826 = vmatmul.bf16.vlgmr.msra.gmra.mxu3 %v3877_v37  ;;  %1269 = vmatpush.bf16.msrb.mxu2 %v3090_v1  ;;  %v3534_v13 = vld [vmem:[#allocation2 + $0x28c] sm:$0xf0]  ;;  %v3074_v14 = vor.u32 %v3518_v11, %v3073_v10  ;;  %v3516_v18 = vld [vmem:[#allocation2 + $0xdc] sm:$0xf0]  ;;  %v3462_v19 = vld [vmem:[%s3869_s9 + $0x54] sm:$0xf0] }
  0x3e   : > { %1318 = vmatpush.bf16.msrb.mxu3 %v3154_v3  ;;  %v2849_v15 = vld [vmem:[%s3869_s9 + $0x50] sm:$0xf]  ;;  %v3138_v16 = vor.u32 %v3534_v13, %v3137_v12  ;;  %v3129_v20 = vld [vmem:[#allocation2 + $0x248] sm:$0xf]  ;;  %v3532_v21 = vld [vmem:[#allocation2 + $0x25c] sm:$0xf0]  ;;  %v3066_v24 = vor.u32 %v3516_v18, %v3065_v17 }
  0x3f   : > { %v3461_v22 = vld [vmem:[%s3869_s9 + $0x54] sm:$0xf]  ;;  %v2851_v23 = vld [vmem:[%s3869_s9 + $0x58] sm:$0xf0]  ;;  %v3935_v25 = vor.u32 %v3462_v19, %v2849_v15  ;;  %v3130_v26 = vor.u32 %v3532_v21, %v3129_v20  ;;  %v3057_v28 = vld [vmem:[#allocation2 + $0x98] sm:$0xf] }
  0x40   : > { %v3937_v27 = vor.u32 %v3461_v22, %v2851_v23  ;;  %v3514_v29 = vld [vmem:[#allocation2 + $0xac] sm:$0xf0]  ;;  %v3121_v30 = vld [vmem:[#allocation2 + $0x218] sm:$0xf]  ;;  %v3049_v34 = vld [vmem:[#allocation2 + $0x68] sm:$0xf] }
  0x41   : > { %1270 = vmatpush.bf16.msrb.mxu2 %v3082_v7  ;;  %4721 = vst [vmem:[#allocation19_spill] sm:$0xff] %v3935_v25  ;;  %v3058_v31 = vor.u32 %v3514_v29, %v3057_v28  ;;  %v3530_v32 = vld [vmem:[#allocation2 + $0x22c] sm:$0xf0]  ;;  %v3512_v35 = vld [vmem:[#allocation2 + $0x7c] sm:$0xf0] }
  0x42   : > { %1319 = vmatpush.bf16.msrb.mxu3 %v3146_v9  ;;  %4722 = vst [vmem:[#allocation20_spill] sm:$0xff] %v3937_v27  ;;  %v3122_v33 = vor.u32 %v3530_v32, %v3121_v30  ;;  %v3113_v38 = vld [vmem:[#allocation2 + $0x1e8] sm:$0xf]  ;;  %v3050_v39 = vor.u32 %v3512_v35, %v3049_v34  ;;  %v3528_v40 = vld [vmem:[#allocation2 + $0x1fc] sm:$0xf0] }
  0x43   : > { %v3114_v41 = vor.u32 %v3528_v40, %v3113_v38  ;;  %v3041_v44 = vld [vmem:[#allocation2 + $0x38] sm:$0xf]  ;;  %v3510_v45 = vld [vmem:[#allocation2 + $0x4c] sm:$0xf0]  ;;  %v2857_v52 = vld [vmem:[%s3869_s9 + $0x60] sm:$0xf] }
  0x44   : > { %v3105_v46 = vld [vmem:[#allocation2 + $0x1b8] sm:$0xf]  ;;  %v3526_v47 = vld [vmem:[#allocation2 + $0x1cc] sm:$0xf0]  ;;  %v3042_v50 = vor.u32 %v3510_v45, %v3041_v44  ;;  %v3464_v53 = vld [vmem:[%s3869_s9 + $0x64] sm:$0xf0] }
  0x45   : > { %1271 = vmatpush.bf16.msrb.mxu2 %v3074_v14  ;;  %v3106_v51 = vor.u32 %v3526_v47, %v3105_v46  ;;  %v3463_v56 = vld [vmem:[%s3869_s9 + $0x64] sm:$0xf]  ;;  %v2859_v57 = vld [vmem:[%s3869_s9 + $0x68] sm:$0xf0]  ;;  %v3947_v58 = vor.u32 %v3464_v53, %v2857_v52  ;;  %v3033_v59 = vld [vmem:[#allocation2 + $0x8] sm:$0xf] }
  0x46   : > { %1320 = vmatpush.bf16.msrb.mxu3 %v3138_v16  ;;  %v3508_v62 = vld [vmem:[#allocation2 + $0x1c] sm:$0xf0]  ;;  %v3097_v63 = vld [vmem:[#allocation2 + $0x188] sm:$0xf]  ;;  %v3949_v0 = vor.u32 %v3463_v56, %v2859_v57  ;;  %v2865_v4 = vld [vmem:[%s3869_s9 + $0x70] sm:$0xf] }
  0x47   : > { %4723 = vst [vmem:[#allocation21_spill] sm:$0xff] %v3947_v58  ;;  %v3034_v1 = vor.u32 %v3508_v62, %v3033_v59  ;;  %v3524_v2 = vld [vmem:[#allocation2 + $0x19c] sm:$0xf0]  ;;  %v3466_v5 = vld [vmem:[%s3869_s9 + $0x74] sm:$0xf0] }
  0x48   : > { %4724 = vst [vmem:[#allocation22_spill] sm:$0xff] %v3949_v0  ;;  %v3098_v3 = vor.u32 %v3524_v2, %v3097_v63  ;;  %v3465_v6 = vld [vmem:[%s3869_s9 + $0x74] sm:$0xf]  ;;  %v2867_v7 = vld [vmem:[%s3869_s9 + $0x78] sm:$0xf0]  ;;  %v3959_v8 = vor.u32 %v3466_v5, %v2865_v4 }
  0x49   : > { %1272 = vmatpush.bf16.msrb.mxu2 %v3066_v24  ;;  %v3961_v9 = vor.u32 %v3465_v6, %v2867_v7 }
  0x4a   : > { %1321 = vmatpush.bf16.msrb.mxu3 %v3130_v26  ;;  %4725 = vst [vmem:[#allocation23_spill] sm:$0xff] %v3959_v8 }
  0x4b   : > { %684 = vmatmul.bf16.gmra.mxu0 %v3887_v42  ;;  %4726 = vst [vmem:[#allocation24_spill] sm:$0xff] %v3961_v9 }
  0x4c   : > { %733 = vmatmul.bf16.gmra.mxu1 %v3889_v43  ;;  %782 = vmatmul.bf16.gmra.mxu2 %v3887_v42 }
  0x4d   : > { %831 = vmatmul.bf16.gmra.mxu3 %v3889_v43  ;;  %1273 = vmatpush.bf16.msrb.mxu2 %v3058_v31 }
  0x4e   : > { %1322 = vmatpush.bf16.msrb.mxu3 %v3122_v33 }
  0x51   : > { %1274 = vmatpush.bf16.msrb.mxu2 %v3050_v39 }
  0x52   : > { %1323 = vmatpush.bf16.msrb.mxu3 %v3114_v41 }
  0x55   : > { %1275 = vmatpush.bf16.msrb.mxu2 %v3042_v50 }
  0x56   : > { %1324 = vmatpush.bf16.msrb.mxu3 %v3106_v51 }
  0x59   : > { %1276 = vmatpush.bf16.msrb.mxu2 %v3034_v1 }
  0x5a   : > { %1325 = vmatpush.bf16.msrb.mxu3 %v3098_v3 }
  0x5b   : > { %689 = vmatmul.bf16.gmra.mxu0 %v3899_v48 }
  0x5c   : > { %738 = vmatmul.bf16.gmra.mxu1 %v3901_v49  ;;  %787 = vmatmul.bf16.gmra.mxu2 %v3899_v48 }
  0x5d   : > { %836 = vmatmul.bf16.gmra.mxu3 %v3901_v49 }
  0x6b   : > { %694 = vmatmul.bf16.gmra.mxu0 %v3911_v54 }
  0x6c   : > { %743 = vmatmul.bf16.gmra.mxu1 %v3913_v55  ;;  %792 = vmatmul.bf16.gmra.mxu2 %v3911_v54 }
  0x6d   : > { %841 = vmatmul.bf16.gmra.mxu3 %v3913_v55 }
  0x7b   : > { %699 = vmatmul.bf16.gmra.mxu0 %v3923_v60 }
  0x7c   : > { %748 = vmatmul.bf16.gmra.mxu1 %v3925_v61  ;;  %797 = vmatmul.bf16.gmra.mxu2 %v3923_v60 }
  0x7d   : > { %846 = vmatmul.bf16.gmra.mxu3 %v3925_v61 }
  0x8b   : > { %704 = vmatmul.bf16.gmra.mxu0 %v3935_v25 }
  0x8c   : > { %753 = vmatmul.bf16.gmra.mxu1 %v3937_v27  ;;  %802 = vmatmul.bf16.gmra.mxu2 %v3935_v25 }
  0x8d   : > { %851 = vmatmul.bf16.gmra.mxu3 %v3937_v27 }
  0x9b   : > { %709 = vmatmul.bf16.gmra.mxu0 %v3947_v58 }
  0x9c   : > { %758 = vmatmul.bf16.gmra.mxu1 %v3949_v0  ;;  %807 = vmatmul.bf16.gmra.mxu2 %v3947_v58 }
  0x9d   : > { %856 = vmatmul.bf16.gmra.mxu3 %v3949_v0 }
  0xab   : > { %714 = vmatmul.bf16.gmra.mxu0 %v3959_v8 }
  0xac   : > { %763 = vmatmul.bf16.gmra.mxu1 %v3961_v9  ;;  %812 = vmatmul.bf16.gmra.mxu2 %v3959_v8 }
  0xad   : > { %861 = vmatmul.bf16.gmra.mxu3 %v3961_v9 }
  0xb8   : > { %v680_v10 = vpop.f32.mrf.mxu0 }
  0xb9   : > { %v729_v11 = vpop.f32.mrf.mxu1 }
  0xba   : > { %v3967_v12 = vadd.f32 %v729_v11, %v680_v10 }
  0xbc   : > { %1277 = vmatmul.bf16.vlgmr.msrb.gmra.mxu2 %v3875_v36 }
  0xbd   : > { %1326 = vmatmul.bf16.vlgmr.msrb.gmra.mxu3 %v3877_v37 }
  0xbf   : > { %v778_v13 = vpop.f32.mrf.mxu2 }
  0xc0   : > { %v827_v14 = vpop.f32.mrf.mxu3  ;;  %v3971_v15 = vpop.f32.mrf.mxu0 }
  0xc1   : > { %v3973_v16 = vadd.f32 %v827_v14, %v778_v13  ;;  %v3975_v17 = vpop.f32.mrf.mxu1 }
  0xc3   : > { %4727 = vst [vmem:[#allocation25_spill] sm:$0xff] %v3973_v16 }
  0xc7   : > { %v780_v18 = vpop.f32.mrf.mxu2 }
  0xc8   : > { %v829_v19 = vpop.f32.mrf.mxu3  ;;  %v685_v20 = vpop.f32.mrf.mxu0 }
  0xc9   : > { %v3977_v21 = vadd.f32 %v829_v19, %v780_v18  ;;  %v734_v22 = vpop.f32.mrf.mxu1 }
  0xca   : > { %v3979_v23 = vadd.f32 %v734_v22, %v685_v20 }
  0xcc   : > { %1282 = vmatmul.bf16.gmra.mxu2 %v3887_v42 }
  0xcd   : > { %1331 = vmatmul.bf16.gmra.mxu3 %v3889_v43 }
  0xcf   : > { %v783_v26 = vpop.f32.mrf.mxu2 }
  0xd0   : > { %v832_v28 = vpop.f32.mrf.mxu3  ;;  %v3985_v29 = vpop.f32.mrf.mxu0 }
  0xd1   : > { %v3987_v30 = vadd.f32 %v832_v28, %v783_v26  ;;  %v3989_v31 = vpop.f32.mrf.mxu1 }
  0xd7   : > { %v785_v32 = vpop.f32.mrf.mxu2 }
  0xd8   : > { %v834_v33 = vpop.f32.mrf.mxu3  ;;  %v690_v34 = vpop.f32.mrf.mxu0 }
  0xd9   : > { %v3991_v35 = vadd.f32 %v834_v33, %v785_v32  ;;  %v739_v38 = vpop.f32.mrf.mxu1 }
  0xda   : > { %v3993_v39 = vadd.f32 %v739_v38, %v690_v34 }
  0xdc   : > { %1287 = vmatmul.bf16.gmra.mxu2 %v3899_v48 }
  0xdd   : > { %1336 = vmatmul.bf16.gmra.mxu3 %v3901_v49 }
  0xdf   : > { %v788_v41 = vpop.f32.mrf.mxu2 }
  0xe0   : > { %v837_v44 = vpop.f32.mrf.mxu3  ;;  %v3999_v45 = vpop.f32.mrf.mxu0 }
  0xe1   : > { %v4001_v46 = vadd.f32 %v837_v44, %v788_v41  ;;  %v4003_v47 = vpop.f32.mrf.mxu1 }
  0xe7   : > { %v790_v50 = vpop.f32.mrf.mxu2 }
  0xe8   : > { %v839_v51 = vpop.f32.mrf.mxu3  ;;  %v695_v52 = vpop.f32.mrf.mxu0 }
  0xe9   : > { %v4005_v53 = vadd.f32 %v839_v51, %v790_v50  ;;  %v744_v56 = vpop.f32.mrf.mxu1 }
  0xea   : > { %v4007_v57 = vadd.f32 %v744_v56, %v695_v52 }
  0xec   : > { %1292 = vmatmul.bf16.gmra.mxu2 %v3911_v54 }
  0xed   : > { %1341 = vmatmul.bf16.gmra.mxu3 %v3913_v55 }
  0xef   : > { %v793_v62 = vpop.f32.mrf.mxu2 }
  0xf0   : > { %v842_v63 = vpop.f32.mrf.mxu3  ;;  %v4013_v1 = vpop.f32.mrf.mxu0 }
  0xf1   : > { %v4015_v2 = vadd.f32 %v842_v63, %v793_v62  ;;  %v4017_v3 = vpop.f32.mrf.mxu1 }
  0xf7   : > { %v795_v4 = vpop.f32.mrf.mxu2 }
  0xf8   : > { %v844_v5 = vpop.f32.mrf.mxu3  ;;  %v700_v6 = vpop.f32.mrf.mxu0 }
  0xf9   : > { %v4019_v7 = vadd.f32 %v844_v5, %v795_v4  ;;  %v749_v10 = vpop.f32.mrf.mxu1 }
  0xfa   : > { %v4021_v11 = vadd.f32 %v749_v10, %v700_v6 }
  0xfc   : > { %1297 = vmatmul.bf16.gmra.mxu2 %v3923_v60 }
  0xfd   : > { %1346 = vmatmul.bf16.gmra.mxu3 %v3925_v61 }
  0xff   : > { %v798_v14 = vpop.f32.mrf.mxu2 }
 0x100   : > { %v847_v18 = vpop.f32.mrf.mxu3  ;;  %v702_v19 = vpop.f32.mrf.mxu0 }
 0x101   : > { %v4027_v20 = vadd.f32 %v847_v18, %v798_v14  ;;  %v751_v22 = vpop.f32.mrf.mxu1 }
 0x102   : > { %v752_v37 = vadd.f32 %v751_v22, %v702_v19 }
 0x107   : > { %v800_v26 = vpop.f32.mrf.mxu2 }
 0x108   : > { %v849_v28 = vpop.f32.mrf.mxu3  ;;  %v705_v32 = vpop.f32.mrf.mxu0 }
 0x109   : > { %v754_v33 = vpop.f32.mrf.mxu1 }
 0x10a   : > { %v755_v42 = vadd.f32 %v754_v33, %v705_v32  ;;  %v3502_v32 = vld [vmem:[%s4663_s2 + $0x18] sm:$0xff] }
 0x10c   : > { %1302 = vmatmul.bf16.gmra.mxu2 %v3935_v25 }
 0x10d   : > { %1351 = vmatmul.bf16.gmra.mxu3 %v3937_v27 }
 0x10f   : > { %v803_v34 = vpop.f32.mrf.mxu2 }
 0x110   : > { %v852_v38 = vpop.f32.mrf.mxu3  ;;  %v707_v41 = vpop.f32.mrf.mxu0 }
 0x111   : > { %v756_v44 = vpop.f32.mrf.mxu1 }
 0x112   : > { %v757_v55 = vadd.f32 %v756_v44, %v707_v41  ;;  %v3503_v44 = vld [vmem:[%s4663_s2 + $0x20] sm:$0xff] }
 0x114   : > { %v893_v36 = vpack.c.bf16 %v757_v55, %v755_v42  ;;  %v742_v42 = vadd.f32 %v4003_v47, %v3999_v45 }
 0x117   : > { %v805_v50 = vpop.f32.mrf.mxu2 }
 0x118   : > { %v854_v51 = vpop.f32.mrf.mxu3  ;;  %v710_v52 = vpop.f32.mrf.mxu0 }
 0x119   : > { %v759_v56 = vpop.f32.mrf.mxu1 }
 0x11a   : > { %v760_v61 = vadd.f32 %v759_v56, %v710_v52 }
 0x11c   : > { %1307 = vmatmul.bf16.gmra.mxu2 %v3947_v58 }
 0x11d   : > { %1356 = vmatmul.bf16.gmra.mxu3 %v3949_v0 }
 0x11f   : > { %v808_v62 = vpop.f32.mrf.mxu2 }
 0x120   : > { %v857_v63 = vpop.f32.mrf.mxu3  ;;  %v712_v4 = vpop.f32.mrf.mxu0 }
 0x121   : > { %v761_v5 = vpop.f32.mrf.mxu1  ;;  %v858_v16 = vadd.f32 %v857_v63, %v808_v62  ;;  %v3519_v63 = vld [vmem:[#allocation2 + $0x12c] sm:$0xf] }
 0x122   : > { %v762_v25 = vadd.f32 %v761_v5, %v712_v4  ;;  %v3083_v4 = vld [vmem:[#allocation2 + $0x140] sm:$0xf0] }
 0x123   : > { %v3086_v5 = vor.u32 %v3519_v63, %v3083_v4  ;;  %v3505_v63 = vld [vmem:[%s4663_s2 + $0x30] sm:$0xff] }
 0x124   : > { %v895_v49 = vpack.c.bf16 %v762_v25, %v760_v61  ;;  %v891_v61 = vpack.c.bf16 %v752_v37, %v4021_v11  ;;  %v853_v25 = vadd.f32 %v852_v38, %v803_v34  ;;  %v737_v37 = vadd.f32 %v3989_v31, %v3985_v29 }
 0x127   : > { %v810_v6 = vpop.f32.mrf.mxu2 }
 0x128   : > { %v859_v10 = vpop.f32.mrf.mxu3  ;;  %v715_v14 = vpop.f32.mrf.mxu0 }
 0x129   : > { %v764_v18 = vpop.f32.mrf.mxu1 }
 0x12a   : > { %v765_v27 = vadd.f32 %v764_v18, %v715_v14  ;;  %v3517_v18 = vld [vmem:[#allocation2 + $0xfc] sm:$0xf] }
 0x12c   : > { %1312 = vmatmul.bf16.gmra.mxu2 %v3959_v8  ;;  %v860_v8 = vadd.f32 %v859_v10, %v810_v6  ;;  %v3537_v6 = vld [vmem:[#allocation2 + $0x2dc] sm:$0xf]  ;;  %v3155_v10 = vld [vmem:[#allocation2 + $0x2f0] sm:$0xf0] }
 0x12d   : > { %1361 = vmatmul.bf16.gmra.mxu3 %v3961_v9  ;;  %v3158_v14 = vor.u32 %v3537_v6, %v3155_v10  ;;  %v3107_v6 = vld [vmem:[#allocation2 + $0x1d0] sm:$0xf0] }
 0x12f   : > { %v813_v24 = vpop.f32.mrf.mxu2 }
 0x130   : > { %v862_v40 = vpop.f32.mrf.mxu3  ;;  %v717_v59 = vpop.f32.mrf.mxu0 }
 0x131   : > { %v766_v13 = vpop.f32.mrf.mxu1  ;;  %v863_v48 = vadd.f32 %v862_v40, %v813_v24  ;;  %v4728_v24 = vpack.c.bf16 %v4019_v7, %v4015_v2  ;;  %v3500_v2 = vld [vmem:[%s4663_s2 + $0x8] sm:$0xff] }
 0x132   : > { %v767_v58 = vadd.f32 %v766_v13, %v717_v59  ;;  %v855_v59 = vadd.f32 %v854_v51, %v805_v50  ;;  %v3521_v50 = vld [vmem:[#allocation2 + $0x15c] sm:$0xf]  ;;  %v3091_v51 = vld [vmem:[#allocation2 + $0x170] sm:$0xf0] }
 0x133   : > { %v3094_v52 = vor.u32 %v3521_v50, %v3091_v51  ;;  %v3507_v51 = vld [vmem:[#allocation2 + $0xc] sm:$0xf] }
 0x134   : > { %v897_v0 = vpack.c.bf16 %v767_v58, %v765_v27  ;;  %v896_v27 = vpack.c.bf16 %v860_v8, %v858_v16  ;;  %v747_v58 = vadd.f32 %v4017_v3, %v4013_v1  ;;  %v887_v8 = vpack.c.bf16 %v742_v42, %v3993_v39  ;;  %v3504_v42 = vld [vmem:[%s4663_s2 + $0x28] sm:$0xff] }
 0x135   : > { %v885_v16 = vpack.c.bf16 %v737_v37, %v3979_v23  ;;  %v4729_v39 = vpack.c.bf16 %v4005_v53, %v4001_v46  ;;  %v3139_v37 = vld [vmem:[#allocation2 + $0x290] sm:$0xf0] }
 0x136   : > { %947 = vmatpush.bf16.msrb.mxu0 %v897_v0 }
 0x137   : > { %v815_v60 = vpop.f32.mrf.mxu2 }
 0x138   : > { %v864_v54 = vpop.f32.mrf.mxu3 }
 0x139   : > { %v865_v43 = vadd.f32 %v864_v54, %v815_v60 }
 0x13a   : > { %948 = vmatpush.bf16.msrb.mxu0 %v895_v49 }
 0x13b   : > { %v898_v9 = vpack.c.bf16 %v865_v43, %v863_v48  ;;  %v850_v43 = vadd.f32 %v849_v28, %v800_v26  ;;  %v894_v48 = vpack.c.bf16 %v855_v59, %v853_v25  ;;  %v3075_v59 = vld [vmem:[#allocation2 + $0x110] sm:$0xf0] }
 0x13d   : > { %996 = vmatpush.bf16.msrb.mxu1 %v898_v9  ;;  %v892_v55 = vpack.c.bf16 %v850_v43, %v4027_v20  ;;  %v732_v9 = vadd.f32 %v3975_v17, %v3971_v15  ;;  %v3499_v15 = vld [vmem:[%s4663_s2] sm:$0xff]  ;;  %v4730_v17 = vpack.c.bf16 %v3991_v35, %v3987_v30  ;;  %v3515_v43 = vld [vmem:[#allocation2 + $0xcc] sm:$0xf] }
 0x13e   : > { %949 = vmatpush.bf16.msrb.mxu0 %v893_v36  ;;  %v889_v36 = vpack.c.bf16 %v747_v58, %v4007_v57  ;;  %v3147_v58 = vld [vmem:[#allocation2 + $0x2c0] sm:$0xf0] }
 0x13f   : > { %v1278_v13 = vpop.f32.mrf.mxu2  ;;  %v883_v29 = vpack.c.bf16 %v732_v9, %v3967_v12  ;;  %v4731_v12 = vld [vmem:[#allocation25_spill] sm:$0xff]  ;;  %v3513_v9 = vld [vmem:[#allocation2 + $0x9c] sm:$0xf] }
 0x140   : > { %v1327_v0 = vpop.f32.mrf.mxu3  ;;  %v4732_v57 = vpack.c.bf16 %v3977_v21, %v4731_v12  ;;  %v3501_v21 = vld [vmem:[%s4663_s2 + $0x10] sm:$0xff]  ;;  %v3051_v12 = vld [vmem:[#allocation2 + $0x80] sm:$0xf0] }
 0x141   : > { %v4038_v54 = vadd.f32 %v1327_v0, %v1278_v13  ;;  %997 = vmatpush.bf16.msrb.mxu1 %v896_v27  ;;  %v3078_v13 = vor.u32 %v3517_v18, %v3075_v59  ;;  %v3535_v27 = vld [vmem:[#allocation2 + $0x2ac] sm:$0xf]  ;;  %v3099_v18 = vld [vmem:[#allocation2 + $0x1a0] sm:$0xf0] }
 0x142   : > { %950 = vmatpush.bf16.msrb.mxu0 %v891_v61  ;;  %v3150_v0 = vor.u32 %v3535_v27, %v3147_v58 }
 0x145   : > { %998 = vmatpush.bf16.msrb.mxu1 %v894_v48  ;;  %v3067_v48 = vld [vmem:[#allocation2 + $0xe0] sm:$0xf0] }
 0x146   : > { %951 = vmatpush.bf16.msrb.mxu0 %v889_v36  ;;  %v3070_v36 = vor.u32 %v3515_v43, %v3067_v48 }
 0x147   : > { %v4043_v49 = vpop.f32.mrf.mxu2 }
 0x148   : > { %v4048_v60 = vpop.f32.mrf.mxu3 }
 0x149   : > { %999 = vmatpush.bf16.msrb.mxu1 %v892_v55  ;;  %v3533_v55 = vld [vmem:[#allocation2 + $0x27c] sm:$0xf] }
 0x14a   : > { %952 = vmatpush.bf16.msrb.mxu0 %v887_v8  ;;  %v3142_v8 = vor.u32 %v3533_v55, %v3139_v37 }
 0x14d   : > { %1000 = vmatpush.bf16.msrb.mxu1 %v4728_v24 }
 0x14e   : > { %953 = vmatpush.bf16.msrb.mxu0 %v885_v16  ;;  %v3059_v16 = vld [vmem:[#allocation2 + $0xb0] sm:$0xf0] }
 0x14f   : > { %v1283_v40 = vpop.f32.mrf.mxu2  ;;  %v3062_v24 = vor.u32 %v3513_v9, %v3059_v16 }
 0x150   : > { %v1332_v45 = vpop.f32.mrf.mxu3 }
 0x151   : > { %v4058_v31 = vadd.f32 %v1332_v45, %v1283_v40  ;;  %1001 = vmatpush.bf16.msrb.mxu1 %v4729_v39  ;;  %v3531_v40 = vld [vmem:[#allocation2 + $0x24c] sm:$0xf]  ;;  %v3131_v45 = vld [vmem:[#allocation2 + $0x260] sm:$0xf0] }
 0x152   : > { %954 = vmatpush.bf16.msrb.mxu0 %v883_v29  ;;  %v3134_v29 = vor.u32 %v3531_v40, %v3131_v45 }
 0x155   : > { %1002 = vmatpush.bf16.msrb.mxu1 %v4730_v17  ;;  %955 = vmatmul.bf16.vlgmr.msrb.gmra.mxu0 %v3499_v15  ;;  %v3511_v17 = vld [vmem:[#allocation2 + $0x6c] sm:$0xf] }
 0x156   : > { %1367 = vmatpush.bf16.msra.mxu0 %v3094_v52  ;;  %v3035_v52 = vld [vmem:[#allocation2 + $0x20] sm:$0xf0] }
 0x157   : > { %v4069_v23 = vpop.f32.mrf.mxu2  ;;  %v3038_v4 = vor.u32 %v3507_v51, %v3035_v52  ;;  %v3265_v52 = vld [vmem:[#allocation2 + $0x160] sm:$0xf] }
 0x158   : > { %v4071_v47 = vpop.f32.mrf.mxu3 }
 0x159   : > { %1003 = vmatpush.bf16.msrb.mxu1 %v4732_v57  ;;  %v3054_v57 = vor.u32 %v3511_v17, %v3051_v12  ;;  %v4741_v12 = vld [vmem:[#allocation14_spill] sm:$0xff] }
 0x15a   : > { %1368 = vmatpush.bf16.msra.mxu0 %v3086_v5  ;;  %v3525_v5 = vld [vmem:[#allocation2 + $0x1bc] sm:$0xf] }
 0x15b   : > { %v3110_v10 = vor.u32 %v3525_v5, %v3107_v6  ;;  %v3578_v5 = vld [vmem:[#allocation2 + $0x2f4] sm:$0xf0]  ;;  %v4750_v6 = vld [vmem:[#allocation18_spill] sm:$0xff] }
 0x15c   : > { %1004 = vmatmul.bf16.vlgmr.msrb.gmra.mxu1 %v3499_v15 }
 0x15d   : > { %1416 = vmatpush.bf16.msra.mxu1 %v3158_v14  ;;  %v3523_v14 = vld [vmem:[#allocation2 + $0x18c] sm:$0xf] }
 0x15e   : > { %1369 = vmatpush.bf16.msra.mxu0 %v3078_v13  ;;  %v3102_v27 = vor.u32 %v3523_v14, %v3099_v18  ;;  %v3257_v18 = vld [vmem:[#allocation2 + $0x130] sm:$0xf] }
 0x15f   : > { %v1288_v46 = vpop.f32.mrf.mxu2 }
 0x160   : > { %v1337_v53 = vpop.f32.mrf.mxu3 }
 0x161   : > { %v4076_v1 = vadd.f32 %v1337_v53, %v1288_v46  ;;  %1417 = vmatpush.bf16.msra.mxu1 %v3150_v0  ;;  %v3529_v46 = vld [vmem:[#allocation2 + $0x21c] sm:$0xf]  ;;  %v3123_v53 = vld [vmem:[#allocation2 + $0x230] sm:$0xf0] }
 0x162   : > { %1370 = vmatpush.bf16.msra.mxu0 %v3070_v36 }
 0x165   : > { %960 = vmatmul.bf16.gmra.mxu0 %v3500_v2  ;;  %1418 = vmatpush.bf16.msra.mxu1 %v3142_v8 }
 0x166   : > { %1371 = vmatpush.bf16.msra.mxu0 %v3062_v24  ;;  %v4738_v24 = vld [vmem:[#allocation12_spill] sm:$0xff] }
 0x167   : > { %v4081_v30 = vpop.f32.mrf.mxu2 }
 0x168   : > { %v4083_v35 = vpop.f32.mrf.mxu3 }
 0x169   : > { %1419 = vmatpush.bf16.msra.mxu1 %v3134_v29  ;;  %v4739_v29 = vld [vmem:[#allocation13_spill] sm:$0xff] }
 0x16a   : > { %1372 = vmatpush.bf16.msra.mxu0 %v3054_v57 }
 0x16c   : > { %1009 = vmatmul.bf16.gmra.mxu1 %v3500_v2  ;;  %v3126_v2 = vor.u32 %v3529_v46, %v3123_v53  ;;  %v4742_v53 = vld [vmem:[#allocation15_spill] sm:$0xff] }
 0x16e   : > { %1420 = vmatpush.bf16.msra.mxu1 %v3126_v2  ;;  %v4196_v2 = vld [vmem:[%s4663_s2 + $0x58] sm:$0xff] }
 0x16f   : > { %v1293_v3 = vpop.f32.mrf.mxu2 }
 0x170   : > { %v1342_v7 = vpop.f32.mrf.mxu3 }
 0x171   : > { %v4085_v11 = vadd.f32 %v1342_v7, %v1293_v3  ;;  %v3509_v3 = vld [vmem:[#allocation2 + $0x3c] sm:$0xf]  ;;  %v3043_v7 = vld [vmem:[#allocation2 + $0x50] sm:$0xf0] }
 0x175   : > { %965 = vmatmul.bf16.gmra.mxu0 %v3501_v21 }
 0x177   : > { %v4090_v19 = vpop.f32.mrf.mxu2 }
 0x178   : > { %v4092_v20 = vpop.f32.mrf.mxu3 }
 0x17c   : > { %1014 = vmatmul.bf16.gmra.mxu1 %v3501_v21  ;;  %v3046_v21 = vor.u32 %v3509_v3, %v3043_v7 }
 0x17e   : > { %1373 = vmatpush.bf16.msra.mxu0 %v3046_v21  ;;  %v4745_v21 = vld [vmem:[#allocation16_spill] sm:$0xff] }
 0x17f   : > { %v1298_v22 = vpop.f32.mrf.mxu2 }
 0x180   : > { %v1347_v26 = vpop.f32.mrf.mxu3 }
 0x181   : > { %v4094_v28 = vadd.f32 %v1347_v26, %v1298_v22  ;;  %v3527_v22 = vld [vmem:[#allocation2 + $0x1ec] sm:$0xf]  ;;  %v3115_v26 = vld [vmem:[#allocation2 + $0x200] sm:$0xf0] }
 0x182   : > { %1374 = vmatpush.bf16.msra.mxu0 %v3038_v4  ;;  %v3329_v4 = vld [vmem:[#allocation2 + $0x2e0] sm:$0xf] }
 0x183   : > { %v3330_v14 = vor.u32 %v3578_v5, %v3329_v4  ;;  %v3297_v4 = vld [vmem:[#allocation2 + $0x220] sm:$0xf]  ;;  %v3570_v5 = vld [vmem:[#allocation2 + $0x234] sm:$0xf0] }
 0x185   : > { %970 = vmatmul.bf16.gmra.mxu0 %v3502_v32 }
 0x187   : > { %v4099_v33 = vpop.f32.mrf.mxu2 }
 0x188   : > { %v4101_v34 = vpop.f32.mrf.mxu3 }
 0x189   : > { %v1350_v8 = vadd.f32 %v4101_v34, %v4099_v33  ;;  %v1335_v33 = vadd.f32 %v4071_v47, %v4069_v23  ;;  %v4148_v23 = vld [vmem:[%s4663_s2 + $0x40] sm:$0xff] }
 0x18b   : > { %v1490_v16 = vpack.c.bf16 %v1350_v8, %v4094_v28  ;;  %v3574_v8 = vld [vmem:[#allocation2 + $0x294] sm:$0xf0] }
 0x18c   : > { %1019 = vmatmul.bf16.gmra.mxu1 %v3502_v32  ;;  %v3118_v32 = vor.u32 %v3527_v22, %v3115_v26 }
 0x18e   : > { %1421 = vmatpush.bf16.msra.mxu1 %v3118_v32  ;;  %v4747_v32 = vld [vmem:[#allocation17_spill] sm:$0xff] }
 0x18f   : > { %v4103_v38 = vpop.f32.mrf.mxu2 }
 0x190   : > { %v4105_v41 = vpop.f32.mrf.mxu3 }
 0x191   : > { %v1353_v36 = vadd.f32 %v4105_v41, %v4103_v38  ;;  %v1340_v38 = vadd.f32 %v4083_v35, %v4081_v30  ;;  %v4733_v35 = vld [vmem:[#allocation9_spill] sm:$0xff] }
 0x192   : > { %1422 = vmatpush.bf16.msra.mxu1 %v3110_v10 }
 0x193   : > { %v1486_v34 = vpack.c.bf16 %v1340_v38, %v4076_v1  ;;  %v3305_v38 = vld [vmem:[#allocation2 + $0x250] sm:$0xf] }
 0x195   : > { %975 = vmatmul.bf16.gmra.mxu0 %v3503_v44 }
 0x196   : > { %1423 = vmatpush.bf16.msra.mxu1 %v3102_v27 }
 0x197   : > { %v4110_v56 = vpop.f32.mrf.mxu2 }
 0x198   : > { %v4112_v62 = vpop.f32.mrf.mxu3 }
 0x199   : > { %v1355_v55 = vadd.f32 %v4112_v62, %v4110_v56 }
 0x19a   : > { %1917 = vmatpush.bf16.msrb.mxu1 %v3330_v14 }
 0x19b   : > { %v1492_v9 = vpack.c.bf16 %v1355_v55, %v1353_v36  ;;  %v3558_v36 = vld [vmem:[#allocation2 + $0x114] sm:$0xf0] }
 0x19c   : > { %1024 = vmatmul.bf16.gmra.mxu1 %v3503_v44 }
 0x19f   : > { %v1308_v61 = vpop.f32.mrf.mxu2 }
 0x1a0   : > { %v1357_v25 = vpop.f32.mrf.mxu3 }
 0x1a1   : > { %v1358_v0 = vadd.f32 %v1357_v25, %v1308_v61  ;;  %v3506_v61 = vld [vmem:[%s4663_s2 + $0x38] sm:$0xff]  ;;  %v1345_v25 = vadd.f32 %v4092_v20, %v4090_v19  ;;  %v1330_v19 = vadd.f32 %v4048_v60, %v4043_v49  ;;  %v1484_v20 = vpack.c.bf16 %v1335_v33, %v4058_v31  ;;  %v4735_v49 = vld [vmem:[#allocation10_spill] sm:$0xff]  ;;  %v4736_v31 = vld [vmem:[#allocation11_spill] sm:$0xff] }
 0x1a2   : > { %v3572_v33 = vld [vmem:[#allocation2 + $0x264] sm:$0xf0] }
 0x1a3   : > { %v1488_v41 = vpack.c.bf16 %v1345_v25, %v4085_v11  ;;  %v1482_v30 = vpack.c.bf16 %v1330_v19, %v4038_v54  ;;  %v4164_v11 = vld [vmem:[%s4663_s2 + $0x48] sm:$0xff]  ;;  %v3241_v25 = vld [vmem:[#allocation2 + $0xd0] sm:$0xf]  ;;  %v3306_v19 = vor.u32 %v3572_v33, %v3305_v38 }
 0x1a4   : > { %v3209_v33 = vld [vmem:[#allocation2 + $0x10] sm:$0xf] }
 0x1a5   : > { %980 = vmatmul.bf16.gmra.mxu0 %v3504_v42 }
 0x1a7   : > { %v1310_v39 = vpop.f32.mrf.mxu2 }
 0x1a8   : > { %v1359_v15 = vpop.f32.mrf.mxu3 }
 0x1a9   : > { %v1360_v43 = vadd.f32 %v1359_v15, %v1310_v39  ;;  %v4180_v39 = vld [vmem:[%s4663_s2 + $0x50] sm:$0xff] }
 0x1ab   : > { %v1494_v37 = vpack.c.bf16 %v1360_v43, %v1358_v0 }
 0x1ac   : > { %1029 = vmatmul.bf16.gmra.mxu1 %v3504_v42 }
 0x1af   : > { %v1313_v44 = vpop.f32.mrf.mxu2 }
 0x1b0   : > { %v1362_v50 = vpop.f32.mrf.mxu3 }
 0x1b1   : > { %v1363_v59 = vadd.f32 %v1362_v50, %v1313_v44  ;;  %v4212_v44 = vld [vmem:[%s4663_s2 + $0x60] sm:$0xff] }
 0x1b5   : > { %985 = vmatmul.bf16.gmra.mxu0 %v3505_v63 }
 0x1b7   : > { %v1315_v13 = vpop.f32.mrf.mxu2 }
 0x1b8   : > { %v1364_v58 = vpop.f32.mrf.mxu3 }
 0x1b9   : > { %v1365_v48 = vadd.f32 %v1364_v58, %v1315_v13  ;;  %v3321_v13 = vld [vmem:[#allocation2 + $0x2b0] sm:$0xf]  ;;  %v3576_v58 = vld [vmem:[#allocation2 + $0x2c4] sm:$0xf0] }
 0x1ba   : > { %v3322_v0 = vor.u32 %v3576_v58, %v3321_v13  ;;  %v3552_v13 = vld [vmem:[#allocation2 + $0x84] sm:$0xf0] }
 0x1bb   : > { %v1496_v42 = vpack.c.bf16 %v1365_v48, %v1363_v59  ;;  %v3560_v59 = vld [vmem:[#allocation2 + $0x144] sm:$0xf0] }
 0x1bc   : > { %1034 = vmatmul.bf16.gmra.mxu1 %v3505_v63  ;;  %v3562_v63 = vld [vmem:[#allocation2 + $0x174] sm:$0xf0]  ;;  %v3258_v27 = vor.u32 %v3560_v59, %v3257_v18  ;;  %v3298_v18 = vor.u32 %v3570_v5, %v3297_v4  ;;  %v3225_v59 = vld [vmem:[#allocation2 + $0x70] sm:$0xf]  ;;  %v3564_v4 = vld [vmem:[#allocation2 + $0x1a4] sm:$0xf0] }
 0x1bd   : > { %1546 = vmatpush.bf16.msra.mxu2 %v1496_v42  ;;  %v3266_v10 = vor.u32 %v3562_v63, %v3265_v52  ;;  %1918 = vmatpush.bf16.msrb.mxu1 %v3322_v0  ;;  %v3249_v42 = vld [vmem:[#allocation2 + $0x100] sm:$0xf]  ;;  %v3554_v63 = vld [vmem:[#allocation2 + $0xb4] sm:$0xf0]  ;;  %v3226_v58 = vor.u32 %v3552_v13, %v3225_v59  ;;  %v3568_v0 = vld [vmem:[#allocation2 + $0x204] sm:$0xf0] }
 0x1be   : > { %v3250_v55 = vor.u32 %v3558_v36, %v3249_v42  ;;  %v3233_v52 = vld [vmem:[#allocation2 + $0xa0] sm:$0xf]  ;;  %v4244_v5 = vld [vmem:[%s4663_s2 + $0x70] sm:$0xff]  ;;  %v4760_v13 = vld [vmem:[#allocation22_spill] sm:$0xff] }
 0x1bf   : > { %1868 = vmatpush.bf16.msrb.mxu0 %v3266_v10  ;;  %v4755_v10 = vld [vmem:[#allocation20_spill] sm:$0xff]  ;;  %v3234_v14 = vor.u32 %v3554_v63, %v3233_v52  ;;  %v3273_v52 = vld [vmem:[#allocation2 + $0x190] sm:$0xf] }
 0x1c1   : > { %1547 = vmatpush.bf16.msra.mxu2 %v1494_v37  ;;  %v3313_v37 = vld [vmem:[#allocation2 + $0x280] sm:$0xf] }
 0x1c3   : > { %1869 = vmatpush.bf16.msrb.mxu0 %v3258_v27  ;;  %v3289_v27 = vld [vmem:[#allocation2 + $0x1f0] sm:$0xf] }
 0x1c4   : > { %v3290_v42 = vor.u32 %v3568_v0, %v3289_v27  ;;  %v4762_v0 = vld [vmem:[#allocation23_spill] sm:$0xff] }
 0x1c5   : > { %1548 = vmatpush.bf16.msra.mxu2 %v1492_v9  ;;  %990 = vmatmul.bf16.gmra.mxu0 %v3506_v61  ;;  %v3314_v9 = vor.u32 %v3574_v8, %v3313_v37  ;;  %v3217_v37 = vld [vmem:[#allocation2 + $0x40] sm:$0xf]  ;;  %v3550_v8 = vld [vmem:[#allocation2 + $0x54] sm:$0xf0] }
 0x1c7   : > { %1870 = vmatpush.bf16.msrb.mxu0 %v3250_v55  ;;  %1919 = vmatpush.bf16.msrb.mxu1 %v3314_v9  ;;  %v3281_v9 = vld [vmem:[#allocation2 + $0x1c0] sm:$0xf] }
 0x1c9   : > { %1549 = vmatpush.bf16.msra.mxu2 %v1490_v16  ;;  %v3556_v16 = vld [vmem:[#allocation2 + $0xe4] sm:$0xf0] }
 0x1cb   : > { %1920 = vmatpush.bf16.msrb.mxu1 %v3306_v19  ;;  %v3548_v19 = vld [vmem:[#allocation2 + $0x24] sm:$0xf0] }
 0x1cc   : > { %1039 = vmatmul.bf16.gmra.mxu1 %v3506_v61  ;;  %v4752_v61 = vld [vmem:[#allocation19_spill] sm:$0xff]  ;;  %v3210_v63 = vor.u32 %v3548_v19, %v3209_v33 }
 0x1cd   : > { %1550 = vmatpush.bf16.msra.mxu2 %v1488_v41  ;;  %v3242_v41 = vor.u32 %v3556_v16, %v3241_v25  ;;  %v3218_v25 = vor.u32 %v3550_v8, %v3217_v37  ;;  %v3566_v16 = vld [vmem:[#allocation2 + $0x1d4] sm:$0xf0] }
 0x1ce   : > { %v3282_v38 = vor.u32 %v3566_v16, %v3281_v9  ;;  %v4765_v9 = vld [vmem:[#allocation24_spill] sm:$0xff] }
 0x1cf   : > { %1871 = vmatpush.bf16.msrb.mxu0 %v3242_v41  ;;  %1921 = vmatpush.bf16.msrb.mxu1 %v3298_v18  ;;  %v4757_v41 = vld [vmem:[#allocation21_spill] sm:$0xff] }
 0x1d1   : > { %1551 = vmatpush.bf16.msra.mxu2 %v1486_v34  ;;  %v4228_v34 = vld [vmem:[%s4663_s2 + $0x68] sm:$0xff] }
 0x1d2   : > { %v4141_v28 = vpop.f32.mrf.mxu0 }
 0x1d3   : > { %1872 = vmatpush.bf16.msrb.mxu0 %v3234_v14  ;;  %1922 = vmatpush.bf16.msrb.mxu1 %v3290_v42  ;;  %v3274_v14 = vor.u32 %v3564_v4, %v3273_v52  ;;  %v4260_v42 = vld [vmem:[%s4663_s2 + $0x78] sm:$0xff]  ;;  %v367_v52 = vld [vmem:[#allocation4] sm:$0xff] }
 0x1d5   : > { %1552 = vmatpush.bf16.msra.mxu2 %v1484_v20  ;;  %1375 = vmatmul.bf16.vlgmr.msra.gmra.mxu0 %v4733_v35 }
 0x1d7   : > { %1873 = vmatpush.bf16.msrb.mxu0 %v3226_v58  ;;  %1923 = vmatpush.bf16.msrb.mxu1 %v3282_v38 }
 0x1d9   : > { %v4150_v47 = vpop.f32.mrf.mxu1  ;;  %1553 = vmatpush.bf16.msra.mxu2 %v1482_v30 }
 0x1da   : > { %v4152_v1 = vpop.f32.mrf.mxu0 }
 0x1db   : > { %4734 = vst [vmem:[#allocation25_spill] sm:$0xff] %v4152_v1  ;;  %1874 = vmatpush.bf16.msrb.mxu0 %v3218_v25  ;;  %1924 = vmatpush.bf16.msrb.mxu1 %v3274_v14 }
 0x1dc   : > { %1424 = vmatmul.bf16.vlgmr.msra.gmra.mxu1 %v4735_v49  ;;  %1554 = vmatmul.bf16.vlgmr.msra.gmra.mxu2 %v4148_v23 }
 0x1df   : > { %1875 = vmatpush.bf16.msrb.mxu0 %v3210_v63  ;;  %v1045_v63 = vadd.f32 %v4141_v28, %v367_v52 }
 0x1e1   : > { %v4156_v60 = vpop.f32.mrf.mxu1 }
 0x1e2   : > { %v4158_v54 = vpop.f32.mrf.mxu0 }
 0x1e5   : > { %1380 = vmatmul.bf16.gmra.mxu0 %v4736_v31 }
 0x1e9   : > { %v4166_v56 = vpop.f32.mrf.mxu1 }
 0x1ea   : > { %v4168_v62 = vpop.f32.mrf.mxu0 }
 0x1eb   : > { %4737 = vst [vmem:[#allocation9_spill] sm:$0xff] %v4168_v62 }
 0x1ec   : > { %1429 = vmatmul.bf16.gmra.mxu1 %v4738_v24  ;;  %1559 = vmatmul.bf16.gmra.mxu2 %v4164_v11 }
 0x1f1   : > { %v4172_v40 = vpop.f32.mrf.mxu1 }
 0x1f2   : > { %v4174_v45 = vpop.f32.mrf.mxu0 }
 0x1f5   : > { %1385 = vmatmul.bf16.gmra.mxu0 %v4739_v29 }
 0x1f9   : > { %v4182_v15 = vpop.f32.mrf.mxu1 }
 0x1fa   : > { %v4184_v17 = vpop.f32.mrf.mxu0 }
 0x1fb   : > { %4740 = vst [vmem:[#allocation10_spill] sm:$0xff] %v4184_v17  ;;  %v375_v17 = vld [vmem:[#allocation4 + $0x40] sm:$0xff] }
 0x1fc   : > { %1434 = vmatmul.bf16.gmra.mxu1 %v4741_v12  ;;  %1564 = vmatmul.bf16.gmra.mxu2 %v4180_v39 }
 0x201   : > { %v4188_v57 = vpop.f32.mrf.mxu1 }
 0x202   : > { %v4190_v46 = vpop.f32.mrf.mxu0 }
 0x205   : > { %1390 = vmatmul.bf16.gmra.mxu0 %v4742_v53 }
 0x209   : > { %v4198_v3 = vpop.f32.mrf.mxu1 }
 0x20a   : > { %4743 = vst [vmem:[#allocation11_spill] sm:$0xff] %v4198_v3  ;;  %v4200_v7 = vpop.f32.mrf.mxu0 }
 0x20b   : > { %4744 = vst [vmem:[#allocation12_spill] sm:$0xff] %v4200_v7 }
 0x20c   : > { %1439 = vmatmul.bf16.gmra.mxu1 %v4745_v21  ;;  %1569 = vmatmul.bf16.gmra.mxu2 %v4196_v2 }
 0x211   : > { %v4204_v22 = vpop.f32.mrf.mxu1 }
 0x212   : > { %4746 = vst [vmem:[#allocation13_spill] sm:$0xff] %v4204_v22  ;;  %v4206_v26 = vpop.f32.mrf.mxu0 }
 0x215   : > { %1395 = vmatmul.bf16.gmra.mxu0 %v4747_v32 }
 0x219   : > { %v4214_v50 = vpop.f32.mrf.mxu1 }
 0x21a   : > { %4748 = vst [vmem:[#allocation14_spill] sm:$0xff] %v4214_v50  ;;  %v4216_v51 = vpop.f32.mrf.mxu0 }
 0x21b   : > { %4749 = vst [vmem:[#allocation15_spill] sm:$0xff] %v4216_v51 }
 0x21c   : > { %1444 = vmatmul.bf16.gmra.mxu1 %v4750_v6  ;;  %1574 = vmatmul.bf16.gmra.mxu2 %v4212_v44 }
 0x221   : > { %v4220_v43 = vpop.f32.mrf.mxu1 }
 0x222   : > { %4751 = vst [vmem:[#allocation16_spill] sm:$0xff] %v4220_v43  ;;  %v4222_v48 = vpop.f32.mrf.mxu0  ;;  %v371_v43 = vld [vmem:[#allocation4 + $0x20] sm:$0xff] }
 0x223   : > { %v1049_v28 = vadd.f32 %v4158_v54, %v371_v43  ;;  %v1053_v54 = vadd.f32 %v4174_v45, %v375_v17 }
 0x225   : > { %1400 = vmatmul.bf16.gmra.mxu0 %v4752_v61 }
 0x229   : > { %v4230_v20 = vpop.f32.mrf.mxu1 }
 0x22a   : > { %4753 = vst [vmem:[#allocation17_spill] sm:$0xff] %v4230_v20  ;;  %v4232_v30 = vpop.f32.mrf.mxu0  ;;  %v395_v20 = vld [vmem:[#allocation4 + $0xe0] sm:$0xff] }
 0x22b   : > { %4754 = vst [vmem:[#allocation19_spill] sm:$0xff] %v4232_v30 }
 0x22c   : > { %1449 = vmatmul.bf16.gmra.mxu1 %v4755_v10  ;;  %1579 = vmatmul.bf16.gmra.mxu2 %v4228_v34 }
 0x231   : > { %v4236_v36 = vpop.f32.mrf.mxu1 }
 0x232   : > { %4756 = vst [vmem:[#allocation26_spill] sm:$0xff] %v4236_v36  ;;  %v4238_v55 = vpop.f32.mrf.mxu0 }
 0x235   : > { %1405 = vmatmul.bf16.gmra.mxu0 %v4757_v41 }
 0x239   : > { %v4246_v18 = vpop.f32.mrf.mxu1 }
 0x23a   : > { %4758 = vst [vmem:[#allocation27_spill] sm:$0xff] %v4246_v18  ;;  %v4248_v59 = vpop.f32.mrf.mxu0 }
 0x23b   : > { %4759 = vst [vmem:[#allocation28_spill] sm:$0xff] %v4248_v59 }
 0x23c   : > { %1454 = vmatmul.bf16.gmra.mxu1 %v4760_v13  ;;  %1584 = vmatmul.bf16.gmra.mxu2 %v4244_v5 }
 0x241   : > { %v4252_v27 = vpop.f32.mrf.mxu1 }
 0x242   : > { %4761 = vst [vmem:[#allocation29_spill] sm:$0xff] %v4252_v27  ;;  %v4254_v58 = vpop.f32.mrf.mxu0 }
 0x245   : > { %1410 = vmatmul.bf16.gmra.mxu0 %v4762_v0 }
 0x249   : > { %v4262_v37 = vpop.f32.mrf.mxu1 }
 0x24a   : > { %4763 = vst [vmem:[#allocation30_spill] sm:$0xff] %v4262_v37  ;;  %v4264_v8 = vpop.f32.mrf.mxu0 }
 0x24b   : > { %4764 = vst [vmem:[#allocation31_spill] sm:$0xff] %v4264_v8 }
 0x24c   : > { %1459 = vmatmul.bf16.gmra.mxu1 %v4765_v9  ;;  %1589 = vmatmul.bf16.gmra.mxu2 %v4260_v42 }
 0x251   : > { %v4268_v25 = vpop.f32.mrf.mxu1 }
 0x252   : > { %4766 = vst [vmem:[#allocation32_spill] sm:$0xff] %v4268_v25  ;;  %v1376_v16 = vpop.f32.mrf.mxu0 }
 0x255   : > { %1876 = vmatmul.bf16.vlgmr.msrb.gmra.mxu0 %v4733_v35 }
 0x259   : > { %v1425_v38 = vpop.f32.mrf.mxu1 }
 0x25a   : > { %v4271_v33 = vadd.f32 %v1425_v38, %v1376_v16  ;;  %v1378_v19 = vpop.f32.mrf.mxu0 }
 0x25c   : > { %1925 = vmatmul.bf16.vlgmr.msrb.gmra.mxu1 %v4735_v49 }
 0x25f   : > { %v1555_v4 = vpop.f32.mrf.mxu2 }
 0x260   : > { %v4275_v14 = vadd.f32 %v1555_v4, %v1045_v63 }
 0x261   : > { %v1427_v8 = vpop.f32.mrf.mxu1 }
 0x262   : > { %4767 = vst [vmem:[#allocation33_spill] sm:$0xff] %v4275_v14  ;;  %v4277_v27 = vadd.f32 %v1427_v8, %v1378_v19  ;;  %v1381_v59 = vpop.f32.mrf.mxu0  ;;  %v391_v14 = vld [vmem:[#allocation4 + $0xc0] sm:$0xff] }
 0x265   : > { %1881 = vmatmul.bf16.gmra.mxu0 %v4736_v31 }
 0x267   : > { %v4282_v16 = vpop.f32.mrf.mxu2 }
 0x268   : > { %4768 = vst [vmem:[#allocation34_spill] sm:$0xff] %v4282_v16  ;;  %v383_v16 = vld [vmem:[#allocation4 + $0x80] sm:$0xff] }
 0x269   : > { %v1430_v38 = vpop.f32.mrf.mxu1 }
 0x26a   : > { %v4284_v36 = vadd.f32 %v1430_v38, %v1381_v59  ;;  %v1383_v30 = vpop.f32.mrf.mxu0 }
 0x26c   : > { %1930 = vmatmul.bf16.gmra.mxu1 %v4738_v24 }
 0x26f   : > { %v1560_v52 = vpop.f32.mrf.mxu2 }
 0x270   : > { %v4288_v8 = vadd.f32 %v1560_v52, %v1049_v28 }
 0x271   : > { %v1432_v19 = vpop.f32.mrf.mxu1 }
 0x272   : > { %4769 = vst [vmem:[#allocation35_spill] sm:$0xff] %v4288_v8  ;;  %v4290_v63 = vadd.f32 %v1432_v19, %v1383_v30  ;;  %v1386_v4 = vpop.f32.mrf.mxu0  ;;  %v379_v8 = vld [vmem:[#allocation4 + $0x60] sm:$0xff] }
 0x273   : > { %v1057_v45 = vadd.f32 %v4190_v46, %v379_v8  ;;  %v1061_v46 = vadd.f32 %v4206_v26, %v383_v16 }
 0x275   : > { %1886 = vmatmul.bf16.gmra.mxu0 %v4739_v29 }
 0x277   : > { %v4295_v59 = vpop.f32.mrf.mxu2 }
 0x278   : > { %4770 = vst [vmem:[#allocation36_spill] sm:$0xff] %v4295_v59 }
 0x279   : > { %v1435_v38 = vpop.f32.mrf.mxu1 }
 0x27a   : > { %v4297_v51 = vadd.f32 %v1435_v38, %v1386_v4  ;;  %v1388_v7 = vpop.f32.mrf.mxu0 }
 0x27c   : > { %1935 = vmatmul.bf16.gmra.mxu1 %v4741_v12 }
 0x27f   : > { %v1565_v43 = vpop.f32.mrf.mxu2 }
 0x280   : > { %v4301_v30 = vadd.f32 %v1565_v43, %v1053_v54 }
 0x281   : > { %v1437_v28 = vpop.f32.mrf.mxu1 }
 0x282   : > { %4771 = vst [vmem:[#allocation37_spill] sm:$0xff] %v4301_v30  ;;  %v4303_v52 = vadd.f32 %v1437_v28, %v1388_v7  ;;  %v1391_v19 = vpop.f32.mrf.mxu0 }
 0x285   : > { %1891 = vmatmul.bf16.gmra.mxu0 %v4742_v53 }
 0x287   : > { %v4308_v4 = vpop.f32.mrf.mxu2 }
 0x288   : > { %4772 = vst [vmem:[#allocation38_spill] sm:$0xff] %v4308_v4 }
 0x289   : > { %v1440_v38 = vpop.f32.mrf.mxu1 }
 0x28a   : > { %v4310_v59 = vadd.f32 %v1440_v38, %v1391_v19  ;;  %v1393_v62 = vpop.f32.mrf.mxu0 }
 0x28c   : > { %1940 = vmatmul.bf16.gmra.mxu1 %v4745_v21 }
 0x28f   : > { %v1570_v17 = vpop.f32.mrf.mxu2 }
 0x290   : > { %v4314_v7 = vadd.f32 %v1570_v17, %v1057_v45 }
 0x291   : > { %v1442_v54 = vpop.f32.mrf.mxu1 }
 0x292   : > { %4773 = vst [vmem:[#allocation39_spill] sm:$0xff] %v4314_v7  ;;  %v4316_v43 = vadd.f32 %v1442_v54, %v1393_v62  ;;  %v1396_v28 = vpop.f32.mrf.mxu0 }
 0x295   : > { %1896 = vmatmul.bf16.gmra.mxu0 %v4747_v32 }
 0x297   : > { %v4321_v19 = vpop.f32.mrf.mxu2 }
 0x298   : > { %4774 = vst [vmem:[#allocation40_spill] sm:$0xff] %v4321_v19  ;;  %v387_v19 = vld [vmem:[#allocation4 + $0xa0] sm:$0xff] }
 0x299   : > { %v1445_v38 = vpop.f32.mrf.mxu1 }
 0x29a   : > { %v1446_v4 = vadd.f32 %v1445_v38, %v1396_v28  ;;  %v1398_v30 = vpop.f32.mrf.mxu0  ;;  %v1065_v28 = vadd.f32 %v4222_v48, %v387_v19 }
 0x29c   : > { %1945 = vmatmul.bf16.gmra.mxu1 %v4750_v6 }
 0x29f   : > { %v1575_v8 = vpop.f32.mrf.mxu2 }
 0x2a0   : > { %v4325_v45 = vadd.f32 %v1575_v8, %v1061_v46 }
 0x2a1   : > { %v1447_v62 = vpop.f32.mrf.mxu1 }
 0x2a2   : > { %4775 = vst [vmem:[#allocation41_spill] sm:$0xff] %v4325_v45  ;;  %v1401_v17 = vpop.f32.mrf.mxu0 }
 0x2a5   : > { %1901 = vmatmul.bf16.gmra.mxu0 %v4752_v61 }
 0x2a7   : > { %v4328_v54 = vpop.f32.mrf.mxu2 }
 0x2a8   : > { %4776 = vst [vmem:[#allocation42_spill] sm:$0xff] %v4328_v54  ;;  %v1069_v54 = vadd.f32 %v4238_v55, %v391_v14 }
 0x2a9   : > { %v1450_v25 = vpop.f32.mrf.mxu1 }
 0x2aa   : > { %v1403_v7 = vpop.f32.mrf.mxu0 }
 0x2ac   : > { %1950 = vmatmul.bf16.gmra.mxu1 %v4755_v10 }
 0x2af   : > { %v1580_v38 = vpop.f32.mrf.mxu2 }
 0x2b0   : > { %v4332_v1 = vadd.f32 %v1580_v38, %v1065_v28 }
 0x2b1   : > { %v1452_v26 = vpop.f32.mrf.mxu1 }
 0x2b2   : > { %4777 = vst [vmem:[#allocation43_spill] sm:$0xff] %v4332_v1  ;;  %v1406_v16 = vpop.f32.mrf.mxu0 }
 0x2b5   : > { %1906 = vmatmul.bf16.gmra.mxu0 %v4757_v41  ;;  %v1451_v41 = vadd.f32 %v1450_v25, %v1401_v17 }
 0x2b7   : > { %v4335_v46 = vpop.f32.mrf.mxu2 }
 0x2b8   : > { %4778 = vst [vmem:[#allocation44_spill] sm:$0xff] %v4335_v46  ;;  %v1073_v46 = vadd.f32 %v4254_v58, %v395_v20  ;;  %v1448_v20 = vadd.f32 %v1447_v62, %v1398_v30  ;;  %v4785_v30 = vpack.c.bf16 %v4277_v27, %v4271_v33 }
 0x2b9   : > { %v1455_v8 = vpop.f32.mrf.mxu1 }
 0x2ba   : > { %v1408_v45 = vpop.f32.mrf.mxu0  ;;  %v1456_v6 = vadd.f32 %v1455_v8, %v1406_v16  ;;  %v1491_v58 = vpack.c.bf16 %v1448_v20, %v1446_v4  ;;  %v3251_v20 = vld [vmem:[#allocation2 + $0x118] sm:$0xf0] }
 0x2bc   : > { %1955 = vmatmul.bf16.gmra.mxu1 %v4760_v13 }
 0x2bf   : > { %v1585_v37 = vpop.f32.mrf.mxu2 }
 0x2c0   : > { %v4339_v18 = vadd.f32 %v1585_v37, %v1069_v54 }
 0x2c1   : > { %v1457_v48 = vpop.f32.mrf.mxu1 }
 0x2c2   : > { %4779 = vst [vmem:[#allocation45_spill] sm:$0xff] %v4339_v18  ;;  %v1411_v19 = vpop.f32.mrf.mxu0  ;;  %v1458_v18 = vadd.f32 %v1457_v48, %v1408_v45  ;;  %v3561_v48 = vld [vmem:[#allocation2 + $0x164] sm:$0xf] }
 0x2c5   : > { %1911 = vmatmul.bf16.gmra.mxu0 %v4762_v0  ;;  %v1453_v0 = vadd.f32 %v1452_v26, %v1403_v7 }
 0x2c7   : > { %v4342_v28 = vpop.f32.mrf.mxu2 }
 0x2c8   : > { %4780 = vst [vmem:[#allocation46_spill] sm:$0xff] %v4342_v28  ;;  %v1495_v28 = vpack.c.bf16 %v1458_v18, %v1456_v6 }
 0x2c9   : > { %v1460_v38 = vpop.f32.mrf.mxu1 }
 0x2ca   : > { %v1413_v1 = vpop.f32.mrf.mxu0  ;;  %v1461_v14 = vadd.f32 %v1460_v38, %v1411_v19  ;;  %v3267_v19 = vld [vmem:[#allocation2 + $0x178] sm:$0xf0]  ;;  %v3259_v38 = vld [vmem:[#allocation2 + $0x148] sm:$0xf0] }
 0x2cc   : > { %1960 = vmatmul.bf16.gmra.mxu1 %v4765_v9 }
 0x2cf   : > { %v1590_v10 = vpop.f32.mrf.mxu2 }
 0x2d0   : > { %v4346_v13 = vadd.f32 %v1590_v10, %v1073_v46  ;;  %v1493_v10 = vpack.c.bf16 %v1453_v0, %v1451_v41  ;;  %v4784_v41 = vpack.c.bf16 %v4290_v63, %v4284_v36 }
 0x2d1   : > { %v1462_v55 = vpop.f32.mrf.mxu1 }
 0x2d2   : > { %4781 = vst [vmem:[#allocation47_spill] sm:$0xff] %v4346_v13  ;;  %v1463_v37 = vadd.f32 %v1462_v55, %v1413_v1  ;;  %v1877_v54 = vpop.f32.mrf.mxu0 }
 0x2d4   : > { %v1497_v50 = vpack.c.bf16 %v1463_v37, %v1461_v14 }
 0x2d6   : > { %1595 = vmatpush.bf16.msra.mxu3 %v1497_v50  ;;  %v4782_v50 = vpack.c.bf16 %v4316_v43, %v4310_v59 }
 0x2d9   : > { %v1926_v22 = vpop.f32.mrf.mxu1 }
 0x2da   : > { %v4348_v3 = vadd.f32 %v1926_v22, %v1877_v54  ;;  %1596 = vmatpush.bf16.msra.mxu3 %v1495_v28  ;;  %v4350_v9 = vpop.f32.mrf.mxu0  ;;  %v4783_v22 = vpack.c.bf16 %v4303_v52, %v4297_v51  ;;  %v3270_v28 = vor.u32 %v3561_v48, %v3267_v19  ;;  %v3557_v54 = vld [vmem:[#allocation2 + $0x104] sm:$0xf]  ;;  %v3315_v19 = vld [vmem:[#allocation2 + $0x298] sm:$0xf0] }
 0x2dc   : > { %1966 = vmatpush.bf16.msrb.mxu2 %v3270_v28 }
 0x2de   : > { %1597 = vmatpush.bf16.msra.mxu3 %v1493_v10  ;;  %v3577_v10 = vld [vmem:[#allocation2 + $0x2e4] sm:$0xf] }
 0x2e1   : > { %v4352_v46 = vpop.f32.mrf.mxu1 }
 0x2e2   : > { %1598 = vmatpush.bf16.msra.mxu3 %v1491_v58  ;;  %v1882_v1 = vpop.f32.mrf.mxu0  ;;  %v3331_v58 = vld [vmem:[#allocation2 + $0x2f8] sm:$0xf0] }
 0x2e6   : > { %1599 = vmatpush.bf16.msra.mxu3 %v4782_v50  ;;  %v3555_v50 = vld [vmem:[#allocation2 + $0xd4] sm:$0xf] }
 0x2e9   : > { %v1931_v6 = vpop.f32.mrf.mxu1 }
 0x2ea   : > { %v4357_v18 = vadd.f32 %v1931_v6, %v1882_v1  ;;  %1600 = vmatpush.bf16.msra.mxu3 %v4783_v22  ;;  %v4362_v25 = vpop.f32.mrf.mxu0  ;;  %v3334_v1 = vor.u32 %v3577_v10, %v3331_v58  ;;  %v3243_v6 = vld [vmem:[#allocation2 + $0xe8] sm:$0xf0]  ;;  %v3575_v22 = vld [vmem:[#allocation2 + $0x2b4] sm:$0xf]  ;;  %v3219_v58 = vld [vmem:[#allocation2 + $0x58] sm:$0xf0] }
 0x2ee   : > { %1601 = vmatpush.bf16.msra.mxu3 %v4784_v41  ;;  %v3246_v41 = vor.u32 %v3555_v50, %v3243_v6  ;;  %v3299_v6 = vld [vmem:[#allocation2 + $0x238] sm:$0xf0] }
 0x2f1   : > { %v4367_v0 = vpop.f32.mrf.mxu1 }
 0x2f2   : > { %1602 = vmatpush.bf16.msra.mxu3 %v4785_v30  ;;  %v1887_v59 = vpop.f32.mrf.mxu0  ;;  %v3323_v30 = vld [vmem:[#allocation2 + $0x2c8] sm:$0xf0] }
 0x2f5   : > { %1603 = vmatmul.bf16.vlgmr.msra.gmra.mxu3 %v4148_v23 }
 0x2f6   : > { %2015 = vmatpush.bf16.msrb.mxu3 %v3334_v1  ;;  %v3569_v1 = vld [vmem:[#allocation2 + $0x224] sm:$0xf] }
 0x2f9   : > { %v1936_v4 = vpop.f32.mrf.mxu1 }
 0x2fa   : > { %v4373_v7 = vadd.f32 %v1936_v4, %v1887_v59  ;;  %v4375_v51 = vpop.f32.mrf.mxu0  ;;  %v3326_v59 = vor.u32 %v3575_v22, %v3323_v30  ;;  %v3547_v30 = vld [vmem:[#allocation2 + $0x14] sm:$0xf] }
 0x2fc   : > { %2016 = vmatpush.bf16.msrb.mxu3 %v3326_v59  ;;  %v3211_v59 = vld [vmem:[#allocation2 + $0x28] sm:$0xf0] }
 0x301   : > { %v4377_v52 = vpop.f32.mrf.mxu1 }
 0x302   : > { %v1892_v43 = vpop.f32.mrf.mxu0 }
 0x305   : > { %1608 = vmatmul.bf16.gmra.mxu3 %v4164_v11 }
 0x309   : > { %v1941_v36 = vpop.f32.mrf.mxu1 }
 0x30a   : > { %v4380_v63 = vadd.f32 %v1941_v36, %v1892_v43  ;;  %v4382_v45 = vpop.f32.mrf.mxu0  ;;  %v3553_v43 = vld [vmem:[#allocation2 + $0xa4] sm:$0xf]  ;;  %v3235_v36 = vld [vmem:[#allocation2 + $0xb8] sm:$0xf0] }
 0x30b   : > { %v3238_v48 = vor.u32 %v3553_v43, %v3235_v36  ;;  %v3567_v43 = vld [vmem:[#allocation2 + $0x1f4] sm:$0xf]  ;;  %v3214_v36 = vor.u32 %v3547_v30, %v3211_v59 }
 0x311   : > { %v4384_v27 = vpop.f32.mrf.mxu1 }
 0x312   : > { %v1897_v33 = vpop.f32.mrf.mxu0 }
 0x315   : > { %1613 = vmatmul.bf16.gmra.mxu3 %v4180_v39  ;;  %v3559_v39 = vld [vmem:[#allocation2 + $0x134] sm:$0xf] }
 0x316   : > { %v3262_v55 = vor.u32 %v3559_v39, %v3259_v38  ;;  %v3227_v39 = vld [vmem:[#allocation2 + $0x88] sm:$0xf0]  ;;  %v3571_v38 = vld [vmem:[#allocation2 + $0x254] sm:$0xf] }
 0x318   : > { %1967 = vmatpush.bf16.msrb.mxu2 %v3262_v55 }
 0x319   : > { %v1946_v23 = vpop.f32.mrf.mxu1 }
 0x31a   : > { %v4387_v62 = vadd.f32 %v1946_v23, %v1897_v33  ;;  %v4389_v17 = vpop.f32.mrf.mxu0  ;;  %v3573_v33 = vld [vmem:[#allocation2 + $0x284] sm:$0xf] }
 0x31b   : > { %v3318_v28 = vor.u32 %v3573_v33, %v3315_v19  ;;  %v3291_v33 = vld [vmem:[#allocation2 + $0x208] sm:$0xf0] }
 0x31d   : > { %2017 = vmatpush.bf16.msrb.mxu3 %v3318_v28  ;;  %v3565_v28 = vld [vmem:[#allocation2 + $0x1c4] sm:$0xf] }
 0x321   : > { %v4391_v26 = vpop.f32.mrf.mxu1 }
 0x322   : > { %v4393_v16 = vpop.f32.mrf.mxu0 }
 0x325   : > { %1618 = vmatmul.bf16.gmra.mxu3 %v4196_v2  ;;  %v3254_v2 = vor.u32 %v3557_v54, %v3251_v20  ;;  %v3307_v54 = vld [vmem:[#allocation2 + $0x268] sm:$0xf0] }
 0x326   : > { %v3310_v20 = vor.u32 %v3571_v38, %v3307_v54  ;;  %v3563_v38 = vld [vmem:[#allocation2 + $0x194] sm:$0xf] }
 0x327   : > { %1968 = vmatpush.bf16.msrb.mxu2 %v3254_v2  ;;  %v3549_v2 = vld [vmem:[#allocation2 + $0x44] sm:$0xf] }
 0x328   : > { %2018 = vmatpush.bf16.msrb.mxu3 %v3310_v20  ;;  %v3222_v50 = vor.u32 %v3549_v2, %v3219_v58 }
 0x329   : > { %v4396_v11 = vpop.f32.mrf.mxu1 }
 0x32a   : > { %v4398_v8 = vpop.f32.mrf.mxu0 }
 0x32b   : > { %1969 = vmatpush.bf16.msrb.mxu2 %v3246_v41  ;;  %v3302_v41 = vor.u32 %v3569_v1, %v3299_v6 }
 0x32d   : > { %2019 = vmatpush.bf16.msrb.mxu3 %v3302_v41  ;;  %v1952_v41 = vadd.f32 %v4396_v11, %v4393_v16  ;;  %v1939_v16 = vadd.f32 %v4377_v52, %v4375_v51  ;;  %v4448_v52 = vld [vmem:[%s4663_s2 + $0x88] sm:$0xff] }
 0x32f   : > { %1970 = vmatpush.bf16.msrb.mxu2 %v3238_v48  ;;  %v3294_v48 = vor.u32 %v3567_v43, %v3291_v33 }
 0x331   : > { %v4400_v14 = vpop.f32.mrf.mxu1  ;;  %2020 = vmatpush.bf16.msrb.mxu3 %v3294_v48 }
 0x332   : > { %v4402_v37 = vpop.f32.mrf.mxu0 }
 0x335   : > { %1623 = vmatmul.bf16.gmra.mxu3 %v4212_v44  ;;  %v3551_v44 = vld [vmem:[#allocation2 + $0x74] sm:$0xf] }
 0x336   : > { %v3230_v55 = vor.u32 %v3551_v44, %v3227_v39  ;;  %v3283_v44 = vld [vmem:[#allocation2 + $0x1d8] sm:$0xf0] }
 0x337   : > { %v3286_v39 = vor.u32 %v3565_v28, %v3283_v44  ;;  %v4788_v28 = vld [vmem:[#allocation13_spill] sm:$0xff] }
 0x338   : > { %1971 = vmatpush.bf16.msrb.mxu2 %v3230_v55 }
 0x339   : > { %v1956_v4 = vpop.f32.mrf.mxu1  ;;  %2021 = vmatpush.bf16.msrb.mxu3 %v3286_v39 }
 0x33a   : > { %v1909_v23 = vpop.f32.mrf.mxu0  ;;  %v1957_v58 = vadd.f32 %v1956_v4, %v4402_v37  ;;  %v1944_v37 = vadd.f32 %v4384_v27, %v4382_v45 }
 0x33c   : > { %1972 = vmatpush.bf16.msrb.mxu2 %v3222_v50  ;;  %v2087_v11 = vpack.c.bf16 %v1944_v37, %v4380_v63 }
 0x340   : > { %1973 = vmatpush.bf16.msrb.mxu2 %v3214_v36  ;;  %v4476_v36 = vld [vmem:[%s4663_s2 + $0x98] sm:$0xff] }
 0x341   : > { %v1958_v10 = vpop.f32.mrf.mxu1 }
 0x342   : > { %v1912_v22 = vpop.f32.mrf.mxu0  ;;  %v1959_v1 = vadd.f32 %v1958_v10, %v1909_v23 }
 0x343   : > { %1974 = vmatmul.bf16.vlgmr.msrb.gmra.mxu2 %v4733_v35  ;;  %v1954_v35 = vadd.f32 %v4400_v14, %v4398_v8  ;;  %v4462_v14 = vld [vmem:[%s4663_s2 + $0x90] sm:$0xff] }
 0x344   : > { %v2093_v30 = vpack.c.bf16 %v1959_v1, %v1957_v58  ;;  %v4791_v1 = vld [vmem:[#allocation23_spill] sm:$0xff] }
 0x345   : > { %1628 = vmatmul.bf16.gmra.mxu3 %v4228_v34  ;;  %v3275_v34 = vld [vmem:[#allocation2 + $0x1a8] sm:$0xf0]  ;;  %v2091_v59 = vpack.c.bf16 %v1954_v35, %v1952_v41  ;;  %v4792_v35 = vld [vmem:[#allocation20_spill] sm:$0xff] }
 0x346   : > { %v3278_v54 = vor.u32 %v3563_v38, %v3275_v34  ;;  %v4490_v34 = vld [vmem:[%s4663_s2 + $0xa0] sm:$0xff]  ;;  %v388_v41 = vld [vmem:[#allocation4 + $0xa8] sm:$0xff] }
 0x348   : > { %2022 = vmatpush.bf16.msrb.mxu3 %v3278_v54  ;;  %v4790_v54 = vld [vmem:[#allocation14_spill] sm:$0xff] }
 0x349   : > { %v1961_v19 = vpop.f32.mrf.mxu1 }
 0x34a   : > { %v1914_v55 = vpop.f32.mrf.mxu0  ;;  %v1962_v20 = vadd.f32 %v1961_v19, %v1912_v22  ;;  %v1949_v22 = vadd.f32 %v4391_v26, %v4389_v17  ;;  %v1934_v17 = vadd.f32 %v4367_v0, %v4362_v25  ;;  %v2085_v26 = vpack.c.bf16 %v1939_v16, %v4373_v7  ;;  %v368_v25 = vld [vmem:[#allocation4 + $0x8] sm:$0xff]  ;;  %v4515_v16 = vld [vmem:[%s4663_s2 + $0xb0] sm:$0xff] }
 0x34c   : > { %v2083_v45 = vpack.c.bf16 %v1934_v17, %v4357_v18  ;;  %v392_v17 = vld [vmem:[#allocation4 + $0xc8] sm:$0xff] }
 0x351   : > { %v1963_v2 = vpop.f32.mrf.mxu1 }
 0x352   : > { %v1964_v50 = vadd.f32 %v1963_v2, %v1914_v55  ;;  %v4789_v55 = vld [vmem:[#allocation18_spill] sm:$0xff] }
 0x353   : > { %1979 = vmatmul.bf16.gmra.mxu2 %v4736_v31  ;;  %v1929_v31 = vadd.f32 %v4352_v46, %v4350_v9  ;;  %v1046_v9 = vadd.f32 %v4150_v47, %v368_v25 }
 0x354   : > { %v2095_v6 = vpack.c.bf16 %v1964_v50, %v1962_v20 }
 0x355   : > { %1633 = vmatmul.bf16.gmra.mxu3 %v4244_v5  ;;  %v2089_v5 = vpack.c.bf16 %v1949_v22, %v4387_v62  ;;  %v2081_v51 = vpack.c.bf16 %v1929_v31, %v4348_v3  ;;  %v4796_v31 = vld [vmem:[#allocation27_spill] sm:$0xff] }
 0x356   : > { %2145 = vmatpush.bf16.msra.mxu0 %v2095_v6  ;;  %v4503_v6 = vld [vmem:[%s4663_s2 + $0xa8] sm:$0xff] }
 0x35a   : > { %2146 = vmatpush.bf16.msra.mxu0 %v2093_v30  ;;  %v4793_v30 = vld [vmem:[#allocation17_spill] sm:$0xff] }
 0x35b   : > { %v1066_v22 = vadd.f32 %v4793_v30, %v388_v41 }
 0x35e   : > { %2147 = vmatpush.bf16.msra.mxu0 %v2091_v59 }
 0x362   : > { %2148 = vmatpush.bf16.msra.mxu0 %v2089_v5 }
 0x363   : > { %1984 = vmatmul.bf16.gmra.mxu2 %v4739_v29  ;;  %v370_v29 = vld [vmem:[#allocation4 + $0x18] sm:$0xff] }
 0x364   : > { %v1048_v3 = vadd.f32 %v4156_v60, %v370_v29  ;;  %v4529_v29 = vld [vmem:[%s4663_s2 + $0xb8] sm:$0xff] }
 0x365   : > { %1638 = vmatmul.bf16.gmra.mxu3 %v4260_v42  ;;  %v4434_v42 = vld [vmem:[%s4663_s2 + $0x80] sm:$0xff] }
 0x366   : > { %2149 = vmatpush.bf16.msra.mxu0 %v2087_v11  ;;  %v4517_v11 = vpop.f32.mrf.mxu2 }
 0x36a   : > { %2150 = vmatpush.bf16.msra.mxu0 %v2085_v26  ;;  %v4795_v26 = vld [vmem:[#allocation22_spill] sm:$0xff] }
 0x36e   : > { %2151 = vmatpush.bf16.msra.mxu0 %v2083_v45  ;;  %v1070_v45 = vadd.f32 %v4796_v31, %v392_v17 }
 0x372   : > { %2152 = vmatpush.bf16.msra.mxu0 %v2081_v51 }
 0x373   : > { %1989 = vmatmul.bf16.gmra.mxu2 %v4742_v53  ;;  %v374_v53 = vld [vmem:[#allocation4 + $0x38] sm:$0xff] }
 0x374   : > { %v1052_v60 = vadd.f32 %v4172_v40, %v374_v53 }
 0x375   : > { %2023 = vmatmul.bf16.vlgmr.msrb.gmra.mxu3 %v4735_v49  ;;  %2153 = vmatmul.bf16.vlgmr.msra.gmra.mxu0 %v4434_v42  ;;  %v372_v49 = vld [vmem:[#allocation4 + $0x28] sm:$0xff] }
 0x376   : > { %v1050_v47 = vadd.f32 %v4166_v56, %v372_v49  ;;  %v4797_v49 = vld [vmem:[#allocation24_spill] sm:$0xff] }
 0x378   : > { %v1604_v46 = vpop.f32.mrf.mxu3 }
 0x379   : > { %v4439_v18 = vadd.f32 %v1604_v46, %v1046_v9 }
 0x380   : > { %v1606_v0 = vpop.f32.mrf.mxu3 }
 0x381   : > { %v4443_v7 = vadd.f32 %v1606_v0, %v1048_v3  ;;  %v396_v3 = vld [vmem:[#allocation4 + $0xe8] sm:$0xff] }
 0x383   : > { %1994 = vmatmul.bf16.gmra.mxu2 %v4747_v32  ;;  %v378_v32 = vld [vmem:[#allocation4 + $0x58] sm:$0xff] }
 0x384   : > { %v1056_v40 = vadd.f32 %v4188_v57, %v378_v32  ;;  %v4787_v57 = vld [vmem:[#allocation21_spill] sm:$0xff] }
 0x385   : > { %2028 = vmatmul.bf16.gmra.mxu3 %v4738_v24  ;;  %2158 = vmatmul.bf16.gmra.mxu0 %v4448_v52  ;;  %v376_v24 = vld [vmem:[#allocation4 + $0x48] sm:$0xff] }
 0x386   : > { %v1054_v56 = vadd.f32 %v4182_v15, %v376_v24  ;;  %v4786_v15 = vld [vmem:[#allocation11_spill] sm:$0xff] }
 0x387   : > { %4794 = vst [vmem:[#allocation11_spill] sm:$0xff] %v4517_v11 }
 0x388   : > { %v1609_v63 = vpop.f32.mrf.mxu3 }
 0x389   : > { %v4453_v27 = vadd.f32 %v1609_v63, %v1050_v47  ;;  %v4798_v47 = vld [vmem:[#allocation30_spill] sm:$0xff] }
 0x38a   : > { %v1074_v63 = vadd.f32 %v4798_v47, %v396_v3 }
 0x390   : > { %v1611_v62 = vpop.f32.mrf.mxu3 }
 0x391   : > { %v4457_v8 = vadd.f32 %v1611_v62, %v1052_v60 }
 0x393   : > { %1999 = vmatmul.bf16.gmra.mxu2 %v4752_v61  ;;  %v382_v61 = vld [vmem:[#allocation4 + $0x78] sm:$0xff] }
 0x394   : > { %v1060_v44 = vadd.f32 %v4788_v28, %v382_v61 }
 0x395   : > { %2033 = vmatmul.bf16.gmra.mxu3 %v4741_v12  ;;  %2163 = vmatmul.bf16.gmra.mxu0 %v4462_v14  ;;  %v380_v12 = vld [vmem:[#allocation4 + $0x68] sm:$0xff] }
 0x396   : > { %v1058_v33 = vadd.f32 %v4786_v15, %v380_v12 }
 0x398   : > { %v1614_v4 = vpop.f32.mrf.mxu3 }
 0x399   : > { %v4467_v23 = vadd.f32 %v1614_v4, %v1054_v56 }
 0x3a0   : > { %v1616_v10 = vpop.f32.mrf.mxu3 }
 0x3a1   : > { %v4471_v43 = vadd.f32 %v1616_v10, %v1056_v40 }
 0x3a3   : > { %2004 = vmatmul.bf16.gmra.mxu2 %v4787_v57 }
 0x3a5   : > { %2038 = vmatmul.bf16.gmra.mxu3 %v4745_v21  ;;  %2168 = vmatmul.bf16.gmra.mxu0 %v4476_v36  ;;  %v384_v21 = vld [vmem:[#allocation4 + $0x88] sm:$0xff] }
 0x3a6   : > { %v1062_v20 = vadd.f32 %v4790_v54, %v384_v21 }
 0x3a8   : > { %v1619_v48 = vpop.f32.mrf.mxu3 }
 0x3a9   : > { %v4481_v19 = vadd.f32 %v1619_v48, %v1058_v33 }
 0x3b0   : > { %v1621_v39 = vpop.f32.mrf.mxu3 }
 0x3b1   : > { %v4485_v38 = vadd.f32 %v1621_v39, %v1060_v44 }
 0x3b3   : > { %2009 = vmatmul.bf16.gmra.mxu2 %v4791_v1 }
 0x3b5   : > { %2043 = vmatmul.bf16.gmra.mxu3 %v4789_v55  ;;  %2173 = vmatmul.bf16.gmra.mxu0 %v4490_v34 }
 0x3b8   : > { %v1624_v2 = vpop.f32.mrf.mxu3 }
 0x3b9   : > { %v4495_v58 = vadd.f32 %v1624_v2, %v1062_v20 }
 0x3c0   : > { %v4498_v50 = vpop.f32.mrf.mxu3 }
 0x3c5   : > { %2048 = vmatmul.bf16.gmra.mxu3 %v4792_v35  ;;  %2178 = vmatmul.bf16.gmra.mxu0 %v4503_v6 }
 0x3c6   : > { %v1975_v9 = vpop.f32.mrf.mxu2 }
 0x3c8   : > { %v1629_v59 = vpop.f32.mrf.mxu3 }
 0x3c9   : > { %v4508_v37 = vadd.f32 %v1629_v59, %v1066_v22 }
 0x3ce   : > { %v4531_v0 = vpop.f32.mrf.mxu2 }
 0x3d0   : > { %v4510_v5 = vpop.f32.mrf.mxu3 }
 0x3d5   : > { %2053 = vmatmul.bf16.gmra.mxu3 %v4795_v26  ;;  %2183 = vmatmul.bf16.gmra.mxu0 %v4515_v16 }
 0x3d6   : > { %v1980_v62 = vpop.f32.mrf.mxu2 }
 0x3d8   : > { %v1634_v51 = vpop.f32.mrf.mxu3 }
 0x3d9   : > { %v4522_v25 = vadd.f32 %v1634_v51, %v1070_v45 }
 0x3de   : > { %v1982_v4 = vpop.f32.mrf.mxu2 }
 0x3e0   : > { %v4524_v46 = vpop.f32.mrf.mxu3 }
 0x3e5   : > { %2058 = vmatmul.bf16.gmra.mxu3 %v4797_v49  ;;  %2188 = vmatmul.bf16.gmra.mxu0 %v4529_v29 }
 0x3e6   : > { %v1985_v10 = vpop.f32.mrf.mxu2 }
 0x3e8   : > { %v1639_v53 = vpop.f32.mrf.mxu3 }
 0x3e9   : > { %v4536_v60 = vadd.f32 %v1639_v53, %v1074_v63 }
 0x3eb   : > { %4799 = vst [vmem:[#allocation21_spill] sm:$0xff] %v4536_v60 }
 0x3ee   : > { %v1987_v33 = vpop.f32.mrf.mxu2 }
 0x3f0   : > { %v4538_v24 = vpop.f32.mrf.mxu3 }
 0x3f1   : > { %4800 = vst [vmem:[#allocation13_spill] sm:$0xff] %v4538_v24 }
 0x3f6   : > { %v1990_v61 = vpop.f32.mrf.mxu2 }
 0x3f8   : > { %v2024_v56 = vpop.f32.mrf.mxu3 }
 0x3f9   : > { %v2025_v32 = vadd.f32 %v2024_v56, %v1975_v9 }
 0x3fe   : > { %v1992_v39 = vpop.f32.mrf.mxu2 }
 0x400   : > { %v2026_v40 = vpop.f32.mrf.mxu3 }
 0x406   : > { %v1995_v54 = vpop.f32.mrf.mxu2 }
 0x408   : > { %v2029_v12 = vpop.f32.mrf.mxu3 }
 0x409   : > { %v2030_v15 = vadd.f32 %v2029_v12, %v1980_v62 }
 0x40e   : > { %v1997_v2 = vpop.f32.mrf.mxu2 }
 0x410   : > { %v2031_v48 = vpop.f32.mrf.mxu3 }
 0x411   : > { %v2032_v13 = vadd.f32 %v2031_v48, %v1982_v4  ;;  %v3599_v4 = vld [vmem:[#allocation6 + $0x60] sm:$0xff] }
 0x412   : > { %v3587_v48 = vld [vmem:[#allocation6] sm:$0xff] }
 0x416   : > { %v2000_v35 = vpop.f32.mrf.mxu2 }
 0x418   : > { %v2034_v57 = vpop.f32.mrf.mxu3 }
 0x419   : > { %v2035_v28 = vadd.f32 %v2034_v57, %v1985_v10 }
 0x41e   : > { %v2002_v22 = vpop.f32.mrf.mxu2 }
 0x420   : > { %v2036_v44 = vpop.f32.mrf.mxu3 }
 0x421   : > { %v2037_v11 = vadd.f32 %v2036_v44, %v1987_v33  ;;  %v3596_v33 = vld [vmem:[#allocation6 + $0x48] sm:$0xff] }
 0x426   : > { %v2005_v26 = vpop.f32.mrf.mxu2 }
 0x428   : > { %v2039_v21 = vpop.f32.mrf.mxu3 }
 0x429   : > { %v2040_v55 = vadd.f32 %v2039_v21, %v1990_v61 }
 0x42e   : > { %v2007_v45 = vpop.f32.mrf.mxu2 }
 0x430   : > { %v2041_v20 = vpop.f32.mrf.mxu3 }
 0x436   : > { %v2010_v9 = vpop.f32.mrf.mxu2 }
 0x438   : > { %v2044_v1 = vpop.f32.mrf.mxu3 }
 0x439   : > { %v2045_v41 = vadd.f32 %v2044_v1, %v1995_v54  ;;  %v2042_v1 = vadd.f32 %v2041_v20, %v1992_v39  ;;  %v4801_v39 = vld [vmem:[#allocation33_spill] sm:$0xff]  ;;  %v369_v20 = vld [vmem:[#allocation4 + $0x10] sm:$0xff] }
 0x43b   : > { %v2088_v60 = vpack.c.bf16 %v2042_v1, %v2040_v55 }
 0x43e   : > { %v2012_v49 = vpop.f32.mrf.mxu2 }
 0x440   : > { %v2046_v30 = vpop.f32.mrf.mxu3 }
 0x441   : > { %v2047_v21 = vadd.f32 %v2046_v30, %v1997_v2 }
 0x443   : > { %v2090_v24 = vpack.c.bf16 %v2047_v21, %v2045_v41 }
 0x448   : > { %v2049_v59 = vpop.f32.mrf.mxu3 }
 0x449   : > { %v2050_v57 = vadd.f32 %v2049_v59, %v2000_v35  ;;  %v4802_v35 = vld [vmem:[#allocation25_spill] sm:$0xff] }
 0x44a   : > { %v1047_v30 = vadd.f32 %v4802_v35, %v369_v20 }
 0x450   : > { %v2051_v17 = vpop.f32.mrf.mxu3 }
 0x451   : > { %v2052_v12 = vadd.f32 %v2051_v17, %v2002_v22 }
 0x453   : > { %v2092_v54 = vpack.c.bf16 %v2052_v12, %v2050_v57 }
 0x458   : > { %v2054_v31 = vpop.f32.mrf.mxu3 }
 0x459   : > { %v2055_v10 = vadd.f32 %v2054_v31, %v2005_v26  ;;  %v2084_v26 = vpack.c.bf16 %v2032_v13, %v2030_v15  ;;  %v3593_v13 = vld [vmem:[#allocation6 + $0x30] sm:$0xff]  ;;  %v3588_v15 = vld [vmem:[#allocation6 + $0x8] sm:$0xff] }
 0x45a   : > { %v4803_v31 = vld [vmem:[#allocation34_spill] sm:$0xff] }
 0x460   : > { %v2056_v51 = vpop.f32.mrf.mxu3 }
 0x461   : > { %v2057_v62 = vadd.f32 %v2056_v51, %v2007_v45  ;;  %v2027_v45 = vadd.f32 %v2026_v40, %v4531_v0  ;;  %v3592_v0 = vld [vmem:[#allocation6 + $0x28] sm:$0xff] }
 0x463   : > { %v2094_v61 = vpack.c.bf16 %v2057_v62, %v2055_v10  ;;  %v2082_v22 = vpack.c.bf16 %v2027_v45, %v2025_v32  ;;  %v3597_v32 = vld [vmem:[#allocation6 + $0x50] sm:$0xff] }
 0x468   : > { %v2059_v3 = vpop.f32.mrf.mxu3 }
 0x469   : > { %v2060_v63 = vadd.f32 %v2059_v3, %v2010_v9  ;;  %v2086_v9 = vpack.c.bf16 %v2037_v11, %v2035_v28  ;;  %v3601_v11 = vld [vmem:[#allocation6 + $0x70] sm:$0xff]  ;;  %v3595_v28 = vld [vmem:[#allocation6 + $0x40] sm:$0xff] }
 0x470   : > { %v2061_v47 = vpop.f32.mrf.mxu3 }
 0x471   : > { %v2062_v53 = vadd.f32 %v2061_v47, %v2012_v49 }
 0x473   : > { %v2096_v56 = vpack.c.bf16 %v2062_v53, %v2060_v63 }
 0x475   : > { %2194 = vmatpush.bf16.msra.mxu1 %v2096_v56  ;;  %v4804_v56 = vld [vmem:[#allocation35_spill] sm:$0xff] }
 0x479   : > { %2195 = vmatpush.bf16.msra.mxu1 %v2094_v61 }
 0x47d   : > { %2196 = vmatpush.bf16.msra.mxu1 %v2092_v54  ;;  %v373_v54 = vld [vmem:[#allocation4 + $0x30] sm:$0xff] }
 0x481   : > { %2197 = vmatpush.bf16.msra.mxu1 %v2090_v24  ;;  %v3602_v24 = vld [vmem:[#allocation6 + $0x78] sm:$0xff] }
 0x482   : > { %2600 = vmatpush.bf16.msra.mxu3 %v3602_v24 }
 0x485   : > { %2198 = vmatpush.bf16.msra.mxu1 %v2088_v60  ;;  %v3594_v60 = vld [vmem:[#allocation6 + $0x38] sm:$0xff] }
 0x486   : > { %2551 = vmatpush.bf16.msra.mxu2 %v3594_v60  ;;  %2601 = vmatpush.bf16.msra.mxu3 %v3601_v11  ;;  %v4805_v60 = vld [vmem:[#allocation9_spill] sm:$0xff]  ;;  %v4806_v11 = vld [vmem:[#allocation36_spill] sm:$0xff] }
 0x489   : > { %2199 = vmatpush.bf16.msra.mxu1 %v2086_v9 }
 0x48a   : > { %2552 = vmatpush.bf16.msra.mxu2 %v3593_v13 }
 0x48d   : > { %2200 = vmatpush.bf16.msra.mxu1 %v2084_v26 }
 0x48e   : > { %2553 = vmatpush.bf16.msra.mxu2 %v3592_v0 }
 0x491   : > { %2201 = vmatpush.bf16.msra.mxu1 %v2082_v22 }
 0x494   : > { %2202 = vmatmul.bf16.vlgmr.msra.gmra.mxu1 %v4434_v42  ;;  %v3600_v42 = vld [vmem:[#allocation6 + $0x68] sm:$0xff] }
 0x495   : > { %2602 = vmatpush.bf16.msra.mxu3 %v3600_v42 }
 0x499   : > { %2603 = vmatpush.bf16.msra.mxu3 %v3599_v4 }
 0x4a4   : > { %2207 = vmatmul.bf16.gmra.mxu1 %v4448_v52  ;;  %v2154_v52 = vpop.f32.mrf.mxu0 }
 0x4a5   : > { %v2243_v55 = vadd.f32 %v2154_v52, %v4801_v39 }
 0x4a7   : > { %v2275_v59 = vmax.f32 %v2243_v55, 0.0 }
 0x4ac   : > { %v2156_v40 = vpop.f32.mrf.mxu0 }
 0x4b4   : > { %2212 = vmatmul.bf16.gmra.mxu1 %v4462_v14  ;;  %v3591_v14 = vld [vmem:[#allocation6 + $0x20] sm:$0xff]  ;;  %v2159_v44 = vpop.f32.mrf.mxu0 }
 0x4b5   : > { %2554 = vmatpush.bf16.msra.mxu2 %v3591_v14  ;;  %v2247_v10 = vadd.f32 %v2159_v44, %v4804_v56  ;;  %v377_v44 = vld [vmem:[#allocation4 + $0x50] sm:$0xff] }
 0x4b7   : > { %v2279_v24 = vmax.f32 %v2247_v10, 0.0 }
 0x4c4   : > { %2217 = vmatmul.bf16.gmra.mxu1 %v4476_v36  ;;  %v3590_v36 = vld [vmem:[#allocation6 + $0x18] sm:$0xff] }
 0x4c5   : > { %2555 = vmatpush.bf16.msra.mxu2 %v3590_v36 }
 0x4d4   : > { %2222 = vmatmul.bf16.gmra.mxu1 %v4490_v34  ;;  %v3598_v34 = vld [vmem:[#allocation6 + $0x58] sm:$0xff] }
 0x4d5   : > { %2604 = vmatpush.bf16.msra.mxu3 %v3598_v34 }
 0x4d9   : > { %2605 = vmatpush.bf16.msra.mxu3 %v3597_v32 }
 0x4dd   : > { %2606 = vmatpush.bf16.msra.mxu3 %v3596_v33 }
 0x4e1   : > { %2607 = vmatpush.bf16.msra.mxu3 %v3595_v28 }
 0x4e4   : > { %2227 = vmatmul.bf16.gmra.mxu1 %v4503_v6  ;;  %v3589_v6 = vld [vmem:[#allocation6 + $0x10] sm:$0xff] }
 0x4e5   : > { %2556 = vmatpush.bf16.msra.mxu2 %v3589_v6 }
 0x4e9   : > { %2557 = vmatpush.bf16.msra.mxu2 %v3588_v15 }
 0x4ed   : > { %2558 = vmatpush.bf16.msra.mxu2 %v3587_v48 }
 0x4f4   : > { %2232 = vmatmul.bf16.gmra.mxu1 %v4515_v16  ;;  %v2161_v16 = vpop.f32.mrf.mxu0 }
 0x4fc   : > { %v2164_v3 = vpop.f32.mrf.mxu0 }
 0x504   : > { %2237 = vmatmul.bf16.gmra.mxu1 %v4529_v29  ;;  %v1646_v29 = vadd.f32 %v4803_v31, %v1047_v30  ;;  %v2166_v1 = vpop.f32.mrf.mxu0 }
 0x506   : > { %v2245_v49 = vadd.f32 %v2156_v40, %v1646_v29 }
 0x508   : > { %v2277_v63 = vmax.f32 %v2245_v49, 0.0 }
 0x50c   : > { %v2169_v36 = vpop.f32.mrf.mxu0 }
 0x511   : > { %v2203_v2 = vpop.f32.mrf.mxu1 }
 0x512   : > { %v2244_v41 = vadd.f32 %v2203_v2, %v4439_v18  ;;  %v4808_v2 = vld [vmem:[#allocation10_spill] sm:$0xff] }
 0x514   : > { %v2276_v17 = vmax.f32 %v2244_v41, 0.0  ;;  %v2171_v30 = vpop.f32.mrf.mxu0 }
 0x516   : > { %v2307_v51 = vpack.c.bf16 %v2276_v17, %v2275_v59  ;;  %v4809_v59 = vld [vmem:[#allocation38_spill] sm:$0xff] }
 0x518   : > { %2323 = vst [vmem:[%s4556_s18] sm:$0xff] %v2307_v51  ;;  %v2391_v12 = vunpack.c.l.b16 %v2307_v51  ;;  %v2392_v61 = vunpack.c.h.b16 %v2307_v51 }
 0x519   : > { %v2205_v47 = vpop.f32.mrf.mxu1 }
 0x51a   : > { %v2246_v18 = vadd.f32 %v2205_v47, %v4443_v7  ;;  %v1051_v7 = vadd.f32 %v4805_v60, %v373_v54 }
 0x51c   : > { %v2278_v53 = vmax.f32 %v2246_v18, 0.0  ;;  %v1650_v0 = vadd.f32 %v4806_v11, %v1051_v7  ;;  %v4810_v18 = vld [vmem:[#allocation39_spill] sm:$0xff] }
 0x51e   : > { %v2308_v62 = vpack.c.bf16 %v2278_v53, %v2277_v63  ;;  %v2249_v52 = vadd.f32 %v2161_v16, %v1650_v0  ;;  %v2255_v63 = vadd.f32 %v2169_v36, %v4810_v18  ;;  %v2174_v53 = vpop.f32.mrf.mxu0 }
 0x520   : > { %2324 = vst [vmem:[%s4556_s18 + $0x8] sm:$0xff] %v2308_v62  ;;  %v2393_v57 = vunpack.c.l.b16 %v2308_v62  ;;  %v2394_v21 = vunpack.c.h.b16 %v2308_v62  ;;  %v2281_v34 = vmax.f32 %v2249_v52, 0.0 }
 0x521   : > { %v2208_v9 = vpop.f32.mrf.mxu1 }
 0x522   : > { %v2423_v45 = vpack.c.b16 %v2393_v57, %v2391_v12  ;;  %v2424_v26 = vpack.c.b16 %v2394_v21, %v2392_v61  ;;  %v2248_v22 = vadd.f32 %v2208_v9, %v4453_v27  ;;  %v4807_v27 = vld [vmem:[#allocation37_spill] sm:$0xff]  ;;  %v381_v61 = vld [vmem:[#allocation4 + $0x70] sm:$0xff]  ;;  %v4811_v9 = vld [vmem:[#allocation12_spill] sm:$0xff] }
 0x523   : > { %v2251_v40 = vadd.f32 %v2164_v3, %v4807_v27  ;;  %v385_v27 = vld [vmem:[#allocation4 + $0x90] sm:$0xff] }
 0x524   : > { %v2280_v13 = vmax.f32 %v2248_v22, 0.0  ;;  %2559 = vmatmul.bf16.vlgmr.msra.gmra.mxu2 %v2423_v45  ;;  %2608 = vmatmul.bf16.vlgmr.msra.gmra.mxu3 %v2424_v26  ;;  %v2287_v45 = vmax.f32 %v2255_v63, 0.0  ;;  %v4812_v22 = vld [vmem:[#allocation40_spill] sm:$0xff] }
 0x525   : > { %v2283_v41 = vmax.f32 %v2251_v40, 0.0 }
 0x526   : > { %v2309_v42 = vpack.c.bf16 %v2280_v13, %v2279_v24  ;;  %v2176_v13 = vpop.f32.mrf.mxu0 }
 0x528   : > { %2325 = vst [vmem:[%s4556_s18 + $0x10] sm:$0xff] %v2309_v42  ;;  %v2395_v15 = vunpack.c.l.b16 %v2309_v42  ;;  %v2396_v48 = vunpack.c.h.b16 %v2309_v42 }
 0x529   : > { %v2210_v14 = vpop.f32.mrf.mxu1 }
 0x52a   : > { %v2250_v4 = vadd.f32 %v2210_v14, %v4457_v8  ;;  %v1055_v8 = vadd.f32 %v4808_v2, %v377_v44  ;;  %v4813_v14 = vld [vmem:[#allocation41_spill] sm:$0xff] }
 0x52c   : > { %v2282_v6 = vmax.f32 %v2250_v4, 0.0  ;;  %v1654_v17 = vadd.f32 %v4809_v59, %v1055_v8  ;;  %v2259_v4 = vadd.f32 %v2174_v53, %v4813_v14  ;;  %v4816_v8 = vld [vmem:[#allocation42_spill] sm:$0xff] }
 0x52e   : > { %v2310_v32 = vpack.c.bf16 %v2282_v6, %v2281_v34  ;;  %v2253_v29 = vadd.f32 %v2166_v1, %v1654_v17  ;;  %v2179_v44 = vpop.f32.mrf.mxu0 }
 0x530   : > { %2326 = vst [vmem:[%s4556_s18 + $0x18] sm:$0xff] %v2310_v32  ;;  %v2397_v33 = vunpack.c.l.b16 %v2310_v32  ;;  %v2398_v28 = vunpack.c.h.b16 %v2310_v32  ;;  %v2285_v49 = vmax.f32 %v2253_v29, 0.0 }
 0x531   : > { %v2213_v39 = vpop.f32.mrf.mxu1 }
 0x532   : > { %v2252_v16 = vadd.f32 %v2213_v39, %v4467_v23  ;;  %v2425_v55 = vpack.c.b16 %v2397_v33, %v2395_v15  ;;  %v2426_v20 = vpack.c.b16 %v2398_v28, %v2396_v48  ;;  %v386_v28 = vld [vmem:[#allocation4 + $0x98] sm:$0xff] }
 0x534   : > { %v2284_v35 = vmax.f32 %v2252_v16, 0.0  ;;  %2564 = vmatmul.bf16.gmra.mxu2 %v2425_v55  ;;  %2613 = vmatmul.bf16.gmra.mxu3 %v2426_v20  ;;  %v2291_v16 = vmax.f32 %v2259_v4, 0.0  ;;  %v4815_v20 = vld [vmem:[#allocation16_spill] sm:$0xff] }
 0x535   : > { %v1064_v2 = vadd.f32 %v4815_v20, %v386_v28 }
 0x536   : > { %v2311_v31 = vpack.c.bf16 %v2284_v35, %v2283_v41 }
 0x538   : > { %2327 = vst [vmem:[%s4556_s18 + $0x20] sm:$0xff] %v2311_v31  ;;  %v2399_v62 = vunpack.c.l.b16 %v2311_v31  ;;  %v2400_v10 = vunpack.c.h.b16 %v2311_v31 }
 0x539   : > { %v2215_v51 = vpop.f32.mrf.mxu1 }
 0x53a   : > { %v2254_v3 = vadd.f32 %v2215_v51, %v4471_v43  ;;  %v1059_v43 = vadd.f32 %v4811_v9, %v381_v61  ;;  %v2181_v51 = vpop.f32.mrf.mxu0  ;;  %v390_v61 = vld [vmem:[#allocation4 + $0xb8] sm:$0xff]  ;;  %v4819_v9 = vld [vmem:[#allocation26_spill] sm:$0xff] }
 0x53c   : > { %v2286_v23 = vmax.f32 %v2254_v3, 0.0  ;;  %v1658_v60 = vadd.f32 %v4812_v22, %v1059_v43  ;;  %v1068_v43 = vadd.f32 %v4819_v9, %v390_v61 }
 0x53e   : > { %v2312_v47 = vpack.c.bf16 %v2286_v23, %v2285_v49  ;;  %v2257_v24 = vadd.f32 %v2171_v30, %v1658_v60  ;;  %v1663_v30 = vadd.f32 %v4498_v50, %v1064_v2  ;;  %v4817_v49 = vld [vmem:[#allocation43_spill] sm:$0xff] }
 0x53f   : > { %v2263_v23 = vadd.f32 %v2179_v44, %v4817_v49 }
 0x540   : > { %2328 = vst [vmem:[%s4556_s18 + $0x28] sm:$0xff] %v2312_v47  ;;  %v2401_v56 = vunpack.c.l.b16 %v2312_v47  ;;  %v2402_v12 = vunpack.c.h.b16 %v2312_v47  ;;  %v2289_v42 = vmax.f32 %v2257_v24, 0.0 }
 0x541   : > { %v2218_v57 = vpop.f32.mrf.mxu1 }
 0x542   : > { %v2256_v21 = vadd.f32 %v2218_v57, %v4481_v19  ;;  %v2427_v54 = vpack.c.b16 %v2401_v56, %v2399_v62  ;;  %v2428_v1 = vpack.c.b16 %v2402_v12, %v2400_v10  ;;  %v389_v62 = vld [vmem:[#allocation4 + $0xb0] sm:$0xff]  ;;  %v2184_v60 = vpop.f32.mrf.mxu0 }
 0x543   : > { %v4818_v57 = vld [vmem:[#allocation19_spill] sm:$0xff] }
 0x544   : > { %v2288_v26 = vmax.f32 %v2256_v21, 0.0  ;;  %2569 = vmatmul.bf16.gmra.mxu2 %v2427_v54  ;;  %2618 = vmatmul.bf16.gmra.mxu3 %v2428_v1  ;;  %v1067_v21 = vadd.f32 %v4818_v57, %v389_v62  ;;  %v2295_v54 = vmax.f32 %v2263_v23, 0.0 }
 0x546   : > { %v2313_v7 = vpack.c.bf16 %v2288_v26, %v2287_v45  ;;  %v4820_v45 = vld [vmem:[#allocation44_spill] sm:$0xff] }
 0x547   : > { %v1666_v26 = vadd.f32 %v4820_v45, %v1067_v21  ;;  %v4828_v21 = vld [vmem:[#allocation32_spill] sm:$0xff]  ;;  %v4830_v45 = vld [vmem:[#allocation13_spill] sm:$0xff] }
 0x548   : > { %2329 = vst [vmem:[%s4556_s18 + $0x30] sm:$0xff] %v2313_v7  ;;  %v2403_v36 = vunpack.c.l.b16 %v2313_v7  ;;  %v2404_v6 = vunpack.c.h.b16 %v2313_v7  ;;  %v1667_v7 = vadd.f32 %v4510_v5, %v1068_v43 }
 0x549   : > { %v2220_v11 = vpop.f32.mrf.mxu1  ;;  %v2265_v24 = vadd.f32 %v2181_v51, %v1666_v26 }
 0x54a   : > { %v2258_v0 = vadd.f32 %v2220_v11, %v4485_v38  ;;  %v4814_v38 = vld [vmem:[#allocation15_spill] sm:$0xff] }
 0x54b   : > { %v1063_v39 = vadd.f32 %v4814_v38, %v385_v27  ;;  %v2297_v11 = vmax.f32 %v2265_v24, 0.0 }
 0x54c   : > { %v2290_v19 = vmax.f32 %v2258_v0, 0.0 }
 0x54d   : > { %v1662_v41 = vadd.f32 %v4816_v8, %v1063_v39  ;;  %v4823_v39 = vld [vmem:[#allocation29_spill] sm:$0xff] }
 0x54e   : > { %v2314_v52 = vpack.c.bf16 %v2290_v19, %v2289_v42  ;;  %v4821_v19 = vld [vmem:[#allocation45_spill] sm:$0xff] }
 0x54f   : > { %v2261_v59 = vadd.f32 %v2176_v13, %v1662_v41 }
 0x550   : > { %2330 = vst [vmem:[%s4556_s18 + $0x38] sm:$0xff] %v2314_v52  ;;  %v2405_v34 = vunpack.c.l.b16 %v2314_v52  ;;  %v2406_v32 = vunpack.c.h.b16 %v2314_v52  ;;  %v2267_v52 = vadd.f32 %v2184_v60, %v4821_v19 }
 0x551   : > { %v2223_v40 = vpop.f32.mrf.mxu1  ;;  %v2293_v31 = vmax.f32 %v2261_v59, 0.0 }
 0x552   : > { %v2260_v15 = vadd.f32 %v2223_v40, %v4495_v58  ;;  %v2429_v33 = vpack.c.b16 %v2405_v34, %v2403_v36  ;;  %v2430_v48 = vpack.c.b16 %v2406_v32, %v2404_v6  ;;  %v393_v6 = vld [vmem:[#allocation4 + $0xd0] sm:$0xff]  ;;  %v2186_v32 = vpop.f32.mrf.mxu0  ;;  %v2299_v44 = vmax.f32 %v2267_v52, 0.0 }
 0x554   : > { %v2292_v55 = vmax.f32 %v2260_v15, 0.0  ;;  %2574 = vmatmul.bf16.gmra.mxu2 %v2429_v33  ;;  %2623 = vmatmul.bf16.gmra.mxu3 %v2430_v48  ;;  %v394_v33 = vld [vmem:[#allocation4 + $0xd8] sm:$0xff] }
 0x555   : > { %v4822_v48 = vld [vmem:[#allocation28_spill] sm:$0xff] }
 0x556   : > { %v2315_v35 = vpack.c.bf16 %v2292_v55, %v2291_v16  ;;  %v1071_v28 = vadd.f32 %v4822_v48, %v393_v6  ;;  %v1072_v16 = vadd.f32 %v4823_v39, %v394_v33  ;;  %v4824_v55 = vld [vmem:[#allocation46_spill] sm:$0xff] }
 0x558   : > { %2331 = vst [vmem:[%s4556_s18 + $0x40] sm:$0xff] %v2315_v35  ;;  %v2407_v47 = vunpack.c.l.b16 %v2315_v35  ;;  %v2408_v63 = vunpack.c.h.b16 %v2315_v35  ;;  %v1670_v20 = vadd.f32 %v4824_v55, %v1071_v28  ;;  %v1671_v8 = vadd.f32 %v4524_v46, %v1072_v16 }
 0x559   : > { %v2225_v58 = vpop.f32.mrf.mxu1 }
 0x55a   : > { %v2262_v17 = vadd.f32 %v2225_v58, %v1663_v30  ;;  %v2269_v41 = vadd.f32 %v2186_v32, %v1670_v20  ;;  %v2189_v30 = vpop.f32.mrf.mxu0 }
 0x55c   : > { %v2294_v29 = vmax.f32 %v2262_v17, 0.0  ;;  %v2301_v59 = vmax.f32 %v2269_v41, 0.0 }
 0x55e   : > { %v2316_v3 = vpack.c.bf16 %v2294_v29, %v2293_v31  ;;  %v4825_v31 = vld [vmem:[#allocation47_spill] sm:$0xff] }
 0x55f   : > { %v2271_v29 = vadd.f32 %v2189_v30, %v4825_v31 }
 0x560   : > { %2332 = vst [vmem:[%s4556_s18 + $0x48] sm:$0xff] %v2316_v3  ;;  %v2409_v18 = vunpack.c.l.b16 %v2316_v3  ;;  %v2410_v53 = vunpack.c.h.b16 %v2316_v3 }
 0x561   : > { %v2228_v56 = vpop.f32.mrf.mxu1 }
 0x562   : > { %v2264_v50 = vadd.f32 %v2228_v56, %v4508_v37  ;;  %v2431_v10 = vpack.c.b16 %v2409_v18, %v2407_v47  ;;  %v2432_v12 = vpack.c.b16 %v2410_v53, %v2408_v63  ;;  %v397_v47 = vld [vmem:[#allocation4 + $0xf0] sm:$0xff]  ;;  %v4826_v63 = vld [vmem:[#allocation21_spill] sm:$0xff]  ;;  %v398_v56 = vld [vmem:[#allocation4 + $0xf8] sm:$0xff]  ;;  %v2191_v57 = vpop.f32.mrf.mxu0 }
 0x564   : > { %v2296_v1 = vmax.f32 %v2264_v50, 0.0  ;;  %2579 = vmatmul.bf16.gmra.mxu2 %v2431_v10  ;;  %2628 = vmatmul.bf16.gmra.mxu3 %v2432_v12  ;;  %v4827_v50 = vld [vmem:[#allocation31_spill] sm:$0xff]  ;;  %v2303_v12 = vmax.f32 %v2271_v29, 0.0 }
 0x565   : > { %v1075_v10 = vadd.f32 %v4827_v50, %v397_v47 }
 0x566   : > { %v2317_v22 = vpack.c.bf16 %v2296_v1, %v2295_v54  ;;  %v1076_v54 = vadd.f32 %v4828_v21, %v398_v56  ;;  %v4829_v1 = vld [vmem:[#allocation11_spill] sm:$0xff] }
 0x567   : > { %v1674_v9 = vadd.f32 %v4829_v1, %v1075_v10 }
 0x568   : > { %2333 = vst [vmem:[%s4556_s18 + $0x50] sm:$0xff] %v2317_v22  ;;  %v2411_v14 = vunpack.c.l.b16 %v2317_v22  ;;  %v2412_v36 = vunpack.c.h.b16 %v2317_v22  ;;  %v1675_v26 = vadd.f32 %v4830_v45, %v1076_v54 }
 0x569   : > { %v2230_v37 = vpop.f32.mrf.mxu1  ;;  %v2273_v22 = vadd.f32 %v2191_v57, %v1674_v9 }
 0x56a   : > { %v2266_v13 = vadd.f32 %v2230_v37, %v1667_v7 }
 0x56b   : > { %v2305_v24 = vmax.f32 %v2273_v22, 0.0 }
 0x56c   : > { %v2298_v0 = vmax.f32 %v2266_v13, 0.0 }
 0x56e   : > { %v2318_v42 = vpack.c.bf16 %v2298_v0, %v2297_v11 }
 0x570   : > { %2334 = vst [vmem:[%s4556_s18 + $0x58] sm:$0xff] %v2318_v42  ;;  %v2413_v4 = vunpack.c.l.b16 %v2318_v42  ;;  %v2414_v34 = vunpack.c.h.b16 %v2318_v42 }
 0x571   : > { %v2233_v27 = vpop.f32.mrf.mxu1 }
 0x572   : > { %v2268_v5 = vadd.f32 %v2233_v27, %v4522_v25  ;;  %v2433_v40 = vpack.c.b16 %v2413_v4, %v2411_v14  ;;  %v2434_v15 = vpack.c.b16 %v2414_v34, %v2412_v36  ;;  %v4618_v4 = vld [vmem:[%s4666_s5] ss:$0 sm:$0xff] }
 0x574   : > { %v2300_v38 = vmax.f32 %v2268_v5, 0.0  ;;  %2584 = vmatmul.bf16.gmra.mxu2 %v2433_v40  ;;  %2633 = vmatmul.bf16.gmra.mxu3 %v2434_v15 }
 0x576   : > { %v2319_v2 = vpack.c.bf16 %v2300_v38, %v2299_v44 }
 0x578   : > { %2335 = vst [vmem:[%s4556_s18 + $0x60] sm:$0xff] %v2319_v2  ;;  %v2415_v51 = vunpack.c.l.b16 %v2319_v2  ;;  %v2416_v49 = vunpack.c.h.b16 %v2319_v2 }
 0x579   : > { %v2235_v25 = vpop.f32.mrf.mxu1 }
 0x57a   : > { %v2270_v35 = vadd.f32 %v2235_v25, %v1671_v8 }
 0x57c   : > { %v2302_v58 = vmax.f32 %v2270_v35, 0.0 }
 0x57e   : > { %v2320_v17 = vpack.c.bf16 %v2302_v58, %v2301_v59 }
 0x580   : > { %2336 = vst [vmem:[%s4556_s18 + $0x68] sm:$0xff] %v2320_v17  ;;  %v2417_v3 = vunpack.c.l.b16 %v2320_v17  ;;  %v2418_v23 = vunpack.c.h.b16 %v2320_v17 }
 0x581   : > { %v2238_v18 = vpop.f32.mrf.mxu1 }
 0x582   : > { %v2272_v46 = vadd.f32 %v2238_v18, %v4826_v63  ;;  %v2435_v53 = vpack.c.b16 %v2417_v3, %v2415_v51  ;;  %v2436_v62 = vpack.c.b16 %v2418_v23, %v2416_v49 }
 0x584   : > { %v2304_v61 = vmax.f32 %v2272_v46, 0.0  ;;  %2589 = vmatmul.bf16.gmra.mxu2 %v2435_v53  ;;  %2638 = vmatmul.bf16.gmra.mxu3 %v2436_v62 }
 0x586   : > { %v2321_v43 = vpack.c.bf16 %v2304_v61, %v2303_v12 }
 0x588   : > { %2337 = vst [vmem:[%s4556_s18 + $0x70] sm:$0xff] %v2321_v43  ;;  %v2419_v11 = vunpack.c.l.b16 %v2321_v43  ;;  %v2420_v42 = vunpack.c.h.b16 %v2321_v43 }
 0x589   : > { %v2240_v60 = vpop.f32.mrf.mxu1 }
 0x58a   : > { %v2274_v7 = vadd.f32 %v2240_v60, %v1675_v26 }
 0x58c   : > { %v2306_v37 = vmax.f32 %v2274_v7, 0.0 }
 0x58e   : > { %v2322_v13 = vpack.c.bf16 %v2306_v37, %v2305_v24 }
 0x590   : > { %2338 = vst [vmem:[%s4556_s18 + $0x78] sm:$0xff] %v2322_v13  ;;  %v2421_v0 = vunpack.c.l.b16 %v2322_v13  ;;  %v2422_v19 = vunpack.c.h.b16 %v2322_v13 }
 0x592   : > { %v2437_v52 = vpack.c.b16 %v2421_v0, %v2419_v11  ;;  %v2438_v14 = vpack.c.b16 %v2422_v19, %v2420_v42 }
 0x594   : > { %2594 = vmatmul.bf16.gmra.mxu2 %v2437_v52  ;;  %2643 = vmatmul.bf16.gmra.mxu3 %v2438_v14 }
 0x5a7   : > { %v2560_v36 = vpop.f32.mrf.mxu2  ;;  %v2609_v34 = vpop.f32.mrf.mxu3 }
 0x5a8   : > { %v2561_v6 = vadd.f32 %v4618_v4, %v2560_v36 }
 0x5aa   : > { %v2610_v32 = vadd.f32 %v2609_v34, %v2561_v6 }
 0x5ac   : > { %2649 = vst [vmem:[%s4625_s23] sm:$0xff] %v2610_v32 }
 0x5af   : > { %v2562_v27 = vpop.f32.mrf.mxu2  ;;  %v2611_v5 = vpop.f32.mrf.mxu3 }
 0x5b0   : > { %v2563_v40 = vadd.f32 %v4618_v4, %v2562_v27 }
 0x5b2   : > { %v2612_v15 = vadd.f32 %v2611_v5, %v2563_v40 }
 0x5b4   : > { %2650 = vst [vmem:[%s4625_s23 + $0x8] sm:$0xff] %v2612_v15 }
 0x5b7   : > { %v2565_v33 = vpop.f32.mrf.mxu2  ;;  %v2614_v48 = vpop.f32.mrf.mxu3 }
 0x5b8   : > { %v2566_v28 = vadd.f32 %v4618_v4, %v2565_v33 }
 0x5ba   : > { %v2615_v44 = vadd.f32 %v2614_v48, %v2566_v28 }
 0x5bc   : > { %2651 = vst [vmem:[%s4625_s23 + $0x10] sm:$0xff] %v2615_v44 }
 0x5bf   : > { %v2567_v38 = vpop.f32.mrf.mxu2  ;;  %v2616_v39 = vpop.f32.mrf.mxu3 }
 0x5c0   : > { %v2568_v16 = vadd.f32 %v4618_v4, %v2567_v38 }
 0x5c2   : > { %v2617_v55 = vadd.f32 %v2616_v39, %v2568_v16 }
 0x5c4   : > { %2652 = vst [vmem:[%s4625_s23 + $0x18] sm:$0xff] %v2617_v55 }
 0x5c7   : > { %v2570_v20 = vpop.f32.mrf.mxu2  ;;  %v2619_v2 = vpop.f32.mrf.mxu3 }
 0x5c8   : > { %v2571_v8 = vadd.f32 %v4618_v4, %v2570_v20 }
 0x5ca   : > { %v2620_v41 = vadd.f32 %v2619_v2, %v2571_v8 }
 0x5cc   : > { %2653 = vst [vmem:[%s4625_s23 + $0x20] sm:$0xff] %v2620_v41 }
 0x5cf   : > { %v2572_v25 = vpop.f32.mrf.mxu2  ;;  %v2621_v35 = vpop.f32.mrf.mxu3 }
 0x5d0   : > { %v2573_v30 = vadd.f32 %v4618_v4, %v2572_v25 }
 0x5d2   : > { %v2622_v59 = vadd.f32 %v2621_v35, %v2573_v30 }
 0x5d4   : > { %2654 = vst [vmem:[%s4625_s23 + $0x28] sm:$0xff] %v2622_v59 }
 0x5d7   : > { %v2575_v58 = vpop.f32.mrf.mxu2  ;;  %v2624_v17 = vpop.f32.mrf.mxu3 }
 0x5d8   : > { %v2576_v31 = vadd.f32 %v4618_v4, %v2575_v58 }
 0x5da   : > { %v2625_v29 = vadd.f32 %v2624_v17, %v2576_v31 }
 0x5dc   : > { %2655 = vst [vmem:[%s4625_s23 + $0x30] sm:$0xff] %v2625_v29 }
 0x5df   : > { %v2577_v51 = vpop.f32.mrf.mxu2  ;;  %v2626_v3 = vpop.f32.mrf.mxu3 }
 0x5e0   : > { %v2578_v49 = vadd.f32 %v4618_v4, %v2577_v51 }
 0x5e2   : > { %v2627_v23 = vadd.f32 %v2626_v3, %v2578_v49 }
 0x5e4   : > { %2656 = vst [vmem:[%s4625_s23 + $0x38] sm:$0xff] %v2627_v23 }
 0x5e7   : > { %v2580_v47 = vpop.f32.mrf.mxu2  ;;  %v2629_v18 = vpop.f32.mrf.mxu3 }
 0x5e8   : > { %v2581_v63 = vadd.f32 %v4618_v4, %v2580_v47 }
 0x5ea   : > { %v2630_v46 = vadd.f32 %v2629_v18, %v2581_v63 }
 0x5ec   : > { %2657 = vst [vmem:[%s4625_s23 + $0x40] sm:$0xff] %v2630_v46 }
 0x5ef   : > { %v2582_v53 = vpop.f32.mrf.mxu2  ;;  %v2631_v62 = vpop.f32.mrf.mxu3 }
 0x5f0   : > { %v2583_v56 = vadd.f32 %v4618_v4, %v2582_v53 }
 0x5f2   : > { %v2632_v50 = vadd.f32 %v2631_v62, %v2583_v56 }
 0x5f4   : > { %2658 = vst [vmem:[%s4625_s23 + $0x48] sm:$0xff] %v2632_v50 }
 0x5f7   : > { %v2585_v10 = vpop.f32.mrf.mxu2  ;;  %v2634_v12 = vpop.f32.mrf.mxu3 }
 0x5f8   : > { %v2586_v61 = vadd.f32 %v4618_v4, %v2585_v10 }
 0x5fa   : > { %v2635_v57 = vadd.f32 %v2634_v12, %v2586_v61 }
 0x5fc   : > { %2659 = vst [vmem:[%s4625_s23 + $0x50] sm:$0xff] %v2635_v57 }
 0x5ff   : > { %v2587_v21 = vpop.f32.mrf.mxu2  ;;  %v2636_v54 = vpop.f32.mrf.mxu3 }
 0x600   : > { %v2588_v1 = vadd.f32 %v4618_v4, %v2587_v21 }
 0x602   : > { %v2637_v9 = vadd.f32 %v2636_v54, %v2588_v1 }
 0x604   : > { %2660 = vst [vmem:[%s4625_s23 + $0x58] sm:$0xff] %v2637_v9 }
 0x607   : > { %v2590_v43 = vpop.f32.mrf.mxu2  ;;  %v2639_v45 = vpop.f32.mrf.mxu3 }
 0x608   : > { %v2591_v26 = vadd.f32 %v4618_v4, %v2590_v43 }
 0x60a   : > { %v2640_v22 = vadd.f32 %v2639_v45, %v2591_v26 }
 0x60c   : > { %2661 = vst [vmem:[%s4625_s23 + $0x60] sm:$0xff] %v2640_v22 }
 0x60f   : > { %v2592_v60 = vpop.f32.mrf.mxu2  ;;  %v2641_v7 = vpop.f32.mrf.mxu3 }
 0x610   : > { %v2593_v24 = vadd.f32 %v4618_v4, %v2592_v60 }
 0x612   : > { %v2642_v37 = vadd.f32 %v2641_v7, %v2593_v24 }
 0x614   : > { %2662 = vst [vmem:[%s4625_s23 + $0x68] sm:$0xff] %v2642_v37 }
 0x617   : > { %v2595_v13 = vpop.f32.mrf.mxu2  ;;  %v2644_v11 = vpop.f32.mrf.mxu3 }
 0x618   : > { %v2596_v0 = vadd.f32 %v4618_v4, %v2595_v13 }
 0x61a   : > { %v2645_v42 = vadd.f32 %v2644_v11, %v2596_v0 }
 0x61c   : > { %2663 = vst [vmem:[%s4625_s23 + $0x70] sm:$0xff] %v2645_v42 }
 0x61f   : > { %v2597_v19 = vpop.f32.mrf.mxu2  ;;  %v2646_v14 = vpop.f32.mrf.mxu3 }
 0x620   : > { %v2598_v52 = vadd.f32 %v4618_v4, %v2597_v19 }
 0x622   : > { %v2647_v36 = vadd.f32 %v2646_v14, %v2598_v52 }
 0x624   : > { %2664 = vst [vmem:[%s4625_s23 + $0x78] sm:$0xff] %v2647_v36 }
 0x625 PF: > { %s20_s24 = sadd.s32 1, %s3753_s24  }
 0x626   : > { %p17_p7 = scmp.ge.s32.totalorder %s20_s24, 4  }
 0x628   :  { %19 = sbr.rel (!%p17_p7) target bundleno = 2 (0x2), region = 101 }
 0x62d   :  { %2706 = vsyncpa [#allocation3], 1 }
 0x62e   :  { %2708 = vsyncpa [#allocation3 + $0x1], 1 }
 0x62f   :  { %2709 = vsyncpa [#allocation5], 1 }

</bundles_post_ra>
